<compile_context>
chip_gen: v6e
topology: v6e:2x2x1
jax: 0.10.0
libtpu: 0.0.40
codegen_flags: <defaults>
</compile_context>

<pallas_src>
import numpy as np

import jax
import jax.numpy as jnp
from jax import lax
from jax.experimental import pallas as pl
from jax.experimental.pallas import tpu as pltpu


_PREC = lax.Precision.HIGHEST


def _tap_masks(n, h, w):
    """(9, 1, n*h*w) f32 validity masks, one per 3x3 tap, for the flat
    lane-concatenated batch layout (image-major, row-major within an image).
    mask[t, 0, p] == 1 iff cell p may read its (dr, dc) = (t//3 - 1, t%3 - 1)
    neighbour inside the same image; zero-padding semantics and cross-image
    roll wrap-around are both handled by the mask."""
    q = h * w
    idx = np.arange(n * q) % q
    rows, cols = idx // w, idx % w
    m = np.zeros((9, 1, n * q), np.float32)
    for kh in range(3):
        for kw in range(3):
            dr, dc = kh - 1, kw - 1
            ok = ((rows + dr >= 0) & (rows + dr < h) &
                  (cols + dc >= 0) & (cols + dc < w))
            m[kh * 3 + kw, 0] = ok.astype(np.float32)
    return jnp.asarray(m)


def _select_matrix(n, h_in, w_in, stride, h_out, w_out):
    """(n*h_in*w_in, n*h_out*w_out) 0/1 matrix (block-diagonal over the batch)
    picking the stride-strided cells of a dense stride-1 conv output:
    out[ro, co] = z[stride*ro, stride*co] per image.  Interior-only — no
    re-embedding into a padded grid."""
    q_in, q_out = h_in * w_in, h_out * w_out
    s = np.zeros((n * q_in, n * q_out), np.float32)
    for img in range(n):
        for ro in range(h_out):
            for co in range(w_out):
                src = img * q_in + (stride * ro) * w_in + (stride * co)
                dst = img * q_out + ro * w_out + co
                s[src, dst] = 1.0
    return jnp.asarray(s)


def _make_fused_kernel(statics, n_imgs):
    """statics: tuple of (h_in, w_in, stride, h_out, w_out) per scale block."""
    n_blocks = len(statics)

    def kernel(*refs):
        x_ref = refs[0]
        pos = 1
        blocks = []
        for (_, _, stride, _, _) in statics:
            if stride == 1:
                blocks.append((refs[pos], refs[pos + 1], refs[pos + 2], None))
                pos += 3
            else:
                blocks.append((refs[pos], refs[pos + 1], refs[pos + 2], refs[pos + 3]))
                pos += 4
        out_refs = refs[pos:pos + n_blocks]

        # Lane-fuse the batch: (N, C_in, Q0) -> (C_in, N*Q0); Q0 is a multiple
        # of 128 so the concat is lane-tile aligned (cheap).
        a = jnp.concatenate([x_ref[i] for i in range(n_imgs)], axis=-1)

        for bi, (h, w, stride, h_out, w_out) in enumerate(statics):
            w_ref, b_ref, m_ref, s_ref = blocks[bi]
            nq = n_imgs * h * w

            # 3x3 conv as 9 accumulating tap matmuls on rolled+masked inputs.
            acc = None
            for kh in range(3):
                for kw in range(3):
                    dr, dc = kh - 1, kw - 1
                    t = kh * 3 + kw
                    d = dr * w + dc
                    if (dr, dc) == (0, 0):
                        src = a
                    else:
                        src = pltpu.roll(a, shift=(-d) % nq, axis=1)
                        src = src * m_ref[t]          # zero-pad / wrap handling
                    contrib = jnp.dot(w_ref[t], src,
                                      preferred_element_type=jnp.float32,
                                      precision=_PREC)
                    acc = contrib if acc is None else acc + contrib

            # Folded-BN bias + ReLU.
            acc = jnp.maximum(acc + b_ref[...], 0.0)

            # Stride-2 blocks: interior-only strided selection via one matmul.
            if s_ref is not None:
                acc = jnp.dot(acc, s_ref[...],
                              preferred_element_type=jnp.float32,
                              precision=_PREC)

            # Store per image so the wrapper only needs free reshapes.
            q_out = h_out * w_out
            for i in range(n_imgs):
                out_refs[bi][i] = acc[:, i * q_out:(i + 1) * q_out].astype(
                    out_refs[bi].dtype)

            a = acc   # interior flat layout is already the next block's input

    return kernel


def init_msd_init_layer_params(key, in_channels, out_channels, eps=1e-5):
    """Deterministic synthetic parameters.  Eval-mode BatchNorm is folded: its
    scale goes into the conv weights; only a per-channel bias remains.  Kernel
    weight layout is (9, C_out, C_in) — one (C_out, C_in) slab per tap."""
    params = []
    c_in = in_channels
    for c_out in out_channels:
        key, k_w, k_g, k_b, k_m, k_v = jax.random.split(key, 6)
        w = 0.1 * jax.random.normal(k_w, (3, 3, c_in, c_out), jnp.float32)   # HWIO
        gamma = 1.0 + 0.1 * jax.random.normal(k_g, (c_out,), jnp.float32)
        beta = 0.1 * jax.random.normal(k_b, (c_out,), jnp.float32)
        running_mean = 0.1 * jax.random.normal(k_m, (c_out,), jnp.float32)
        running_var = 1.0 + 0.1 * jax.random.uniform(k_v, (c_out,), jnp.float32)
        scale = gamma / jnp.sqrt(running_var + eps)
        bias = beta - running_mean * scale
        w9 = jnp.transpose(w * scale, (0, 1, 3, 2)).reshape(9, c_out, c_in)
        params.append(dict(w=w, scale=scale, bias=bias,
                           w9=w9, bias2d=bias.reshape(c_out, 1)))
        c_in = c_out
    return params


def cifar10_msd_init_layer(x_nchw, params):
    """Forward pass of CIFAR10MSDInitLayer.  x: NCHW.  Returns a list of NCHW
    arrays, one per scale block (MultiOutputSequential semantics)."""
    n, c_in, h, w = x_nchw.shape
    dtype = x_nchw.dtype

    # Only wrapper-side data movement: a free (metadata-only) reshape.
    x_flat = x_nchw.reshape(n, c_in, h * w)

    kernel_args = [x_flat]
    statics, out_shapes = [], []
    cur_h, cur_w = h, w
    for bi, p in enumerate(params):
        stride = 1 if bi == 0 else 2
        c_out = p["w9"].shape[1]
        h_out = (cur_h - 1) // stride + 1
        w_out = (cur_w - 1) // stride + 1

        kernel_args.append(p["w9"])
        kernel_args.append(p["bias2d"])
        kernel_args.append(_tap_masks(n, cur_h, cur_w))
        if stride != 1:
            kernel_args.append(_select_matrix(n, cur_h, cur_w, stride, h_out, w_out))

        statics.append((cur_h, cur_w, stride, h_out, w_out))
        out_shapes.append(jax.ShapeDtypeStruct((n, c_out, h_out * w_out), dtype))
        cur_h, cur_w = h_out, w_out

    # Single grid step: everything (activations + constants) fits in VMEM
    # (<1 MiB), so whole-array specs and one program minimize fixed overhead.
    outs_flat = pl.pallas_call(
        _make_fused_kernel(tuple(statics), n),
        out_shape=tuple(out_shapes),
    )(*kernel_args)

    # Free reshapes back to NCHW.
    outs = []
    for o, (_, _, _, h_out, w_out) in zip(outs_flat, statics):
        outs.append(o.reshape(n, o.shape[1], h_out, w_out))
    return outs


def _reference(x_nchw, params):
    """Pure-JAX reference (lax conv) for correctness checking."""
    x = jnp.transpose(x_nchw, (0, 2, 3, 1))
    outs = []
    for i, p in enumerate(params):
        stride = 1 if i == 0 else 2
        y = lax.conv_general_dilated(
            x, p["w"], window_strides=(stride, stride),
            padding=((1, 1), (1, 1)),
            dimension_numbers=("NHWC", "HWIO", "NHWC"),
            precision=lax.Precision.HIGHEST)
        y = jnp.maximum(y * p["scale"] + p["bias"], 0.0)
        outs.append(jnp.transpose(y, (0, 3, 1, 2)))
        x = y
    return outs


if __name__ == "__main__":
    key = jax.random.PRNGKey(0)
    k_x, k_p = jax.random.split(key)

    # CIFAR-10 style input at small shapes: N=2, C=3, H=W=16; three scales.
    in_channels = 3
    out_channels = (8, 16, 32)          # stride 1, 2, 2
    x = jax.random.normal(k_x, (2, in_channels, 16, 16), jnp.float32)

    params = init_msd_init_layer_params(k_p, in_channels, out_channels)

    fwd = jax.jit(lambda inp: cifar10_msd_init_layer(inp, params))
    outs = fwd(x)
    outs = [jax.block_until_ready(o) for o in outs]

    refs = _reference(x, params)
    for o, r in zip(outs, refs):
        assert o.shape == r.shape, (o.shape, r.shape)
        assert jnp.allclose(o, r, atol=1e-4, rtol=1e-4), \
            float(jnp.max(jnp.abs(o - r)))

    print("KERNEL_OK")
</pallas_src>

<mosaic_0001>
module attributes {stable_mosaic.version = 11 : i64} {
  func.func @kernel(%arg0: memref<2x3x256xf32, #tpu.memory_space<vmem>>, %arg1: memref<9x8x3xf32, #tpu.memory_space<vmem>>, %arg2: memref<8x1xf32, #tpu.memory_space<vmem>>, %arg3: memref<9x1x512xf32, #tpu.memory_space<vmem>>, %arg4: memref<9x16x8xf32, #tpu.memory_space<vmem>>, %arg5: memref<16x1xf32, #tpu.memory_space<vmem>>, %arg6: memref<9x1x512xf32, #tpu.memory_space<vmem>>, %arg7: memref<512x128xf32, #tpu.memory_space<vmem>>, %arg8: memref<9x32x16xf32, #tpu.memory_space<vmem>>, %arg9: memref<32x1xf32, #tpu.memory_space<vmem>>, %arg10: memref<9x1x128xf32, #tpu.memory_space<vmem>>, %arg11: memref<128x32xf32, #tpu.memory_space<vmem>>, %arg12: memref<2x8x256xf32, #tpu.memory_space<vmem>>, %arg13: memref<2x16x64xf32, #tpu.memory_space<vmem>>, %arg14: memref<2x32x16xf32, #tpu.memory_space<vmem>>) attributes {dimension_semantics = [], scalar_prefetch = 0 : i64, scratch_operands = 0 : i64, tpu.core_type = #tpu.core_type<tc>} {
    %c0 = arith.constant 0 : index
    %c0_0 = arith.constant 0 : index
    %c0_1 = arith.constant 0 : index
    %0 = vector.load %arg0[%c0, %c0_0, %c0_1] : memref<2x3x256xf32, #tpu.memory_space<vmem>>, vector<1x3x256xf32>
    %1 = vector.shape_cast %0 : vector<1x3x256xf32> to vector<3x256xf32>
    %c1 = arith.constant 1 : index
    %c0_2 = arith.constant 0 : index
    %c0_3 = arith.constant 0 : index
    %2 = vector.load %arg0[%c1, %c0_2, %c0_3] : memref<2x3x256xf32, #tpu.memory_space<vmem>>, vector<1x3x256xf32>
    %3 = vector.shape_cast %2 : vector<1x3x256xf32> to vector<3x256xf32>
    %4 = tpu.concatenate %1, %3 in 1 : vector<3x256xf32>, vector<3x256xf32> -> vector<3x512xf32>
    %c17_i32 = arith.constant 17 : i32
    %5 = tpu.dynamic_rotate %4 by %c17_i32 dim 1 : vector<3x512xf32>, i32 -> vector<3x512xf32>
    %c0_4 = arith.constant 0 : index
    %c0_5 = arith.constant 0 : index
    %c0_6 = arith.constant 0 : index
    %6 = vector.load %arg3[%c0_4, %c0_5, %c0_6] : memref<9x1x512xf32, #tpu.memory_space<vmem>>, vector<1x1x512xf32>
    %7 = vector.shape_cast %6 : vector<1x1x512xf32> to vector<1x512xf32>
    %8 = vector.broadcast %7 : vector<1x512xf32> to vector<3x512xf32>
    %9 = arith.mulf %5, %8 : vector<3x512xf32>
    %c0_7 = arith.constant 0 : index
    %c0_8 = arith.constant 0 : index
    %c0_9 = arith.constant 0 : index
    %10 = vector.load %arg1[%c0_7, %c0_8, %c0_9] : memref<9x8x3xf32, #tpu.memory_space<vmem>>, vector<1x8x3xf32>
    %11 = vector.shape_cast %10 : vector<1x8x3xf32> to vector<8x3xf32>
    %cst = arith.constant dense<0.000000e+00> : vector<8x512xf32>
    %12 = tpu.matmul %11, %9, %cst {dimension_numbers = #tpu.dot_dimension_numbers<[1], [0], [0], [1], [0, 0, 1, 1], [], []>, precision = #tpu.contract_precision<fp32>} : vector<8x3xf32>, vector<3x512xf32>, vector<8x512xf32> -> vector<8x512xf32>
    %c16_i32 = arith.constant 16 : i32
    %13 = tpu.dynamic_rotate %4 by %c16_i32 dim 1 : vector<3x512xf32>, i32 -> vector<3x512xf32>
    %c1_10 = arith.constant 1 : index
    %c0_11 = arith.constant 0 : index
    %c0_12 = arith.constant 0 : index
    %14 = vector.load %arg3[%c1_10, %c0_11, %c0_12] : memref<9x1x512xf32, #tpu.memory_space<vmem>>, vector<1x1x512xf32>
    %15 = vector.shape_cast %14 : vector<1x1x512xf32> to vector<1x512xf32>
    %16 = vector.broadcast %15 : vector<1x512xf32> to vector<3x512xf32>
    %17 = arith.mulf %13, %16 : vector<3x512xf32>
    %c1_13 = arith.constant 1 : index
    %c0_14 = arith.constant 0 : index
    %c0_15 = arith.constant 0 : index
    %18 = vector.load %arg1[%c1_13, %c0_14, %c0_15] : memref<9x8x3xf32, #tpu.memory_space<vmem>>, vector<1x8x3xf32>
    %19 = vector.shape_cast %18 : vector<1x8x3xf32> to vector<8x3xf32>
    %cst_16 = arith.constant dense<0.000000e+00> : vector<8x512xf32>
    %20 = tpu.matmul %19, %17, %cst_16 {dimension_numbers = #tpu.dot_dimension_numbers<[1], [0], [0], [1], [0, 0, 1, 1], [], []>, precision = #tpu.contract_precision<fp32>} : vector<8x3xf32>, vector<3x512xf32>, vector<8x512xf32> -> vector<8x512xf32>
    %21 = arith.addf %12, %20 : vector<8x512xf32>
    %c15_i32 = arith.constant 15 : i32
    %22 = tpu.dynamic_rotate %4 by %c15_i32 dim 1 : vector<3x512xf32>, i32 -> vector<3x512xf32>
    %c2 = arith.constant 2 : index
    %c0_17 = arith.constant 0 : index
    %c0_18 = arith.constant 0 : index
    %23 = vector.load %arg3[%c2, %c0_17, %c0_18] : memref<9x1x512xf32, #tpu.memory_space<vmem>>, vector<1x1x512xf32>
    %24 = vector.shape_cast %23 : vector<1x1x512xf32> to vector<1x512xf32>
    %25 = vector.broadcast %24 : vector<1x512xf32> to vector<3x512xf32>
    %26 = arith.mulf %22, %25 : vector<3x512xf32>
    %c2_19 = arith.constant 2 : index
    %c0_20 = arith.constant 0 : index
    %c0_21 = arith.constant 0 : index
    %27 = vector.load %arg1[%c2_19, %c0_20, %c0_21] : memref<9x8x3xf32, #tpu.memory_space<vmem>>, vector<1x8x3xf32>
    %28 = vector.shape_cast %27 : vector<1x8x3xf32> to vector<8x3xf32>
    %cst_22 = arith.constant dense<0.000000e+00> : vector<8x512xf32>
    %29 = tpu.matmul %28, %26, %cst_22 {dimension_numbers = #tpu.dot_dimension_numbers<[1], [0], [0], [1], [0, 0, 1, 1], [], []>, precision = #tpu.contract_precision<fp32>} : vector<8x3xf32>, vector<3x512xf32>, vector<8x512xf32> -> vector<8x512xf32>
    %30 = arith.addf %21, %29 : vector<8x512xf32>
    %c1_i32 = arith.constant 1 : i32
    %31 = tpu.dynamic_rotate %4 by %c1_i32 dim 1 : vector<3x512xf32>, i32 -> vector<3x512xf32>
    %c3 = arith.constant 3 : index
    %c0_23 = arith.constant 0 : index
    %c0_24 = arith.constant 0 : index
    %32 = vector.load %arg3[%c3, %c0_23, %c0_24] : memref<9x1x512xf32, #tpu.memory_space<vmem>>, vector<1x1x512xf32>
    %33 = vector.shape_cast %32 : vector<1x1x512xf32> to vector<1x512xf32>
    %34 = vector.broadcast %33 : vector<1x512xf32> to vector<3x512xf32>
    %35 = arith.mulf %31, %34 : vector<3x512xf32>
    %c3_25 = arith.constant 3 : index
    %c0_26 = arith.constant 0 : index
    %c0_27 = arith.constant 0 : index
    %36 = vector.load %arg1[%c3_25, %c0_26, %c0_27] : memref<9x8x3xf32, #tpu.memory_space<vmem>>, vector<1x8x3xf32>
    %37 = vector.shape_cast %36 : vector<1x8x3xf32> to vector<8x3xf32>
    %cst_28 = arith.constant dense<0.000000e+00> : vector<8x512xf32>
    %38 = tpu.matmul %37, %35, %cst_28 {dimension_numbers = #tpu.dot_dimension_numbers<[1], [0], [0], [1], [0, 0, 1, 1], [], []>, precision = #tpu.contract_precision<fp32>} : vector<8x3xf32>, vector<3x512xf32>, vector<8x512xf32> -> vector<8x512xf32>
    %39 = arith.addf %30, %38 : vector<8x512xf32>
    %c4 = arith.constant 4 : index
    %c0_29 = arith.constant 0 : index
    %c0_30 = arith.constant 0 : index
    %40 = vector.load %arg1[%c4, %c0_29, %c0_30] : memref<9x8x3xf32, #tpu.memory_space<vmem>>, vector<1x8x3xf32>
    %41 = vector.shape_cast %40 : vector<1x8x3xf32> to vector<8x3xf32>
    %cst_31 = arith.constant dense<0.000000e+00> : vector<8x512xf32>
    %42 = tpu.matmul %41, %4, %cst_31 {dimension_numbers = #tpu.dot_dimension_numbers<[1], [0], [0], [1], [0, 0, 1, 1], [], []>, precision = #tpu.contract_precision<fp32>} : vector<8x3xf32>, vector<3x512xf32>, vector<8x512xf32> -> vector<8x512xf32>
    %43 = arith.addf %39, %42 : vector<8x512xf32>
    %c511_i32 = arith.constant 511 : i32
    %44 = tpu.dynamic_rotate %4 by %c511_i32 dim 1 : vector<3x512xf32>, i32 -> vector<3x512xf32>
    %c5 = arith.constant 5 : index
    %c0_32 = arith.constant 0 : index
    %c0_33 = arith.constant 0 : index
    %45 = vector.load %arg3[%c5, %c0_32, %c0_33] : memref<9x1x512xf32, #tpu.memory_space<vmem>>, vector<1x1x512xf32>
    %46 = vector.shape_cast %45 : vector<1x1x512xf32> to vector<1x512xf32>
    %47 = vector.broadcast %46 : vector<1x512xf32> to vector<3x512xf32>
    %48 = arith.mulf %44, %47 : vector<3x512xf32>
    %c5_34 = arith.constant 5 : index
    %c0_35 = arith.constant 0 : index
    %c0_36 = arith.constant 0 : index
    %49 = vector.load %arg1[%c5_34, %c0_35, %c0_36] : memref<9x8x3xf32, #tpu.memory_space<vmem>>, vector<1x8x3xf32>
    %50 = vector.shape_cast %49 : vector<1x8x3xf32> to vector<8x3xf32>
    %cst_37 = arith.constant dense<0.000000e+00> : vector<8x512xf32>
    %51 = tpu.matmul %50, %48, %cst_37 {dimension_numbers = #tpu.dot_dimension_numbers<[1], [0], [0], [1], [0, 0, 1, 1], [], []>, precision = #tpu.contract_precision<fp32>} : vector<8x3xf32>, vector<3x512xf32>, vector<8x512xf32> -> vector<8x512xf32>
    %52 = arith.addf %43, %51 : vector<8x512xf32>
    %c497_i32 = arith.constant 497 : i32
    %53 = tpu.dynamic_rotate %4 by %c497_i32 dim 1 : vector<3x512xf32>, i32 -> vector<3x512xf32>
    %c6 = arith.constant 6 : index
    %c0_38 = arith.constant 0 : index
    %c0_39 = arith.constant 0 : index
    %54 = vector.load %arg3[%c6, %c0_38, %c0_39] : memref<9x1x512xf32, #tpu.memory_space<vmem>>, vector<1x1x512xf32>
    %55 = vector.shape_cast %54 : vector<1x1x512xf32> to vector<1x512xf32>
    %56 = vector.broadcast %55 : vector<1x512xf32> to vector<3x512xf32>
    %57 = arith.mulf %53, %56 : vector<3x512xf32>
    %c6_40 = arith.constant 6 : index
    %c0_41 = arith.constant 0 : index
    %c0_42 = arith.constant 0 : index
    %58 = vector.load %arg1[%c6_40, %c0_41, %c0_42] : memref<9x8x3xf32, #tpu.memory_space<vmem>>, vector<1x8x3xf32>
    %59 = vector.shape_cast %58 : vector<1x8x3xf32> to vector<8x3xf32>
    %cst_43 = arith.constant dense<0.000000e+00> : vector<8x512xf32>
    %60 = tpu.matmul %59, %57, %cst_43 {dimension_numbers = #tpu.dot_dimension_numbers<[1], [0], [0], [1], [0, 0, 1, 1], [], []>, precision = #tpu.contract_precision<fp32>} : vector<8x3xf32>, vector<3x512xf32>, vector<8x512xf32> -> vector<8x512xf32>
    %61 = arith.addf %52, %60 : vector<8x512xf32>
    %c496_i32 = arith.constant 496 : i32
    %62 = tpu.dynamic_rotate %4 by %c496_i32 dim 1 : vector<3x512xf32>, i32 -> vector<3x512xf32>
    %c7 = arith.constant 7 : index
    %c0_44 = arith.constant 0 : index
    %c0_45 = arith.constant 0 : index
    %63 = vector.load %arg3[%c7, %c0_44, %c0_45] : memref<9x1x512xf32, #tpu.memory_space<vmem>>, vector<1x1x512xf32>
    %64 = vector.shape_cast %63 : vector<1x1x512xf32> to vector<1x512xf32>
    %65 = vector.broadcast %64 : vector<1x512xf32> to vector<3x512xf32>
    %66 = arith.mulf %62, %65 : vector<3x512xf32>
    %c7_46 = arith.constant 7 : index
    %c0_47 = arith.constant 0 : index
    %c0_48 = arith.constant 0 : index
    %67 = vector.load %arg1[%c7_46, %c0_47, %c0_48] : memref<9x8x3xf32, #tpu.memory_space<vmem>>, vector<1x8x3xf32>
    %68 = vector.shape_cast %67 : vector<1x8x3xf32> to vector<8x3xf32>
    %cst_49 = arith.constant dense<0.000000e+00> : vector<8x512xf32>
    %69 = tpu.matmul %68, %66, %cst_49 {dimension_numbers = #tpu.dot_dimension_numbers<[1], [0], [0], [1], [0, 0, 1, 1], [], []>, precision = #tpu.contract_precision<fp32>} : vector<8x3xf32>, vector<3x512xf32>, vector<8x512xf32> -> vector<8x512xf32>
    %70 = arith.addf %61, %69 : vector<8x512xf32>
    %c495_i32 = arith.constant 495 : i32
    %71 = tpu.dynamic_rotate %4 by %c495_i32 dim 1 : vector<3x512xf32>, i32 -> vector<3x512xf32>
    %c8 = arith.constant 8 : index
    %c0_50 = arith.constant 0 : index
    %c0_51 = arith.constant 0 : index
    %72 = vector.load %arg3[%c8, %c0_50, %c0_51] : memref<9x1x512xf32, #tpu.memory_space<vmem>>, vector<1x1x512xf32>
    %73 = vector.shape_cast %72 : vector<1x1x512xf32> to vector<1x512xf32>
    %74 = vector.broadcast %73 : vector<1x512xf32> to vector<3x512xf32>
    %75 = arith.mulf %71, %74 : vector<3x512xf32>
    %c8_52 = arith.constant 8 : index
    %c0_53 = arith.constant 0 : index
    %c0_54 = arith.constant 0 : index
    %76 = vector.load %arg1[%c8_52, %c0_53, %c0_54] : memref<9x8x3xf32, #tpu.memory_space<vmem>>, vector<1x8x3xf32>
    %77 = vector.shape_cast %76 : vector<1x8x3xf32> to vector<8x3xf32>
    %cst_55 = arith.constant dense<0.000000e+00> : vector<8x512xf32>
    %78 = tpu.matmul %77, %75, %cst_55 {dimension_numbers = #tpu.dot_dimension_numbers<[1], [0], [0], [1], [0, 0, 1, 1], [], []>, precision = #tpu.contract_precision<fp32>} : vector<8x3xf32>, vector<3x512xf32>, vector<8x512xf32> -> vector<8x512xf32>
    %79 = arith.addf %70, %78 : vector<8x512xf32>
    %c0_56 = arith.constant 0 : index
    %c0_57 = arith.constant 0 : index
    %80 = vector.load %arg2[%c0_56, %c0_57] : memref<8x1xf32, #tpu.memory_space<vmem>>, vector<8x1xf32>
    %81 = vector.broadcast %80 : vector<8x1xf32> to vector<8x512xf32>
    %82 = arith.addf %79, %81 : vector<8x512xf32>
    %cst_58 = arith.constant 0.000000e+00 : f32
    %83 = vector.broadcast %cst_58 : f32 to vector<8x512xf32>
    %84 = arith.maximumf %82, %83 : vector<8x512xf32>
    %85 = vector.extract_strided_slice %84 {offsets = [0, 0], sizes = [8, 256], strides = [1, 1]} : vector<8x512xf32> to vector<8x256xf32>
    %c0_59 = arith.constant 0 : index
    %c0_60 = arith.constant 0 : index
    %c0_61 = arith.constant 0 : index
    %86 = vector.load %arg12[%c0_59, %c0_60, %c0_61] : memref<2x8x256xf32, #tpu.memory_space<vmem>>, vector<1x8x256xf32>
    %87 = vector.shape_cast %86 : vector<1x8x256xf32> to vector<8x256xf32>
    %88 = vector.shape_cast %85 : vector<8x256xf32> to vector<1x8x256xf32>
    tpu.vector_store %arg12[%c0_59, %c0_60, %c0_61], %88 {strides = array<i32>} : memref<2x8x256xf32, #tpu.memory_space<vmem>>, vector<1x8x256xf32>,
    %89 = vector.extract_strided_slice %84 {offsets = [0, 256], sizes = [8, 256], strides = [1, 1]} : vector<8x512xf32> to vector<8x256xf32>
    %c1_62 = arith.constant 1 : index
    %c0_63 = arith.constant 0 : index
    %c0_64 = arith.constant 0 : index
    %90 = vector.load %arg12[%c1_62, %c0_63, %c0_64] : memref<2x8x256xf32, #tpu.memory_space<vmem>>, vector<1x8x256xf32>
    %91 = vector.shape_cast %90 : vector<1x8x256xf32> to vector<8x256xf32>
    %92 = vector.shape_cast %89 : vector<8x256xf32> to vector<1x8x256xf32>
    tpu.vector_store %arg12[%c1_62, %c0_63, %c0_64], %92 {strides = array<i32>} : memref<2x8x256xf32, #tpu.memory_space<vmem>>, vector<1x8x256xf32>,
    %c17_i32_65 = arith.constant 17 : i32
    %93 = tpu.dynamic_rotate %84 by %c17_i32_65 dim 1 : vector<8x512xf32>, i32 -> vector<8x512xf32>
    %c0_66 = arith.constant 0 : index
    %c0_67 = arith.constant 0 : index
    %c0_68 = arith.constant 0 : index
    %94 = vector.load %arg6[%c0_66, %c0_67, %c0_68] : memref<9x1x512xf32, #tpu.memory_space<vmem>>, vector<1x1x512xf32>
    %95 = vector.shape_cast %94 : vector<1x1x512xf32> to vector<1x512xf32>
    %96 = vector.broadcast %95 : vector<1x512xf32> to vector<8x512xf32>
    %97 = arith.mulf %93, %96 : vector<8x512xf32>
    %c0_69 = arith.constant 0 : index
    %c0_70 = arith.constant 0 : index
    %c0_71 = arith.constant 0 : index
    %98 = vector.load %arg4[%c0_69, %c0_70, %c0_71] : memref<9x16x8xf32, #tpu.memory_space<vmem>>, vector<1x16x8xf32>
    %99 = vector.shape_cast %98 : vector<1x16x8xf32> to vector<16x8xf32>
    %cst_72 = arith.constant dense<0.000000e+00> : vector<16x512xf32>
    %100 = tpu.matmul %99, %97, %cst_72 {dimension_numbers = #tpu.dot_dimension_numbers<[1], [0], [0], [1], [0, 0, 1, 1], [], []>, precision = #tpu.contract_precision<fp32>} : vector<16x8xf32>, vector<8x512xf32>, vector<16x512xf32> -> vector<16x512xf32>
    %c16_i32_73 = arith.constant 16 : i32
    %101 = tpu.dynamic_rotate %84 by %c16_i32_73 dim 1 : vector<8x512xf32>, i32 -> vector<8x512xf32>
    %c1_74 = arith.constant 1 : index
    %c0_75 = arith.constant 0 : index
    %c0_76 = arith.constant 0 : index
    %102 = vector.load %arg6[%c1_74, %c0_75, %c0_76] : memref<9x1x512xf32, #tpu.memory_space<vmem>>, vector<1x1x512xf32>
    %103 = vector.shape_cast %102 : vector<1x1x512xf32> to vector<1x512xf32>
    %104 = vector.broadcast %103 : vector<1x512xf32> to vector<8x512xf32>
    %105 = arith.mulf %101, %104 : vector<8x512xf32>
    %c1_77 = arith.constant 1 : index
    %c0_78 = arith.constant 0 : index
    %c0_79 = arith.constant 0 : index
    %106 = vector.load %arg4[%c1_77, %c0_78, %c0_79] : memref<9x16x8xf32, #tpu.memory_space<vmem>>, vector<1x16x8xf32>
    %107 = vector.shape_cast %106 : vector<1x16x8xf32> to vector<16x8xf32>
    %cst_80 = arith.constant dense<0.000000e+00> : vector<16x512xf32>
    %108 = tpu.matmul %107, %105, %cst_80 {dimension_numbers = #tpu.dot_dimension_numbers<[1], [0], [0], [1], [0, 0, 1, 1], [], []>, precision = #tpu.contract_precision<fp32>} : vector<16x8xf32>, vector<8x512xf32>, vector<16x512xf32> -> vector<16x512xf32>
    %109 = arith.addf %100, %108 : vector<16x512xf32>
    %c15_i32_81 = arith.constant 15 : i32
    %110 = tpu.dynamic_rotate %84 by %c15_i32_81 dim 1 : vector<8x512xf32>, i32 -> vector<8x512xf32>
    %c2_82 = arith.constant 2 : index
    %c0_83 = arith.constant 0 : index
    %c0_84 = arith.constant 0 : index
    %111 = vector.load %arg6[%c2_82, %c0_83, %c0_84] : memref<9x1x512xf32, #tpu.memory_space<vmem>>, vector<1x1x512xf32>
    %112 = vector.shape_cast %111 : vector<1x1x512xf32> to vector<1x512xf32>
    %113 = vector.broadcast %112 : vector<1x512xf32> to vector<8x512xf32>
    %114 = arith.mulf %110, %113 : vector<8x512xf32>
    %c2_85 = arith.constant 2 : index
    %c0_86 = arith.constant 0 : index
    %c0_87 = arith.constant 0 : index
    %115 = vector.load %arg4[%c2_85, %c0_86, %c0_87] : memref<9x16x8xf32, #tpu.memory_space<vmem>>, vector<1x16x8xf32>
    %116 = vector.shape_cast %115 : vector<1x16x8xf32> to vector<16x8xf32>
    %cst_88 = arith.constant dense<0.000000e+00> : vector<16x512xf32>
    %117 = tpu.matmul %116, %114, %cst_88 {dimension_numbers = #tpu.dot_dimension_numbers<[1], [0], [0], [1], [0, 0, 1, 1], [], []>, precision = #tpu.contract_precision<fp32>} : vector<16x8xf32>, vector<8x512xf32>, vector<16x512xf32> -> vector<16x512xf32>
    %118 = arith.addf %109, %117 : vector<16x512xf32>
    %c1_i32_89 = arith.constant 1 : i32
    %119 = tpu.dynamic_rotate %84 by %c1_i32_89 dim 1 : vector<8x512xf32>, i32 -> vector<8x512xf32>
    %c3_90 = arith.constant 3 : index
    %c0_91 = arith.constant 0 : index
    %c0_92 = arith.constant 0 : index
    %120 = vector.load %arg6[%c3_90, %c0_91, %c0_92] : memref<9x1x512xf32, #tpu.memory_space<vmem>>, vector<1x1x512xf32>
    %121 = vector.shape_cast %120 : vector<1x1x512xf32> to vector<1x512xf32>
    %122 = vector.broadcast %121 : vector<1x512xf32> to vector<8x512xf32>
    %123 = arith.mulf %119, %122 : vector<8x512xf32>
    %c3_93 = arith.constant 3 : index
    %c0_94 = arith.constant 0 : index
    %c0_95 = arith.constant 0 : index
    %124 = vector.load %arg4[%c3_93, %c0_94, %c0_95] : memref<9x16x8xf32, #tpu.memory_space<vmem>>, vector<1x16x8xf32>
    %125 = vector.shape_cast %124 : vector<1x16x8xf32> to vector<16x8xf32>
    %cst_96 = arith.constant dense<0.000000e+00> : vector<16x512xf32>
    %126 = tpu.matmul %125, %123, %cst_96 {dimension_numbers = #tpu.dot_dimension_numbers<[1], [0], [0], [1], [0, 0, 1, 1], [], []>, precision = #tpu.contract_precision<fp32>} : vector<16x8xf32>, vector<8x512xf32>, vector<16x512xf32> -> vector<16x512xf32>
    %127 = arith.addf %118, %126 : vector<16x512xf32>
    %c4_97 = arith.constant 4 : index
    %c0_98 = arith.constant 0 : index
    %c0_99 = arith.constant 0 : index
    %128 = vector.load %arg4[%c4_97, %c0_98, %c0_99] : memref<9x16x8xf32, #tpu.memory_space<vmem>>, vector<1x16x8xf32>
    %129 = vector.shape_cast %128 : vector<1x16x8xf32> to vector<16x8xf32>
    %cst_100 = arith.constant dense<0.000000e+00> : vector<16x512xf32>
    %130 = tpu.matmul %129, %84, %cst_100 {dimension_numbers = #tpu.dot_dimension_numbers<[1], [0], [0], [1], [0, 0, 1, 1], [], []>, precision = #tpu.contract_precision<fp32>} : vector<16x8xf32>, vector<8x512xf32>, vector<16x512xf32> -> vector<16x512xf32>
    %131 = arith.addf %127, %130 : vector<16x512xf32>
    %c511_i32_101 = arith.constant 511 : i32
    %132 = tpu.dynamic_rotate %84 by %c511_i32_101 dim 1 : vector<8x512xf32>, i32 -> vector<8x512xf32>
    %c5_102 = arith.constant 5 : index
    %c0_103 = arith.constant 0 : index
    %c0_104 = arith.constant 0 : index
    %133 = vector.load %arg6[%c5_102, %c0_103, %c0_104] : memref<9x1x512xf32, #tpu.memory_space<vmem>>, vector<1x1x512xf32>
    %134 = vector.shape_cast %133 : vector<1x1x512xf32> to vector<1x512xf32>
    %135 = vector.broadcast %134 : vector<1x512xf32> to vector<8x512xf32>
    %136 = arith.mulf %132, %135 : vector<8x512xf32>
    %c5_105 = arith.constant 5 : index
    %c0_106 = arith.constant 0 : index
    %c0_107 = arith.constant 0 : index
    %137 = vector.load %arg4[%c5_105, %c0_106, %c0_107] : memref<9x16x8xf32, #tpu.memory_space<vmem>>, vector<1x16x8xf32>
    %138 = vector.shape_cast %137 : vector<1x16x8xf32> to vector<16x8xf32>
    %cst_108 = arith.constant dense<0.000000e+00> : vector<16x512xf32>
    %139 = tpu.matmul %138, %136, %cst_108 {dimension_numbers = #tpu.dot_dimension_numbers<[1], [0], [0], [1], [0, 0, 1, 1], [], []>, precision = #tpu.contract_precision<fp32>} : vector<16x8xf32>, vector<8x512xf32>, vector<16x512xf32> -> vector<16x512xf32>
    %140 = arith.addf %131, %139 : vector<16x512xf32>
    %c497_i32_109 = arith.constant 497 : i32
    %141 = tpu.dynamic_rotate %84 by %c497_i32_109 dim 1 : vector<8x512xf32>, i32 -> vector<8x512xf32>
    %c6_110 = arith.constant 6 : index
    %c0_111 = arith.constant 0 : index
    %c0_112 = arith.constant 0 : index
    %142 = vector.load %arg6[%c6_110, %c0_111, %c0_112] : memref<9x1x512xf32, #tpu.memory_space<vmem>>, vector<1x1x512xf32>
    %143 = vector.shape_cast %142 : vector<1x1x512xf32> to vector<1x512xf32>
    %144 = vector.broadcast %143 : vector<1x512xf32> to vector<8x512xf32>
    %145 = arith.mulf %141, %144 : vector<8x512xf32>
    %c6_113 = arith.constant 6 : index
    %c0_114 = arith.constant 0 : index
    %c0_115 = arith.constant 0 : index
    %146 = vector.load %arg4[%c6_113, %c0_114, %c0_115] : memref<9x16x8xf32, #tpu.memory_space<vmem>>, vector<1x16x8xf32>
    %147 = vector.shape_cast %146 : vector<1x16x8xf32> to vector<16x8xf32>
    %cst_116 = arith.constant dense<0.000000e+00> : vector<16x512xf32>
    %148 = tpu.matmul %147, %145, %cst_116 {dimension_numbers = #tpu.dot_dimension_numbers<[1], [0], [0], [1], [0, 0, 1, 1], [], []>, precision = #tpu.contract_precision<fp32>} : vector<16x8xf32>, vector<8x512xf32>, vector<16x512xf32> -> vector<16x512xf32>
    %149 = arith.addf %140, %148 : vector<16x512xf32>
    %c496_i32_117 = arith.constant 496 : i32
    %150 = tpu.dynamic_rotate %84 by %c496_i32_117 dim 1 : vector<8x512xf32>, i32 -> vector<8x512xf32>
    %c7_118 = arith.constant 7 : index
    %c0_119 = arith.constant 0 : index
    %c0_120 = arith.constant 0 : index
    %151 = vector.load %arg6[%c7_118, %c0_119, %c0_120] : memref<9x1x512xf32, #tpu.memory_space<vmem>>, vector<1x1x512xf32>
    %152 = vector.shape_cast %151 : vector<1x1x512xf32> to vector<1x512xf32>
    %153 = vector.broadcast %152 : vector<1x512xf32> to vector<8x512xf32>
    %154 = arith.mulf %150, %153 : vector<8x512xf32>
    %c7_121 = arith.constant 7 : index
    %c0_122 = arith.constant 0 : index
    %c0_123 = arith.constant 0 : index
    %155 = vector.load %arg4[%c7_121, %c0_122, %c0_123] : memref<9x16x8xf32, #tpu.memory_space<vmem>>, vector<1x16x8xf32>
    %156 = vector.shape_cast %155 : vector<1x16x8xf32> to vector<16x8xf32>
    %cst_124 = arith.constant dense<0.000000e+00> : vector<16x512xf32>
    %157 = tpu.matmul %156, %154, %cst_124 {dimension_numbers = #tpu.dot_dimension_numbers<[1], [0], [0], [1], [0, 0, 1, 1], [], []>, precision = #tpu.contract_precision<fp32>} : vector<16x8xf32>, vector<8x512xf32>, vector<16x512xf32> -> vector<16x512xf32>
    %158 = arith.addf %149, %157 : vector<16x512xf32>
    %c495_i32_125 = arith.constant 495 : i32
    %159 = tpu.dynamic_rotate %84 by %c495_i32_125 dim 1 : vector<8x512xf32>, i32 -> vector<8x512xf32>
    %c8_126 = arith.constant 8 : index
    %c0_127 = arith.constant 0 : index
    %c0_128 = arith.constant 0 : index
    %160 = vector.load %arg6[%c8_126, %c0_127, %c0_128] : memref<9x1x512xf32, #tpu.memory_space<vmem>>, vector<1x1x512xf32>
    %161 = vector.shape_cast %160 : vector<1x1x512xf32> to vector<1x512xf32>
    %162 = vector.broadcast %161 : vector<1x512xf32> to vector<8x512xf32>
    %163 = arith.mulf %159, %162 : vector<8x512xf32>
    %c8_129 = arith.constant 8 : index
    %c0_130 = arith.constant 0 : index
    %c0_131 = arith.constant 0 : index
    %164 = vector.load %arg4[%c8_129, %c0_130, %c0_131] : memref<9x16x8xf32, #tpu.memory_space<vmem>>, vector<1x16x8xf32>
    %165 = vector.shape_cast %164 : vector<1x16x8xf32> to vector<16x8xf32>
    %cst_132 = arith.constant dense<0.000000e+00> : vector<16x512xf32>
    %166 = tpu.matmul %165, %163, %cst_132 {dimension_numbers = #tpu.dot_dimension_numbers<[1], [0], [0], [1], [0, 0, 1, 1], [], []>, precision = #tpu.contract_precision<fp32>} : vector<16x8xf32>, vector<8x512xf32>, vector<16x512xf32> -> vector<16x512xf32>
    %167 = arith.addf %158, %166 : vector<16x512xf32>
    %c0_133 = arith.constant 0 : index
    %c0_134 = arith.constant 0 : index
    %168 = vector.load %arg5[%c0_133, %c0_134] : memref<16x1xf32, #tpu.memory_space<vmem>>, vector<16x1xf32>
    %169 = vector.broadcast %168 : vector<16x1xf32> to vector<16x512xf32>
    %170 = arith.addf %167, %169 : vector<16x512xf32>
    %cst_135 = arith.constant 0.000000e+00 : f32
    %171 = vector.broadcast %cst_135 : f32 to vector<16x512xf32>
    %172 = arith.maximumf %170, %171 : vector<16x512xf32>
    %c0_136 = arith.constant 0 : index
    %c0_137 = arith.constant 0 : index
    %173 = vector.load %arg7[%c0_136, %c0_137] : memref<512x128xf32, #tpu.memory_space<vmem>>, vector<512x128xf32>
    %cst_138 = arith.constant dense<0.000000e+00> : vector<16x128xf32>
    %174 = tpu.matmul %172, %173, %cst_138 {dimension_numbers = #tpu.dot_dimension_numbers<[1], [0], [0], [1], [0, 0, 1, 1], [], []>, precision = #tpu.contract_precision<fp32>} : vector<16x512xf32>, vector<512x128xf32>, vector<16x128xf32> -> vector<16x128xf32>
    %175 = vector.extract_strided_slice %174 {offsets = [0, 0], sizes = [16, 64], strides = [1, 1]} : vector<16x128xf32> to vector<16x64xf32>
    %c0_139 = arith.constant 0 : index
    %c0_140 = arith.constant 0 : index
    %c0_141 = arith.constant 0 : index
    %176 = vector.load %arg13[%c0_139, %c0_140, %c0_141] : memref<2x16x64xf32, #tpu.memory_space<vmem>>, vector<1x16x64xf32>
    %177 = vector.shape_cast %176 : vector<1x16x64xf32> to vector<16x64xf32>
    %178 = vector.shape_cast %175 : vector<16x64xf32> to vector<1x16x64xf32>
    tpu.vector_store %arg13[%c0_139, %c0_140, %c0_141], %178 {strides = array<i32>} : memref<2x16x64xf32, #tpu.memory_space<vmem>>, vector<1x16x64xf32>,
    %179 = vector.extract_strided_slice %174 {offsets = [0, 64], sizes = [16, 64], strides = [1, 1]} : vector<16x128xf32> to vector<16x64xf32>
    %c1_142 = arith.constant 1 : index
    %c0_143 = arith.constant 0 : index
    %c0_144 = arith.constant 0 : index
    %180 = vector.load %arg13[%c1_142, %c0_143, %c0_144] : memref<2x16x64xf32, #tpu.memory_space<vmem>>, vector<1x16x64xf32>
    %181 = vector.shape_cast %180 : vector<1x16x64xf32> to vector<16x64xf32>
    %182 = vector.shape_cast %179 : vector<16x64xf32> to vector<1x16x64xf32>
    tpu.vector_store %arg13[%c1_142, %c0_143, %c0_144], %182 {strides = array<i32>} : memref<2x16x64xf32, #tpu.memory_space<vmem>>, vector<1x16x64xf32>,
    %c9_i32 = arith.constant 9 : i32
    %183 = tpu.dynamic_rotate %174 by %c9_i32 dim 1 : vector<16x128xf32>, i32 -> vector<16x128xf32>
    %c0_145 = arith.constant 0 : index
    %c0_146 = arith.constant 0 : index
    %c0_147 = arith.constant 0 : index
    %184 = vector.load %arg10[%c0_145, %c0_146, %c0_147] : memref<9x1x128xf32, #tpu.memory_space<vmem>>, vector<1x1x128xf32>
    %185 = vector.shape_cast %184 : vector<1x1x128xf32> to vector<1x128xf32>
    %186 = vector.broadcast %185 : vector<1x128xf32> to vector<16x128xf32>
    %187 = arith.mulf %183, %186 : vector<16x128xf32>
    %c0_148 = arith.constant 0 : index
    %c0_149 = arith.constant 0 : index
    %c0_150 = arith.constant 0 : index
    %188 = vector.load %arg8[%c0_148, %c0_149, %c0_150] : memref<9x32x16xf32, #tpu.memory_space<vmem>>, vector<1x32x16xf32>
    %189 = vector.shape_cast %188 : vector<1x32x16xf32> to vector<32x16xf32>
    %cst_151 = arith.constant dense<0.000000e+00> : vector<32x128xf32>
    %190 = tpu.matmul %189, %187, %cst_151 {dimension_numbers = #tpu.dot_dimension_numbers<[1], [0], [0], [1], [0, 0, 1, 1], [], []>, precision = #tpu.contract_precision<fp32>} : vector<32x16xf32>, vector<16x128xf32>, vector<32x128xf32> -> vector<32x128xf32>
    %c8_i32 = arith.constant 8 : i32
    %191 = tpu.dynamic_rotate %174 by %c8_i32 dim 1 : vector<16x128xf32>, i32 -> vector<16x128xf32>
    %c1_152 = arith.constant 1 : index
    %c0_153 = arith.constant 0 : index
    %c0_154 = arith.constant 0 : index
    %192 = vector.load %arg10[%c1_152, %c0_153, %c0_154] : memref<9x1x128xf32, #tpu.memory_space<vmem>>, vector<1x1x128xf32>
    %193 = vector.shape_cast %192 : vector<1x1x128xf32> to vector<1x128xf32>
    %194 = vector.broadcast %193 : vector<1x128xf32> to vector<16x128xf32>
    %195 = arith.mulf %191, %194 : vector<16x128xf32>
    %c1_155 = arith.constant 1 : index
    %c0_156 = arith.constant 0 : index
    %c0_157 = arith.constant 0 : index
    %196 = vector.load %arg8[%c1_155, %c0_156, %c0_157] : memref<9x32x16xf32, #tpu.memory_space<vmem>>, vector<1x32x16xf32>
    %197 = vector.shape_cast %196 : vector<1x32x16xf32> to vector<32x16xf32>
    %cst_158 = arith.constant dense<0.000000e+00> : vector<32x128xf32>
    %198 = tpu.matmul %197, %195, %cst_158 {dimension_numbers = #tpu.dot_dimension_numbers<[1], [0], [0], [1], [0, 0, 1, 1], [], []>, precision = #tpu.contract_precision<fp32>} : vector<32x16xf32>, vector<16x128xf32>, vector<32x128xf32> -> vector<32x128xf32>
    %199 = arith.addf %190, %198 : vector<32x128xf32>
    %c7_i32 = arith.constant 7 : i32
    %200 = tpu.dynamic_rotate %174 by %c7_i32 dim 1 : vector<16x128xf32>, i32 -> vector<16x128xf32>
    %c2_159 = arith.constant 2 : index
    %c0_160 = arith.constant 0 : index
    %c0_161 = arith.constant 0 : index
    %201 = vector.load %arg10[%c2_159, %c0_160, %c0_161] : memref<9x1x128xf32, #tpu.memory_space<vmem>>, vector<1x1x128xf32>
    %202 = vector.shape_cast %201 : vector<1x1x128xf32> to vector<1x128xf32>
    %203 = vector.broadcast %202 : vector<1x128xf32> to vector<16x128xf32>
    %204 = arith.mulf %200, %203 : vector<16x128xf32>
    %c2_162 = arith.constant 2 : index
    %c0_163 = arith.constant 0 : index
    %c0_164 = arith.constant 0 : index
    %205 = vector.load %arg8[%c2_162, %c0_163, %c0_164] : memref<9x32x16xf32, #tpu.memory_space<vmem>>, vector<1x32x16xf32>
    %206 = vector.shape_cast %205 : vector<1x32x16xf32> to vector<32x16xf32>
    %cst_165 = arith.constant dense<0.000000e+00> : vector<32x128xf32>
    %207 = tpu.matmul %206, %204, %cst_165 {dimension_numbers = #tpu.dot_dimension_numbers<[1], [0], [0], [1], [0, 0, 1, 1], [], []>, precision = #tpu.contract_precision<fp32>} : vector<32x16xf32>, vector<16x128xf32>, vector<32x128xf32> -> vector<32x128xf32>
    %208 = arith.addf %199, %207 : vector<32x128xf32>
    %c1_i32_166 = arith.constant 1 : i32
    %209 = tpu.dynamic_rotate %174 by %c1_i32_166 dim 1 : vector<16x128xf32>, i32 -> vector<16x128xf32>
    %c3_167 = arith.constant 3 : index
    %c0_168 = arith.constant 0 : index
    %c0_169 = arith.constant 0 : index
    %210 = vector.load %arg10[%c3_167, %c0_168, %c0_169] : memref<9x1x128xf32, #tpu.memory_space<vmem>>, vector<1x1x128xf32>
    %211 = vector.shape_cast %210 : vector<1x1x128xf32> to vector<1x128xf32>
    %212 = vector.broadcast %211 : vector<1x128xf32> to vector<16x128xf32>
    %213 = arith.mulf %209, %212 : vector<16x128xf32>
    %c3_170 = arith.constant 3 : index
    %c0_171 = arith.constant 0 : index
    %c0_172 = arith.constant 0 : index
    %214 = vector.load %arg8[%c3_170, %c0_171, %c0_172] : memref<9x32x16xf32, #tpu.memory_space<vmem>>, vector<1x32x16xf32>
    %215 = vector.shape_cast %214 : vector<1x32x16xf32> to vector<32x16xf32>
    %cst_173 = arith.constant dense<0.000000e+00> : vector<32x128xf32>
    %216 = tpu.matmul %215, %213, %cst_173 {dimension_numbers = #tpu.dot_dimension_numbers<[1], [0], [0], [1], [0, 0, 1, 1], [], []>, precision = #tpu.contract_precision<fp32>} : vector<32x16xf32>, vector<16x128xf32>, vector<32x128xf32> -> vector<32x128xf32>
    %217 = arith.addf %208, %216 : vector<32x128xf32>
    %c4_174 = arith.constant 4 : index
    %c0_175 = arith.constant 0 : index
    %c0_176 = arith.constant 0 : index
    %218 = vector.load %arg8[%c4_174, %c0_175, %c0_176] : memref<9x32x16xf32, #tpu.memory_space<vmem>>, vector<1x32x16xf32>
    %219 = vector.shape_cast %218 : vector<1x32x16xf32> to vector<32x16xf32>
    %cst_177 = arith.constant dense<0.000000e+00> : vector<32x128xf32>
    %220 = tpu.matmul %219, %174, %cst_177 {dimension_numbers = #tpu.dot_dimension_numbers<[1], [0], [0], [1], [0, 0, 1, 1], [], []>, precision = #tpu.contract_precision<fp32>} : vector<32x16xf32>, vector<16x128xf32>, vector<32x128xf32> -> vector<32x128xf32>
    %221 = arith.addf %217, %220 : vector<32x128xf32>
    %c127_i32 = arith.constant 127 : i32
    %222 = tpu.dynamic_rotate %174 by %c127_i32 dim 1 : vector<16x128xf32>, i32 -> vector<16x128xf32>
    %c5_178 = arith.constant 5 : index
    %c0_179 = arith.constant 0 : index
    %c0_180 = arith.constant 0 : index
    %223 = vector.load %arg10[%c5_178, %c0_179, %c0_180] : memref<9x1x128xf32, #tpu.memory_space<vmem>>, vector<1x1x128xf32>
    %224 = vector.shape_cast %223 : vector<1x1x128xf32> to vector<1x128xf32>
    %225 = vector.broadcast %224 : vector<1x128xf32> to vector<16x128xf32>
    %226 = arith.mulf %222, %225 : vector<16x128xf32>
    %c5_181 = arith.constant 5 : index
    %c0_182 = arith.constant 0 : index
    %c0_183 = arith.constant 0 : index
    %227 = vector.load %arg8[%c5_181, %c0_182, %c0_183] : memref<9x32x16xf32, #tpu.memory_space<vmem>>, vector<1x32x16xf32>
    %228 = vector.shape_cast %227 : vector<1x32x16xf32> to vector<32x16xf32>
    %cst_184 = arith.constant dense<0.000000e+00> : vector<32x128xf32>
    %229 = tpu.matmul %228, %226, %cst_184 {dimension_numbers = #tpu.dot_dimension_numbers<[1], [0], [0], [1], [0, 0, 1, 1], [], []>, precision = #tpu.contract_precision<fp32>} : vector<32x16xf32>, vector<16x128xf32>, vector<32x128xf32> -> vector<32x128xf32>
    %230 = arith.addf %221, %229 : vector<32x128xf32>
    %c121_i32 = arith.constant 121 : i32
    %231 = tpu.dynamic_rotate %174 by %c121_i32 dim 1 : vector<16x128xf32>, i32 -> vector<16x128xf32>
    %c6_185 = arith.constant 6 : index
    %c0_186 = arith.constant 0 : index
    %c0_187 = arith.constant 0 : index
    %232 = vector.load %arg10[%c6_185, %c0_186, %c0_187] : memref<9x1x128xf32, #tpu.memory_space<vmem>>, vector<1x1x128xf32>
    %233 = vector.shape_cast %232 : vector<1x1x128xf32> to vector<1x128xf32>
    %234 = vector.broadcast %233 : vector<1x128xf32> to vector<16x128xf32>
    %235 = arith.mulf %231, %234 : vector<16x128xf32>
    %c6_188 = arith.constant 6 : index
    %c0_189 = arith.constant 0 : index
    %c0_190 = arith.constant 0 : index
    %236 = vector.load %arg8[%c6_188, %c0_189, %c0_190] : memref<9x32x16xf32, #tpu.memory_space<vmem>>, vector<1x32x16xf32>
    %237 = vector.shape_cast %236 : vector<1x32x16xf32> to vector<32x16xf32>
    %cst_191 = arith.constant dense<0.000000e+00> : vector<32x128xf32>
    %238 = tpu.matmul %237, %235, %cst_191 {dimension_numbers = #tpu.dot_dimension_numbers<[1], [0], [0], [1], [0, 0, 1, 1], [], []>, precision = #tpu.contract_precision<fp32>} : vector<32x16xf32>, vector<16x128xf32>, vector<32x128xf32> -> vector<32x128xf32>
    %239 = arith.addf %230, %238 : vector<32x128xf32>
    %c120_i32 = arith.constant 120 : i32
    %240 = tpu.dynamic_rotate %174 by %c120_i32 dim 1 : vector<16x128xf32>, i32 -> vector<16x128xf32>
    %c7_192 = arith.constant 7 : index
    %c0_193 = arith.constant 0 : index
    %c0_194 = arith.constant 0 : index
    %241 = vector.load %arg10[%c7_192, %c0_193, %c0_194] : memref<9x1x128xf32, #tpu.memory_space<vmem>>, vector<1x1x128xf32>
    %242 = vector.shape_cast %241 : vector<1x1x128xf32> to vector<1x128xf32>
    %243 = vector.broadcast %242 : vector<1x128xf32> to vector<16x128xf32>
    %244 = arith.mulf %240, %243 : vector<16x128xf32>
    %c7_195 = arith.constant 7 : index
    %c0_196 = arith.constant 0 : index
    %c0_197 = arith.constant 0 : index
    %245 = vector.load %arg8[%c7_195, %c0_196, %c0_197] : memref<9x32x16xf32, #tpu.memory_space<vmem>>, vector<1x32x16xf32>
    %246 = vector.shape_cast %245 : vector<1x32x16xf32> to vector<32x16xf32>
    %cst_198 = arith.constant dense<0.000000e+00> : vector<32x128xf32>
    %247 = tpu.matmul %246, %244, %cst_198 {dimension_numbers = #tpu.dot_dimension_numbers<[1], [0], [0], [1], [0, 0, 1, 1], [], []>, precision = #tpu.contract_precision<fp32>} : vector<32x16xf32>, vector<16x128xf32>, vector<32x128xf32> -> vector<32x128xf32>
    %248 = arith.addf %239, %247 : vector<32x128xf32>
    %c119_i32 = arith.constant 119 : i32
    %249 = tpu.dynamic_rotate %174 by %c119_i32 dim 1 : vector<16x128xf32>, i32 -> vector<16x128xf32>
    %c8_199 = arith.constant 8 : index
    %c0_200 = arith.constant 0 : index
    %c0_201 = arith.constant 0 : index
    %250 = vector.load %arg10[%c8_199, %c0_200, %c0_201] : memref<9x1x128xf32, #tpu.memory_space<vmem>>, vector<1x1x128xf32>
    %251 = vector.shape_cast %250 : vector<1x1x128xf32> to vector<1x128xf32>
    %252 = vector.broadcast %251 : vector<1x128xf32> to vector<16x128xf32>
    %253 = arith.mulf %249, %252 : vector<16x128xf32>
    %c8_202 = arith.constant 8 : index
    %c0_203 = arith.constant 0 : index
    %c0_204 = arith.constant 0 : index
    %254 = vector.load %arg8[%c8_202, %c0_203, %c0_204] : memref<9x32x16xf32, #tpu.memory_space<vmem>>, vector<1x32x16xf32>
    %255 = vector.shape_cast %254 : vector<1x32x16xf32> to vector<32x16xf32>
    %cst_205 = arith.constant dense<0.000000e+00> : vector<32x128xf32>
    %256 = tpu.matmul %255, %253, %cst_205 {dimension_numbers = #tpu.dot_dimension_numbers<[1], [0], [0], [1], [0, 0, 1, 1], [], []>, precision = #tpu.contract_precision<fp32>} : vector<32x16xf32>, vector<16x128xf32>, vector<32x128xf32> -> vector<32x128xf32>
    %257 = arith.addf %248, %256 : vector<32x128xf32>
    %c0_206 = arith.constant 0 : index
    %c0_207 = arith.constant 0 : index
    %258 = vector.load %arg9[%c0_206, %c0_207] : memref<32x1xf32, #tpu.memory_space<vmem>>, vector<32x1xf32>
    %259 = vector.broadcast %258 : vector<32x1xf32> to vector<32x128xf32>
    %260 = arith.addf %257, %259 : vector<32x128xf32>
    %cst_208 = arith.constant 0.000000e+00 : f32
    %261 = vector.broadcast %cst_208 : f32 to vector<32x128xf32>
    %262 = arith.maximumf %260, %261 : vector<32x128xf32>
    %c0_209 = arith.constant 0 : index
    %c0_210 = arith.constant 0 : index
    %263 = vector.load %arg11[%c0_209, %c0_210] : memref<128x32xf32, #tpu.memory_space<vmem>>, vector<128x32xf32>
    %cst_211 = arith.constant dense<0.000000e+00> : vector<32x32xf32>
    %264 = tpu.matmul %262, %263, %cst_211 {dimension_numbers = #tpu.dot_dimension_numbers<[1], [0], [0], [1], [0, 0, 1, 1], [], []>, precision = #tpu.contract_precision<fp32>} : vector<32x128xf32>, vector<128x32xf32>, vector<32x32xf32> -> vector<32x32xf32>
    %265 = vector.extract_strided_slice %264 {offsets = [0, 0], sizes = [32, 16], strides = [1, 1]} : vector<32x32xf32> to vector<32x16xf32>
    %c0_212 = arith.constant 0 : index
    %c0_213 = arith.constant 0 : index
    %c0_214 = arith.constant 0 : index
    %266 = vector.load %arg14[%c0_212, %c0_213, %c0_214] : memref<2x32x16xf32, #tpu.memory_space<vmem>>, vector<1x32x16xf32>
    %267 = vector.shape_cast %266 : vector<1x32x16xf32> to vector<32x16xf32>
    %268 = vector.shape_cast %265 : vector<32x16xf32> to vector<1x32x16xf32>
    tpu.vector_store %arg14[%c0_212, %c0_213, %c0_214], %268 {strides = array<i32>} : memref<2x32x16xf32, #tpu.memory_space<vmem>>, vector<1x32x16xf32>,
    %269 = vector.extract_strided_slice %264 {offsets = [0, 16], sizes = [32, 16], strides = [1, 1]} : vector<32x32xf32> to vector<32x16xf32>
    %c1_215 = arith.constant 1 : index
    %c0_216 = arith.constant 0 : index
    %c0_217 = arith.constant 0 : index
    %270 = vector.load %arg14[%c1_215, %c0_216, %c0_217] : memref<2x32x16xf32, #tpu.memory_space<vmem>>, vector<1x32x16xf32>
    %271 = vector.shape_cast %270 : vector<1x32x16xf32> to vector<32x16xf32>
    %272 = vector.shape_cast %269 : vector<32x16xf32> to vector<1x32x16xf32>
    tpu.vector_store %arg14[%c1_215, %c0_216, %c0_217], %272 {strides = array<i32>} : memref<2x32x16xf32, #tpu.memory_space<vmem>>, vector<1x32x16xf32>,
    return
  }
}

</mosaic_0001>

<bundles_post_ra>
// kernel: _lambda_.1
= control target key start
LH: loop header
LB: loop body
LE: loop exit
PB: predicated region body
PF: predicated region fallthrough
CT: control target
= control target key end

     0   :  { %20 = vsyncpa [#allocation3], 0  ;;  %s34804_s0 = inlined_call_operand.vmem [shape: f32[2,3,256], index: 0, kind: input, shape index: {}]   ;;  %s34805_s1 = inlined_call_operand.vmem [shape: f32[9,8,3], index: 1, kind: input, shape index: {}]   ;;  %s34806_s2 = inlined_call_operand.hbm [shape: f32[8,1], index: 2, kind: input, shape index: {}]   ;;  %s34807_s3 = inlined_call_operand.vmem [shape: f32[9,1,512], index: 3, kind: input, shape index: {}, may-alias: {3,6}]   ;;  %s34808_s4 = inlined_call_operand.hbm [shape: f32[9,16,8], index: 4, kind: input, shape index: {}]   ;;  %s34809_s5 = inlined_call_operand.vmem [shape: f32[16,1], index: 5, kind: input, shape index: {}]   ;;  %s34810_s6 = inlined_call_operand.vmem [shape: f32[9,1,512], index: 6, kind: input, shape index: {}, may-alias: {3,6}]   ;;  %s34811_s7 = inlined_call_operand.hbm [shape: f32[512,128], index: 7, kind: input, shape index: {}]   ;;  %s34812_s8 = inlined_call_operand.hbm [shape: f32[9,32,16], index: 8, kind: input, shape index: {}]   ;;  %s34813_s9 = inlined_call_operand.hbm [shape: f32[32,1], index: 9, kind: input, shape index: {}]   ;;  %s34814_s10 = inlined_call_operand.hbm [shape: f32[9,1,128], index: 10, kind: input, shape index: {}]   ;;  %s34815_s11 = inlined_call_operand.hbm [shape: f32[128,32], index: 11, kind: input, shape index: {}]   ;;  %s34816_s12 = inlined_call_operand.vmem [shape: f32[2,8,256], index: 12, kind: output, shape index: {0}]   ;;  %s34817_s13 = inlined_call_operand.vmem [shape: f32[2,16,64], index: 13, kind: output, shape index: {1}]   ;;  %s34818_s14 = inlined_call_operand.vmem [shape: f32[2,32,16], index: 14, kind: output, shape index: {2}]  }
   0x1   :  { %21 = vsyncpa [#allocation5], 0 }
   0x2   :  { %22 = vsyncpa [#allocation8], 0 }
   0x3   :  { %23 = vsyncpa [#allocation11], 0  ;;  %s29007_s29 = smov [#allocation4]  }
   0x4   :  { %s45_s30 = sshll.u32 %s29007_s29, 4  ;;  %s46_s30 = int_to_ptr.vmem [resolvable:$true] %s45_s30 }
   0x5   :  { %s28867_s15 = scalar_lea.vmem %s46_s30, 2304  ;;  %p28872_p1 = scmp.lt.s32.totalorder %s46_s30, %s46_s30 }
   0x6   :  { %p28868_p0 = scmp.ne.s32.totalorder %s46_s30, %s28867_s15  ;;  %p28873_p2 = scmp.lt.s32.totalorder %s28867_s15, %s28867_s15 }
   0x8   :  { %p28874_p3 = por %p28873_p2, %p28872_p1 }
   0xa   :  { %p28875_p4 = pnand %p28874_p3, %p28868_p0 }
   0xc   :  { %28878 = shalt.err (!%p28875_p4)
}
   0xd   :  { %s29008_s16 = smov 128   ;;  %s29009_s17 = smov 8  }
   0xe   :  { %51 = dma.hbm_to_vmem [thread:$0]  %s34808_s4, 2304, %s46_s30, [#allocation5], %s29008_s16, %s29008_s16, %s29009_s17  }
   0xf   :  { %s29010_s20 = smov [#allocation7]   ;;  %s29011_s22 = smov [#allocation10]  }
  0x10   :  { %s73_s21 = sshll.u32 %s29010_s20, 4  ;;  %s97_s23 = sshll.u32 %s29011_s22, 4  ;;  %s74_s21 = int_to_ptr.vmem [resolvable:$true] %s73_s21  ;;  %s98_s23 = int_to_ptr.vmem [resolvable:$true] %s97_s23 }
  0x11   :  { %s28887_s24 = scalar_lea.vmem %s74_s21, 4608  ;;  %p28892_p6 = scmp.lt.s32.totalorder %s74_s21, %s74_s21 }
  0x12   :  { %p28888_p5 = scmp.ne.s32.totalorder %s74_s21, %s28887_s24  ;;  %p28893_p7 = scmp.lt.s32.totalorder %s28887_s24, %s28887_s24 }
  0x14   :  { %p28894_p8 = por %p28893_p7, %p28892_p6 }
  0x16   :  { %p28895_p9 = pnand %p28894_p8, %p28888_p5 }
  0x18   :  { %28898 = shalt.err (!%p28895_p9)
}
  0x19   :  { %79 = dma.hbm_to_vmem [thread:$0]  %s34812_s8, 4608, %s74_s21, [#allocation8], %s29008_s16, %s29008_s16, %s29009_s17  }
  0x1a   :  { %s28907_s4 = scalar_lea.vmem %s98_s23, 144  ;;  %s28911_s27 = scalar_lea.vmem %s98_s23, 160 }
  0x1b   :  { %p28908_p10 = scmp.ne.s32.totalorder %s98_s23, %s28907_s4  ;;  %p28912_p11 = scmp.lt.s32.totalorder %s98_s23, %s98_s23 }
  0x1c   :  { %p28913_p12 = scmp.lt.s32.totalorder %s28911_s27, %s28907_s4 }
  0x1e   :  { %p28914_p13 = por %p28913_p12, %p28912_p11 }
  0x20   :  { %p28915_p0 = pnand %p28914_p13, %p28908_p10 }
  0x22   :  { %28918 = shalt.err (!%p28915_p0)
}
  0x23   :  { %s29012_s28 = smov 16   ;;  %s29013_s29 = smov 1  }
  0x24   :  { %103 = dma.hbm_to_vmem [thread:$0]  %s34814_s10, 144, %s98_s23, [#allocation11], %s29012_s28, %s29012_s28, %s29013_s29  }
  0x25   :  { %s29014_s18 = smov [#allocation2]   ;;  %s29015_s19 = smov [#allocation6]  }
  0x26   :  { %s34_s8 = sshll.u32 %s29014_s18, 4  ;;  %s61_s20 = sshll.u32 %s29015_s19, 4  ;;  %s35_s8 = int_to_ptr.vmem [resolvable:$true] %s34_s8  ;;  %s62_s20 = int_to_ptr.vmem [resolvable:$true] %s61_s20 }
  0x27   :  { %s28927_s21 = scalar_lea.vmem %s35_s8, 128  ;;  %p28932_p2 = scmp.lt.s32.totalorder %s35_s8, %s35_s8 }
  0x28   :  { %p28928_p1 = scmp.ne.s32.totalorder %s35_s8, %s28927_s21  ;;  %p28933_p3 = scmp.lt.s32.totalorder %s28927_s21, %s28927_s21 }
  0x2a   :  { %p28934_p4 = por %p28933_p3, %p28932_p2 }
  0x2c   :  { %p28935_p5 = pnand %p28934_p4, %p28928_p1 }
  0x2e   :  { %28938 = shalt.err (!%p28935_p5)
}
  0x2f   :  { %37 = dma.hbm_to_vmem [thread:$0]  %s34806_s2, 128, %s35_s8, [#allocation3]  }
  0x30   :  { %s28947_s25 = scalar_lea.vmem %s62_s20, 8192  ;;  %p28952_p7 = scmp.lt.s32.totalorder %s62_s20, %s62_s20 }
  0x31   :  { %p28948_p6 = scmp.ne.s32.totalorder %s62_s20, %s28947_s25  ;;  %p28953_p8 = scmp.lt.s32.totalorder %s28947_s25, %s28947_s25 }
  0x33   :  { %p28954_p9 = por %p28953_p8, %p28952_p7 }
  0x35   :  { %p28955_p10 = pnand %p28954_p9, %p28948_p6 }
  0x37   :  { %28958 = shalt.err (!%p28955_p10)
}
  0x38   :  { %67 = dma.hbm_to_vmem [thread:$0]  %s34811_s7, 8192, %s62_s20, [#allocation5], %s29008_s16, %s29008_s16, %s29009_s17  }
  0x39   :  { %s29016_s26 = smov [#allocation9]   ;;  %s29017_s27 = smov [#allocation12]  }
  0x3a   :  { %s85_s4 = sshll.u32 %s29016_s26, 4  ;;  %s109_s2 = sshll.u32 %s29017_s27, 4  ;;  %s86_s4 = int_to_ptr.vmem [resolvable:$true] %s85_s4  ;;  %s110_s2 = int_to_ptr.vmem [resolvable:$true] %s109_s2 }
  0x3b   :  { %s28967_s30 = scalar_lea.vmem %s86_s4, 512  ;;  %p28972_p12 = scmp.lt.s32.totalorder %s86_s4, %s86_s4 }
  0x3c   :  { %p28968_p11 = scmp.ne.s32.totalorder %s86_s4, %s28967_s30  ;;  %p28973_p13 = scmp.lt.s32.totalorder %s28967_s30, %s28967_s30 }
  0x3e   :  { %p28974_p0 = por %p28973_p13, %p28972_p12 }
  0x40   :  { %p28975_p1 = pnand %p28974_p0, %p28968_p11 }
  0x42   :  { %28978 = shalt.err (!%p28975_p1)
}
  0x43   :  { %91 = dma.hbm_to_vmem [thread:$0]  %s34813_s9, 512, %s86_s4, [#allocation8], %s29008_s16, %s29008_s16, %s29009_s17  }
  0x44   :  { %s28987_s7 = scalar_lea.vmem %s110_s2, 2048  ;;  %p28992_p3 = scmp.lt.s32.totalorder %s110_s2, %s110_s2 }
  0x45   :  { %p28988_p2 = scmp.ne.s32.totalorder %s110_s2, %s28987_s7  ;;  %p28993_p4 = scmp.lt.s32.totalorder %s28987_s7, %s28987_s7 }
  0x47   :  { %p28994_p5 = por %p28993_p4, %p28992_p3 }
  0x49   :  { %p28995_p6 = pnand %p28994_p5, %p28988_p2 }
  0x4b   :  { %28998 = shalt.err (!%p28995_p6)
}
  0x4c   :  { %115 = dma.hbm_to_vmem [thread:$0]  %s34815_s11, 2048, %s110_s2, [#allocation11], %s29008_s16, %s29008_s16, %s29009_s17  }
  0x4d   :  { %28999 = dma.done.wait [#allocation3], 128  }
  0x4e   :  { %29000 = vsyncadd [#allocation3], 4294967168 }
  0x4f   :  { %29001 = dma.done.wait [#allocation5], 10496  }
  0x50   :  { %29002 = vsyncadd [#allocation5], 4294956800 }
  0x51   :  { %29003 = dma.done.wait [#allocation8], 5120  }
  0x52   :  { %29004 = vsyncadd [#allocation8], 4294962176 }
  0x53   :  { %29005 = dma.done.wait [#allocation11], 2192  }
  0x54   :  { %29006 = vsyncadd [#allocation11], 4294965104  ;;  %v34819_v0 = vmov 0.0   ;;  %v29151_v1 = vld [vmem:[%s34804_s0] sm:$0x77]  ;;  %s29020_s16 = smov 15   ;;  %v154_v6 = vlaneseq }
  0x55   :  { %313 = vmatprep.mubr.f32.mxu0 %v34819_v0  ;;  %399 = vmatprep.mubr.f32.mxu1 %v34819_v0  ;;  %v29156_v2 = vld [vmem:[%s34804_s0 + $0x8] sm:$0x77]  ;;  %v29166_v4 = vcombine.high %v29151_v1, %v29151_v1  ;;  %s29019_s0 = smov 17   ;;  %s29021_s22 = smov 127   ;;  %vm230_vm0 = vcmask 23552   ;;  %vm234_vm2 = vcmask 1042432  }
  0x56   :  { %188 = vrot.lane.b32.xlu0 %v29151_v1, %s29012_s28  ;;  %v29162_v3 = vcombine.high %v29156_v2, %v29156_v2  ;;  %s29022_s24 = smov 113   ;;  %s29023_s25 = smov 112   ;;  %v27121_v5 = vld [vmem:[%s34805_s1 + $0x8] sm:$0xff]  ;;  %v164_v8 = vshrl.u32 %v154_v6, 7  ;;  %v29236_v10 = vand.u32 127, %v154_v6  ;;  %v187_v53 = vld [vmem:[%s34805_s1] sm:$0xff] }
  0x57   :  { %s29024_s10 = smov 111   ;;  %v232_v7 = vsel %vm230_vm0, %v27121_v5, 0  ;;  %v27120_v12 = vld [vmem:[%s34807_s3 + $0x4] sm:$0xf]  ;;  %v29270_v32 = vld [vmem:[%s34807_s3] sm:$0xf] }
  0x58   :  { %194 = vrot.lane.b32.xlu1 %v29162_v3, %s29012_s28  ;;  %v29234_v9 = vand.u32 4294901760, %v232_v7  ;;  %35176 = vst [vmem:[#allocation17_spill] sm:$0xff] %v29236_v10  ;;  %v29238_v11 = vsub.s32 0, %v164_v8  ;;  %v29246_v14 = vsub.s32 1, %v164_v8  ;;  %v29248_v16 = vsub.s32 2, %v164_v8  ;;  %s29026_s19 = smov 9  }
  0x59   :  { %v29250_v17 = vsub.s32 3, %v164_v8  ;;  %vm196_vm1 = vcmp.lt.s32.totalorder %v29236_v10, 16  ;;  %vm156_vm3 = vcmp.lt.s32.totalorder %v29236_v10, 17  ;;  %v1178_v61 = vsel %vm230_vm0, %v187_v53, 0  ;;  %s29027_s21 = smov 7   ;;  %s29029_s11 = smov 120  }
  0x5a   :  { %190 = vrot.lane.b32.xlu0 %v29166_v4, %s29012_s28  ;;  %35177 = vst [vmem:[#allocation18_spill] sm:$0xff] %v29238_v11  ;;  %v29244_v13 = vsub.f32 %v232_v7, %v29234_v9  ;;  %35178 = vst [vmem:[#allocation19_spill] sm:$0xff] %v29246_v14  ;;  %v207_v18 = vrot.slane %v27120_v12, %v29238_v11  ;;  %v211_v21 = vrot.slane %v27120_v12, %v29246_v14  ;;  %vm9116_vm10 = vcmask 64512   ;;  %s29030_s23 = smov 119  }
  0x5b   :  { %35179 = vst [vmem:[#allocation20_spill] sm:$0xff] %v29248_v16  ;;  %35180 = vst [vmem:[#allocation21_spill] sm:$0xff] %v29250_v17  ;;  %v215_v25 = vrot.slane %v27120_v12, %v29248_v16  ;;  %v219_v26 = vrot.slane %v27120_v12, %v29250_v17  ;;  %v170_v43 = vrot.slane %v29270_v32, %v29246_v14  ;;  %v29309_v12 = vand.u32 4294901760, %v1178_v61 }
  0x5c   :  { %192 = vrot.lane.b32.xlu1 %v29156_v2, %s29012_s28  ;;  %v29255_v19 = vand.u32 4294901760, %v29244_v13  ;;  %v166_v56 = vrot.slane %v29270_v32, %v29238_v11  ;;  %vm2130_vm4 = vcmp.lt.s32.totalorder %v29236_v10, 15  ;;  %vm3121_vm5 = vcmp.lt.s32.totalorder %v29236_v10, 1 }
  0x5d   :  { %vm5059_vm6 = vcmp.lt.s32.totalorder %v29236_v10, 127  ;;  %vm6050_vm7 = vcmp.lt.s32.totalorder %v29236_v10, 113  ;;  %vm7041_vm8 = vcmp.lt.s32.totalorder %v29236_v10, 112  ;;  %vm8032_vm9 = vcmp.lt.s32.totalorder %v29236_v10, 111 }
  0x5e   :  { %146 = vrot.lane.b32.xlu0 %v29151_v1, %s29019_s0  ;;  %v317_v28 = vsub.f32 %v29244_v13, %v29255_v19  ;;  %vm20712_vm11 = vcmask 130048   ;;  %vm20662_vm12 = vcmask 523264  }
  0x60   :  { %148 = vrot.lane.b32.xlu1 %v29166_v4, %s29019_s0  ;;  %v29281_v42 = vand.u32 4294901760, %v317_v28  ;;  %v174_v28 = vrot.slane %v29270_v32, %v29248_v16 }
  0x62   :  { %152 = vrot.lane.b32.xlu0 %v29162_v3, %s29019_s0 }
  0x64   :  { %150 = vrot.lane.b32.xlu1 %v29156_v2, %s29019_s0 }
  0x66   :  { %2122 = vrot.lane.b32.xlu0 %v29151_v1, %s29020_s16 }
  0x68   :  { %2124 = vrot.lane.b32.xlu1 %v29166_v4, %s29020_s16 }
  0x6a   :  { %2128 = vrot.lane.b32.xlu0 %v29162_v3, %s29020_s16 }
  0x6c   :  { %2126 = vrot.lane.b32.xlu1 %v29156_v2, %s29020_s16 }
  0x6e   :  { %3113 = vrot.lane.b32.xlu0 %v29151_v1, %s29013_s29 }
  0x70   :  { %3115 = vrot.lane.b32.xlu1 %v29166_v4, %s29013_s29 }
  0x72   :  { %3119 = vrot.lane.b32.xlu0 %v29162_v3, %s29013_s29 }
  0x74   :  { %3117 = vrot.lane.b32.xlu1 %v29156_v2, %s29013_s29 }
  0x76   :  { %5053 = vrot.lane.b32.xlu0 %v29166_v4, %s29021_s22 }
  0x78   :  { %5055 = vrot.lane.b32.xlu1 %v29156_v2, %s29021_s22 }
  0x7a   :  { %5051 = vrot.lane.b32.xlu0 %v29151_v1, %s29021_s22 }
  0x7c   :  { %5057 = vrot.lane.b32.xlu1 %v29162_v3, %s29021_s22 }
  0x7e   :  { %6044 = vrot.lane.b32.xlu0 %v29166_v4, %s29022_s24 }
  0x80   :  { %6046 = vrot.lane.b32.xlu1 %v29156_v2, %s29022_s24 }
  0x82   :  { %6042 = vrot.lane.b32.xlu0 %v29151_v1, %s29022_s24 }
  0x84   :  { %6048 = vrot.lane.b32.xlu1 %v29162_v3, %s29022_s24 }
  0x86   :  { %7035 = vrot.lane.b32.xlu0 %v29166_v4, %s29023_s25 }
  0x88   :  { %7037 = vrot.lane.b32.xlu1 %v29156_v2, %s29023_s25 }
  0x8a   :  { %7033 = vrot.lane.b32.xlu0 %v29151_v1, %s29023_s25 }
  0x8c   :  { %7039 = vrot.lane.b32.xlu1 %v29162_v3, %s29023_s25 }
  0x8e   :  { %8026 = vrot.lane.b32.xlu0 %v29166_v4, %s29024_s10 }
  0x90   :  { %8028 = vrot.lane.b32.xlu1 %v29156_v2, %s29024_s10 }
  0x92   :  { %8024 = vrot.lane.b32.xlu0 %v29151_v1, %s29024_s10 }
  0x94   :  { %8030 = vrot.lane.b32.xlu1 %v29162_v3, %s29024_s10 }
  0xc8   :  { %v189_v15 = vpop.permute.xlu0 %188 }
  0xca   :  { %v195_v20 = vpop.permute.xlu1 %194 }
  0xcb   :  { %v200_v22 = vsel %vm196_vm1, %v195_v20, %v189_v15 }
  0xcc   :  { %v224_v23 = vmul.f32 %v207_v18, %v200_v22  ;;  %v191_v24 = vpop.permute.xlu0 %190 }
  0xcd   :  { %v199_v27 = vsel %vm196_vm1, %v189_v15, %v191_v24 }
  0xce   :  { %v236_v29 = vsel %vm234_vm2, %v224_v23, 0  ;;  %v225_v30 = vmul.f32 %v211_v21, %v199_v27  ;;  %v193_v31 = vpop.permute.xlu1 %192  ;;  %v178_v23 = vrot.slane %v29270_v32, %v29250_v17 }
  0xcf   :  { %v29272_v33 = vand.u32 4294901760, %v236_v29  ;;  %v197_v34 = vsel %vm196_vm1, %v193_v31, %v195_v20  ;;  %v198_v35 = vsel %vm196_vm1, %v191_v24, %v193_v31  ;;  %v29321_v24 = vsub.f32 %v1178_v61, %v29309_v12 }
  0xd0   :  { %v239_v36 = vsel %vm234_vm2, %v225_v30, 0  ;;  %v226_v37 = vmul.f32 %v215_v25, %v198_v35  ;;  %v227_v38 = vmul.f32 %v219_v26, %v197_v34  ;;  %v147_v39 = vpop.permute.xlu0 %146 }
  0xd1   :  { %v362_v40 = vsub.f32 %v236_v29, %v29272_v33  ;;  %v277_v41 = vand.u32 4294901760, %v239_v36  ;;  %v29339_v35 = vand.u32 4294901760, %v29321_v24 }
  0xd2   :  { %v242_v44 = vsel %vm234_vm2, %v226_v37, 0  ;;  %v245_v45 = vsel %vm234_vm2, %v227_v38, 0  ;;  %v149_v46 = vpop.permute.xlu1 %148 }
  0xd3   :  { %v29287_v47 = vand.u32 4294901760, %v245_v45  ;;  %278 = vmatprep.subr.mxu0 %v277_v41  ;;  %v356_v48 = vsub.f32 %v239_v36, %v277_v41  ;;  %v363_v49 = vand.u32 4294901760, %v362_v40  ;;  %v29289_v50 = vand.u32 4294901760, %v242_v44 }
  0xd4   :  { %280 = vmatpush1.msra.mxu0 %v29272_v33  ;;  %v159_v51 = vsel %vm156_vm3, %v147_v39, %v149_v46  ;;  %v153_v52 = vpop.permute.xlu0 %152 }
  0xd5   :  { %319 = vmatmul.mubr.f32.vlgmr.msra.gmra.mxu0 %v29281_v42  ;;  %439 = vmatprep.subr.mxu0 %v356_v48  ;;  %v357_v54 = vand.u32 4294901760, %v356_v48  ;;  %v184_v55 = vmul.f32 %v170_v43, %v159_v51  ;;  %v364_v57 = vsub.f32 %v362_v40, %v363_v49  ;;  %v160_v58 = vsel %vm156_vm3, %v153_v52, %v147_v39 }
  0xd6   :  { %442 = vmatpush1.msra.mxu0 %v362_v40  ;;  %475 = vmatprep.mubr.f32.mxu0 %v34819_v0  ;;  %v821_v59 = vsub.f32 %v245_v45, %v29287_v47  ;;  %v827_v62 = vsub.f32 %v242_v44, %v29289_v50  ;;  %v183_v5 = vmul.f32 %v166_v56, %v160_v58  ;;  %v151_v15 = vpop.permute.xlu1 %150 }
  0xd7   :  { %593 = vmatprep.subr.mxu0 %v357_v54  ;;  %v358_v60 = vsub.f32 %v356_v48, %v357_v54  ;;  %v1184_v7 = vsel %vm234_vm2, %v184_v55, 0  ;;  %v365_v8 = vand.u32 4294901760, %v364_v57  ;;  %v157_v25 = vsel %vm156_vm3, %v151_v15, %v153_v52  ;;  %v27123_v54 = vld [vmem:[%s34805_s1 + $0x10] sm:$0xff] }
  0xd8   :  { %v822_v6 = vand.u32 4294901760, %v821_v59  ;;  %v828_v18 = vand.u32 4294901760, %v827_v62  ;;  %v29312_v20 = vand.u32 4294901760, %v1184_v7  ;;  %v1181_v21 = vsel %vm234_vm2, %v183_v5, 0  ;;  %v2123_v38 = vpop.permute.xlu0 %2122 }
  0xd9   :  { %478 = vmatmul.mubr.f32.vlgmr.msra.gmra.mxu0 %v29244_v13  ;;  %v359_v63 = vand.u32 4294901760, %v358_v60  ;;  %v29326_v26 = vand.u32 4294901760, %v1181_v21  ;;  %v158_v31 = vsel %vm156_vm3, %v149_v46, %v151_v15  ;;  %v186_v34 = vmul.f32 %v178_v23, %v157_v25 }
  0xda   :  { %597 = vmatpush1.msra.mxu0 %v363_v49  ;;  %630 = vmatprep.mubr.f32.mxu0 %v34819_v0  ;;  %v823_v22 = vsub.f32 %v821_v59, %v822_v6  ;;  %v829_v27 = vsub.f32 %v827_v62, %v828_v18  ;;  %v1301_v30 = vsub.f32 %v1184_v7, %v29312_v20 }
  0xdb   :  { %743 = vmatprep.subr.mxu0 %v29287_v47  ;;  %360 = vmatprep.subr.mxu1 %v359_v63  ;;  %v29342_v32 = vsub.f32 %v1181_v21, %v29326_v26  ;;  %v185_v37 = vmul.f32 %v174_v28, %v158_v31  ;;  %v1190_v39 = vsel %vm234_vm2, %v186_v34, 0  ;;  %v1262_v40 = vsub.f32 %v29321_v24, %v29339_v35 }
  0xdc   :  { %366 = vmatpush1.msra.mxu1 %v365_v8  ;;  %v824_v29 = vand.u32 4294901760, %v823_v22  ;;  %v830_v36 = vand.u32 4294901760, %v829_v27  ;;  %v29364_v44 = vand.u32 4294901760, %v1190_v39  ;;  %v2129_v51 = vpop.permute.xlu0 %2128 }
  0xdd   :  { %401 = vmatmul.mubr.f32.vlgmr.msra.gmra.mxu1 %v29234_v9  ;;  %515 = vmatprep.subr.mxu1 %v277_v41  ;;  %v1187_v43 = vsel %vm234_vm2, %v185_v37, 0  ;;  %v29370_v46 = vand.u32 4294901760, %v1262_v40  ;;  %v2134_v58 = vsel %vm2130_vm4, %v2129_v51, %v2123_v38 }
  0xde   :  { %632 = vmatmul.mubr.f32.vlgmr.msra.gmra.mxu0 %v29234_v9  ;;  %517 = vmatpush1.msra.mxu1 %v29272_v33  ;;  %v29379_v52 = vand.u32 4294901760, %v1187_v43  ;;  %v1766_v56 = vsub.f32 %v1190_v39, %v29364_v44 }
  0xdf   :  { %745 = vmatpush1.msra.mxu0 %v29289_v50  ;;  %669 = vmatprep.subr.mxu1 %v277_v41  ;;  %v29355_v41 = vld [vmem:[%s34807_s3 + $0x8] sm:$0xf] }
  0xe0   :  { %904 = vmatprep.subr.mxu0 %v821_v59  ;;  %550 = vmatprep.mubr.f32.mxu1 %v34819_v0  ;;  %v2145_v48 = vrot.slane %v29355_v41, %v29246_v14  ;;  %v2141_v55 = vrot.slane %v29355_v41, %v29238_v11  ;;  %v2165_v59 = vsel %vm230_vm0, %v27123_v54, 0  ;;  %v1767_v61 = vand.u32 4294901760, %v1766_v56 }
  0xe1   :  { %778 = vmatprep.mubr.f32.mxu0 %v34819_v0  ;;  %554 = vmatmul.mubr.f32.vlgmr.msra.gmra.mxu1 %v29255_v19  ;;  %v29403_v63 = vand.u32 4294901760, %v2165_v59  ;;  %v2153_v15 = vrot.slane %v29355_v41, %v29250_v17  ;;  %v2149_v25 = vrot.slane %v29355_v41, %v29248_v16 }
  0xe2   :  { %671 = vmatpush1.msra.mxu1 %v29272_v33  ;;  %784 = vmatmul.mubr.f32.vlgmr.msra.gmra.mxu0 %v29281_v42  ;;  %v1302_v33 = vand.u32 4294901760, %v1301_v30  ;;  %v1308_v42 = vand.u32 4294901760, %v29342_v32  ;;  %v1768_v8 = vsub.f32 %v1766_v56, %v1767_v61 }
  0xe3   :  { %907 = vmatpush1.msra.mxu0 %v827_v62  ;;  %825 = vmatprep.subr.mxu1 %v824_v29 }
  0xe4   :  { %1058 = vmatprep.subr.mxu0 %v822_v6  ;;  %704 = vmatprep.mubr.f32.mxu1 %v34819_v0  ;;  %v1303_v45 = vsub.f32 %v1301_v30, %v1302_v33  ;;  %v1309_v53 = vsub.f32 %v29342_v32, %v1308_v42  ;;  %v1769_v27 = vand.u32 4294901760, %v1768_v8 }
  0xe5   :  { %940 = vmatprep.mubr.f32.mxu0 %v34819_v0  ;;  %706 = vmatmul.mubr.f32.vlgmr.msra.gmra.mxu1 %v29234_v9 }
  0xe6   :  { %831 = vmatpush1.msra.mxu1 %v830_v36  ;;  %943 = vmatmul.mubr.f32.vlgmr.msra.gmra.mxu0 %v29244_v13  ;;  %v29361_v13 = vpop.permute.xlu1 %2124  ;;  %v1310_v60 = vand.u32 4294901760, %v1309_v53  ;;  %v3114_v36 = vpop.permute.xlu0 %3113 }
  0xe7   :  { %1062 = vmatpush1.msra.mxu0 %v828_v18  ;;  %980 = vmatprep.subr.mxu1 %v29287_v47  ;;  %v2133_v49 = vsel %vm2130_vm4, %v2123_v38, %v29361_v13  ;;  %v29418_v18 = vsub.f32 %v2165_v59, %v29403_v63  ;;  %v29454_v38 = vld [vmem:[%s34807_s3 + $0xc] sm:$0xf] }
  0xe8   :  { %864 = vmatprep.mubr.f32.mxu1 %v34819_v0  ;;  %1095 = vmatprep.mubr.f32.mxu0 %v34819_v0  ;;  %v2159_v57 = vmul.f32 %v2145_v48, %v2133_v49  ;;  %v3132_v53 = vrot.slane %v29454_v38, %v29238_v11 }
  0xe9   :  { %1223 = vmatprep.subr.mxu0 %v29312_v20  ;;  %866 = vmatmul.mubr.f32.vlgmr.msra.gmra.mxu1 %v29234_v9 }
  0xea   :  { %982 = vmatpush1.msra.mxu1 %v29289_v50  ;;  %1097 = vmatmul.mubr.f32.vlgmr.msra.gmra.mxu0 %v29234_v9  ;;  %v2171_v62 = vsel %vm234_vm2, %v2159_v57, 0  ;;  %v2127_v5 = vpop.permute.xlu1 %2126 }
  0xeb   :  { %1225 = vmatpush1.msra.mxu0 %v29326_v26  ;;  %1134 = vmatprep.subr.mxu1 %v29287_v47  ;;  %v1304_v47 = vand.u32 4294901760, %v1303_v45  ;;  %v29408_v7 = vand.u32 4294901760, %v2171_v62  ;;  %v2131_v21 = vsel %vm2130_vm4, %v2127_v5, %v2129_v51  ;;  %v27125_v51 = vld [vmem:[%s34805_s1 + $0x18] sm:$0xff] }
  0xec   :  { %1384 = vmatprep.subr.mxu0 %v1301_v30  ;;  %1015 = vmatprep.mubr.f32.mxu1 %v34819_v0  ;;  %v2161_v29 = vmul.f32 %v2153_v15, %v2131_v21  ;;  %v29438_v30 = vand.u32 4294901760, %v29418_v18  ;;  %v3140_v21 = vrot.slane %v29454_v38, %v29248_v16 }
  0xed   :  { %1258 = vmatprep.mubr.f32.mxu0 %v34819_v0  ;;  %1019 = vmatmul.mubr.f32.vlgmr.msra.gmra.mxu1 %v29255_v19  ;;  %v1772_v19 = vsub.f32 %v1187_v43, %v29379_v52  ;;  %v2288_v28 = vsub.f32 %v2171_v62, %v29408_v7  ;;  %v3136_v43 = vrot.slane %v29454_v38, %v29246_v14 }
  0xee   :  { %1136 = vmatpush1.msra.mxu1 %v29289_v50  ;;  %1264 = vmatmul.mubr.f32.vlgmr.msra.gmra.mxu0 %v29370_v46  ;;  %v2158_v50 = vmul.f32 %v2141_v55, %v2134_v58  ;;  %v2177_v37 = vsel %vm234_vm2, %v2161_v29, 0 }
  0xef   :  { %1387 = vmatpush1.msra.mxu0 %v29342_v32  ;;  %1305 = vmatprep.subr.mxu1 %v1304_v47  ;;  %v1773_v6 = vand.u32 4294901760, %v1772_v19  ;;  %v29463_v41 = vand.u32 4294901760, %v2177_v37 }
  0xf0   :  { %1538 = vmatprep.subr.mxu0 %v1302_v33  ;;  %1169 = vmatprep.mubr.f32.mxu1 %v34819_v0  ;;  %v2249_v33 = vsub.f32 %v29418_v18, %v29438_v30 }
  0xf1   :  { %1420 = vmatprep.mubr.f32.mxu0 %v34819_v0  ;;  %1171 = vmatmul.mubr.f32.vlgmr.msra.gmra.mxu1 %v29234_v9  ;;  %v2168_v9 = vsel %vm234_vm2, %v2158_v50, 0  ;;  %v1774_v23 = vsub.f32 %v1772_v19, %v1773_v6  ;;  %v2753_v54 = vsub.f32 %v2177_v37, %v29463_v41 }
  0xf2   :  { %1311 = vmatpush1.msra.mxu1 %v1310_v60  ;;  %1423 = vmatmul.mubr.f32.vlgmr.msra.gmra.mxu0 %v29321_v24  ;;  %v29424_v22 = vand.u32 4294901760, %v2168_v9 }
  0xf3   :  { %1542 = vmatpush1.msra.mxu0 %v1308_v42  ;;  %1460 = vmatprep.subr.mxu1 %v29312_v20  ;;  %v1775_v34 = vand.u32 4294901760, %v1774_v23  ;;  %v2754_v58 = vand.u32 4294901760, %v2753_v54 }
  0xf4   :  { %1688 = vmatprep.subr.mxu0 %v29364_v44  ;;  %1344 = vmatprep.mubr.f32.mxu1 %v34819_v0  ;;  %v29441_v31 = vsub.f32 %v2168_v9, %v29424_v22 }
  0xf5   :  { %1575 = vmatprep.mubr.f32.mxu0 %v34819_v0  ;;  %1346 = vmatmul.mubr.f32.vlgmr.msra.gmra.mxu1 %v29309_v12  ;;  %v2755_v62 = vsub.f32 %v2753_v54, %v2754_v58 }
  0xf6   :  { %1462 = vmatpush1.msra.mxu1 %v29326_v26  ;;  %1577 = vmatmul.mubr.f32.vlgmr.msra.gmra.mxu0 %v29309_v12  ;;  %v2295_v39 = vand.u32 4294901760, %v29441_v31 }
  0xf7   :  { %1690 = vmatpush1.msra.mxu0 %v29379_v52  ;;  %1614 = vmatprep.subr.mxu1 %v29312_v20  ;;  %v2132_v20 = vsel %vm2130_vm4, %v29361_v13, %v2127_v5  ;;  %v29469_v13 = vand.u32 4294901760, %v2249_v33  ;;  %v3144_v5 = vrot.slane %v29454_v38, %v29250_v17  ;;  %v2756_v23 = vand.u32 4294901760, %v2755_v62 }
  0xf8   :  { %1849 = vmatprep.subr.mxu0 %v1766_v56  ;;  %1495 = vmatprep.mubr.f32.mxu1 %v34819_v0  ;;  %v2160_v32 = vmul.f32 %v2149_v25, %v2132_v20  ;;  %v2296_v49 = vsub.f32 %v29441_v31, %v2295_v39  ;;  %v3156_v56 = vsel %vm230_vm0, %v27125_v51, 0 }
  0xf9   :  { %1723 = vmatprep.mubr.f32.mxu0 %v34819_v0  ;;  %1499 = vmatmul.mubr.f32.vlgmr.msra.gmra.mxu1 %v29339_v35 }
  0xfa   :  { %1616 = vmatpush1.msra.mxu1 %v29326_v26  ;;  %1729 = vmatmul.mubr.f32.vlgmr.msra.gmra.mxu0 %v29370_v46  ;;  %v2289_v26 = vand.u32 4294901760, %v2288_v28  ;;  %v2174_v40 = vsel %vm234_vm2, %v2160_v32, 0  ;;  %v3120_v46 = vpop.permute.xlu0 %3119  ;;  %v2297_v57 = vand.u32 4294901760, %v2296_v49 }
  0xfb   :  { %1852 = vmatpush1.msra.mxu0 %v1772_v19  ;;  %1770 = vmatprep.subr.mxu1 %v1769_v27  ;;  %v29478_v48 = vand.u32 4294901760, %v2174_v40  ;;  %v3125_v55 = vsel %vm3121_vm5, %v3120_v46, %v3114_v36  ;;  %v29502_v19 = vand.u32 4294901760, %v3156_v56 }
  0xfc   :  { %2003 = vmatprep.subr.mxu0 %v1767_v61  ;;  %1649 = vmatprep.mubr.f32.mxu1 %v34819_v0  ;;  %v2290_v42 = vsub.f32 %v2288_v28, %v2289_v26 }
  0xfd   :  { %1885 = vmatprep.mubr.f32.mxu0 %v34819_v0  ;;  %1651 = vmatmul.mubr.f32.vlgmr.msra.gmra.mxu1 %v29309_v12 }
  0xfe   :  { %1776 = vmatpush1.msra.mxu1 %v1775_v34  ;;  %1888 = vmatmul.mubr.f32.vlgmr.msra.gmra.mxu0 %v29321_v24  ;;  %v29460_v24 = vpop.permute.xlu1 %3115 }
  0xff   :  { %2007 = vmatpush1.msra.mxu0 %v1773_v6  ;;  %1925 = vmatprep.subr.mxu1 %v29364_v44  ;;  %v3124_v45 = vsel %vm3121_vm5, %v3114_v36, %v29460_v24  ;;  %v29517_v6 = vsub.f32 %v3156_v56, %v29502_v19 }
 0x100   :  { %1809 = vmatprep.mubr.f32.mxu1 %v34819_v0  ;;  %2040 = vmatprep.mubr.f32.mxu0 %v34819_v0  ;;  %v3150_v47 = vmul.f32 %v3136_v43, %v3124_v45  ;;  %v4111_v45 = vsel %vm234_vm2, %v29166_v4, 0 }
 0x101   :  { %2210 = vmatprep.subr.mxu0 %v29408_v7  ;;  %1811 = vmatmul.mubr.f32.vlgmr.msra.gmra.mxu1 %v29309_v12  ;;  %v29584_v49 = vand.u32 4294901760, %v4111_v45 }
 0x102   :  { %1927 = vmatpush1.msra.mxu1 %v29379_v52  ;;  %2042 = vmatmul.mubr.f32.vlgmr.msra.gmra.mxu0 %v29309_v12  ;;  %v3162_v59 = vsel %vm234_vm2, %v3150_v47, 0  ;;  %v3118_v60 = vpop.permute.xlu1 %3117 }
 0x103   :  { %2212 = vmatpush1.msra.mxu0 %v29424_v22  ;;  %2079 = vmatprep.subr.mxu1 %v29364_v44  ;;  %v2291_v44 = vand.u32 4294901760, %v2290_v42  ;;  %v29507_v61 = vand.u32 4294901760, %v3162_v59  ;;  %v3122_v9 = vsel %vm3121_vm5, %v3118_v60, %v3120_v46 }
 0x104   :  { %2371 = vmatprep.subr.mxu0 %v2288_v28  ;;  %1960 = vmatprep.mubr.f32.mxu1 %v34819_v0  ;;  %v3152_v27 = vmul.f32 %v3144_v5, %v3122_v9  ;;  %v29537_v28 = vand.u32 4294901760, %v29517_v6 }
 0x105   :  { %2245 = vmatprep.mubr.f32.mxu0 %v34819_v0  ;;  %1964 = vmatmul.mubr.f32.vlgmr.msra.gmra.mxu1 %v29339_v35  ;;  %v2759_v35 = vsub.f32 %v2174_v40, %v29478_v48  ;;  %v3279_v25 = vsub.f32 %v3162_v59, %v29507_v61  ;;  %v4115_v59 = vsel %vm234_vm2, %v29162_v3, 0 }
 0x106   :  { %2081 = vmatpush1.msra.mxu1 %v29379_v52  ;;  %2251 = vmatmul.mubr.f32.vlgmr.msra.gmra.mxu0 %v29469_v13  ;;  %v3149_v52 = vmul.f32 %v3132_v53, %v3125_v55  ;;  %v3240_v32 = vsub.f32 %v29517_v6, %v29537_v28  ;;  %v29599_v53 = vsub.f32 %v4111_v45, %v29584_v49  ;;  %v29632_v3 = vpop.permute.xlu1 %5055 }
 0x107   :  { %2374 = vmatpush1.msra.mxu0 %v29441_v31  ;;  %2292 = vmatprep.subr.mxu1 %v2291_v44  ;;  %v2760_v50 = vand.u32 4294901760, %v2759_v35  ;;  %v3280_v34 = vand.u32 4294901760, %v3279_v25 }
 0x108   :  { %2525 = vmatprep.subr.mxu0 %v2289_v26  ;;  %2114 = vmatprep.mubr.f32.mxu1 %v34819_v0  ;;  %v3241_v33 = vand.u32 4294901760, %v3240_v32 }
 0x109   :  { %2407 = vmatprep.mubr.f32.mxu0 %v34819_v0  ;;  %2116 = vmatmul.mubr.f32.vlgmr.msra.gmra.mxu1 %v29309_v12  ;;  %v3159_v12 = vsel %vm234_vm2, %v3149_v52, 0  ;;  %v2761_v15 = vsub.f32 %v2759_v35, %v2760_v50 }
 0x10a   :  { %2298 = vmatpush1.msra.mxu1 %v2297_v57  ;;  %2410 = vmatmul.mubr.f32.vlgmr.msra.gmra.mxu0 %v29418_v18  ;;  %v29523_v8 = vand.u32 4294901760, %v3159_v12  ;;  %v5054_v57 = vpop.permute.xlu0 %5053 }
 0x10b   :  { %2529 = vmatpush1.msra.mxu0 %v2295_v39  ;;  %2447 = vmatprep.subr.mxu1 %v29408_v7  ;;  %v2762_v29 = vand.u32 4294901760, %v2761_v15  ;;  %v5061_v9 = vsel %vm5059_vm6, %v5054_v57, %v29632_v3 }
 0x10c   :  { %2675 = vmatprep.subr.mxu0 %v29463_v41  ;;  %2331 = vmatprep.mubr.f32.mxu1 %v34819_v0  ;;  %v3285_v20 = vsub.f32 %v3159_v12, %v29523_v8  ;;  %v29636_v12 = vand.u32 4294901760, %v4115_v59 }
 0x10d   :  { %2562 = vmatprep.mubr.f32.mxu0 %v34819_v0  ;;  %2333 = vmatmul.mubr.f32.vlgmr.msra.gmra.mxu1 %v29403_v63 }
 0x10e   :  { %2449 = vmatpush1.msra.mxu1 %v29424_v22  ;;  %2564 = vmatmul.mubr.f32.vlgmr.msra.gmra.mxu0 %v29403_v63  ;;  %v3286_v26 = vand.u32 4294901760, %v3285_v20 }
 0x10f   :  { %2677 = vmatpush1.msra.mxu0 %v29478_v48  ;;  %2601 = vmatprep.subr.mxu1 %v29408_v7  ;;  %v3123_v7 = vsel %vm3121_vm5, %v29460_v24, %v3118_v60  ;;  %v27126_v24 = vld [vmem:[%s34805_s1 + $0x20] sm:$0xff]  ;;  %v29624_v60 = vld [vmem:[%s34807_s3 + $0x14] sm:$0xf] }
 0x110   :  { %2836 = vmatprep.subr.mxu0 %v2753_v54  ;;  %2482 = vmatprep.mubr.f32.mxu1 %v34819_v0  ;;  %v3151_v31 = vmul.f32 %v3140_v21, %v3123_v7  ;;  %v3287_v39 = vsub.f32 %v3285_v20, %v3286_v26  ;;  %v5074_v62 = vrot.slane %v29624_v60, %v29246_v14  ;;  %v27128_v21 = vld [vmem:[%s34805_s1 + $0x28] sm:$0xff] }
 0x111   :  { %2710 = vmatprep.mubr.f32.mxu0 %v34819_v0  ;;  %2486 = vmatmul.mubr.f32.vlgmr.msra.gmra.mxu1 %v29438_v30 }
 0x112   :  { %2603 = vmatpush1.msra.mxu1 %v29424_v22  ;;  %2716 = vmatmul.mubr.f32.vlgmr.msra.gmra.mxu0 %v29469_v13  ;;  %v3168_v22 = vsel %vm234_vm2, %v3152_v27, 0  ;;  %v3165_v36 = vsel %vm234_vm2, %v3151_v31, 0  ;;  %v3288_v43 = vand.u32 4294901760, %v3287_v39  ;;  %v5088_v7 = vmul.f32 %v5074_v62, %v5061_v9 }
 0x113   :  { %2839 = vmatpush1.msra.mxu0 %v2759_v35  ;;  %2757 = vmatprep.subr.mxu1 %v2756_v23  ;;  %v29551_v37 = vand.u32 4294901760, %v3168_v22  ;;  %v29559_v38 = vand.u32 4294901760, %v3165_v36  ;;  %v4227_v35 = vand.u32 4294901760, %v29599_v53  ;;  %v5070_v23 = vrot.slane %v29624_v60, %v29238_v11 }
 0x114   :  { %2990 = vmatprep.subr.mxu0 %v2754_v58  ;;  %2636 = vmatprep.mubr.f32.mxu1 %v34819_v0 }
 0x115   :  { %2872 = vmatprep.mubr.f32.mxu0 %v34819_v0  ;;  %2638 = vmatmul.mubr.f32.vlgmr.msra.gmra.mxu1 %v29403_v63  ;;  %v3744_v42 = vsub.f32 %v3168_v22, %v29551_v37  ;;  %v3750_v13 = vsub.f32 %v3165_v36, %v29559_v38  ;;  %v5100_v22 = vsel %vm234_vm2, %v5088_v7, 0  ;;  %v5058_v36 = vpop.permute.xlu1 %5057 }
 0x116   :  { %2763 = vmatpush1.msra.mxu1 %v2762_v29  ;;  %2875 = vmatmul.mubr.f32.vlgmr.msra.gmra.mxu0 %v29418_v18  ;;  %v3281_v18 = vsub.f32 %v3279_v25, %v3280_v34 }
 0x117   :  { %2994 = vmatpush1.msra.mxu0 %v2760_v50  ;;  %2912 = vmatprep.subr.mxu1 %v29463_v41  ;;  %v4113_v50 = vsel %vm234_vm2, %v29156_v2, 0 }
 0x118   :  { %2796 = vmatprep.mubr.f32.mxu1 %v34819_v0  ;;  %3027 = vmatprep.mubr.f32.mxu0 %v34819_v0  ;;  %v3282_v40 = vand.u32 4294901760, %v3281_v18 }
 0x119   :  { %3201 = vmatprep.subr.mxu0 %v29507_v61  ;;  %2798 = vmatmul.mubr.f32.vlgmr.msra.gmra.mxu1 %v29403_v63 }
 0x11a   :  { %2914 = vmatpush1.msra.mxu1 %v29478_v48  ;;  %3029 = vmatmul.mubr.f32.vlgmr.msra.gmra.mxu0 %v29403_v63 }
 0x11b   :  { %3203 = vmatpush1.msra.mxu0 %v29523_v8  ;;  %3066 = vmatprep.subr.mxu1 %v29463_v41  ;;  %v4107_v41 = vsel %vm230_vm0, %v27126_v24, 0 }
 0x11c   :  { %3362 = vmatprep.subr.mxu0 %v3279_v25  ;;  %2947 = vmatprep.mubr.f32.mxu1 %v34819_v0  ;;  %v29577_v46 = vand.u32 4294901760, %v4107_v41  ;;  %v4691_v25 = vsub.f32 %v4115_v59, %v29636_v12 }
 0x11d   :  { %3236 = vmatprep.mubr.f32.mxu0 %v34819_v0  ;;  %2951 = vmatmul.mubr.f32.vlgmr.msra.gmra.mxu1 %v29438_v30  ;;  %v3745_v30 = vand.u32 4294901760, %v3744_v42 }
 0x11e   :  { %3068 = vmatpush1.msra.mxu1 %v29478_v48  ;;  %3242 = vmatmul.mubr.f32.vlgmr.msra.gmra.mxu0 %v3241_v33  ;;  %v4109_v48 = vsel %vm234_vm2, %v29151_v1, 0  ;;  %v29593_v1 = vsub.f32 %v4107_v41, %v29577_v46 }
 0x11f   :  { %3365 = vmatpush1.msra.mxu0 %v3285_v20  ;;  %3283 = vmatprep.subr.mxu1 %v3282_v40  ;;  %v3746_v4 = vsub.f32 %v3744_v42, %v3745_v30  ;;  %v29590_v51 = vand.u32 4294901760, %v4109_v48 }
 0x120   :  { %3516 = vmatprep.subr.mxu0 %v3280_v34  ;;  %3101 = vmatprep.mubr.f32.mxu1 %v34819_v0  ;;  %v29605_v47 = vand.u32 4294901760, %v29593_v1  ;;  %v4692_v34 = vand.u32 4294901760, %v4691_v25 }
 0x121   :  { %3398 = vmatprep.mubr.f32.mxu0 %v34819_v0  ;;  %3103 = vmatmul.mubr.f32.vlgmr.msra.gmra.mxu1 %v29403_v63  ;;  %v3751_v63 = vand.u32 4294901760, %v3750_v13  ;;  %v3747_v54 = vand.u32 4294901760, %v3746_v4  ;;  %v29608_v55 = vsub.f32 %v4109_v48, %v29590_v51 }
 0x122   :  { %3289 = vmatpush1.msra.mxu1 %v3288_v43  ;;  %3401 = vmatmul.mubr.f32.vlgmr.msra.gmra.mxu0 %v29517_v6  ;;  %v4187_v52 = vsub.f32 %v29593_v1, %v29605_v47  ;;  %v4693_v18 = vsub.f32 %v4691_v25, %v4692_v34  ;;  %v5060_v43 = vsel %vm5059_vm6, %v29632_v3, %v5058_v36  ;;  %v27130_v3 = vld [vmem:[%s34805_s1 + $0x30] sm:$0xff] }
 0x123   :  { %3520 = vmatpush1.msra.mxu0 %v3286_v26  ;;  %3438 = vmatprep.subr.mxu1 %v29507_v61  ;;  %v3752_v44 = vsub.f32 %v3750_v13, %v3751_v63  ;;  %v4233_v58 = vand.u32 4294901760, %v29608_v55 }
 0x124   :  { %3666 = vmatprep.subr.mxu0 %v29551_v37  ;;  %3322 = vmatprep.mubr.f32.mxu1 %v34819_v0  ;;  %v29640_v2 = vand.u32 4294901760, %v4187_v52  ;;  %v4694_v41 = vand.u32 4294901760, %v4693_v18 }
 0x125   :  { %3553 = vmatprep.mubr.f32.mxu0 %v34819_v0  ;;  %3324 = vmatmul.mubr.f32.vlgmr.msra.gmra.mxu1 %v29502_v19  ;;  %v3753_v56 = vand.u32 4294901760, %v3752_v44  ;;  %v4234_v5 = vsub.f32 %v29608_v55, %v4233_v58 }
 0x126   :  { %3440 = vmatpush1.msra.mxu1 %v29523_v8  ;;  %3555 = vmatmul.mubr.f32.vlgmr.msra.gmra.mxu0 %v29502_v19 }
 0x127   :  { %3668 = vmatpush1.msra.mxu0 %v29559_v38  ;;  %3592 = vmatprep.subr.mxu1 %v29507_v61  ;;  %v4228_v61 = vsub.f32 %v29599_v53, %v4227_v35  ;;  %v4235_v27 = vand.u32 4294901760, %v4234_v5 }
 0x128   :  { %3827 = vmatprep.subr.mxu0 %v3744_v42  ;;  %3473 = vmatprep.mubr.f32.mxu1 %v34819_v0  ;;  %v5078_v42 = vrot.slane %v29624_v60, %v29248_v16 }
 0x129   :  { %3701 = vmatprep.mubr.f32.mxu0 %v34819_v0  ;;  %3477 = vmatmul.mubr.f32.vlgmr.msra.gmra.mxu1 %v29537_v28  ;;  %v4229_v15 = vand.u32 4294901760, %v4228_v61 }
 0x12a   :  { %3594 = vmatpush1.msra.mxu1 %v29523_v8  ;;  %3707 = vmatmul.mubr.f32.vlgmr.msra.gmra.mxu0 %v3241_v33  ;;  %v5052_v8 = vpop.permute.xlu0 %5051  ;;  %v5082_v33 = vrot.slane %v29624_v60, %v29250_v17 }
 0x12b   :  { %3830 = vmatpush1.msra.mxu0 %v3750_v13  ;;  %3748 = vmatprep.subr.mxu1 %v3747_v54  ;;  %v5062_v20 = vsel %vm5059_vm6, %v5052_v8, %v5054_v57  ;;  %v5063_v24 = vsel %vm5059_vm6, %v5058_v36, %v5052_v8  ;;  %v29723_v54 = vld [vmem:[%s34807_s3 + $0x18] sm:$0xf]  ;;  %v6085_v8 = vsel %vm230_vm0, %v27130_v3, 0 }
 0x12c   :  { %3981 = vmatprep.subr.mxu0 %v3745_v30  ;;  %3627 = vmatprep.mubr.f32.mxu1 %v34819_v0  ;;  %v5087_v31 = vmul.f32 %v5070_v23, %v5062_v20  ;;  %v5090_v30 = vmul.f32 %v5082_v33, %v5063_v24  ;;  %v6061_v62 = vrot.slane %v29723_v54, %v29238_v11 }
 0x12d   :  { %3863 = vmatprep.mubr.f32.mxu0 %v34819_v0  ;;  %3629 = vmatmul.mubr.f32.vlgmr.msra.gmra.mxu1 %v29502_v19  ;;  %v6069_v36 = vrot.slane %v29723_v54, %v29248_v16 }
 0x12e   :  { %3754 = vmatpush1.msra.mxu1 %v3753_v56  ;;  %3866 = vmatmul.mubr.f32.vlgmr.msra.gmra.mxu0 %v29517_v6  ;;  %v29645_v6 = vand.u32 4294901760, %v4113_v50  ;;  %v6045_v44 = vpop.permute.xlu0 %6044 }
 0x12f   :  { %3985 = vmatpush1.msra.mxu0 %v3751_v63  ;;  %3903 = vmatprep.subr.mxu1 %v29551_v37 }
 0x130   :  { %3787 = vmatprep.mubr.f32.mxu1 %v34819_v0  ;;  %4018 = vmatprep.mubr.f32.mxu0 %v34819_v0  ;;  %v4697_v29 = vsub.f32 %v4113_v50, %v29645_v6 }
 0x131   :  { %3789 = vmatmul.mubr.f32.vlgmr.msra.gmra.mxu1 %v29502_v19  ;;  %4148 = vmatprep.subr.mxu0 %v29584_v49 }
 0x132   :  { %3905 = vmatpush1.msra.mxu1 %v29559_v38  ;;  %4020 = vmatmul.mubr.f32.vlgmr.msra.gmra.mxu0 %v29502_v19  ;;  %v4698_v32 = vand.u32 4294901760, %v4697_v29  ;;  %v6043_v60 = vpop.permute.xlu0 %6042 }
 0x133   :  { %4057 = vmatprep.subr.mxu1 %v29551_v37  ;;  %3938 = vmatprep.mubr.f32.mxu1 %v34819_v0  ;;  %v5097_v37 = vsel %vm234_vm2, %v5087_v31, 0  ;;  %v6053_v9 = vsel %vm6050_vm7, %v6043_v60, %v6045_v44 }
 0x134   :  { %4150 = vmatpush1.msra.mxu0 %v29590_v51  ;;  %4183 = vmatprep.mubr.f32.mxu0 %v34819_v0  ;;  %v29695_v40 = vand.u32 4294901760, %v5097_v37 }
 0x135   :  { %3942 = vmatmul.mubr.f32.vlgmr.msra.gmra.mxu1 %v29537_v28  ;;  %4309 = vmatprep.subr.mxu0 %v29599_v53  ;;  %v5094_v28 = vsel %vm230_vm0, %v27128_v21, 0 }
 0x136   :  { %4059 = vmatpush1.msra.mxu1 %v29559_v38  ;;  %4189 = vmatmul.mubr.f32.vlgmr.msra.gmra.mxu0 %v29640_v2  ;;  %v29674_v26 = vand.u32 4294901760, %v5094_v28  ;;  %v4699_v38 = vsub.f32 %v4697_v29, %v4698_v32  ;;  %v5223_v63 = vsub.f32 %v5097_v37, %v29695_v40 }
 0x137   :  { %4092 = vmatprep.mubr.f32.mxu1 %v34819_v0  ;;  %4312 = vmatpush1.msra.mxu0 %v29608_v55 }
 0x138   :  { %4345 = vmatprep.mubr.f32.mxu0 %v34819_v0  ;;  %4230 = vmatprep.subr.mxu1 %v4229_v15  ;;  %v29689_v39 = vsub.f32 %v5094_v28, %v29674_v26  ;;  %v4700_v45 = vand.u32 4294901760, %v4699_v38  ;;  %v5224_v55 = vand.u32 4294901760, %v5223_v63  ;;  %v6073_v28 = vrot.slane %v29723_v54, %v29250_v17 }
 0x139   :  { %4094 = vmatmul.mubr.f32.vlgmr.msra.gmra.mxu1 %v29502_v19  ;;  %4463 = vmatprep.subr.mxu0 %v4227_v35  ;;  %v29679_v19 = vand.u32 4294901760, %v5100_v22 }
 0x13a   :  { %4348 = vmatmul.mubr.f32.vlgmr.msra.gmra.mxu0 %v29593_v1  ;;  %4236 = vmatpush1.msra.mxu1 %v4235_v27  ;;  %v29709_v48 = vand.u32 4294901760, %v29689_v39  ;;  %v5225_v61 = vsub.f32 %v5223_v63, %v5224_v55 }
 0x13b   :  { %4269 = vmatprep.mubr.f32.mxu1 %v34819_v0  ;;  %4467 = vmatpush1.msra.mxu0 %v4233_v58  ;;  %v5217_v13 = vsub.f32 %v5100_v22, %v29679_v19  ;;  %v6065_v58 = vrot.slane %v29723_v54, %v29246_v14 }
 0x13c   :  { %4500 = vmatprep.mubr.f32.mxu0 %v34819_v0  ;;  %4385 = vmatprep.subr.mxu1 %v29584_v49  ;;  %v5178_v53 = vsub.f32 %v29689_v39, %v29709_v48  ;;  %v5226_v15 = vand.u32 4294901760, %v5225_v61 }
 0x13d   :  { %4271 = vmatmul.mubr.f32.vlgmr.msra.gmra.mxu1 %v29577_v46  ;;  %4613 = vmatprep.subr.mxu0 %v29636_v12  ;;  %v5218_v4 = vand.u32 4294901760, %v5217_v13 }
 0x13e   :  { %4502 = vmatmul.mubr.f32.vlgmr.msra.gmra.mxu0 %v29577_v46  ;;  %4387 = vmatpush1.msra.mxu1 %v29590_v51  ;;  %v29737_v52 = vand.u32 4294901760, %v5178_v53 }
 0x13f   :  { %4420 = vmatprep.mubr.f32.mxu1 %v34819_v0  ;;  %4615 = vmatpush1.msra.mxu0 %v29645_v6  ;;  %v5219_v57 = vsub.f32 %v5217_v13, %v5218_v4 }
 0x140   :  { %4648 = vmatprep.mubr.f32.mxu0 %v34819_v0  ;;  %4539 = vmatprep.subr.mxu1 %v29584_v49  ;;  %v5089_v49 = vmul.f32 %v5078_v42, %v5060_v43 }
 0x141   :  { %4424 = vmatmul.mubr.f32.vlgmr.msra.gmra.mxu1 %v29605_v47  ;;  %4774 = vmatprep.subr.mxu0 %v4691_v25  ;;  %v29768_v25 = vand.u32 4294901760, %v6085_v8 }
 0x142   :  { %4654 = vmatmul.mubr.f32.vlgmr.msra.gmra.mxu0 %v29640_v2  ;;  %4541 = vmatpush1.msra.mxu1 %v29590_v51  ;;  %v5106_v51 = vsel %vm234_vm2, %v5090_v30, 0  ;;  %v5103_v56 = vsel %vm234_vm2, %v5089_v49, 0  ;;  %v5220_v2 = vand.u32 4294901760, %v5219_v57  ;;  %v27132_v57 = vld [vmem:[%s34805_s1 + $0x38] sm:$0xff] }
 0x143   :  { %4574 = vmatprep.mubr.f32.mxu1 %v34819_v0  ;;  %4777 = vmatpush1.msra.mxu0 %v4697_v29  ;;  %v29731_v35 = vand.u32 4294901760, %v5106_v51  ;;  %v29746_v50 = vand.u32 4294901760, %v5103_v56  ;;  %v29783_v31 = vsub.f32 %v6085_v8, %v29768_v25  ;;  %v7076_v61 = vsel %vm230_vm0, %v27132_v57, 0 }
 0x144   :  { %4810 = vmatprep.mubr.f32.mxu0 %v34819_v0  ;;  %4928 = vmatprep.subr.mxu0 %v4692_v34 }
 0x145   :  { %4576 = vmatmul.mubr.f32.vlgmr.msra.gmra.mxu1 %v29577_v46  ;;  %4695 = vmatprep.subr.mxu1 %v4694_v41  ;;  %v5682_v5 = vsub.f32 %v5106_v51, %v29731_v35  ;;  %v29803_v38 = vand.u32 4294901760, %v29783_v31 }
 0x146   :  { %4813 = vmatmul.mubr.f32.vlgmr.msra.gmra.mxu0 %v29593_v1  ;;  %4701 = vmatpush1.msra.mxu1 %v4700_v45  ;;  %v29728_v1 = vpop.permute.xlu1 %6046  ;;  %v29819_v45 = vld [vmem:[%s34807_s3 + $0x1c] sm:$0xf] }
 0x147   :  { %4932 = vmatpush1.msra.mxu0 %v4698_v32  ;;  %4734 = vmatprep.mubr.f32.mxu1 %v34819_v0  ;;  %v6052_v59 = vsel %vm6050_vm7, %v6045_v44, %v29728_v1  ;;  %v5683_v21 = vand.u32 4294901760, %v5682_v5  ;;  %v6169_v30 = vsub.f32 %v29783_v31, %v29803_v38  ;;  %v7056_v53 = vrot.slane %v29819_v45, %v29246_v14 }
 0x148   :  { %4965 = vmatprep.mubr.f32.mxu0 %v34819_v0  ;;  %5139 = vmatprep.subr.mxu0 %v29679_v19 }
 0x149   :  { %4736 = vmatmul.mubr.f32.vlgmr.msra.gmra.mxu1 %v29577_v46  ;;  %4850 = vmatprep.subr.mxu1 %v29636_v12  ;;  %v5684_v29 = vsub.f32 %v5682_v5, %v5683_v21  ;;  %v29834_v51 = vand.u32 4294901760, %v6169_v30 }
 0x14a   :  { %4967 = vmatmul.mubr.f32.vlgmr.msra.gmra.mxu0 %v29577_v46  ;;  %4852 = vmatpush1.msra.mxu1 %v29645_v6  ;;  %v6049_v7 = vpop.permute.xlu1 %6048 }
 0x14b   :  { %5141 = vmatpush1.msra.mxu0 %v29695_v40  ;;  %4885 = vmatprep.mubr.f32.mxu1 %v34819_v0  ;;  %v6054_v34 = vsel %vm6050_vm7, %v6049_v7, %v6043_v60  ;;  %v5685_v37 = vand.u32 4294901760, %v5684_v29 }
 0x14c   :  { %5300 = vmatprep.subr.mxu0 %v5217_v13  ;;  %5004 = vmatprep.subr.mxu1 %v29636_v12  ;;  %v6079_v12 = vmul.f32 %v6065_v58, %v6052_v59  ;;  %v6081_v33 = vmul.f32 %v6073_v28, %v6054_v34  ;;  %v7036_v13 = vpop.permute.xlu0 %7035 }
 0x14d   :  { %5174 = vmatprep.mubr.f32.mxu0 %v34819_v0  ;;  %4889 = vmatmul.mubr.f32.vlgmr.msra.gmra.mxu1 %v29605_v47  ;;  %v5688_v47 = vsub.f32 %v5103_v56, %v29746_v50 }
 0x14e   :  { %5006 = vmatpush1.msra.mxu1 %v29645_v6  ;;  %5180 = vmatmul.mubr.f32.vlgmr.msra.gmra.mxu0 %v29737_v52  ;;  %v6078_v6 = vmul.f32 %v6061_v62, %v6053_v9  ;;  %v6091_v23 = vsel %vm234_vm2, %v6079_v12, 0  ;;  %v6097_v43 = vsel %vm234_vm2, %v6081_v33, 0 }
 0x14f   :  { %5303 = vmatpush1.msra.mxu0 %v5223_v63  ;;  %5221 = vmatprep.subr.mxu1 %v5220_v2  ;;  %v5689_v27 = vand.u32 4294901760, %v5688_v47  ;;  %v29773_v20 = vand.u32 4294901760, %v6091_v23 }
 0x150   :  { %5454 = vmatprep.subr.mxu0 %v5218_v4  ;;  %5039 = vmatprep.mubr.f32.mxu1 %v34819_v0  ;;  %v29828_v4 = vand.u32 4294901760, %v6097_v43 }
 0x151   :  { %5336 = vmatprep.mubr.f32.mxu0 %v34819_v0  ;;  %5041 = vmatmul.mubr.f32.vlgmr.msra.gmra.mxu1 %v29577_v46  ;;  %v6088_v46 = vsel %vm234_vm2, %v6078_v6, 0  ;;  %v5690_v32 = vsub.f32 %v5688_v47, %v5689_v27  ;;  %v6208_v18 = vsub.f32 %v6091_v23, %v29773_v20 }
 0x152   :  { %5227 = vmatpush1.msra.mxu1 %v5226_v15  ;;  %5339 = vmatmul.mubr.f32.vlgmr.msra.gmra.mxu0 %v29689_v39  ;;  %v29789_v22 = vand.u32 4294901760, %v6088_v46  ;;  %v6673_v58 = vsub.f32 %v6097_v43, %v29828_v4  ;;  %v7064_v15 = vrot.slane %v29819_v45, %v29250_v17 }
 0x153   :  { %5458 = vmatpush1.msra.mxu0 %v5224_v55  ;;  %5376 = vmatprep.subr.mxu1 %v29679_v19  ;;  %v5691_v42 = vand.u32 4294901760, %v5690_v32  ;;  %v7034_v55 = vpop.permute.xlu0 %7033 }
 0x154   :  { %5604 = vmatprep.subr.mxu0 %v29731_v35  ;;  %5260 = vmatprep.mubr.f32.mxu1 %v34819_v0  ;;  %v29806_v24 = vsub.f32 %v6088_v46, %v29789_v22  ;;  %v7044_v60 = vsel %vm7041_vm8, %v7034_v55, %v7036_v13  ;;  %v6674_v2 = vand.u32 4294901760, %v6673_v58 }
 0x155   :  { %5491 = vmatprep.mubr.f32.mxu0 %v34819_v0  ;;  %5262 = vmatmul.mubr.f32.vlgmr.msra.gmra.mxu1 %v29674_v26 }
 0x156   :  { %5378 = vmatpush1.msra.mxu1 %v29695_v40  ;;  %5493 = vmatmul.mubr.f32.vlgmr.msra.gmra.mxu0 %v29674_v26  ;;  %v6215_v63 = vand.u32 4294901760, %v29806_v24 }
 0x157   :  { %5606 = vmatpush1.msra.mxu0 %v29746_v50  ;;  %5530 = vmatprep.subr.mxu1 %v29679_v19  ;;  %v6051_v19 = vsel %vm6050_vm7, %v29728_v1, %v6049_v7 }
 0x158   :  { %5765 = vmatprep.subr.mxu0 %v5682_v5  ;;  %5411 = vmatprep.mubr.f32.mxu1 %v34819_v0  ;;  %v6080_v41 = vmul.f32 %v6069_v36, %v6051_v19  ;;  %v6216_v56 = vsub.f32 %v29806_v24, %v6215_v63  ;;  %v29867_v5 = vand.u32 4294901760, %v7076_v61 }
 0x159   :  { %5639 = vmatprep.mubr.f32.mxu0 %v34819_v0  ;;  %5415 = vmatmul.mubr.f32.vlgmr.msra.gmra.mxu1 %v29709_v48 }
 0x15a   :  { %5532 = vmatpush1.msra.mxu1 %v29695_v40  ;;  %5645 = vmatmul.mubr.f32.vlgmr.msra.gmra.mxu0 %v29737_v52  ;;  %v6209_v40 = vand.u32 4294901760, %v6208_v18  ;;  %v6094_v49 = vsel %vm234_vm2, %v6080_v41, 0  ;;  %v7052_v52 = vrot.slane %v29819_v45, %v29238_v11  ;;  %v6217_v3 = vand.u32 4294901760, %v6216_v56 }
 0x15b   :  { %5768 = vmatpush1.msra.mxu0 %v5688_v47  ;;  %5686 = vmatprep.subr.mxu1 %v5685_v37  ;;  %v29843_v1 = vand.u32 4294901760, %v6094_v49  ;;  %v6675_v47 = vsub.f32 %v6673_v58, %v6674_v2  ;;  %v29882_v6 = vsub.f32 %v7076_v61, %v29867_v5 }
 0x15c   :  { %5919 = vmatprep.subr.mxu0 %v5683_v21  ;;  %5565 = vmatprep.mubr.f32.mxu1 %v34819_v0  ;;  %v6210_v44 = vsub.f32 %v6208_v18, %v6209_v40 }
 0x15d   :  { %5801 = vmatprep.mubr.f32.mxu0 %v34819_v0  ;;  %5567 = vmatmul.mubr.f32.vlgmr.msra.gmra.mxu1 %v29674_v26  ;;  %v6676_v46 = vand.u32 4294901760, %v6675_v47  ;;  %v29902_v34 = vand.u32 4294901760, %v29882_v6 }
 0x15e   :  { %5692 = vmatpush1.msra.mxu1 %v5691_v42  ;;  %5804 = vmatmul.mubr.f32.vlgmr.msra.gmra.mxu0 %v29689_v39  ;;  %v29825_v39 = vpop.permute.xlu1 %7037 }
 0x15f   :  { %5923 = vmatpush1.msra.mxu0 %v5689_v27  ;;  %5841 = vmatprep.subr.mxu1 %v29731_v35  ;;  %v7043_v54 = vsel %vm7041_vm8, %v7036_v13, %v29825_v39  ;;  %v7060_v27 = vrot.slane %v29819_v45, %v29248_v16  ;;  %v7160_v33 = vsub.f32 %v29882_v6, %v29902_v34 }
 0x160   :  { %5725 = vmatprep.mubr.f32.mxu1 %v34819_v0  ;;  %5956 = vmatprep.mubr.f32.mxu0 %v34819_v0  ;;  %v7070_v59 = vmul.f32 %v7056_v53, %v7043_v54 }
 0x161   :  { %6130 = vmatprep.subr.mxu0 %v29773_v20  ;;  %5727 = vmatmul.mubr.f32.vlgmr.msra.gmra.mxu1 %v29674_v26  ;;  %v29933_v43 = vand.u32 4294901760, %v7160_v33 }
 0x162   :  { %5843 = vmatpush1.msra.mxu1 %v29746_v50  ;;  %5958 = vmatmul.mubr.f32.vlgmr.msra.gmra.mxu0 %v29674_v26  ;;  %v7082_v62 = vsel %vm234_vm2, %v7070_v59, 0  ;;  %v7040_v12 = vpop.permute.xlu1 %7039 }
 0x163   :  { %6132 = vmatpush1.msra.mxu0 %v29789_v22  ;;  %5995 = vmatprep.subr.mxu1 %v29731_v35  ;;  %v6211_v35 = vand.u32 4294901760, %v6210_v44  ;;  %v29872_v8 = vand.u32 4294901760, %v7082_v62  ;;  %v7045_v21 = vsel %vm7041_vm8, %v7040_v12, %v7034_v55  ;;  %v27134_v44 = vld [vmem:[%s34805_s1 + $0x40] sm:$0xff] }
 0x164   :  { %6291 = vmatprep.subr.mxu0 %v6208_v18  ;;  %5876 = vmatprep.mubr.f32.mxu1 %v34819_v0  ;;  %v7072_v28 = vmul.f32 %v7064_v15, %v7045_v21  ;;  %v8027_v18 = vpop.permute.xlu0 %8026  ;;  %v8067_v56 = vsel %vm230_vm0, %v27134_v44, 0 }
 0x165   :  { %6165 = vmatprep.mubr.f32.mxu0 %v34819_v0  ;;  %5880 = vmatmul.mubr.f32.vlgmr.msra.gmra.mxu1 %v29709_v48  ;;  %v6679_v48 = vsub.f32 %v6094_v49, %v29843_v1  ;;  %v7199_v29 = vsub.f32 %v7082_v62, %v29872_v8 }
 0x166   :  { %5997 = vmatpush1.msra.mxu1 %v29746_v50  ;;  %6171 = vmatmul.mubr.f32.vlgmr.msra.gmra.mxu0 %v29834_v51  ;;  %v7069_v50 = vmul.f32 %v7052_v52, %v7044_v60  ;;  %v7088_v19 = vsel %vm234_vm2, %v7072_v28, 0 }
 0x167   :  { %6294 = vmatpush1.msra.mxu0 %v29806_v24  ;;  %6212 = vmatprep.subr.mxu1 %v6211_v35  ;;  %v6680_v9 = vand.u32 4294901760, %v6679_v48  ;;  %v29918_v24 = vld [vmem:[%s34807_s3 + $0x20] sm:$0xf] }
 0x168   :  { %6445 = vmatprep.subr.mxu0 %v6209_v40  ;;  %6030 = vmatprep.mubr.f32.mxu1 %v34819_v0  ;;  %v29927_v40 = vand.u32 4294901760, %v7088_v19  ;;  %v8047_v30 = vrot.slane %v29918_v24, %v29246_v14 }
 0x169   :  { %6327 = vmatprep.mubr.f32.mxu0 %v34819_v0  ;;  %6032 = vmatmul.mubr.f32.vlgmr.msra.gmra.mxu1 %v29674_v26  ;;  %v7079_v26 = vsel %vm234_vm2, %v7069_v50, 0  ;;  %v6681_v7 = vsub.f32 %v6679_v48, %v6680_v9 }
 0x16a   :  { %6218 = vmatpush1.msra.mxu1 %v6217_v3  ;;  %6330 = vmatmul.mubr.f32.vlgmr.msra.gmra.mxu0 %v29783_v31  ;;  %v29888_v23 = vand.u32 4294901760, %v7079_v26  ;;  %v7664_v53 = vsub.f32 %v7088_v19, %v29927_v40  ;;  %v8055_v3 = vrot.slane %v29918_v24, %v29250_v17 }
 0x16b   :  { %6449 = vmatpush1.msra.mxu0 %v6215_v63  ;;  %6367 = vmatprep.subr.mxu1 %v29773_v20  ;;  %v6682_v36 = vand.u32 4294901760, %v6681_v7  ;;  %v8025_v63 = vpop.permute.xlu0 %8024 }
 0x16c   :  { %6595 = vmatprep.subr.mxu0 %v29828_v4  ;;  %6251 = vmatprep.mubr.f32.mxu1 %v34819_v0  ;;  %v29905_v32 = vsub.f32 %v7079_v26, %v29888_v23  ;;  %v8035_v55 = vsel %vm8032_vm9, %v8025_v63, %v8027_v18  ;;  %v7665_v35 = vand.u32 4294901760, %v7664_v53 }
 0x16d   :  { %6482 = vmatprep.mubr.f32.mxu0 %v34819_v0  ;;  %6253 = vmatmul.mubr.f32.vlgmr.msra.gmra.mxu1 %v29768_v25 }
 0x16e   :  { %6369 = vmatpush1.msra.mxu1 %v29789_v22  ;;  %6484 = vmatmul.mubr.f32.vlgmr.msra.gmra.mxu0 %v29768_v25  ;;  %v7206_v42 = vand.u32 4294901760, %v29905_v32 }
 0x16f   :  { %6597 = vmatpush1.msra.mxu0 %v29843_v1  ;;  %6521 = vmatprep.subr.mxu1 %v29773_v20  ;;  %v7042_v20 = vsel %vm7041_vm8, %v29825_v39, %v7040_v12 }
 0x170   :  { %6756 = vmatprep.subr.mxu0 %v6673_v58  ;;  %6402 = vmatprep.mubr.f32.mxu1 %v34819_v0  ;;  %v7071_v37 = vmul.f32 %v7060_v27, %v7042_v20  ;;  %v7207_v49 = vsub.f32 %v29905_v32, %v7206_v42  ;;  %v29966_v58 = vand.u32 4294901760, %v8067_v56 }
 0x171   :  { %6630 = vmatprep.mubr.f32.mxu0 %v34819_v0  ;;  %6406 = vmatmul.mubr.f32.vlgmr.msra.gmra.mxu1 %v29803_v38 }
 0x172   :  { %6523 = vmatpush1.msra.mxu1 %v29789_v22  ;;  %6636 = vmatmul.mubr.f32.vlgmr.msra.gmra.mxu0 %v29834_v51  ;;  %v7200_v22 = vand.u32 4294901760, %v7199_v29  ;;  %v7085_v41 = vsel %vm234_vm2, %v7071_v37, 0  ;;  %v8043_v51 = vrot.slane %v29918_v24, %v29238_v11  ;;  %v7208_v57 = vand.u32 4294901760, %v7207_v49 }
 0x173   :  { %6759 = vmatpush1.msra.mxu0 %v6679_v48  ;;  %6677 = vmatprep.subr.mxu1 %v6676_v46  ;;  %v29942_v39 = vand.u32 4294901760, %v7085_v41  ;;  %v7666_v48 = vsub.f32 %v7664_v53, %v7665_v35  ;;  %v29981_v50 = vsub.f32 %v8067_v56, %v29966_v58 }
 0x174   :  { %6910 = vmatprep.subr.mxu0 %v6674_v2  ;;  %6556 = vmatprep.mubr.f32.mxu1 %v34819_v0  ;;  %v7201_v13 = vsub.f32 %v7199_v29, %v7200_v22 }
 0x175   :  { %6792 = vmatprep.mubr.f32.mxu0 %v34819_v0  ;;  %6558 = vmatmul.mubr.f32.vlgmr.msra.gmra.mxu1 %v29768_v25  ;;  %v7667_v26 = vand.u32 4294901760, %v7666_v48  ;;  %v30001_v21 = vand.u32 4294901760, %v29981_v50  ;;  %v29025_v48 = vmov 0  }
 0x176   :  { %6683 = vmatpush1.msra.mxu1 %v6682_v36  ;;  %6795 = vmatmul.mubr.f32.vlgmr.msra.gmra.mxu0 %v29783_v31  ;;  %v29924_v31 = vpop.permute.xlu1 %8028 }
 0x177   :  { %6914 = vmatpush1.msra.mxu0 %v6680_v9  ;;  %6832 = vmatprep.subr.mxu1 %v29828_v4  ;;  %v8034_v45 = vsel %vm8032_vm9, %v8027_v18, %v29924_v31  ;;  %v8051_v9 = vrot.slane %v29918_v24, %v29248_v16  ;;  %v8151_v20 = vsub.f32 %v29981_v50, %v30001_v21 }
 0x178   :  { %6716 = vmatprep.mubr.f32.mxu1 %v34819_v0  ;;  %6947 = vmatprep.mubr.f32.mxu0 %v34819_v0  ;;  %v8061_v54 = vmul.f32 %v8047_v30, %v8034_v45 }
 0x179   :  { %7121 = vmatprep.subr.mxu0 %v29872_v8  ;;  %6718 = vmatmul.mubr.f32.vlgmr.msra.gmra.mxu1 %v29768_v25  ;;  %v8152_v37 = vand.u32 4294901760, %v8151_v20 }
 0x17a   :  { %6834 = vmatpush1.msra.mxu1 %v29843_v1  ;;  %6949 = vmatmul.mubr.f32.vlgmr.msra.gmra.mxu0 %v29768_v25  ;;  %v8073_v52 = vsel %vm234_vm2, %v8061_v54, 0  ;;  %v8031_v59 = vpop.permute.xlu1 %8030 }
 0x17b   :  { %7123 = vmatpush1.msra.mxu0 %v29888_v23  ;;  %6986 = vmatprep.subr.mxu1 %v29828_v4  ;;  %v7202_v4 = vand.u32 4294901760, %v7201_v13  ;;  %v29971_v61 = vand.u32 4294901760, %v8073_v52  ;;  %v8036_v2 = vsel %vm8032_vm9, %v8031_v59, %v8025_v63 }
 0x17c   :  { %7282 = vmatprep.subr.mxu0 %v7199_v29  ;;  %6867 = vmatprep.mubr.f32.mxu1 %v34819_v0  ;;  %v8063_v15 = vmul.f32 %v8055_v3, %v8036_v2  ;;  %v9015_v3 = vld [vmem:[#allocation2] sm:$0xff] }
 0x17d   :  { %7156 = vmatprep.mubr.f32.mxu0 %v34819_v0  ;;  %6871 = vmatmul.mubr.f32.vlgmr.msra.gmra.mxu1 %v29803_v38  ;;  %v7670_v38 = vsub.f32 %v7085_v41, %v29942_v39  ;;  %v8190_v47 = vsub.f32 %v8073_v52, %v29971_v61 }
 0x17e   :  { %6988 = vmatpush1.msra.mxu1 %v29843_v1  ;;  %7162 = vmatmul.mubr.f32.vlgmr.msra.gmra.mxu0 %v29933_v43  ;;  %v8060_v1 = vmul.f32 %v8043_v51, %v8035_v55 }
 0x17f   :  { %7285 = vmatpush1.msra.mxu0 %v29905_v32  ;;  %7203 = vmatprep.subr.mxu1 %v7202_v4  ;;  %v7671_v60 = vand.u32 4294901760, %v7670_v38  ;;  %v8191_v29 = vand.u32 4294901760, %v8190_v47 }
 0x180   :  { %7436 = vmatprep.subr.mxu0 %v7200_v22  ;;  %7021 = vmatprep.mubr.f32.mxu1 %v34819_v0 }
 0x181   :  { %7318 = vmatprep.mubr.f32.mxu0 %v34819_v0  ;;  %7023 = vmatmul.mubr.f32.vlgmr.msra.gmra.mxu1 %v29768_v25  ;;  %v8070_v25 = vsel %vm234_vm2, %v8060_v1, 0  ;;  %v7672_v12 = vsub.f32 %v7670_v38, %v7671_v60 }
 0x182   :  { %7209 = vmatpush1.msra.mxu1 %v7208_v57  ;;  %7321 = vmatmul.mubr.f32.vlgmr.msra.gmra.mxu0 %v29882_v6  ;;  %v29987_v62 = vand.u32 4294901760, %v8070_v25 }
 0x183   :  { %7440 = vmatpush1.msra.mxu0 %v7206_v42  ;;  %7358 = vmatprep.subr.mxu1 %v29872_v8  ;;  %v7673_v27 = vand.u32 4294901760, %v7672_v12 }
 0x184   :  { %7586 = vmatprep.subr.mxu0 %v29927_v40  ;;  %7242 = vmatprep.mubr.f32.mxu1 %v34819_v0  ;;  %v8196_v7 = vsub.f32 %v8070_v25, %v29987_v62 }
 0x185   :  { %7473 = vmatprep.mubr.f32.mxu0 %v34819_v0  ;;  %7244 = vmatmul.mubr.f32.vlgmr.msra.gmra.mxu1 %v29867_v5 }
 0x186   :  { %7360 = vmatpush1.msra.mxu1 %v29888_v23  ;;  %7475 = vmatmul.mubr.f32.vlgmr.msra.gmra.mxu0 %v29867_v5  ;;  %v8197_v28 = vand.u32 4294901760, %v8196_v7 }
 0x187   :  { %7588 = vmatpush1.msra.mxu0 %v29942_v39  ;;  %7512 = vmatprep.subr.mxu1 %v29872_v8  ;;  %v8033_v8 = vsel %vm8032_vm9, %v29924_v31, %v8031_v59 }
 0x188   :  { %7747 = vmatprep.subr.mxu0 %v7664_v53  ;;  %7393 = vmatprep.mubr.f32.mxu1 %v34819_v0  ;;  %v8062_v46 = vmul.f32 %v8051_v9, %v8033_v8  ;;  %v8198_v18 = vsub.f32 %v8196_v7, %v8197_v28 }
 0x189   :  { %7621 = vmatprep.mubr.f32.mxu0 %v34819_v0  ;;  %7397 = vmatmul.mubr.f32.vlgmr.msra.gmra.mxu1 %v29902_v34 }
 0x18a   :  { %7514 = vmatpush1.msra.mxu1 %v29888_v23  ;;  %7627 = vmatmul.mubr.f32.vlgmr.msra.gmra.mxu0 %v29933_v43  ;;  %v8079_v23 = vsel %vm234_vm2, %v8063_v15, 0  ;;  %v8076_v32 = vsel %vm234_vm2, %v8062_v46, 0  ;;  %v8199_v41 = vand.u32 4294901760, %v8198_v18 }
 0x18b   :  { %7750 = vmatpush1.msra.mxu0 %v7670_v38  ;;  %7668 = vmatprep.subr.mxu1 %v7667_v26  ;;  %v30015_v36 = vand.u32 4294901760, %v8079_v23  ;;  %v30023_v22 = vand.u32 4294901760, %v8076_v32 }
 0x18c   :  { %7901 = vmatprep.subr.mxu0 %v7665_v35  ;;  %7547 = vmatprep.mubr.f32.mxu1 %v34819_v0 }
 0x18d   :  { %7783 = vmatprep.mubr.f32.mxu0 %v34819_v0  ;;  %7549 = vmatmul.mubr.f32.vlgmr.msra.gmra.mxu1 %v29867_v5  ;;  %v8655_v24 = vsub.f32 %v8079_v23, %v30015_v36  ;;  %v8661_v31 = vsub.f32 %v8076_v32, %v30023_v22 }
 0x18e   :  { %7674 = vmatpush1.msra.mxu1 %v7673_v27  ;;  %7786 = vmatmul.mubr.f32.vlgmr.msra.gmra.mxu0 %v29882_v6  ;;  %v8192_v6 = vsub.f32 %v8190_v47, %v8191_v29 }
 0x18f   :  { %7905 = vmatpush1.msra.mxu0 %v7671_v60  ;;  %7823 = vmatprep.subr.mxu1 %v29927_v40  ;;  %v8662_v43 = vand.u32 4294901760, %v8661_v31 }
 0x190   :  { %7707 = vmatprep.mubr.f32.mxu1 %v34819_v0  ;;  %7938 = vmatprep.mubr.f32.mxu0 %v34819_v0  ;;  %v8193_v33 = vand.u32 4294901760, %v8192_v6 }
 0x191   :  { %8112 = vmatprep.subr.mxu0 %v29971_v61  ;;  %7709 = vmatmul.mubr.f32.vlgmr.msra.gmra.mxu1 %v29867_v5  ;;  %v8663_v4 = vsub.f32 %v8661_v31, %v8662_v43 }
 0x192   :  { %7825 = vmatpush1.msra.mxu1 %v29942_v39  ;;  %7940 = vmatmul.mubr.f32.vlgmr.msra.gmra.mxu0 %v29867_v5 }
 0x193   :  { %8114 = vmatpush1.msra.mxu0 %v29987_v62  ;;  %7977 = vmatprep.subr.mxu1 %v29927_v40  ;;  %v8664_v1 = vand.u32 4294901760, %v8663_v4 }
 0x194   :  { %8273 = vmatprep.subr.mxu0 %v8190_v47  ;;  %7858 = vmatprep.mubr.f32.mxu1 %v34819_v0 }
 0x195   :  { %8147 = vmatprep.mubr.f32.mxu0 %v34819_v0  ;;  %v320_v19 = vpop.f32.mrf.mxu0  ;;  %7862 = vmatmul.mubr.f32.vlgmr.msra.gmra.mxu1 %v29902_v34  ;;  %v8656_v34 = vand.u32 4294901760, %v8655_v24 }
 0x196   :  { %7979 = vmatpush1.msra.mxu1 %v29942_v39  ;;  %8153 = vmatmul.mubr.f32.vlgmr.msra.gmra.mxu0 %v8152_v37 }
 0x197   :  { %8276 = vmatpush1.msra.mxu0 %v8196_v7  ;;  %8194 = vmatprep.subr.mxu1 %v8193_v33  ;;  %v30030_v42 = vpop.f32.mrf.mxu0 }
 0x198   :  { %8427 = vmatprep.subr.mxu0 %v8191_v29  ;;  %8012 = vmatprep.mubr.f32.mxu1 %v34819_v0 }
 0x199   :  { %8309 = vmatprep.mubr.f32.mxu0 %v34819_v0  ;;  %v479_v40 = vpop.f32.mrf.mxu0  ;;  %8014 = vmatmul.mubr.f32.vlgmr.msra.gmra.mxu1 %v29867_v5  ;;  %v8657_v5 = vsub.f32 %v8655_v24, %v8656_v34 }
 0x19a   :  { %8200 = vmatpush1.msra.mxu1 %v8199_v41  ;;  %8312 = vmatmul.mubr.f32.vlgmr.msra.gmra.mxu0 %v29981_v50 }
 0x19b   :  { %8431 = vmatpush1.msra.mxu0 %v8197_v28  ;;  %8349 = vmatprep.subr.mxu1 %v29971_v61  ;;  %v30038_v13 = vpop.f32.mrf.mxu0  ;;  %v8658_v53 = vand.u32 4294901760, %v8657_v5 }
 0x19c   :  { %8577 = vmatprep.subr.mxu0 %v30015_v36  ;;  %8233 = vmatprep.mubr.f32.mxu1 %v34819_v0 }
 0x19d   :  { %8464 = vmatprep.mubr.f32.mxu0 %v34819_v0  ;;  %v402_v30 = vpop.f32.mrf.mxu1  ;;  %8235 = vmatmul.mubr.f32.vlgmr.msra.gmra.mxu1 %v29966_v58 }
 0x19e   :  { %v403_v45 = vadd.f32 %v402_v30, %v320_v19  ;;  %v633_v63 = vpop.f32.mrf.mxu0  ;;  %8351 = vmatpush1.msra.mxu1 %v29987_v62  ;;  %8466 = vmatmul.mubr.f32.vlgmr.msra.gmra.mxu0 %v29966_v58 }
 0x19f   :  { %8579 = vmatpush1.msra.mxu0 %v30023_v22  ;;  %8503 = vmatprep.subr.mxu1 %v29971_v61  ;;  %v30048_v39 = vpop.f32.mrf.mxu1 }
 0x1a0   :  { %8738 = vmatprep.subr.mxu0 %v8655_v24  ;;  %v30050_v49 = vpop.f32.mrf.mxu0  ;;  %8384 = vmatprep.mubr.f32.mxu1 %v34819_v0  ;;  %v480_v44 = vadd.f32 %v479_v40, %v403_v45 }
 0x1a1   :  { %8612 = vmatprep.mubr.f32.mxu0 %v34819_v0  ;;  %v555_v51 = vpop.f32.mrf.mxu1  ;;  %8388 = vmatmul.mubr.f32.vlgmr.msra.gmra.mxu1 %v30001_v21 }
 0x1a2   :  { %v556_v54 = vadd.f32 %v555_v51, %v480_v44  ;;  %v785_v55 = vpop.f32.mrf.mxu0  ;;  %8505 = vmatpush1.msra.mxu1 %v29987_v62  ;;  %8618 = vmatmul.mubr.f32.vlgmr.msra.gmra.mxu0 %v8152_v37 }
 0x1a3   :  { %8741 = vmatpush1.msra.mxu0 %v8661_v31  ;;  %8659 = vmatprep.subr.mxu1 %v8658_v53  ;;  %v30056_v56 = vpop.f32.mrf.mxu1 }
 0x1a4   :  { %8892 = vmatprep.subr.mxu0 %v8656_v34  ;;  %v30058_v38 = vpop.f32.mrf.mxu0  ;;  %8538 = vmatprep.mubr.f32.mxu1 %v34819_v0  ;;  %v634_v57 = vadd.f32 %v633_v63, %v556_v54 }
 0x1a5   :  { %8774 = vmatprep.mubr.f32.mxu0 %v34819_v0  ;;  %v707_v35 = vpop.f32.mrf.mxu1  ;;  %8540 = vmatmul.mubr.f32.vlgmr.msra.gmra.mxu1 %v29966_v58 }
 0x1a6   :  { %v708_v52 = vadd.f32 %v707_v35, %v634_v57  ;;  %v944_v59 = vpop.f32.mrf.mxu0  ;;  %8665 = vmatpush1.msra.mxu1 %v8664_v1  ;;  %8777 = vmatmul.mubr.f32.vlgmr.msra.gmra.mxu0 %v29981_v50 }
 0x1a7   :  { %8896 = vmatpush1.msra.mxu0 %v8662_v43  ;;  %8814 = vmatprep.subr.mxu1 %v30015_v36  ;;  %v30065_v60 = vpop.f32.mrf.mxu1 }
 0x1a8   :  { %v30067_v61 = vpop.f32.mrf.mxu0  ;;  %8698 = vmatprep.mubr.f32.mxu1 %v34819_v0  ;;  %8929 = vmatprep.mubr.f32.mxu0 %v34819_v0 }
 0x1a9   :  { %v867_v25 = vpop.f32.mrf.mxu1  ;;  %8700 = vmatmul.mubr.f32.vlgmr.msra.gmra.mxu1 %v29966_v58  ;;  %28851 = vset.pattern.permute.xlu0 %v29025_v48 }
 0x1aa   :  { %v868_v2 = vadd.f32 %v867_v25, %v785_v55  ;;  %v1098_v62 = vpop.f32.mrf.mxu0  ;;  %8816 = vmatpush1.msra.mxu1 %v30023_v22  ;;  %8849 = vmatprep.mubr.f32.mxu1 %v34819_v0 }
 0x1ab   :  { %8968 = vmatprep.subr.mxu1 %v30015_v36  ;;  %v30075_v50 = vpop.f32.mrf.mxu1  ;;  %8931 = vmatmul.mubr.f32.vlgmr.msra.gmra.mxu0 %v29966_v58 }
 0x1ac   :  { %v30078_v12 = vpop.f32.mrf.mxu0  ;;  %v945_v9 = vadd.f32 %v944_v59, %v868_v2  ;;  %9018 = vperm.xlu0 %28851, %v9015_v3   ;;  %9189 = vmatprep.mubr.f32.mxu0 %v34819_v0 }
 0x1ad   :  { %v1020_v26 = vpop.f32.mrf.mxu1  ;;  %8853 = vmatmul.mubr.f32.vlgmr.msra.gmra.mxu1 %v30001_v21  ;;  %28852 = vset.pattern.permute.xlu1 %v29025_v48 }
 0x1ae   :  { %v1021_v47 = vadd.f32 %v1020_v26, %v945_v9  ;;  %v1265_v8 = vpop.f32.mrf.mxu0  ;;  %8970 = vmatpush1.msra.mxu1 %v30023_v22  ;;  %9003 = vmatprep.mubr.f32.mxu1 %v34819_v0 }
 0x1af   :  { %v1266_v15 = vadd.f32 %v1265_v8, %v708_v52  ;;  %v30084_v7 = vpop.f32.mrf.mxu1 }
 0x1b0   :  { %v30086_v27 = vpop.f32.mrf.mxu0  ;;  %v1099_v46 = vadd.f32 %v1098_v62, %v1021_v47 }
 0x1b1   :  { %v1172_v29 = vpop.f32.mrf.mxu1  ;;  %9005 = vmatmul.mubr.f32.vlgmr.msra.gmra.mxu1 %v29966_v58 }
 0x1b2   :  { %v1173_v23 = vadd.f32 %v1172_v29, %v1099_v46  ;;  %v1424_v20 = vpop.f32.mrf.mxu0  ;;  %9286 = vmatprep.mubr.f32.mxu1 %v34819_v0 }
 0x1b3   :  { %v30090_v21 = vpop.f32.mrf.mxu1 }
 0x1b4   :  { %v30092_v28 = vpop.f32.mrf.mxu0 }
 0x1b5   :  { %v1347_v32 = vpop.f32.mrf.mxu1 }
 0x1b6   :  { %v1348_v36 = vadd.f32 %v1347_v32, %v1266_v15  ;;  %v1578_v6 = vpop.f32.mrf.mxu0 }
 0x1b7   :  { %v30094_v37 = vpop.f32.mrf.mxu1 }
 0x1b8   :  { %v30096_v22 = vpop.f32.mrf.mxu0  ;;  %v1425_v18 = vadd.f32 %v1424_v20, %v1348_v36 }
 0x1b9   :  { %v1500_v19 = vpop.f32.mrf.mxu1 }
 0x1ba   :  { %v1501_v33 = vadd.f32 %v1500_v19, %v1425_v18  ;;  %v1730_v24 = vpop.f32.mrf.mxu0 }
 0x1bb   :  { %v1731_v58 = vadd.f32 %v1730_v24, %v1173_v23  ;;  %v30098_v31 = vpop.f32.mrf.mxu1 }
 0x1bc   :  { %v30100_v41 = vpop.f32.mrf.mxu0  ;;  %v1579_v40 = vadd.f32 %v1578_v6, %v1501_v33 }
 0x1bd   :  { %v1652_v34 = vpop.f32.mrf.mxu1 }
 0x1be   :  { %v1653_v43 = vadd.f32 %v1652_v34, %v1579_v40  ;;  %v1889_v30 = vpop.f32.mrf.mxu0 }
 0x1bf   :  { %v30102_v5 = vpop.f32.mrf.mxu1 }
 0x1c0   :  { %35181 = vst [vmem:[#allocation22_spill] sm:$0xff] %v30102_v5  ;;  %v30104_v45 = vpop.f32.mrf.mxu0 }
 0x1c1   :  { %v1812_v63 = vpop.f32.mrf.mxu1 }
 0x1c2   :  { %v1813_v44 = vadd.f32 %v1812_v63, %v1731_v58  ;;  %v2043_v4 = vpop.f32.mrf.mxu0 }
 0x1c3   :  { %v30106_v51 = vpop.f32.mrf.mxu1 }
 0x1c4   :  { %v1890_v53 = vadd.f32 %v1889_v30, %v1813_v44  ;;  %v30108_v54 = vpop.f32.mrf.mxu0 }
 0x1c5   :  { %35182 = vst [vmem:[#allocation23_spill] sm:$0xff] %v30108_v54  ;;  %v1965_v55 = vpop.f32.mrf.mxu1 }
 0x1c6   :  { %v1966_v57 = vadd.f32 %v1965_v55, %v1890_v53  ;;  %v2252_v1 = vpop.f32.mrf.mxu0 }
 0x1c7   :  { %v30110_v35 = vpop.f32.mrf.mxu1 }
 0x1c8   :  { %v2044_v52 = vadd.f32 %v2043_v4, %v1966_v57  ;;  %v30112_v59 = vpop.f32.mrf.mxu0 }
 0x1c9   :  { %v2117_v25 = vpop.f32.mrf.mxu1 }
 0x1ca   :  { %v2118_v48 = vadd.f32 %v2117_v25, %v2044_v52  ;;  %v2411_v3 = vpop.f32.mrf.mxu0 }
 0x1cb   :  { %v30114_v2 = vpop.f32.mrf.mxu1 }
 0x1cc   :  { %35183 = vst [vmem:[#allocation24_spill] sm:$0xff] %v30114_v2  ;;  %v30116_v62 = vpop.f32.mrf.mxu0 }
 0x1cd   :  { %v2334_v9 = vpop.f32.mrf.mxu1 }
 0x1ce   :  { %v2335_v26 = vadd.f32 %v2334_v9, %v2252_v1  ;;  %v2565_v47 = vpop.f32.mrf.mxu0 }
 0x1cf   :  { %v30118_v8 = vpop.f32.mrf.mxu1 }
 0x1d0   :  { %v2412_v15 = vadd.f32 %v2411_v3, %v2335_v26  ;;  %v30120_v46 = vpop.f32.mrf.mxu0 }
 0x1d1   :  { %v2487_v29 = vpop.f32.mrf.mxu1 }
 0x1d2   :  { %v2488_v23 = vadd.f32 %v2487_v29, %v2412_v15  ;;  %v2717_v20 = vpop.f32.mrf.mxu0 }
 0x1d3   :  { %v30122_v32 = vpop.f32.mrf.mxu1 }
 0x1d4   :  { %v2566_v36 = vadd.f32 %v2565_v47, %v2488_v23  ;;  %v30124_v6 = vpop.f32.mrf.mxu0 }
 0x1d5   :  { %v2639_v18 = vpop.f32.mrf.mxu1 }
 0x1d6   :  { %v2640_v19 = vadd.f32 %v2639_v18, %v2566_v36  ;;  %v2876_v33 = vpop.f32.mrf.mxu0 }
 0x1d7   :  { %v30126_v24 = vpop.f32.mrf.mxu1 }
 0x1d8   :  { %v3109_v58 = vadd.f32 %v2640_v19, %v1653_v43  ;;  %v30128_v40 = vpop.f32.mrf.mxu0 }
 0x1d9   :  { %v2799_v34 = vpop.f32.mrf.mxu1 }
 0x1da   :  { %v2800_v30 = vadd.f32 %v2799_v34, %v2717_v20  ;;  %v3030_v63 = vpop.f32.mrf.mxu0 }
 0x1db   :  { %v30130_v44 = vpop.f32.mrf.mxu1 }
 0x1dc   :  { %v2877_v4 = vadd.f32 %v2876_v33, %v2800_v30  ;;  %v30132_v53 = vpop.f32.mrf.mxu0 }
 0x1dd   :  { %35184 = vst [vmem:[#allocation25_spill] sm:$0xff] %v30132_v53  ;;  %v2952_v55 = vpop.f32.mrf.mxu1 }
 0x1de   :  { %v2953_v57 = vadd.f32 %v2952_v55, %v2877_v4  ;;  %v3243_v1 = vpop.f32.mrf.mxu0 }
 0x1df   :  { %v30134_v52 = vpop.f32.mrf.mxu1 }
 0x1e0   :  { %35185 = vst [vmem:[#allocation26_spill] sm:$0xff] %v30134_v52  ;;  %v3031_v25 = vadd.f32 %v3030_v63, %v2953_v57  ;;  %v30136_v3 = vpop.f32.mrf.mxu0 }
 0x1e1   :  { %v3104_v9 = vpop.f32.mrf.mxu1 }
 0x1e2   :  { %v3105_v43 = vadd.f32 %v3104_v9, %v3031_v25  ;;  %v3402_v26 = vpop.f32.mrf.mxu0 }
 0x1e3   :  { %v30138_v47 = vpop.f32.mrf.mxu1 }
 0x1e4   :  { %35186 = vst [vmem:[#allocation27_spill] sm:$0xff] %v30138_v47  ;;  %v3111_v15 = vadd.f32 %v3105_v43, %v2118_v48  ;;  %v30140_v29 = vpop.f32.mrf.mxu0 }
 0x1e5   :  { %v3325_v23 = vpop.f32.mrf.mxu1 }
 0x1e6   :  { %v3326_v20 = vadd.f32 %v3325_v23, %v3243_v1  ;;  %v3556_v36 = vpop.f32.mrf.mxu0 }
 0x1e7   :  { %v30142_v18 = vpop.f32.mrf.mxu1 }
 0x1e8   :  { %v3403_v19 = vadd.f32 %v3402_v26, %v3326_v20  ;;  %v30144_v33 = vpop.f32.mrf.mxu0 }
 0x1e9   :  { %v3478_v34 = vpop.f32.mrf.mxu1 }
 0x1ea   :  { %v3479_v30 = vadd.f32 %v3478_v34, %v3403_v19  ;;  %v3708_v63 = vpop.f32.mrf.mxu0 }
 0x1eb   :  { %v30146_v4 = vpop.f32.mrf.mxu1 }
 0x1ec   :  { %v3557_v55 = vadd.f32 %v3556_v36, %v3479_v30  ;;  %v30148_v57 = vpop.f32.mrf.mxu0 }
 0x1ed   :  { %v3630_v25 = vpop.f32.mrf.mxu1 }
 0x1ee   :  { %v3631_v48 = vadd.f32 %v3630_v25, %v3557_v55  ;;  %v3867_v9 = vpop.f32.mrf.mxu0 }
 0x1ef   :  { %v30150_v43 = vpop.f32.mrf.mxu1 }
 0x1f0   :  { %35187 = vst [vmem:[#allocation28_spill] sm:$0xff] %v30150_v43  ;;  %v4100_v1 = vadd.f32 %v3631_v48, %v3109_v58  ;;  %v30152_v23 = vpop.f32.mrf.mxu0 }
 0x1f1   :  { %35188 = vst [vmem:[#allocation29_spill] sm:$0xff] %v30152_v23  ;;  %v3790_v0 = vpop.f32.mrf.mxu1 }
 0x1f2   :  { %v3791_v26 = vadd.f32 %v3790_v0, %v3708_v63  ;;  %v4021_v20 = vpop.f32.mrf.mxu0 }
 0x1f3   :  { %v30154_v16 = vpop.f32.mrf.mxu1 }
 0x1f4   :  { %v3868_v19 = vadd.f32 %v3867_v9, %v3791_v26  ;;  %v30156_v34 = vpop.f32.mrf.mxu0 }
 0x1f5   :  { %35189 = vst [vmem:[#allocation30_spill] sm:$0xff] %v30156_v34  ;;  %v3943_v17 = vpop.f32.mrf.mxu1 }
 0x1f6   :  { %v3944_v36 = vadd.f32 %v3943_v17, %v3868_v19  ;;  %v4190_v30 = vpop.f32.mrf.mxu0 }
 0x1f7   :  { %v30158_v11 = vpop.f32.mrf.mxu1 }
 0x1f8   :  { %35190 = vst [vmem:[#allocation31_spill] sm:$0xff] %v30158_v11  ;;  %v4022_v55 = vadd.f32 %v4021_v20, %v3944_v36  ;;  %v30160_v25 = vpop.f32.mrf.mxu0 }
 0x1f9   :  { %v4095_v10 = vpop.f32.mrf.mxu1 }
 0x1fa   :  { %v4096_v58 = vadd.f32 %v4095_v10, %v4022_v55  ;;  %v4349_v48 = vpop.f32.mrf.mxu0 }
 0x1fb   :  { %v30162_v14 = vpop.f32.mrf.mxu1 }
 0x1fc   :  { %35191 = vst [vmem:[#allocation32_spill] sm:$0xff] %v30162_v14  ;;  %v4102_v0 = vadd.f32 %v4096_v58, %v3111_v15  ;;  %v30164_v63 = vpop.f32.mrf.mxu0 }
 0x1fd   :  { %v4272_v47 = vpop.f32.mrf.mxu1 }
 0x1fe   :  { %v4273_v9 = vadd.f32 %v4272_v47, %v4190_v30  ;;  %v4503_v26 = vpop.f32.mrf.mxu0 }
 0x1ff   :  { %v30166_v34 = vpop.f32.mrf.mxu1 }
 0x200   :  { %v4350_v17 = vadd.f32 %v4349_v48, %v4273_v9  ;;  %v30168_v19 = vpop.f32.mrf.mxu0 }
 0x201   :  { %35192 = vst [vmem:[#allocation33_spill] sm:$0xff] %v30168_v19  ;;  %v4425_v53 = vpop.f32.mrf.mxu1 }
 0x202   :  { %v4426_v20 = vadd.f32 %v4425_v53, %v4350_v17  ;;  %v4655_v36 = vpop.f32.mrf.mxu0 }
 0x203   :  { %v30170_v2 = vpop.f32.mrf.mxu1 }
 0x204   :  { %v4504_v10 = vadd.f32 %v4503_v26, %v4426_v20  ;;  %v30172_v55 = vpop.f32.mrf.mxu0 }
 0x205   :  { %35193 = vst [vmem:[#allocation34_spill] sm:$0xff] %v30172_v55  ;;  %v4577_v14 = vpop.f32.mrf.mxu1 }
 0x206   :  { %v4578_v15 = vadd.f32 %v4577_v14, %v4504_v10  ;;  %v4814_v58 = vpop.f32.mrf.mxu0 }
 0x207   :  { %v30174_v11 = vpop.f32.mrf.mxu1 }
 0x208   :  { %35194 = vst [vmem:[#allocation35_spill] sm:$0xff] %v30174_v11  ;;  %v5047_v47 = vadd.f32 %v4578_v15, %v4100_v1  ;;  %v30176_v30 = vpop.f32.mrf.mxu0 }
 0x209   :  { %35195 = vst [vmem:[#allocation36_spill] sm:$0xff] %v30176_v30  ;;  %v4737_v43 = vpop.f32.mrf.mxu1 }
 0x20a   :  { %v4738_v48 = vadd.f32 %v4737_v43, %v4655_v36  ;;  %v4968_v9 = vpop.f32.mrf.mxu0 }
 0x20b   :  { %v30178_v19 = vpop.f32.mrf.mxu1 }
 0x20c   :  { %35196 = vst [vmem:[#allocation37_spill] sm:$0xff] %v30178_v19  ;;  %v4815_v53 = vadd.f32 %v4814_v58, %v4738_v48  ;;  %v30180_v17 = vpop.f32.mrf.mxu0 }
 0x20d   :  { %35197 = vst [vmem:[#allocation38_spill] sm:$0xff] %v30180_v17  ;;  %v4890_v52 = vpop.f32.mrf.mxu1 }
 0x20e   :  { %v4891_v26 = vadd.f32 %v4890_v52, %v4815_v53  ;;  %v5181_v20 = vpop.f32.mrf.mxu0 }
 0x20f   :  { %v30182_v55 = vpop.f32.mrf.mxu1 }
 0x210   :  { %35198 = vst [vmem:[#allocation39_spill] sm:$0xff] %v30182_v55  ;;  %v4969_v14 = vadd.f32 %v4968_v9, %v4891_v26  ;;  %v30184_v10 = vpop.f32.mrf.mxu0 }
 0x211   :  { %v5042_v11 = vpop.f32.mrf.mxu1 }
 0x212   :  { %v5043_v1 = vadd.f32 %v5042_v11, %v4969_v14  ;;  %v5340_v15 = vpop.f32.mrf.mxu0 }
 0x213   :  { %v30186_v30 = vpop.f32.mrf.mxu1 }
 0x214   :  { %35199 = vst [vmem:[#allocation40_spill] sm:$0xff] %v30186_v30  ;;  %v5049_v43 = vadd.f32 %v5043_v1, %v4102_v0  ;;  %v30188_v36 = vpop.f32.mrf.mxu0 }
 0x215   :  { %v5263_v19 = vpop.f32.mrf.mxu1 }
 0x216   :  { %v5264_v58 = vadd.f32 %v5263_v19, %v5181_v20  ;;  %v5494_v48 = vpop.f32.mrf.mxu0 }
 0x217   :  { %v30190_v17 = vpop.f32.mrf.mxu1 }
 0x218   :  { %v5341_v52 = vadd.f32 %v5340_v15, %v5264_v58  ;;  %v30192_v53 = vpop.f32.mrf.mxu0 }
 0x219   :  { %35200 = vst [vmem:[#allocation41_spill] sm:$0xff] %v30192_v53  ;;  %v5416_v55 = vpop.f32.mrf.mxu1 }
 0x21a   :  { %v5417_v9 = vadd.f32 %v5416_v55, %v5341_v52  ;;  %v5646_v26 = vpop.f32.mrf.mxu0 }
 0x21b   :  { %v30194_v54 = vpop.f32.mrf.mxu1 }
 0x21c   :  { %v5495_v11 = vadd.f32 %v5494_v48, %v5417_v9  ;;  %v30196_v14 = vpop.f32.mrf.mxu0 }
 0x21d   :  { %35201 = vst [vmem:[#allocation42_spill] sm:$0xff] %v30196_v14  ;;  %v5568_v30 = vpop.f32.mrf.mxu1 }
 0x21e   :  { %v5569_v0 = vadd.f32 %v5568_v30, %v5495_v11  ;;  %v5805_v1 = vpop.f32.mrf.mxu0 }
 0x21f   :  { %v30198_v5 = vpop.f32.mrf.mxu1 }
 0x220   :  { %35202 = vst [vmem:[#allocation43_spill] sm:$0xff] %v30198_v5  ;;  %v30200_v19 = vadd.f32 %v5569_v0, %v5047_v47  ;;  %v30202_v20 = vpop.f32.mrf.mxu0 }
 0x221   :  { %35204 = vst [vmem:[#allocation45_spill] sm:$0xff] %v30202_v20  ;;  %v5728_v15 = vpop.f32.mrf.mxu1 }
 0x222   :  { %35203 = vst [vmem:[#allocation44_spill] sm:$0xff] %v30200_v19  ;;  %v5729_v58 = vadd.f32 %v5728_v15, %v5646_v26  ;;  %v5959_v53 = vpop.f32.mrf.mxu0 }
 0x223   :  { %v30204_v23 = vpop.f32.mrf.mxu1 }
 0x224   :  { %v5806_v55 = vadd.f32 %v5805_v1, %v5729_v58  ;;  %v30206_v52 = vpop.f32.mrf.mxu0 }
 0x225   :  { %35205 = vst [vmem:[#allocation46_spill] sm:$0xff] %v30206_v52  ;;  %v5881_v48 = vpop.f32.mrf.mxu1 }
 0x226   :  { %v5882_v9 = vadd.f32 %v5881_v48, %v5806_v55  ;;  %v30208_v14 = vpop.f32.mrf.mxu0 }
 0x227   :  { %v30210_v30 = vpop.f32.mrf.mxu1 }
 0x228   :  { %35206 = vst [vmem:[#allocation47_spill] sm:$0xff] %v30210_v30  ;;  %v5960_v11 = vadd.f32 %v5959_v53, %v5882_v9  ;;  %v30212_v5 = vpop.f32.mrf.mxu0  ;;  %v405_v9 = vadd.f32 %v30048_v39, %v30030_v42 }
 0x229   :  { %v6033_v47 = vpop.f32.mrf.mxu1 }
 0x22a   :  { %v6034_v0 = vadd.f32 %v6033_v47, %v5960_v11  ;;  %v30214_v19 = vpop.f32.mrf.mxu0 }
 0x22b   :  { %v30216_v26 = vpop.f32.mrf.mxu1 }
 0x22c   :  { %35207 = vst [vmem:[#allocation48_spill] sm:$0xff] %v30216_v26  ;;  %v30218_v15 = vadd.f32 %v6034_v0, %v5049_v43  ;;  %v30220_v1 = vpop.f32.mrf.mxu0  ;;  %v870_v26 = vadd.f32 %v30075_v50, %v30058_v38 }
 0x22d   :  { %v6254_v58 = vpop.f32.mrf.mxu1 }
 0x22e   :  { %35208 = vst [vmem:[#allocation49_spill] sm:$0xff] %v30218_v15  ;;  %v30222_v52 = vpop.f32.mrf.mxu0  ;;  %v482_v15 = vadd.f32 %v30038_v13, %v405_v9 }
 0x22f   :  { %35209 = vst [vmem:[#allocation50_spill] sm:$0xff] %v30222_v52  ;;  %v6256_v55 = vpop.f32.mrf.mxu1 }
 0x230   :  { %v30224_v48 = vpop.f32.mrf.mxu0  ;;  %v558_v39 = vadd.f32 %v30056_v56, %v482_v15 }
 0x231   :  { %35210 = vst [vmem:[#allocation51_spill] sm:$0xff] %v30224_v48  ;;  %v30226_v30 = vpop.f32.mrf.mxu1 }
 0x232   :  { %v30228_v53 = vpop.f32.mrf.mxu0  ;;  %v636_v38 = vadd.f32 %v30050_v49, %v558_v39  ;;  %v2337_v49 = vadd.f32 %v30118_v8, %v30112_v59 }
 0x233   :  { %v30232_v11 = vpop.f32.mrf.mxu1 }
 0x234   :  { %v30234_v47 = vpop.f32.mrf.mxu0  ;;  %v710_v56 = vadd.f32 %v30065_v60, %v636_v38  ;;  %v3328_v60 = vadd.f32 %v30142_v18, %v30136_v3  ;;  %v4275_v3 = vadd.f32 %v30166_v34, %v30160_v25  ;;  %v6255_v25 = vadd.f32 %v6254_v58, %v30208_v14 }
 0x235   :  { %35211 = vst [vmem:[#allocation52_spill] sm:$0xff] %v30234_v47  ;;  %v30236_v43 = vpop.f32.mrf.mxu1  ;;  %v947_v47 = vadd.f32 %v30067_v61, %v870_v26 }
 0x236   :  { %35212 = vst [vmem:[#allocation53_spill] sm:$0xff] %v30236_v43  ;;  %v30238_v0 = vpop.f32.mrf.mxu0  ;;  %v6332_v58 = vadd.f32 %v30214_v19, %v6255_v25  ;;  %v35229_v25 = vld [vmem:[#allocation31_spill] sm:$0xff] }
 0x237   :  { %35213 = vst [vmem:[#allocation54_spill] sm:$0xff] %v30238_v0  ;;  %v30243_v20 = vpop.f32.mrf.mxu1  ;;  %v1023_v50 = vadd.f32 %v30084_v7, %v947_v47 }
 0x238   :  { %35214 = vst [vmem:[#allocation55_spill] sm:$0xff] %v30243_v20  ;;  %v30245_v48 = vpop.f32.mrf.mxu0 }
 0x239   :  { %35215 = vst [vmem:[#allocation56_spill] sm:$0xff] %v30245_v48  ;;  %v30247_v52 = vpop.f32.mrf.mxu1  ;;  %v1101_v61 = vadd.f32 %v30078_v12, %v1023_v50 }
 0x23a   :  { %35216 = vst [vmem:[#allocation57_spill] sm:$0xff] %v30247_v52  ;;  %v30249_v42 = vpop.f32.mrf.mxu0 }
 0x23b   :  { %35217 = vst [vmem:[#allocation58_spill] sm:$0xff] %v30249_v42  ;;  %v30253_v43 = vpop.f32.mrf.mxu1  ;;  %v1175_v47 = vadd.f32 %v30090_v21, %v1101_v61 }
 0x23c   :  { %v30255_v0 = vpop.f32.mrf.mxu0 }
 0x23d   :  { %35218 = vst [vmem:[#allocation59_spill] sm:$0xff] %v30255_v0  ;;  %v30257_v13 = vpop.f32.mrf.mxu1  ;;  %v1268_v0 = vadd.f32 %v30086_v27, %v710_v56  ;;  %v1733_v38 = vadd.f32 %v30100_v41, %v1175_v47  ;;  %v2414_v27 = vadd.f32 %v30116_v62, %v2337_v49 }
 0x23e   :  { %35219 = vst [vmem:[#allocation60_spill] sm:$0xff] %v30257_v13  ;;  %v7163_v9 = vpop.f32.mrf.mxu0 }
 0x23f   :  { %v30261_v48 = vpop.f32.mrf.mxu1  ;;  %v1350_v39 = vadd.f32 %v30094_v37, %v1268_v0  ;;  %v1815_v8 = vadd.f32 %v30106_v51, %v1733_v38  ;;  %v3405_v37 = vadd.f32 %v30140_v29, %v3328_v60  ;;  %v2490_v41 = vadd.f32 %v30122_v32, %v2414_v27 }
 0x240   :  { %v7165_v20 = vpop.f32.mrf.mxu0  ;;  %v5266_v51 = vadd.f32 %v30190_v17, %v30184_v10  ;;  %v2802_v29 = vadd.f32 %v30130_v44, %v30124_v6  ;;  %v4352_v32 = vadd.f32 %v30164_v63, %v4275_v3  ;;  %v3793_v17 = vadd.f32 %v30154_v16, %v30148_v57 }
 0x241   :  { %v30263_v52 = vpop.f32.mrf.mxu1  ;;  %v1427_v59 = vadd.f32 %v30092_v28, %v1350_v39  ;;  %v1892_v28 = vadd.f32 %v30104_v45, %v1815_v8  ;;  %v3481_v34 = vadd.f32 %v30146_v4, %v3405_v37  ;;  %v2568_v45 = vadd.f32 %v30120_v46, %v2490_v41  ;;  %v35225_v8 = vld [vmem:[#allocation28_spill] sm:$0xff]  ;;  %v35226_v41 = vld [vmem:[#allocation33_spill] sm:$0xff] }
 0x242   :  { %35220 = vst [vmem:[#allocation61_spill] sm:$0xff] %v30263_v52  ;;  %v7322_v42 = vpop.f32.mrf.mxu0  ;;  %v5343_v4 = vadd.f32 %v30188_v36, %v5266_v51  ;;  %v2879_v63 = vadd.f32 %v30128_v40, %v2802_v29  ;;  %v4428_v16 = vadd.f32 %v30170_v2, %v4352_v32  ;;  %v35222_v40 = vld [vmem:[#allocation22_spill] sm:$0xff]  ;;  %v6408_v37 = vadd.f32 %v30226_v30, %v6332_v58  ;;  %v35231_v30 = vld [vmem:[#allocation41_spill] sm:$0xff] }
 0x243   :  { %v30267_v26 = vpop.f32.mrf.mxu1  ;;  %v1503_v61 = vadd.f32 %v30098_v31, %v1427_v59  ;;  %v6257_v31 = vadd.f32 %v6256_v55, %v30212_v5  ;;  %v1968_v44 = vadd.f32 %v30110_v35, %v1892_v28  ;;  %v3559_v5 = vadd.f32 %v30144_v33, %v3481_v34  ;;  %v35221_v35 = vld [vmem:[#allocation29_spill] sm:$0xff]  ;;  %v35223_v33 = vld [vmem:[#allocation23_spill] sm:$0xff] }
 0x244   :  { %v7324_v15 = vpop.f32.mrf.mxu0  ;;  %v3870_v36 = vadd.f32 %v35221_v35, %v3793_v17  ;;  %v5419_v19 = vadd.f32 %v30194_v54, %v5343_v4  ;;  %v35228_v28 = vld [vmem:[#allocation37_spill] sm:$0xff]  ;;  %v35230_v17 = vld [vmem:[#allocation24_spill] sm:$0xff]  ;;  %v35236_v35 = vld [vmem:[#allocation35_spill] sm:$0xff] }
 0x245   :  { %v7245_v13 = vpop.f32.mrf.mxu1  ;;  %v1581_v6 = vadd.f32 %v30096_v22, %v1503_v61  ;;  %v6334_v57 = vadd.f32 %v30220_v1, %v6257_v31  ;;  %v2642_v22 = vadd.f32 %v30126_v24, %v2568_v45  ;;  %v2046_v59 = vadd.f32 %v35223_v33, %v1968_v44  ;;  %v35233_v4 = vld [vmem:[#allocation57_spill] sm:$0xff] }
 0x246   :  { %v30272_v7 = vpop.f32.mrf.mxu0  ;;  %v7246_v10 = vadd.f32 %v7245_v13, %v7163_v9  ;;  %v3633_v1 = vadd.f32 %v35225_v8, %v3559_v5  ;;  %v4506_v61 = vadd.f32 %v35226_v41, %v4428_v16  ;;  %v3946_v32 = vadd.f32 %v35229_v25, %v3870_v36  ;;  %v35235_v16 = vld [vmem:[#allocation50_spill] sm:$0xff]  ;;  %v35242_v41 = vld [vmem:[#allocation45_spill] sm:$0xff] }
 0x247   :  { %v7247_v52 = vpop.f32.mrf.mxu1  ;;  %v1655_v27 = vadd.f32 %v35222_v40, %v1581_v6  ;;  %v6410_v29 = vadd.f32 %v30232_v11, %v6334_v57  ;;  %v35232_v6 = vld [vmem:[#allocation42_spill] sm:$0xff]  ;;  %v35234_v11 = vld [vmem:[#allocation25_spill] sm:$0xff]  ;;  %v6486_v57 = vadd.f32 %v35235_v16, %v6408_v37 }
 0x248   :  { %v30278_v12 = vpop.f32.mrf.mxu0  ;;  %v7248_v46 = vadd.f32 %v7247_v52, %v7165_v20  ;;  %v7323_v9 = vadd.f32 %v7322_v42, %v7246_v10  ;;  %v35224_v52 = vld [vmem:[#allocation26_spill] sm:$0xff]  ;;  %v30347_v10 = vadd.f32 %v35230_v17, %v2046_v59  ;;  %v5731_v44 = vadd.f32 %v30204_v23, %v35232_v6  ;;  %v35239_v23 = vld [vmem:[#allocation52_spill] sm:$0xff] }
 0x249   :  { %v7398_v50 = vpop.f32.mrf.mxu1  ;;  %v2955_v2 = vadd.f32 %v35224_v52, %v2879_v63  ;;  %v35227_v42 = vld [vmem:[#allocation34_spill] sm:$0xff]  ;;  %v3110_v54 = vadd.f32 %v2642_v22, %v1655_v27  ;;  %v6720_v63 = vadd.f32 %v35233_v4, %v30228_v53  ;;  %v4580_v36 = vadd.f32 %v35236_v35, %v4506_v61  ;;  %v35238_v27 = vld [vmem:[#allocation51_spill] sm:$0xff]  ;;  %v35250_v35 = vld [vmem:[#allocation44_spill] sm:$0xff] }
 0x24a   :  { %v30282_v56 = vpop.f32.mrf.mxu0  ;;  %v7325_v3 = vadd.f32 %v7324_v15, %v7248_v46  ;;  %v4740_v51 = vadd.f32 %v35228_v28, %v35227_v42  ;;  %v7399_v31 = vadd.f32 %v7398_v50, %v7323_v9  ;;  %v5497_v15 = vadd.f32 %v35231_v30, %v5419_v19  ;;  %v35237_v9 = vld [vmem:[#allocation36_spill] sm:$0xff]  ;;  %v35240_v19 = vld [vmem:[#allocation30_spill] sm:$0xff] }
 0x24b   :  { %v30286_v21 = vpop.f32.mrf.mxu1  ;;  %v3033_v58 = vadd.f32 %v35234_v11, %v2955_v2  ;;  %v4101_v46 = vadd.f32 %v3633_v1, %v3110_v54  ;;  %v6488_v33 = vadd.f32 %v35238_v27, %v6410_v29  ;;  %v6722_v59 = vadd.f32 %v30253_v43, %v35239_v23  ;;  %v35243_v42 = vld [vmem:[#allocation54_spill] sm:$0xff]  ;;  %v35244_v54 = vld [vmem:[#allocation53_spill] sm:$0xff] }
 0x24c   :  { %v30289_v0 = vpop.f32.mrf.mxu0  ;;  %v7401_v50 = vadd.f32 %v30286_v21, %v7325_v3  ;;  %v4817_v40 = vadd.f32 %v35237_v9, %v4740_v51  ;;  %v4024_v52 = vadd.f32 %v35240_v19, %v3946_v32  ;;  %v7477_v2 = vadd.f32 %v30272_v7, %v7399_v31  ;;  %v35241_v21 = vld [vmem:[#allocation43_spill] sm:$0xff] }
 0x24d   :  { %v30293_v18 = vpop.f32.mrf.mxu1  ;;  %v5571_v3 = vadd.f32 %v35241_v21, %v5497_v15  ;;  %v5808_v61 = vadd.f32 %v35242_v41, %v5731_v44  ;;  %v6797_v28 = vadd.f32 %v35243_v42, %v6720_v63  ;;  %v6560_v43 = vadd.f32 %v35244_v54, %v6486_v57  ;;  %v35247_v15 = vld [vmem:[#allocation56_spill] sm:$0xff] }
 0x24e   :  { %v30296_v62 = vpop.f32.mrf.mxu0  ;;  %v7479_v25 = vadd.f32 %v30278_v12, %v7401_v50  ;;  %v5048_v31 = vadd.f32 %v4580_v36, %v4101_v46  ;;  %v6799_v6 = vadd.f32 %v35247_v15, %v6722_v59  ;;  %v7551_v4 = vadd.f32 %v30293_v18, %v7477_v2  ;;  %v35248_v12 = vld [vmem:[#allocation47_spill] sm:$0xff] }
 0x24f   :  { %v30302_v49 = vpop.f32.mrf.mxu1  ;;  %v7029_v36 = vadd.f32 %v6560_v43, %v35250_v35 }
 0x250   :  { %v30308_v47 = vpop.f32.mrf.mxu0  ;;  %v6039_v16 = vadd.f32 %v5571_v3, %v5048_v31  ;;  %v7553_v9 = vadd.f32 %v30302_v49, %v7479_v25  ;;  %v35253_v3 = vld [vmem:[#allocation32_spill] sm:$0xff]  ;;  %v35254_v49 = vld [vmem:[#allocation46_spill] sm:$0xff] }
 0x251   :  { %v7710_v39 = vpop.f32.mrf.mxu1  ;;  %v8020_v2 = vadd.f32 %v7551_v4, %v7029_v36  ;;  %v4098_v41 = vadd.f32 %v35253_v3, %v4024_v52  ;;  %v35256_v25 = vld [vmem:[#allocation40_spill] sm:$0xff]  ;;  %v35260_v36 = vld [vmem:[#allocation49_spill] sm:$0xff] }
 0x252   :  { %v30315_v60 = vpop.f32.mrf.mxu0  ;;  %v7711_v8 = vadd.f32 %v7710_v39, %v30282_v56  ;;  %v35245_v56 = vld [vmem:[#allocation39_spill] sm:$0xff]  ;;  %v18734_v3 = vld [vmem:[%s34809_s5] sm:$0xff] }
 0x253   :  { %v7712_v14 = vpop.f32.mrf.mxu1  ;;  %v4893_v39 = vadd.f32 %v35245_v56, %v4817_v40 }
 0x254   :  { %v30323_v55 = vpop.f32.mrf.mxu0  ;;  %v7713_v51 = vadd.f32 %v7712_v14, %v30289_v0  ;;  %v7788_v0 = vadd.f32 %v30296_v62, %v7711_v8 }
 0x255   :  { %v30327_v13 = vpop.f32.mrf.mxu1 }
 0x256   :  { %v8154_v38 = vpop.f32.mrf.mxu0  ;;  %v7790_v46 = vadd.f32 %v30308_v47, %v7713_v51  ;;  %v7864_v8 = vadd.f32 %v30327_v13, %v7788_v0  ;;  %v9019_v51 = vpop.permute.xlu0 %9018 }
 0x257   :  { %v30334_v20 = vpop.f32.mrf.mxu1 }
 0x258   :  { %v8156_v24 = vpop.f32.mrf.mxu0  ;;  %v7942_v52 = vadd.f32 %v30315_v60, %v7864_v8 }
 0x259   :  { %v30343_v34 = vpop.f32.mrf.mxu1 }
 0x25a   :  { %v8313_v45 = vpop.f32.mrf.mxu0 }
 0x25b   :  { %v30354_v5 = vpop.f32.mrf.mxu1 }
 0x25c   :  { %v8315_v22 = vpop.f32.mrf.mxu0 }
 0x25d   :  { %v8236_v53 = vpop.f32.mrf.mxu1 }
 0x25e   :  { %v8237_v1 = vadd.f32 %v8236_v53, %v8154_v38  ;;  %v8467_v37 = vpop.f32.mrf.mxu0  ;;  %v35246_v38 = vld [vmem:[#allocation55_spill] sm:$0xff]  ;;  %v6875_v53 = vadd.f32 %v30261_v48, %v6799_v6  ;;  %v35259_v6 = vld [vmem:[#allocation61_spill] sm:$0xff] }
 0x25f   :  { %v8238_v29 = vpop.f32.mrf.mxu1  ;;  %v6562_v30 = vadd.f32 %v35246_v38, %v6488_v33  ;;  %v35251_v33 = vld [vmem:[#allocation27_spill] sm:$0xff] }
 0x260   :  { %v8314_v32 = vadd.f32 %v8313_v45, %v8237_v1  ;;  %v8239_v17 = vadd.f32 %v8238_v29, %v8156_v24  ;;  %v8469_v7 = vpop.f32.mrf.mxu0  ;;  %v5884_v45 = vadd.f32 %v35248_v12, %v5808_v61  ;;  %v35249_v24 = vld [vmem:[#allocation60_spill] sm:$0xff]  ;;  %v3107_v62 = vadd.f32 %v35251_v33, %v3033_v58  ;;  %v35255_v61 = vld [vmem:[#allocation58_spill] sm:$0xff] }
 0x261   :  { %v8389_v44 = vpop.f32.mrf.mxu1  ;;  %v6873_v57 = vadd.f32 %v35249_v24, %v6797_v28  ;;  %v7030_v59 = vadd.f32 %v6562_v30, %v6039_v16  ;;  %v7866_v58 = vadd.f32 %v30334_v20, %v7790_v46  ;;  %v35258_v20 = vld [vmem:[#allocation48_spill] sm:$0xff] }
 0x262   :  { %v8316_v14 = vadd.f32 %v8315_v22, %v8239_v17  ;;  %v8390_v63 = vadd.f32 %v8389_v44, %v8314_v32  ;;  %v8619_v11 = vpop.f32.mrf.mxu0  ;;  %v35252_v22 = vld [vmem:[#allocation38_spill] sm:$0xff]  ;;  %v3112_v43 = vadd.f32 %v3107_v62, %v30347_v10  ;;  %v35257_v32 = vld [vmem:[#allocation59_spill] sm:$0xff] }
 0x263   :  { %v8391_v50 = vpop.f32.mrf.mxu1  ;;  %v4971_v23 = vadd.f32 %v35252_v22, %v4893_v39  ;;  %v6951_v42 = vadd.f32 %v35255_v61, %v6873_v57  ;;  %v8021_v29 = vadd.f32 %v7553_v9, %v7030_v59  ;;  %v6953_v17 = vadd.f32 %v35257_v32, %v6875_v53  ;;  %v9115_v61 = vld [vmem:[#allocation4 + $0x18] sm:$0xff] }
 0x264   :  { %v8468_v40 = vadd.f32 %v8467_v37, %v8390_v63  ;;  %v8392_v27 = vadd.f32 %v8391_v50, %v8316_v14  ;;  %v8621_v18 = vpop.f32.mrf.mxu0  ;;  %v5962_v37 = vadd.f32 %v35254_v49, %v5884_v45  ;;  %v4103_v30 = vadd.f32 %v4098_v41, %v3112_v43  ;;  %v9114_v41 = vld [vmem:[#allocation4 + $0x10] sm:$0xff] }
 0x265   :  { %v8541_v19 = vpop.f32.mrf.mxu1  ;;  %v5045_v13 = vadd.f32 %v35256_v25, %v4971_v23  ;;  %v7025_v44 = vadd.f32 %v35259_v6, %v6951_v42  ;;  %v7944_v4 = vadd.f32 %v30323_v55, %v7866_v58  ;;  %v7027_v45 = vadd.f32 %v30267_v26, %v6953_v17  ;;  %v35264_v6 = vld [vmem:[#allocation21_spill] sm:$0xff] }
 0x266   :  { %v8470_v47 = vadd.f32 %v8469_v7, %v8392_v27  ;;  %v8542_v1 = vadd.f32 %v8541_v19, %v8468_v40  ;;  %v8778_v21 = vpop.f32.mrf.mxu0  ;;  %v6036_v15 = vadd.f32 %v35258_v20, %v5962_v37  ;;  %v9118_v49 = vsel %vm9116_vm10, %v9114_v41, 0  ;;  %v27137_v37 = vld [vmem:[%s34810_s6 + $0x4] sm:$0xf] }
 0x267   :  { %v8543_v28 = vpop.f32.mrf.mxu1  ;;  %v5050_v12 = vadd.f32 %v5045_v13, %v4103_v30  ;;  %v7031_v9 = vadd.f32 %v7025_v44, %v35260_v36  ;;  %v8018_v26 = vadd.f32 %v30354_v5, %v7944_v4  ;;  %v30464_v58 = vand.u32 4294901760, %v9118_v49 }
 0x268   :  { %v9011_v54 = vadd.f32 %v8542_v1, %v8020_v2  ;;  %v8544_v48 = vadd.f32 %v8543_v28, %v8470_v47  ;;  %v8780_v31 = vpop.f32.mrf.mxu0  ;;  %v35261_v28 = vld [vmem:[#allocation19_spill] sm:$0xff]  ;;  %v9104_v44 = vrot.slane %v27137_v37, %v35264_v6 }
 0x269   :  { %v8701_v7 = vpop.f32.mrf.mxu1  ;;  %v6041_v50 = vadd.f32 %v6036_v15, %v5050_v12  ;;  %v30471_v25 = vsub.f32 %v9118_v49, %v30464_v58 }
 0x26a   :  { %v9012_v56 = vadd.f32 %v8544_v48, %v8021_v29  ;;  %v9021_v39 = vadd.f32 %v9019_v51, %v9011_v54  ;;  %v8702_v38 = vadd.f32 %v8701_v7, %v8619_v11  ;;  %v8016_v11 = vadd.f32 %v30343_v34, %v7942_v52 }
 0x26b   :  { %v8703_v0 = vpop.f32.mrf.mxu1  ;;  %v8932_v24 = vpop.f32.mrf.mxu0  ;;  %v7032_v33 = vadd.f32 %v7027_v45, %v6041_v50  ;;  %v9121_v29 = vsel %vm9116_vm10, %v9115_v61, 0  ;;  %v30476_v7 = vand.u32 4294901760, %v30471_v25 }
 0x26c   :  { %v9022_v10 = vadd.f32 %v9019_v51, %v9012_v56  ;;  %v30398_v14 = vmax.f32 %v9021_v39, 0.0  ;;  %v8779_v63 = vadd.f32 %v8778_v21, %v8702_v38  ;;  %v8704_v16 = vadd.f32 %v8703_v0, %v8621_v18  ;;  %v35263_v56 = vld [vmem:[#allocation18_spill] sm:$0xff] }
 0x26d   :  { %v8854_v60 = vpop.f32.mrf.mxu1  ;;  %v8934_v27 = vpop.f32.mrf.mxu0  ;;  %v8022_v62 = vadd.f32 %v8016_v11, %v7031_v9  ;;  %v8023_v53 = vadd.f32 %v8018_v26, %v7032_v33  ;;  %v30473_v13 = vand.u32 4294901760, %v9121_v29  ;;  %v9092_v39 = vrot.slane %v27137_v37, %v35263_v56 }
 0x26e   :  { %v9026_v57 = vmax.f32 %v9022_v10, 0.0  ;;  %9029 = vst [vmem:[%s34816_s12] sm:$0xff] %v30398_v14  ;;  %v8781_v55 = vadd.f32 %v8780_v31, %v8704_v16  ;;  %v8855_v46 = vadd.f32 %v8854_v60, %v8779_v63  ;;  %9074 = vrot.lane.b32.xlu1 %v30398_v14, %s29012_s28  ;;  %v9193_v30 = vsub.f32 %v30471_v25, %v30476_v7 }
 0x26f   :  { %v8856_v35 = vpop.f32.mrf.mxu1  ;;  %v30479_v31 = vsub.f32 %v9121_v29, %v30473_v13  ;;  %v35266_v9 = vmov 0.0  }
 0x270   :  { %9030 = vst [vmem:[%s34816_s12 + $0x8] sm:$0xff] %v9026_v57  ;;  %v8933_v34 = vadd.f32 %v8932_v24, %v8855_v46  ;;  %v8857_v40 = vadd.f32 %v8856_v35, %v8781_v55  ;;  %v30492_v12 = vand.u32 4294901760, %v9193_v30 }
 0x271   :  { %v9006_v18 = vpop.f32.mrf.mxu1  ;;  %v30485_v20 = vand.u32 4294901760, %v30479_v31 }
 0x272   :  { %v8935_v22 = vadd.f32 %v8934_v27, %v8857_v40  ;;  %v9007_v23 = vadd.f32 %v9006_v18, %v8933_v34  ;;  %9076 = vrot.lane.b32.xlu1 %v9026_v57, %s29012_s28 }
 0x273   :  { %v9008_v59 = vpop.f32.mrf.mxu1  ;;  %v9204_v45 = vsub.f32 %v30479_v31, %v30485_v20 }
 0x274   :  { %v9013_v19 = vadd.f32 %v9007_v23, %v8022_v62  ;;  %v9009_v2 = vadd.f32 %v9008_v59, %v8935_v22  ;;  %v30521_v23 = vld [vmem:[%s34810_s6] sm:$0xf] }
 0x275   :  { %v30498_v46 = vand.u32 4294901760, %v9204_v45  ;;  %v9051_v41 = vrot.slane %v30521_v23, %v35263_v56 }
 0x276   :  { %v9023_v8 = vadd.f32 %v9019_v51, %v9013_v19  ;;  %v9014_v5 = vadd.f32 %v9009_v2, %v8023_v53  ;;  %v9055_v2 = vrot.slane %v30521_v23, %v35261_v28 }
 0x278   :  { %v9027_v47 = vmax.f32 %v9023_v8, 0.0  ;;  %v9024_v1 = vadd.f32 %v9019_v51, %v9014_v5  ;;  %v9096_v51 = vrot.slane %v27137_v37, %v35261_v28 }
 0x27a   :  { %27135 = vst [vmem:[%s34816_s12 + $0x10] sm:$0xff] %v9027_v47  ;;  %v9028_v21 = vmax.f32 %v9024_v1, 0.0  ;;  %9078 = vrot.lane.b32.xlu1 %v9027_v47, %s29012_s28 }
 0x27c   :  { %27136 = vst [vmem:[%s34816_s12 + $0x18] sm:$0xff] %v9028_v21  ;;  %9080 = vrot.lane.b32.xlu0 %v9028_v21, %s29012_s28 }
 0x27e   :  { %9036 = vrot.lane.b32.xlu1 %v9026_v57, %s29019_s0 }
 0x280   :  { %9034 = vrot.lane.b32.xlu0 %v30398_v14, %s29019_s0 }
 0x282   :  { %9038 = vrot.lane.b32.xlu1 %v9027_v47, %s29019_s0 }
 0x284   :  { %9040 = vrot.lane.b32.xlu0 %v9028_v21, %s29019_s0 }
 0x286   :  { %11187 = vrot.lane.b32.xlu1 %v9026_v57, %s29020_s16 }
 0x288   :  { %11185 = vrot.lane.b32.xlu0 %v30398_v14, %s29020_s16 }
 0x28a   :  { %11189 = vrot.lane.b32.xlu1 %v9027_v47, %s29020_s16 }
 0x28c   :  { %11191 = vrot.lane.b32.xlu0 %v9028_v21, %s29020_s16 }
 0x28e   :  { %12271 = vrot.lane.b32.xlu1 %v9026_v57, %s29013_s29 }
 0x290   :  { %12269 = vrot.lane.b32.xlu0 %v30398_v14, %s29013_s29 }
 0x292   :  { %12273 = vrot.lane.b32.xlu1 %v9027_v47, %s29013_s29 }
 0x294   :  { %12275 = vrot.lane.b32.xlu0 %v9028_v21, %s29013_s29 }
 0x296   :  { %14402 = vrot.lane.b32.xlu1 %v9027_v47, %s29021_s22 }
 0x298   :  { %14400 = vrot.lane.b32.xlu0 %v9026_v57, %s29021_s22 }
 0x29a   :  { %14404 = vrot.lane.b32.xlu1 %v9028_v21, %s29021_s22 }
 0x29c   :  { %14398 = vrot.lane.b32.xlu0 %v30398_v14, %s29021_s22 }
 0x29e   :  { %15486 = vrot.lane.b32.xlu1 %v9027_v47, %s29022_s24 }
 0x2a0   :  { %15484 = vrot.lane.b32.xlu0 %v9026_v57, %s29022_s24 }
 0x2a2   :  { %15488 = vrot.lane.b32.xlu1 %v9028_v21, %s29022_s24 }
 0x2a4   :  { %15482 = vrot.lane.b32.xlu0 %v30398_v14, %s29022_s24 }
 0x2a6   :  { %16570 = vrot.lane.b32.xlu1 %v9027_v47, %s29023_s25 }
 0x2a8   :  { %16568 = vrot.lane.b32.xlu0 %v9026_v57, %s29023_s25 }
 0x2aa   :  { %16572 = vrot.lane.b32.xlu1 %v9028_v21, %s29023_s25 }
 0x2ac   :  { %16566 = vrot.lane.b32.xlu0 %v30398_v14, %s29023_s25 }
 0x2ae   :  { %17654 = vrot.lane.b32.xlu1 %v9027_v47, %s29024_s10 }
 0x2b0   :  { %17652 = vrot.lane.b32.xlu0 %v9026_v57, %s29024_s10  ;;  %v35265_v57 = vld [vmem:[#allocation20_spill] sm:$0xff] }
 0x2b1   :  { %v9100_v55 = vrot.slane %v27137_v37, %v35265_v57 }
 0x2b2   :  { %17656 = vrot.lane.b32.xlu1 %v9028_v21, %s29024_s10 }
 0x2b4   :  { %17650 = vrot.lane.b32.xlu0 %v30398_v14, %s29024_s10 }
 0x2b8   :  { %18738 = vperm.xlu0 %28851, %v18734_v3   ;;  %v9072_v3 = vld [vmem:[#allocation4] sm:$0xff] }
 0x2e0   :  { %v9075_v42 = vpop.permute.xlu1 %9074 }
 0x2e4   :  { %v9077_v54 = vpop.permute.xlu1 %9076 }
 0x2e5   :  { %v9084_v43 = vsel %vm196_vm1, %v9075_v42, %v9077_v54 }
 0x2e6   :  { %v9110_v32 = vmul.f32 %v9096_v51, %v9084_v43  ;;  %v9073_v51 = vld [vmem:[#allocation4 + $0x8] sm:$0xff] }
 0x2e8   :  { %v9153_v17 = vand.u32 4294901760, %v9110_v32 }
 0x2ea   :  { %v9243_v52 = vsub.f32 %v9110_v32, %v9153_v17  ;;  %9154 = vmatprep.subr.mxu0 %v9153_v17  ;;  %v10155_v32 = vsel %vm9116_vm10, %v9073_v51, 0 }
 0x2ec   :  { %v9244_v38 = vand.u32 4294901760, %v9243_v52  ;;  %v9079_v15 = vpop.permute.xlu1 %9078 }
 0x2ed   :  { %v9083_v50 = vsel %vm196_vm1, %v9077_v54, %v9079_v15 }
 0x2ee   :  { %v9081_v4 = vpop.permute.xlu0 %9080  ;;  %v9245_v0 = vsub.f32 %v9243_v52, %v9244_v38  ;;  %v9111_v26 = vmul.f32 %v9100_v55, %v9083_v50 }
 0x2ef   :  { %v9082_v10 = vsel %vm196_vm1, %v9079_v15, %v9081_v4  ;;  %v9085_v14 = vsel %vm196_vm1, %v9081_v4, %v9075_v42  ;;  %v10152_v42 = vsel %vm9116_vm10, %v9072_v3, 0 }
 0x2f0   :  { %v9109_v63 = vmul.f32 %v9092_v39, %v9085_v14  ;;  %v9246_v16 = vand.u32 4294901760, %v9245_v0  ;;  %v9112_v60 = vmul.f32 %v9104_v44, %v9082_v10  ;;  %v30508_v18 = vand.u32 4294901760, %v9111_v26  ;;  %v30525_v19 = vpop.permute.xlu1 %9036 }
 0x2f1   :  { %v30556_v43 = vand.u32 4294901760, %v10152_v42  ;;  %v9063_v10 = vrot.slane %v30521_v23, %v35264_v6 }
 0x2f2   :  { %v9155_v24 = vand.u32 4294901760, %v9109_v63  ;;  %9247 = vmatprep.subr.mxu1 %v9246_v16  ;;  %v30502_v36 = vand.u32 4294901760, %v9112_v60  ;;  %v9763_v62 = vsub.f32 %v9111_v26, %v30508_v18  ;;  %v9035_v59 = vpop.permute.xlu0 %9034 }
 0x2f3   :  { %v9044_v5 = vsel %vm156_vm3, %v9035_v59, %v30525_v19  ;;  %v30566_v39 = vsub.f32 %v10152_v42, %v30556_v43 }
 0x2f4   :  { %v9249_v11 = vsub.f32 %v9109_v63, %v9155_v24  ;;  %9156 = vmatpush1.msra.mxu0 %v9155_v24  ;;  %v9757_v40 = vsub.f32 %v9112_v60, %v30502_v36  ;;  %v9764_v53 = vand.u32 4294901760, %v9763_v62  ;;  %v9069_v1 = vmul.f32 %v9055_v2, %v9044_v5  ;;  %v9039_v0 = vpop.permute.xlu1 %9038 }
 0x2f5   :  { %9195 = vmatmul.mubr.f32.vlgmr.msra.gmra.mxu0 %v30492_v12  ;;  %9333 = vmatprep.subr.mxu0 %v9243_v52  ;;  %v30579_v15 = vand.u32 4294901760, %v30566_v39  ;;  %v9043_v55 = vsel %vm156_vm3, %v30525_v19, %v9039_v0  ;;  %v11225_v19 = vld [vmem:[#allocation4 + $0x20] sm:$0xff] }
 0x2f6   :  { %v9250_v35 = vand.u32 4294901760, %v9249_v11  ;;  %9336 = vmatpush1.msra.mxu0 %v9249_v11  ;;  %9200 = vmatprep.mubr.f32.mxu0 %v35266_v9  ;;  %v9758_v33 = vand.u32 4294901760, %v9757_v40  ;;  %v9765_v47 = vsub.f32 %v9763_v62, %v9764_v53  ;;  %v9041_v21 = vpop.permute.xlu0 %9040  ;;  %v30543_v37 = vand.u32 4294901760, %v9069_v1 }
 0x2f7   :  { %9504 = vmatprep.subr.mxu0 %v9244_v38  ;;  %v9045_v61 = vsel %vm156_vm3, %v9041_v21, %v9035_v59  ;;  %v30568_v38 = vand.u32 4294901760, %v10155_v32  ;;  %v10227_v14 = vsub.f32 %v30566_v39, %v30579_v15  ;;  %v9042_v16 = vsel %vm156_vm3, %v9039_v0, %v9041_v21  ;;  %v11226_v21 = vld [vmem:[#allocation4 + $0x28] sm:$0xff] }
 0x2f8   :  { %v9251_v34 = vsub.f32 %v9249_v11, %v9250_v35  ;;  %v9759_v22 = vsub.f32 %v9757_v40, %v9758_v33  ;;  %v9766_v49 = vand.u32 4294901760, %v9765_v47  ;;  %v9068_v29 = vmul.f32 %v9051_v41, %v9045_v61 }
 0x2f9   :  { %9206 = vmatmul.mubr.f32.gmra.mxu0 %v30498_v46  ;;  %v10277_v54 = vsub.f32 %v9069_v1, %v30543_v37  ;;  %v30582_v44 = vsub.f32 %v10155_v32, %v30568_v38  ;;  %v30603_v45 = vand.u32 4294901760, %v10227_v14  ;;  %v11228_v1 = vsel %vm9116_vm10, %v11225_v19, 0 }
 0x2fa   :  { %9369 = vmatprep.mubr.f32.mxu0 %v35266_v9  ;;  %v9252_v27 = vand.u32 4294901760, %v9251_v34  ;;  %v9760_v8 = vand.u32 4294901760, %v9759_v22  ;;  %v30643_v34 = vld [vmem:[%s34810_s6 + $0x8] sm:$0xf] }
 0x2fb   :  { %v10278_v52 = vand.u32 4294901760, %v10277_v54  ;;  %v30593_v63 = vand.u32 4294901760, %v30582_v44  ;;  %v11203_v2 = vrot.slane %v30643_v34, %v35263_v56 }
 0x2fc   :  { %9253 = vmatpush1.msra.mxu1 %v9252_v27 }
 0x2fd   :  { %9372 = vmatmul.mubr.f32.vlgmr.msra.gmra.mxu0 %v30471_v25  ;;  %9288 = vmatmul.mubr.f32.vlgmr.msra.gmra.mxu1 %v30464_v58  ;;  %v10238_v60 = vsub.f32 %v30582_v44, %v30593_v63 }
 0x2fe   :  { %9417 = vmatprep.subr.mxu1 %v9153_v17  ;;  %9508 = vmatpush1.msra.mxu0 %v9250_v35 }
 0x2ff   :  { %9419 = vmatpush1.msra.mxu1 %v9155_v24  ;;  %9668 = vmatprep.subr.mxu0 %v30502_v36 }
 0x300   :  { %9587 = vmatprep.subr.mxu1 %v9153_v17  ;;  %9293 = vmatprep.mubr.f32.mxu1 %v35266_v9  ;;  %v30561_v17 = vand.u32 4294901760, %v9068_v29 }
 0x301   :  { %9377 = vmatprep.mubr.f32.mxu0 %v35266_v9  ;;  %9295 = vmatmul.mubr.f32.gmra.mxu1 %v30473_v13 }
 0x302   :  { %9380 = vmatmul.mubr.f32.gmra.mxu0 %v30479_v31  ;;  %9452 = vmatprep.mubr.f32.mxu1 %v35266_v9  ;;  %v10283_v30 = vsub.f32 %v9068_v29, %v30561_v17 }
 0x303   :  { %9541 = vmatprep.mubr.f32.mxu0 %v35266_v9 }
 0x304   :  { %v10284_v4 = vand.u32 4294901760, %v10283_v30 }
 0x305   :  { %9456 = vmatmul.mubr.f32.vlgmr.msra.gmra.mxu1 %v30476_v7 }
 0x306   :  { %9543 = vmatmul.mubr.f32.vlgmr.msra.gmra.mxu0 %v30464_v58  ;;  %9589 = vmatpush1.msra.mxu1 %v9155_v24  ;;  %v9059_v24 = vrot.slane %v30521_v23, %v35265_v57 }
 0x307   :  { %9670 = vmatpush1.msra.mxu0 %v30508_v18  ;;  %9761 = vmatprep.subr.mxu1 %v9760_v8 }
 0x308   :  { %9847 = vmatprep.subr.mxu0 %v9757_v40  ;;  %9461 = vmatprep.mubr.f32.mxu1 %v35266_v9  ;;  %v9070_v50 = vmul.f32 %v9059_v24, %v9043_v55  ;;  %v11186_v40 = vpop.permute.xlu0 %11185 }
 0x309   :  { %9548 = vmatprep.mubr.f32.mxu0 %v35266_v9  ;;  %9465 = vmatmul.mubr.f32.gmra.mxu1 %v30485_v20 }
 0x30a   :  { %9550 = vmatmul.mubr.f32.gmra.mxu0 %v30473_v13  ;;  %9622 = vmatprep.mubr.f32.mxu1 %v35266_v9 }
 0x30b   :  { %9703 = vmatprep.mubr.f32.mxu0 %v35266_v9 }
 0x30d   :  { %9624 = vmatmul.mubr.f32.vlgmr.msra.gmra.mxu1 %v30464_v58 }
 0x30e   :  { %9709 = vmatmul.mubr.f32.vlgmr.msra.gmra.mxu0 %v30492_v12  ;;  %9767 = vmatpush1.msra.mxu1 %v9766_v49  ;;  %v9071_v12 = vmul.f32 %v9063_v10, %v9042_v16  ;;  %v30679_v49 = vand.u32 4294901760, %v11228_v1 }
 0x30f   :  { %9850 = vmatpush1.msra.mxu0 %v9763_v62  ;;  %9931 = vmatprep.subr.mxu1 %v30502_v36 }
 0x310   :  { %10018 = vmatprep.subr.mxu0 %v9758_v33  ;;  %9629 = vmatprep.mubr.f32.mxu1 %v35266_v9  ;;  %v11207_v33 = vrot.slane %v30643_v34, %v35261_v28  ;;  %v30689_v51 = vsub.f32 %v11228_v1, %v30679_v49 }
 0x311   :  { %9714 = vmatprep.mubr.f32.mxu0 %v35266_v9  ;;  %9631 = vmatmul.mubr.f32.gmra.mxu1 %v30473_v13 }
 0x312   :  { %9720 = vmatmul.mubr.f32.gmra.mxu0 %v30498_v46  ;;  %9800 = vmatprep.mubr.f32.mxu1 %v35266_v9  ;;  %v30618_v46 = vand.u32 4294901760, %v10238_v60 }
 0x313   :  { %9883 = vmatprep.mubr.f32.mxu0 %v35266_v9 }
 0x315   :  { %9802 = vmatmul.mubr.f32.vlgmr.msra.gmra.mxu1 %v30464_v58 }
 0x316   :  { %9886 = vmatmul.mubr.f32.vlgmr.msra.gmra.mxu0 %v30471_v25  ;;  %9933 = vmatpush1.msra.mxu1 %v30508_v18  ;;  %v10279_v25 = vsub.f32 %v10277_v54, %v10278_v52 }
 0x317   :  { %10022 = vmatpush1.msra.mxu0 %v9764_v53  ;;  %10101 = vmatprep.subr.mxu1 %v30502_v36  ;;  %v11192_v53 = vpop.permute.xlu0 %11191 }
 0x318   :  { %10188 = vmatprep.subr.mxu0 %v30543_v37  ;;  %9807 = vmatprep.mubr.f32.mxu1 %v35266_v9  ;;  %v11196_v47 = vsel %vm2130_vm4, %v11192_v53, %v11186_v40 }
 0x319   :  { %9891 = vmatprep.mubr.f32.mxu0 %v35266_v9  ;;  %9809 = vmatmul.mubr.f32.gmra.mxu1 %v30473_v13  ;;  %v11220_v3 = vmul.f32 %v11203_v2, %v11196_v47 }
 0x31a   :  { %9894 = vmatmul.mubr.f32.gmra.mxu0 %v30479_v31  ;;  %9966 = vmatprep.mubr.f32.mxu1 %v35266_v9  ;;  %v10280_v31 = vand.u32 4294901760, %v10279_v25  ;;  %v11215_v25 = vrot.slane %v30643_v34, %v35264_v6 }
 0x31b   :  { %10055 = vmatprep.mubr.f32.mxu0 %v35266_v9  ;;  %v30684_v61 = vand.u32 4294901760, %v11220_v3 }
 0x31d   :  { %9970 = vmatmul.mubr.f32.vlgmr.msra.gmra.mxu1 %v30476_v7  ;;  %v10285_v7 = vsub.f32 %v10283_v30, %v10284_v4 }
 0x31e   :  { %10057 = vmatmul.mubr.f32.vlgmr.msra.gmra.mxu0 %v30464_v58  ;;  %10103 = vmatpush1.msra.mxu1 %v30508_v18  ;;  %v30647_v18 = vpop.permute.xlu1 %11187 }
 0x31f   :  { %10190 = vmatpush1.msra.mxu0 %v30561_v17  ;;  %10281 = vmatprep.subr.mxu1 %v10280_v31  ;;  %v10286_v11 = vand.u32 4294901760, %v10285_v7  ;;  %v11195_v22 = vsel %vm2130_vm4, %v11186_v40, %v30647_v18  ;;  %v11211_v7 = vrot.slane %v30643_v34, %v35265_v57 }
 0x320   :  { %10367 = vmatprep.subr.mxu0 %v10277_v54  ;;  %9975 = vmatprep.mubr.f32.mxu1 %v35266_v9  ;;  %v11221_v59 = vmul.f32 %v11207_v33, %v11195_v22  ;;  %v11359_v54 = vsub.f32 %v11220_v3, %v30684_v61 }
 0x321   :  { %10062 = vmatprep.mubr.f32.mxu0 %v35266_v9  ;;  %9979 = vmatmul.mubr.f32.gmra.mxu1 %v30485_v20  ;;  %v30614_v20 = vand.u32 4294901760, %v9071_v12 }
 0x322   :  { %10064 = vmatmul.mubr.f32.gmra.mxu0 %v30473_v13  ;;  %10136 = vmatprep.mubr.f32.mxu1 %v35266_v9  ;;  %v30666_v5 = vand.u32 4294901760, %v11221_v59 }
 0x323   :  { %10223 = vmatprep.mubr.f32.mxu0 %v35266_v9  ;;  %v10791_v35 = vsub.f32 %v9071_v12, %v30614_v20 }
 0x324   :  { %v11353_v41 = vsub.f32 %v11221_v59, %v30666_v5 }
 0x325   :  { %10138 = vmatmul.mubr.f32.vlgmr.msra.gmra.mxu1 %v30464_v58  ;;  %v30628_v58 = vand.u32 4294901760, %v9070_v50  ;;  %v10792_v36 = vand.u32 4294901760, %v10791_v35 }
 0x326   :  { %10229 = vmatmul.mubr.f32.vlgmr.msra.gmra.mxu0 %v30603_v45  ;;  %10287 = vmatpush1.msra.mxu1 %v10286_v11  ;;  %v11354_v42 = vand.u32 4294901760, %v11353_v41 }
 0x327   :  { %10370 = vmatpush1.msra.mxu0 %v10283_v30  ;;  %10451 = vmatprep.subr.mxu1 %v30543_v37  ;;  %v10793_v26 = vsub.f32 %v10791_v35, %v10792_v36  ;;  %v11190_v30 = vpop.permute.xlu1 %11189 }
 0x328   :  { %10538 = vmatprep.subr.mxu0 %v10278_v52  ;;  %10143 = vmatprep.mubr.f32.mxu1 %v35266_v9  ;;  %v11355_v32 = vsub.f32 %v11353_v41, %v11354_v42  ;;  %v11193_v10 = vsel %vm2130_vm4, %v11190_v30, %v11192_v53  ;;  %v12310_v53 = vld [vmem:[#allocation4 + $0x38] sm:$0xff] }
 0x329   :  { %10234 = vmatprep.mubr.f32.mxu0 %v35266_v9  ;;  %10145 = vmatmul.mubr.f32.gmra.mxu1 %v30473_v13  ;;  %v10797_v13 = vsub.f32 %v9070_v50, %v30628_v58  ;;  %v10794_v62 = vand.u32 4294901760, %v10793_v26  ;;  %v11223_v31 = vmul.f32 %v11215_v25, %v11193_v10  ;;  %v12270_v50 = vpop.permute.xlu0 %12269 }
 0x32a   :  { %10240 = vmatmul.mubr.f32.gmra.mxu0 %v30618_v46  ;;  %10320 = vmatprep.mubr.f32.mxu1 %v35266_v9 }
 0x32b   :  { %10403 = vmatprep.mubr.f32.mxu0 %v35266_v9  ;;  %v10798_v27 = vand.u32 4294901760, %v10797_v13 }
 0x32d   :  { %10322 = vmatmul.mubr.f32.vlgmr.msra.gmra.mxu1 %v30556_v43  ;;  %v10799_v23 = vsub.f32 %v10797_v13, %v10798_v27 }
 0x32e   :  { %10406 = vmatmul.mubr.f32.vlgmr.msra.gmra.mxu0 %v30566_v39  ;;  %10453 = vmatpush1.msra.mxu1 %v30561_v17 }
 0x32f   :  { %10542 = vmatpush1.msra.mxu0 %v10284_v4  ;;  %10621 = vmatprep.subr.mxu1 %v30543_v37  ;;  %v10800_v8 = vand.u32 4294901760, %v10799_v23  ;;  %v11231_v37 = vsel %vm9116_vm10, %v11226_v21, 0 }
 0x330   :  { %10702 = vmatprep.subr.mxu0 %v30614_v20  ;;  %10327 = vmatprep.mubr.f32.mxu1 %v35266_v9  ;;  %v30691_v29 = vand.u32 4294901760, %v11231_v37 }
 0x331   :  { %10411 = vmatprep.mubr.f32.mxu0 %v35266_v9  ;;  %10329 = vmatmul.mubr.f32.gmra.mxu1 %v30568_v38 }
 0x332   :  { %10414 = vmatmul.mubr.f32.gmra.mxu0 %v30582_v44  ;;  %10486 = vmatprep.mubr.f32.mxu1 %v35266_v9  ;;  %v30705_v52 = vsub.f32 %v11231_v37, %v30691_v29 }
 0x333   :  { %10575 = vmatprep.mubr.f32.mxu0 %v35266_v9 }
 0x334   :  { %v30716_v0 = vand.u32 4294901760, %v30705_v52 }
 0x335   :  { %10490 = vmatmul.mubr.f32.vlgmr.msra.gmra.mxu1 %v30579_v15 }
 0x336   :  { %10577 = vmatmul.mubr.f32.vlgmr.msra.gmra.mxu0 %v30556_v43  ;;  %10623 = vmatpush1.msra.mxu1 %v30561_v17  ;;  %v30702_v17 = vand.u32 4294901760, %v30689_v51  ;;  %v11314_v16 = vsub.f32 %v30705_v52, %v30716_v0 }
 0x337   :  { %10704 = vmatpush1.msra.mxu0 %v30628_v58  ;;  %10795 = vmatprep.subr.mxu1 %v10794_v62 }
 0x338   :  { %10881 = vmatprep.subr.mxu0 %v10791_v35  ;;  %10495 = vmatprep.mubr.f32.mxu1 %v35266_v9  ;;  %v11303_v4 = vsub.f32 %v30689_v51, %v30702_v17  ;;  %v30741_v60 = vand.u32 4294901760, %v11314_v16 }
 0x339   :  { %10582 = vmatprep.mubr.f32.mxu0 %v35266_v9  ;;  %10499 = vmatmul.mubr.f32.gmra.mxu1 %v30593_v63 }
 0x33a   :  { %10584 = vmatmul.mubr.f32.gmra.mxu0 %v30568_v38  ;;  %10656 = vmatprep.mubr.f32.mxu1 %v35266_v9  ;;  %v30726_v14 = vand.u32 4294901760, %v11303_v4 }
 0x33b   :  { %10737 = vmatprep.mubr.f32.mxu0 %v35266_v9 }
 0x33d   :  { %10658 = vmatmul.mubr.f32.vlgmr.msra.gmra.mxu1 %v30556_v43 }
 0x33e   :  { %10743 = vmatmul.mubr.f32.vlgmr.msra.gmra.mxu0 %v30603_v45  ;;  %10801 = vmatpush1.msra.mxu1 %v10800_v8  ;;  %v11194_v45 = vsel %vm2130_vm4, %v30647_v18, %v11190_v30  ;;  %v12309_v18 = vld [vmem:[#allocation4 + $0x30] sm:$0xff] }
 0x33f   :  { %10884 = vmatpush1.msra.mxu0 %v10797_v13  ;;  %10965 = vmatprep.subr.mxu1 %v30614_v20  ;;  %v11222_v24 = vmul.f32 %v11211_v7, %v11194_v45  ;;  %v12312_v59 = vsel %vm9116_vm10, %v12309_v18, 0 }
 0x340   :  { %11052 = vmatprep.subr.mxu0 %v10792_v36  ;;  %10663 = vmatprep.mubr.f32.mxu1 %v35266_v9  ;;  %v30802_v8 = vand.u32 4294901760, %v12312_v59 }
 0x341   :  { %10748 = vmatprep.mubr.f32.mxu0 %v35266_v9  ;;  %10665 = vmatmul.mubr.f32.gmra.mxu1 %v30568_v38 }
 0x342   :  { %10754 = vmatmul.mubr.f32.gmra.mxu0 %v30618_v46  ;;  %10834 = vmatprep.mubr.f32.mxu1 %v35266_v9  ;;  %v30766_v46 = vld [vmem:[%s34810_s6 + $0xc] sm:$0xf]  ;;  %v30812_v21 = vsub.f32 %v12312_v59, %v30802_v8 }
 0x343   :  { %10917 = vmatprep.mubr.f32.mxu0 %v35266_v9  ;;  %v12291_v36 = vrot.slane %v30766_v46, %v35261_v28  ;;  %v12287_v33 = vrot.slane %v30766_v46, %v35263_v56 }
 0x345   :  { %10836 = vmatmul.mubr.f32.vlgmr.msra.gmra.mxu1 %v30556_v43 }
 0x346   :  { %10920 = vmatmul.mubr.f32.vlgmr.msra.gmra.mxu0 %v30566_v39  ;;  %10967 = vmatpush1.msra.mxu1 %v30628_v58  ;;  %v11360_v39 = vand.u32 4294901760, %v11359_v54 }
 0x347   :  { %11056 = vmatpush1.msra.mxu0 %v10798_v27  ;;  %11135 = vmatprep.subr.mxu1 %v30614_v20  ;;  %v12276_v27 = vpop.permute.xlu0 %12275 }
 0x348   :  { %11264 = vmatprep.subr.mxu0 %v30666_v5  ;;  %10841 = vmatprep.mubr.f32.mxu1 %v35266_v9  ;;  %v12280_v23 = vsel %vm3121_vm5, %v12276_v27, %v12270_v50 }
 0x349   :  { %10925 = vmatprep.mubr.f32.mxu0 %v35266_v9  ;;  %10843 = vmatmul.mubr.f32.gmra.mxu1 %v30568_v38  ;;  %v12304_v19 = vmul.f32 %v12287_v33, %v12280_v23 }
 0x34a   :  { %10928 = vmatmul.mubr.f32.gmra.mxu0 %v30582_v44  ;;  %11000 = vmatprep.mubr.f32.mxu1 %v35266_v9  ;;  %v11356_v44 = vand.u32 4294901760, %v11355_v32  ;;  %v12299_v32 = vrot.slane %v30766_v46, %v35264_v6 }
 0x34b   :  { %11089 = vmatprep.mubr.f32.mxu0 %v35266_v9  ;;  %v30807_v47 = vand.u32 4294901760, %v12304_v19 }
 0x34d   :  { %11004 = vmatmul.mubr.f32.vlgmr.msra.gmra.mxu1 %v30579_v15  ;;  %v11361_v15 = vsub.f32 %v11359_v54, %v11360_v39 }
 0x34e   :  { %11091 = vmatmul.mubr.f32.vlgmr.msra.gmra.mxu0 %v30556_v43  ;;  %11137 = vmatpush1.msra.mxu1 %v30628_v58  ;;  %v30770_v58 = vpop.permute.xlu1 %12271 }
 0x34f   :  { %11266 = vmatpush1.msra.mxu0 %v30684_v61  ;;  %11357 = vmatprep.subr.mxu1 %v11356_v44  ;;  %v11362_v12 = vand.u32 4294901760, %v11361_v15  ;;  %v12279_v26 = vsel %vm3121_vm5, %v12270_v50, %v30770_v58  ;;  %v12295_v15 = vrot.slane %v30766_v46, %v35265_v57  ;;  %v13355_v50 = vld [vmem:[#allocation4 + $0x48] sm:$0xff] }
 0x350   :  { %11443 = vmatprep.subr.mxu0 %v11353_v41  ;;  %11009 = vmatprep.mubr.f32.mxu1 %v35266_v9  ;;  %v12305_v40 = vmul.f32 %v12291_v36, %v12279_v26  ;;  %v12443_v41 = vsub.f32 %v12304_v19, %v30807_v47  ;;  %v13360_v36 = vsel %vm9116_vm10, %v13355_v50, 0 }
 0x351   :  { %11096 = vmatprep.mubr.f32.mxu0 %v35266_v9  ;;  %11013 = vmatmul.mubr.f32.gmra.mxu1 %v30593_v63  ;;  %v30737_v63 = vand.u32 4294901760, %v11223_v31 }
 0x352   :  { %11098 = vmatmul.mubr.f32.gmra.mxu0 %v30568_v38  ;;  %11170 = vmatprep.mubr.f32.mxu1 %v35266_v9  ;;  %v30789_v22 = vand.u32 4294901760, %v12305_v40 }
 0x353   :  { %11299 = vmatprep.mubr.f32.mxu0 %v35266_v9  ;;  %v11867_v11 = vsub.f32 %v11223_v31, %v30737_v63 }
 0x354   :  { %v12437_v2 = vsub.f32 %v12305_v40, %v30789_v22 }
 0x355   :  { %11172 = vmatmul.mubr.f32.vlgmr.msra.gmra.mxu1 %v30556_v43  ;;  %v30751_v43 = vand.u32 4294901760, %v11222_v24  ;;  %v11868_v55 = vand.u32 4294901760, %v11867_v11 }
 0x356   :  { %11305 = vmatmul.mubr.f32.vlgmr.msra.gmra.mxu0 %v30726_v14  ;;  %11363 = vmatpush1.msra.mxu1 %v11362_v12  ;;  %v12438_v1 = vand.u32 4294901760, %v12437_v2 }
 0x357   :  { %11446 = vmatpush1.msra.mxu0 %v11359_v54  ;;  %11527 = vmatprep.subr.mxu1 %v30666_v5  ;;  %v11869_v20 = vsub.f32 %v11867_v11, %v11868_v55  ;;  %v12274_v54 = vpop.permute.xlu1 %12273 }
 0x358   :  { %11614 = vmatprep.subr.mxu0 %v11354_v42  ;;  %11177 = vmatprep.mubr.f32.mxu1 %v35266_v9  ;;  %v12439_v37 = vsub.f32 %v12437_v2, %v12438_v1  ;;  %v12277_v25 = vsel %vm3121_vm5, %v12274_v54, %v12276_v27  ;;  %v30919_v27 = vand.u32 4294901760, %v13360_v36 }
 0x359   :  { %11310 = vmatprep.mubr.f32.mxu0 %v35266_v9  ;;  %11179 = vmatmul.mubr.f32.gmra.mxu1 %v30568_v38  ;;  %v11873_v38 = vsub.f32 %v11222_v24, %v30751_v43  ;;  %v11870_v13 = vand.u32 4294901760, %v11869_v20  ;;  %v12307_v44 = vmul.f32 %v12299_v32, %v12277_v25 }
 0x35a   :  { %11316 = vmatmul.mubr.f32.gmra.mxu0 %v30741_v60  ;;  %11396 = vmatprep.mubr.f32.mxu1 %v35266_v9 }
 0x35b   :  { %11479 = vmatprep.mubr.f32.mxu0 %v35266_v9  ;;  %v11874_v35 = vand.u32 4294901760, %v11873_v38  ;;  %v30858_v16 = vand.u32 4294901760, %v12307_v44 }
 0x35d   :  { %11398 = vmatmul.mubr.f32.vlgmr.msra.gmra.mxu1 %v30679_v49  ;;  %v11875_v34 = vsub.f32 %v11873_v38, %v11874_v35  ;;  %v12951_v12 = vsub.f32 %v12307_v44, %v30858_v16 }
 0x35e   :  { %11482 = vmatmul.mubr.f32.vlgmr.msra.gmra.mxu0 %v30689_v51  ;;  %11529 = vmatpush1.msra.mxu1 %v30684_v61 }
 0x35f   :  { %11618 = vmatpush1.msra.mxu0 %v11360_v39  ;;  %11697 = vmatprep.subr.mxu1 %v30666_v5  ;;  %v11876_v62 = vand.u32 4294901760, %v11875_v34  ;;  %v12315_v5 = vsel %vm9116_vm10, %v12310_v53, 0  ;;  %v12952_v45 = vand.u32 4294901760, %v12951_v12 }
 0x360   :  { %11778 = vmatprep.subr.mxu0 %v30737_v63  ;;  %11403 = vmatprep.mubr.f32.mxu1 %v35266_v9  ;;  %v30814_v3 = vand.u32 4294901760, %v12315_v5 }
 0x361   :  { %11487 = vmatprep.mubr.f32.mxu0 %v35266_v9  ;;  %11405 = vmatmul.mubr.f32.gmra.mxu1 %v30691_v29 }
 0x362   :  { %11490 = vmatmul.mubr.f32.gmra.mxu0 %v30705_v52  ;;  %11562 = vmatprep.mubr.f32.mxu1 %v35266_v9  ;;  %v30828_v42 = vsub.f32 %v12315_v5, %v30814_v3 }
 0x363   :  { %11651 = vmatprep.mubr.f32.mxu0 %v35266_v9 }
 0x364   :  { %v30839_v30 = vand.u32 4294901760, %v30828_v42 }
 0x365   :  { %11566 = vmatmul.mubr.f32.vlgmr.msra.gmra.mxu1 %v30702_v17 }
 0x366   :  { %11653 = vmatmul.mubr.f32.vlgmr.msra.gmra.mxu0 %v30679_v49  ;;  %11699 = vmatpush1.msra.mxu1 %v30684_v61  ;;  %v30825_v61 = vand.u32 4294901760, %v30812_v21  ;;  %v12398_v10 = vsub.f32 %v30828_v42, %v30839_v30 }
 0x367   :  { %11780 = vmatpush1.msra.mxu0 %v30751_v43  ;;  %11871 = vmatprep.subr.mxu1 %v11870_v13  ;;  %v28856_v13 = vld [vmem:[%s34816_s12] sm:$0xff] }
 0x368   :  { %11957 = vmatprep.subr.mxu0 %v11867_v11  ;;  %11571 = vmatprep.mubr.f32.mxu1 %v35266_v9  ;;  %v12387_v39 = vsub.f32 %v30812_v21, %v30825_v61  ;;  %v30912_v26 = vand.u32 4294901760, %v28856_v13 }
 0x369   :  { %11658 = vmatprep.mubr.f32.mxu0 %v35266_v9  ;;  %11575 = vmatmul.mubr.f32.gmra.mxu1 %v30716_v0 }
 0x36a   :  { %11660 = vmatmul.mubr.f32.gmra.mxu0 %v30691_v29  ;;  %11732 = vmatprep.mubr.f32.mxu1 %v35266_v9  ;;  %v12388_v4 = vand.u32 4294901760, %v12387_v39  ;;  %v13488_v18 = vsub.f32 %v28856_v13, %v30912_v26 }
 0x36b   :  { %11813 = vmatprep.mubr.f32.mxu0 %v35266_v9 }
 0x36c   :  { %v13489_v23 = vand.u32 4294901760, %v13488_v18 }
 0x36d   :  { %11734 = vmatmul.mubr.f32.vlgmr.msra.gmra.mxu1 %v30679_v49 }
 0x36e   :  { %11819 = vmatmul.mubr.f32.vlgmr.msra.gmra.mxu0 %v30726_v14  ;;  %11877 = vmatpush1.msra.mxu1 %v11876_v62  ;;  %v12278_v14 = vsel %vm3121_vm5, %v30770_v58, %v12274_v54 }
 0x36f   :  { %11960 = vmatpush1.msra.mxu0 %v11873_v38  ;;  %12041 = vmatprep.subr.mxu1 %v30737_v63  ;;  %v12306_v7 = vmul.f32 %v12295_v15, %v12278_v14  ;;  %v28855_v38 = vld [vmem:[%s34816_s12 + $0x8] sm:$0xff] }
 0x370   :  { %12128 = vmatprep.subr.mxu0 %v11868_v55  ;;  %11739 = vmatprep.mubr.f32.mxu1 %v35266_v9  ;;  %v30896_v20 = vand.u32 4294901760, %v28855_v38 }
 0x371   :  { %11824 = vmatprep.mubr.f32.mxu0 %v35266_v9  ;;  %11741 = vmatmul.mubr.f32.gmra.mxu1 %v30691_v29 }
 0x372   :  { %11830 = vmatmul.mubr.f32.gmra.mxu0 %v30741_v60  ;;  %11910 = vmatprep.mubr.f32.mxu1 %v35266_v9 }
 0x373   :  { %11993 = vmatprep.mubr.f32.mxu0 %v35266_v9 }
 0x375   :  { %11912 = vmatmul.mubr.f32.vlgmr.msra.gmra.mxu1 %v30679_v49 }
 0x376   :  { %11996 = vmatmul.mubr.f32.vlgmr.msra.gmra.mxu0 %v30689_v51  ;;  %12043 = vmatpush1.msra.mxu1 %v30751_v43  ;;  %v12444_v51 = vand.u32 4294901760, %v12443_v41 }
 0x377   :  { %12132 = vmatpush1.msra.mxu0 %v11874_v35  ;;  %12211 = vmatprep.subr.mxu1 %v30737_v63  ;;  %v12953_v63 = vsub.f32 %v12951_v12, %v12952_v45  ;;  %v13482_v35 = vsub.f32 %v28855_v38, %v30896_v20 }
 0x378   :  { %12348 = vmatprep.subr.mxu0 %v30789_v22  ;;  %11917 = vmatprep.mubr.f32.mxu1 %v35266_v9 }
 0x379   :  { %12001 = vmatprep.mubr.f32.mxu0 %v35266_v9  ;;  %11919 = vmatmul.mubr.f32.gmra.mxu1 %v30691_v29  ;;  %v12954_v24 = vand.u32 4294901760, %v12953_v63  ;;  %v13483_v34 = vand.u32 4294901760, %v13482_v35  ;;  %v31003_v63 = vpop.permute.xlu1 %14402 }
 0x37a   :  { %12004 = vmatmul.mubr.f32.gmra.mxu0 %v30705_v52  ;;  %12076 = vmatprep.mubr.f32.mxu1 %v35266_v9  ;;  %v12440_v52 = vand.u32 4294901760, %v12439_v37  ;;  %v28857_v37 = vld [vmem:[%s34816_s12 + $0x18] sm:$0xff] }
 0x37b   :  { %12165 = vmatprep.mubr.f32.mxu0 %v35266_v9  ;;  %v13484_v33 = vsub.f32 %v13482_v35, %v13483_v34 }
 0x37d   :  { %12080 = vmatmul.mubr.f32.vlgmr.msra.gmra.mxu1 %v30702_v17  ;;  %v12445_v17 = vsub.f32 %v12443_v41, %v12444_v51  ;;  %v13485_v59 = vand.u32 4294901760, %v13484_v33 }
 0x37e   :  { %12167 = vmatmul.mubr.f32.vlgmr.msra.gmra.mxu0 %v30679_v49  ;;  %12213 = vmatpush1.msra.mxu1 %v30751_v43  ;;  %v13354_v43 = vld [vmem:[#allocation4 + $0x40] sm:$0xff] }
 0x37f   :  { %12350 = vmatpush1.msra.mxu0 %v30807_v47  ;;  %12441 = vmatprep.subr.mxu1 %v12440_v52  ;;  %v12446_v31 = vand.u32 4294901760, %v12445_v17  ;;  %v13357_v46 = vsel %vm9116_vm10, %v13354_v43, 0  ;;  %v28858_v52 = vld [vmem:[%s34816_s12 + $0x10] sm:$0xff] }
 0x380   :  { %12527 = vmatprep.subr.mxu0 %v12437_v2  ;;  %12085 = vmatprep.mubr.f32.mxu1 %v35266_v9  ;;  %v30904_v58 = vand.u32 4294901760, %v13357_v46  ;;  %v13490_v2 = vsub.f32 %v13488_v18, %v13489_v23  ;;  %v30978_v39 = vand.u32 4294901760, %v28858_v52 }
 0x381   :  { %12172 = vmatprep.mubr.f32.mxu0 %v35266_v9  ;;  %12089 = vmatmul.mubr.f32.gmra.mxu1 %v30716_v0  ;;  %v12399_v0 = vand.u32 4294901760, %v12398_v10 }
 0x382   :  { %12174 = vmatmul.mubr.f32.gmra.mxu0 %v30691_v29  ;;  %12246 = vmatprep.mubr.f32.mxu1 %v35266_v9  ;;  %v30917_v40 = vsub.f32 %v13357_v46, %v30904_v58  ;;  %v30989_v15 = vsub.f32 %v28858_v52, %v30978_v39 }
 0x383   :  { %12383 = vmatprep.mubr.f32.mxu0 %v35266_v9 }
 0x384   :  { %v30930_v62 = vand.u32 4294901760, %v30917_v40 }
 0x385   :  { %12248 = vmatmul.mubr.f32.vlgmr.msra.gmra.mxu1 %v30679_v49  ;;  %v30868_v49 = vand.u32 4294901760, %v12306_v7 }
 0x386   :  { %12389 = vmatmul.mubr.f32.vlgmr.msra.gmra.mxu0 %v12388_v4  ;;  %12447 = vmatpush1.msra.mxu1 %v12446_v31  ;;  %v13432_v53 = vsub.f32 %v30917_v40, %v30930_v62 }
 0x387   :  { %12530 = vmatpush1.msra.mxu0 %v12443_v41  ;;  %12611 = vmatprep.subr.mxu1 %v30789_v22 }
 0x388   :  { %12698 = vmatprep.subr.mxu0 %v12438_v1  ;;  %12253 = vmatprep.mubr.f32.mxu1 %v35266_v9  ;;  %v30950_v5 = vand.u32 4294901760, %v13432_v53 }
 0x389   :  { %12394 = vmatprep.mubr.f32.mxu0 %v35266_v9  ;;  %12255 = vmatmul.mubr.f32.gmra.mxu1 %v30691_v29  ;;  %v12957_v29 = vsub.f32 %v12306_v7, %v30868_v49  ;;  %v14401_v7 = vpop.permute.xlu0 %14400 }
 0x38a   :  { %12400 = vmatmul.mubr.f32.gmra.mxu0 %v12399_v0  ;;  %12480 = vmatprep.mubr.f32.mxu1 %v35266_v9  ;;  %v14407_v46 = vsel %vm5059_vm6, %v14401_v7, %v31003_v63 }
 0x38b   :  { %12563 = vmatprep.mubr.f32.mxu0 %v35266_v9  ;;  %v12958_v60 = vand.u32 4294901760, %v12957_v29 }
 0x38d   :  { %12482 = vmatmul.mubr.f32.vlgmr.msra.gmra.mxu1 %v30802_v8  ;;  %v12959_v11 = vsub.f32 %v12957_v29, %v12958_v60  ;;  %v31023_v53 = vpop.permute.xlu0 %14398 }
 0x38e   :  { %12566 = vmatmul.mubr.f32.vlgmr.msra.gmra.mxu0 %v30812_v21  ;;  %12613 = vmatpush1.msra.mxu1 %v30807_v47 }
 0x38f   :  { %12702 = vmatpush1.msra.mxu0 %v12444_v51  ;;  %12781 = vmatprep.subr.mxu1 %v30789_v22  ;;  %v12960_v55 = vand.u32 4294901760, %v12959_v11  ;;  %v30933_v22 = vsub.f32 %v13360_v36, %v30919_v27  ;;  %v14003_v11 = vand.u32 4294901760, %v30989_v15 }
 0x390   :  { %12862 = vmatprep.subr.mxu0 %v30858_v16  ;;  %12487 = vmatprep.mubr.f32.mxu1 %v35266_v9 }
 0x391   :  { %12571 = vmatprep.mubr.f32.mxu0 %v35266_v9  ;;  %12489 = vmatmul.mubr.f32.gmra.mxu1 %v30814_v3  ;;  %v30942_v19 = vand.u32 4294901760, %v30933_v22  ;;  %v14004_v33 = vsub.f32 %v30989_v15, %v14003_v11 }
 0x392   :  { %12574 = vmatmul.mubr.f32.gmra.mxu0 %v30828_v42  ;;  %12646 = vmatprep.mubr.f32.mxu1 %v35266_v9 }
 0x393   :  { %12735 = vmatprep.mubr.f32.mxu0 %v35266_v9 }
 0x395   :  { %12650 = vmatmul.mubr.f32.vlgmr.msra.gmra.mxu1 %v30825_v61 }
 0x396   :  { %12737 = vmatmul.mubr.f32.vlgmr.msra.gmra.mxu0 %v30802_v8  ;;  %12783 = vmatpush1.msra.mxu1 %v30807_v47  ;;  %v13443_v47 = vsub.f32 %v30933_v22, %v30942_v19 }
 0x397   :  { %12864 = vmatpush1.msra.mxu0 %v30868_v49  ;;  %12955 = vmatprep.subr.mxu1 %v12954_v24 }
 0x398   :  { %13041 = vmatprep.subr.mxu0 %v12951_v12  ;;  %12655 = vmatprep.mubr.f32.mxu1 %v35266_v9  ;;  %v30958_v41 = vand.u32 4294901760, %v13443_v47 }
 0x399   :  { %12742 = vmatprep.mubr.f32.mxu0 %v35266_v9  ;;  %12659 = vmatmul.mubr.f32.gmra.mxu1 %v30839_v30 }
 0x39a   :  { %12744 = vmatmul.mubr.f32.gmra.mxu0 %v30814_v3  ;;  %12816 = vmatprep.mubr.f32.mxu1 %v35266_v9 }
 0x39b   :  { %12897 = vmatprep.mubr.f32.mxu0 %v35266_v9 }
 0x39d   :  { %12818 = vmatmul.mubr.f32.vlgmr.msra.gmra.mxu1 %v30802_v8 }
 0x39e   :  { %12903 = vmatmul.mubr.f32.vlgmr.msra.gmra.mxu0 %v12388_v4  ;;  %12961 = vmatpush1.msra.mxu1 %v12960_v55 }
 0x39f   :  { %13044 = vmatpush1.msra.mxu0 %v12957_v29  ;;  %13125 = vmatprep.subr.mxu1 %v30858_v16 }
 0x3a0   :  { %13212 = vmatprep.subr.mxu0 %v12952_v45  ;;  %12823 = vmatprep.mubr.f32.mxu1 %v35266_v9 }
 0x3a1   :  { %12908 = vmatprep.mubr.f32.mxu0 %v35266_v9  ;;  %12825 = vmatmul.mubr.f32.gmra.mxu1 %v30814_v3 }
 0x3a2   :  { %12914 = vmatmul.mubr.f32.gmra.mxu0 %v12399_v0  ;;  %12994 = vmatprep.mubr.f32.mxu1 %v35266_v9  ;;  %v30999_v0 = vld [vmem:[%s34810_s6 + $0x14] sm:$0xf] }
 0x3a3   :  { %13077 = vmatprep.mubr.f32.mxu0 %v35266_v9  ;;  %v14420_v43 = vrot.slane %v30999_v0, %v35261_v28 }
 0x3a5   :  { %12996 = vmatmul.mubr.f32.vlgmr.msra.gmra.mxu1 %v30802_v8 }
 0x3a6   :  { %13080 = vmatmul.mubr.f32.vlgmr.msra.gmra.mxu0 %v30812_v21  ;;  %13127 = vmatpush1.msra.mxu1 %v30868_v49  ;;  %v13491_v21 = vand.u32 4294901760, %v13490_v2 }
 0x3a7   :  { %13216 = vmatpush1.msra.mxu0 %v12958_v60  ;;  %13295 = vmatprep.subr.mxu1 %v30858_v16 }
 0x3a8   :  { %13393 = vmatprep.subr.mxu0 %v30896_v20  ;;  %13001 = vmatprep.mubr.f32.mxu1 %v35266_v9 }
 0x3a9   :  { %13085 = vmatprep.mubr.f32.mxu0 %v35266_v9  ;;  %13003 = vmatmul.mubr.f32.gmra.mxu1 %v30814_v3 }
 0x3aa   :  { %13088 = vmatmul.mubr.f32.gmra.mxu0 %v30828_v42  ;;  %13160 = vmatprep.mubr.f32.mxu1 %v35266_v9 }
 0x3ab   :  { %13249 = vmatprep.mubr.f32.mxu0 %v35266_v9 }
 0x3ad   :  { %13164 = vmatmul.mubr.f32.vlgmr.msra.gmra.mxu1 %v30825_v61  ;;  %v30963_v61 = vand.u32 4294901760, %v28857_v37 }
 0x3ae   :  { %13251 = vmatmul.mubr.f32.vlgmr.msra.gmra.mxu0 %v30802_v8  ;;  %13297 = vmatpush1.msra.mxu1 %v30868_v49 }
 0x3af   :  { %13395 = vmatpush1.msra.mxu0 %v30912_v26  ;;  %13486 = vmatprep.subr.mxu1 %v13485_v59  ;;  %v30971_v51 = vsub.f32 %v28857_v37, %v30963_v61  ;;  %v14438_v37 = vld [vmem:[#allocation4 + $0x50] sm:$0xff] }
 0x3b0   :  { %13572 = vmatprep.subr.mxu0 %v13482_v35  ;;  %13169 = vmatprep.mubr.f32.mxu1 %v35266_v9 }
 0x3b1   :  { %13256 = vmatprep.mubr.f32.mxu0 %v35266_v9  ;;  %13173 = vmatmul.mubr.f32.gmra.mxu1 %v30839_v30 }
 0x3b2   :  { %13258 = vmatmul.mubr.f32.gmra.mxu0 %v30814_v3  ;;  %13330 = vmatprep.mubr.f32.mxu1 %v35266_v9 }
 0x3b3   :  { %13428 = vmatprep.mubr.f32.mxu0 %v35266_v9 }
 0x3b5   :  { %v9196_v1 = vpop.f32.mrf.mxu0  ;;  %13332 = vmatmul.mubr.f32.vlgmr.msra.gmra.mxu1 %v30802_v8 }
 0x3b6   :  { %13434 = vmatmul.mubr.f32.vlgmr.msra.gmra.mxu0 %v30950_v5  ;;  %13492 = vmatpush1.msra.mxu1 %v13491_v21 }
 0x3b7   :  { %13575 = vmatpush1.msra.mxu0 %v13488_v18  ;;  %v9198_v42 = vpop.f32.mrf.mxu0  ;;  %13656 = vmatprep.subr.mxu1 %v30896_v20 }
 0x3b8   :  { %13743 = vmatprep.subr.mxu0 %v13483_v34  ;;  %13337 = vmatprep.mubr.f32.mxu1 %v35266_v9 }
 0x3b9   :  { %13439 = vmatprep.mubr.f32.mxu0 %v35266_v9  ;;  %v9207_v8 = vpop.f32.mrf.mxu0  ;;  %13339 = vmatmul.mubr.f32.gmra.mxu1 %v30814_v3  ;;  %v13997_v3 = vand.u32 4294901760, %v30971_v51 }
 0x3ba   :  { %13445 = vmatmul.mubr.f32.gmra.mxu0 %v30958_v41  ;;  %13525 = vmatprep.mubr.f32.mxu1 %v35266_v9 }
 0x3bb   :  { %v9209_v54 = vpop.f32.mrf.mxu0  ;;  %13608 = vmatprep.mubr.f32.mxu0 %v35266_v9  ;;  %v13998_v16 = vsub.f32 %v30971_v51, %v13997_v3 }
 0x3bd   :  { %v9373_v32 = vpop.f32.mrf.mxu0  ;;  %v9289_v30 = vpop.f32.mrf.mxu1  ;;  %13527 = vmatmul.mubr.f32.vlgmr.msra.gmra.mxu1 %v30904_v58 }
 0x3be   :  { %13611 = vmatmul.mubr.f32.vlgmr.msra.gmra.mxu0 %v30917_v40  ;;  %v9290_v25 = vadd.f32 %v9289_v30, %v9196_v1  ;;  %13658 = vmatpush1.msra.mxu1 %v30912_v26  ;;  %v14408_v30 = vsel %vm5059_vm6, %v31023_v53, %v14401_v7 }
 0x3bf   :  { %13747 = vmatpush1.msra.mxu0 %v13489_v23  ;;  %v9375_v17 = vpop.f32.mrf.mxu0  ;;  %13826 = vmatprep.subr.mxu1 %v30896_v20  ;;  %v9291_v44 = vpop.f32.mrf.mxu1  ;;  %v13999_v20 = vand.u32 4294901760, %v13998_v16  ;;  %v14434_v23 = vmul.f32 %v14420_v43, %v14407_v46  ;;  %v14439_v16 = vld [vmem:[#allocation4 + $0x58] sm:$0xff] }
 0x3c0   :  { %13907 = vmatprep.subr.mxu0 %v30963_v61  ;;  %v9374_v4 = vadd.f32 %v9373_v32, %v9290_v25  ;;  %v9292_v10 = vadd.f32 %v9291_v44, %v9198_v42  ;;  %13532 = vmatprep.mubr.f32.mxu1 %v35266_v9  ;;  %v14416_v42 = vrot.slane %v30999_v0, %v35263_v56  ;;  %v14005_v32 = vand.u32 4294901760, %v14004_v33 }
 0x3c1   :  { %13616 = vmatprep.mubr.f32.mxu0 %v35266_v9  ;;  %v9296_v31 = vpop.f32.mrf.mxu1  ;;  %13534 = vmatmul.mubr.f32.gmra.mxu1 %v30919_v27  ;;  %v31029_v52 = vand.u32 4294901760, %v14434_v23 }
 0x3c2   :  { %v9381_v14 = vpop.f32.mrf.mxu0  ;;  %13619 = vmatmul.mubr.f32.gmra.mxu0 %v30933_v22  ;;  %v9376_v12 = vadd.f32 %v9375_v17, %v9292_v10  ;;  %v9297_v49 = vadd.f32 %v9296_v31, %v9207_v8  ;;  %13691 = vmatprep.mubr.f32.mxu1 %v35266_v9  ;;  %v14441_v10 = vsel %vm9116_vm10, %v14438_v37, 0  ;;  %v14433_v7 = vmul.f32 %v14416_v42, %v14408_v30 }
 0x3c3   :  { %13780 = vmatprep.mubr.f32.mxu0 %v35266_v9  ;;  %v9298_v45 = vpop.f32.mrf.mxu1  ;;  %v14428_v42 = vrot.slane %v30999_v0, %v35264_v6 }
 0x3c4   :  { %v9383_v29 = vpop.f32.mrf.mxu0  ;;  %v9382_v60 = vadd.f32 %v9381_v14, %v9297_v49  ;;  %v9299_v24 = vadd.f32 %v9298_v45, %v9209_v54  ;;  %v31059_v43 = vand.u32 4294901760, %v14433_v7 }
 0x3c5   :  { %v9457_v55 = vpop.f32.mrf.mxu1  ;;  %13695 = vmatmul.mubr.f32.vlgmr.msra.gmra.mxu1 %v30930_v62 }
 0x3c6   :  { %v9544_v38 = vpop.f32.mrf.mxu0  ;;  %13782 = vmatmul.mubr.f32.vlgmr.msra.gmra.mxu0 %v30904_v58  ;;  %v9384_v50 = vadd.f32 %v9383_v29, %v9299_v24  ;;  %v9458_v35 = vadd.f32 %v9457_v55, %v9374_v4  ;;  %13828 = vmatpush1.msra.mxu1 %v30912_v26  ;;  %v14444_v29 = vsel %vm9116_vm10, %v14439_v16, 0 }
 0x3c7   :  { %13909 = vmatpush1.msra.mxu0 %v30978_v39  ;;  %14000 = vmatprep.subr.mxu1 %v13999_v20  ;;  %v9459_v36 = vpop.f32.mrf.mxu1 }
 0x3c8   :  { %14086 = vmatprep.subr.mxu0 %v30971_v51  ;;  %v9546_v13 = vpop.f32.mrf.mxu0  ;;  %v9545_v34 = vadd.f32 %v9544_v38, %v9458_v35  ;;  %v9460_v18 = vadd.f32 %v9459_v36, %v9376_v12  ;;  %13700 = vmatprep.mubr.f32.mxu1 %v35266_v9  ;;  %v31052_v51 = vand.u32 4294901760, %v14441_v10 }
 0x3c9   :  { %13787 = vmatprep.mubr.f32.mxu0 %v35266_v9  ;;  %v9466_v59 = vpop.f32.mrf.mxu1  ;;  %13704 = vmatmul.mubr.f32.gmra.mxu1 %v30942_v19 }
 0x3ca   :  { %v9551_v26 = vpop.f32.mrf.mxu0  ;;  %13789 = vmatmul.mubr.f32.gmra.mxu0 %v30919_v27  ;;  %v9547_v2 = vadd.f32 %v9546_v13, %v9460_v18  ;;  %v9467_v47 = vadd.f32 %v9466_v59, %v9382_v60  ;;  %13861 = vmatprep.mubr.f32.mxu1 %v35266_v9  ;;  %v31067_v46 = vsub.f32 %v14441_v10, %v31052_v51 }
 0x3cb   :  { %13942 = vmatprep.mubr.f32.mxu0 %v35266_v9  ;;  %v9468_v1 = vpop.f32.mrf.mxu1 }
 0x3cc   :  { %v9553_v21 = vpop.f32.mrf.mxu0  ;;  %v9552_v8 = vadd.f32 %v9551_v26, %v9467_v47  ;;  %v9469_v54 = vadd.f32 %v9468_v1, %v9384_v50  ;;  %v31069_v50 = vand.u32 4294901760, %v14444_v29  ;;  %v14405_v1 = vpop.permute.xlu1 %14404 }
 0x3cd   :  { %v9625_v25 = vpop.f32.mrf.mxu1  ;;  %13863 = vmatmul.mubr.f32.vlgmr.msra.gmra.mxu1 %v30904_v58 }
 0x3ce   :  { %v9710_v17 = vpop.f32.mrf.mxu0  ;;  %13948 = vmatmul.mubr.f32.vlgmr.msra.gmra.mxu0 %v30950_v5  ;;  %v9554_v44 = vadd.f32 %v9553_v21, %v9469_v54  ;;  %v31036_v4 = vadd.f32 %v9625_v25, %v9545_v34  ;;  %14006 = vmatpush1.msra.mxu1 %v14005_v32  ;;  %v31048_v5 = vsub.f32 %v14434_v23, %v31029_v52 }
 0x3cf   :  { %14089 = vmatpush1.msra.mxu0 %v30989_v15  ;;  %14170 = vmatprep.subr.mxu1 %v30963_v61  ;;  %v9627_v31 = vpop.f32.mrf.mxu1  ;;  %v31087_v15 = vand.u32 4294901760, %v31067_v46 }
 0x3d0   :  { %14257 = vmatprep.subr.mxu0 %v13997_v3  ;;  %v9712_v14 = vpop.f32.mrf.mxu0  ;;  %v31043_v12 = vadd.f32 %v9627_v31, %v9547_v2  ;;  %13868 = vmatprep.mubr.f32.mxu1 %v35266_v9 }
 0x3d1   :  { %13953 = vmatprep.mubr.f32.mxu0 %v35266_v9  ;;  %v9632_v49 = vpop.f32.mrf.mxu1  ;;  %13870 = vmatmul.mubr.f32.gmra.mxu1 %v30919_v27  ;;  %v14516_v30 = vsub.f32 %v31067_v46, %v31087_v15 }
 0x3d2   :  { %v9721_v45 = vpop.f32.mrf.mxu0  ;;  %13959 = vmatmul.mubr.f32.gmra.mxu0 %v30958_v41  ;;  %v31054_v3 = vadd.f32 %v9632_v49, %v9552_v8  ;;  %14039 = vmatprep.mubr.f32.mxu1 %v35266_v9  ;;  %v14567_v41 = vand.u32 4294901760, %v31048_v5 }
 0x3d3   :  { %14122 = vmatprep.mubr.f32.mxu0 %v35266_v9  ;;  %v9634_v60 = vpop.f32.mrf.mxu1 }
 0x3d4   :  { %v9723_v24 = vpop.f32.mrf.mxu0  ;;  %v31061_v55 = vadd.f32 %v9634_v60, %v9554_v44 }
 0x3d5   :  { %v9803_v38 = vpop.f32.mrf.mxu1  ;;  %14041 = vmatmul.mubr.f32.vlgmr.msra.gmra.mxu1 %v30904_v58 }
 0x3d6   :  { %v9887_v20 = vpop.f32.mrf.mxu0  ;;  %14125 = vmatmul.mubr.f32.vlgmr.msra.gmra.mxu0 %v30917_v40  ;;  %v9804_v35 = vadd.f32 %v9803_v38, %v9710_v17  ;;  %14172 = vmatpush1.msra.mxu1 %v30978_v39  ;;  %v31077_v40 = vsub.f32 %v14433_v7, %v31059_v43  ;;  %v14409_v17 = vsel %vm5059_vm6, %v14405_v1, %v31023_v53 }
 0x3d7   :  { %14261 = vmatpush1.msra.mxu0 %v14003_v11  ;;  %14340 = vmatprep.subr.mxu1 %v30963_v61  ;;  %v9805_v36 = vpop.f32.mrf.mxu1  ;;  %v14568_v61 = vsub.f32 %v31048_v5, %v14567_v41  ;;  %v31090_v11 = vsub.f32 %v14444_v29, %v31069_v50  ;;  %v14436_v7 = vmul.f32 %v14428_v42, %v14409_v17 }
 0x3d8   :  { %14477 = vmatprep.subr.mxu0 %v31029_v52  ;;  %v9889_v13 = vpop.f32.mrf.mxu0  ;;  %v9888_v34 = vadd.f32 %v9887_v20, %v9804_v35  ;;  %v9806_v18 = vadd.f32 %v9805_v36, %v9712_v14  ;;  %14046 = vmatprep.mubr.f32.mxu1 %v35266_v9  ;;  %v14424_v35 = vrot.slane %v30999_v0, %v35265_v57 }
 0x3d9   :  { %14130 = vmatprep.mubr.f32.mxu0 %v35266_v9  ;;  %v9810_v33 = vpop.f32.mrf.mxu1  ;;  %14048 = vmatmul.mubr.f32.gmra.mxu1 %v30919_v27  ;;  %v14569_v32 = vand.u32 4294901760, %v14568_v61  ;;  %v31102_v25 = vand.u32 4294901760, %v31090_v11 }
 0x3da   :  { %v9895_v23 = vpop.f32.mrf.mxu0  ;;  %14133 = vmatmul.mubr.f32.gmra.mxu0 %v30933_v22  ;;  %v9890_v59 = vadd.f32 %v9889_v13, %v9806_v18  ;;  %v9811_v26 = vadd.f32 %v9810_v33, %v9721_v45  ;;  %14205 = vmatprep.mubr.f32.mxu1 %v35266_v9  ;;  %v14573_v22 = vand.u32 4294901760, %v31077_v40  ;;  %v31117_v45 = vand.u32 4294901760, %v14516_v30 }
 0x3db   :  { %14294 = vmatprep.mubr.f32.mxu0 %v35266_v9  ;;  %v9812_v2 = vpop.f32.mrf.mxu1  ;;  %v14527_v29 = vsub.f32 %v31090_v11, %v31102_v25  ;;  %v31128_v18 = vand.u32 4294901760, %v14436_v7 }
 0x3dc   :  { %v9897_v47 = vpop.f32.mrf.mxu0  ;;  %v9896_v21 = vadd.f32 %v9895_v23, %v9811_v26  ;;  %v9813_v37 = vadd.f32 %v9812_v2, %v9723_v24  ;;  %v14574_v53 = vsub.f32 %v31077_v40, %v14573_v22 }
 0x3dd   :  { %v9971_v8 = vpop.f32.mrf.mxu1  ;;  %14209 = vmatmul.mubr.f32.vlgmr.msra.gmra.mxu1 %v30930_v62  ;;  %v31132_v61 = vand.u32 4294901760, %v14527_v29 }
 0x3de   :  { %v10058_v54 = vpop.f32.mrf.mxu0  ;;  %14296 = vmatmul.mubr.f32.vlgmr.msra.gmra.mxu0 %v30904_v58  ;;  %v9898_v44 = vadd.f32 %v9897_v47, %v9813_v37  ;;  %v9972_v10 = vadd.f32 %v9971_v8, %v9888_v34  ;;  %14342 = vmatpush1.msra.mxu1 %v30978_v39  ;;  %v14575_v13 = vand.u32 4294901760, %v14574_v53  ;;  %v14406_v34 = vsel %vm5059_vm6, %v31003_v63, %v14405_v1 }
 0x3df   :  { %14479 = vmatpush1.msra.mxu0 %v31059_v43  ;;  %14570 = vmatprep.subr.mxu1 %v14569_v32  ;;  %v9973_v62 = vpop.f32.mrf.mxu1 }
 0x3e0   :  { %14656 = vmatprep.subr.mxu0 %v31048_v5  ;;  %v10060_v31 = vpop.f32.mrf.mxu0  ;;  %v10059_v14 = vadd.f32 %v10058_v54, %v9972_v10  ;;  %v9974_v16 = vadd.f32 %v9973_v62, %v9890_v59  ;;  %14214 = vmatprep.mubr.f32.mxu1 %v35266_v9 }
 0x3e1   :  { %14301 = vmatprep.mubr.f32.mxu0 %v35266_v9  ;;  %v9980_v49 = vpop.f32.mrf.mxu1  ;;  %14218 = vmatmul.mubr.f32.gmra.mxu1 %v30942_v19 }
 0x3e2   :  { %v10065_v39 = vpop.f32.mrf.mxu0  ;;  %14303 = vmatmul.mubr.f32.gmra.mxu0 %v30919_v27  ;;  %v10061_v60 = vadd.f32 %v10060_v31, %v9974_v16  ;;  %v9981_v24 = vadd.f32 %v9980_v49, %v9896_v21  ;;  %14375 = vmatprep.mubr.f32.mxu1 %v35266_v9 }
 0x3e3   :  { %14512 = vmatprep.mubr.f32.mxu0 %v35266_v9  ;;  %v9982_v38 = vpop.f32.mrf.mxu1 }
 0x3e4   :  { %v10067_v20 = vpop.f32.mrf.mxu0  ;;  %v10066_v36 = vadd.f32 %v10065_v39, %v9981_v24  ;;  %v9983_v19 = vadd.f32 %v9982_v38, %v9898_v44 }
 0x3e5   :  { %v10139_v33 = vpop.f32.mrf.mxu1  ;;  %14377 = vmatmul.mubr.f32.vlgmr.msra.gmra.mxu1 %v30904_v58  ;;  %v14435_v58 = vmul.f32 %v14424_v35, %v14406_v34 }
 0x3e6   :  { %v10230_v23 = vpop.f32.mrf.mxu0  ;;  %14518 = vmatmul.mubr.f32.vlgmr.msra.gmra.mxu0 %v31117_v45  ;;  %v10068_v59 = vadd.f32 %v10067_v20, %v9983_v19  ;;  %v31134_v26 = vadd.f32 %v10139_v33, %v10059_v14  ;;  %14576 = vmatpush1.msra.mxu1 %v14575_v13 }
 0x3e7   :  { %v10231_v0 = vadd.f32 %v10230_v23, %v31036_v4  ;;  %14659 = vmatpush1.msra.mxu0 %v31077_v40  ;;  %14740 = vmatprep.subr.mxu1 %v31029_v52  ;;  %v10141_v63 = vpop.f32.mrf.mxu1  ;;  %v31147_v4 = vsub.f32 %v14436_v7, %v31128_v18  ;;  %v31156_v8 = vand.u32 4294901760, %v14435_v58  ;;  %v31182_v40 = vld [vmem:[%s34810_s6 + $0x18] sm:$0xf] }
 0x3e8   :  { %14827 = vmatprep.subr.mxu0 %v14567_v41  ;;  %v10232_v2 = vpop.f32.mrf.mxu0  ;;  %v31141_v47 = vadd.f32 %v10141_v63, %v10061_v60  ;;  %14382 = vmatprep.mubr.f32.mxu1 %v35266_v9  ;;  %v31187_v60 = vpop.permute.xlu1 %15486  ;;  %v15504_v20 = vrot.slane %v31182_v40, %v35261_v28 }
 0x3e9   :  { %v10233_v1 = vadd.f32 %v10232_v2, %v31043_v12  ;;  %14523 = vmatprep.mubr.f32.mxu0 %v35266_v9  ;;  %v10146_v21 = vpop.f32.mrf.mxu1  ;;  %14384 = vmatmul.mubr.f32.gmra.mxu1 %v30919_v27  ;;  %v31170_v10 = vsub.f32 %v14435_v58, %v31156_v8 }
 0x3ea   :  { %v10241_v37 = vpop.f32.mrf.mxu0  ;;  %14529 = vmatmul.mubr.f32.gmra.mxu0 %v31132_v61  ;;  %v31151_v5 = vadd.f32 %v10146_v21, %v10066_v36  ;;  %14609 = vmatprep.mubr.f32.mxu1 %v35266_v9 }
 0x3eb   :  { %v10242_v41 = vadd.f32 %v10241_v37, %v31054_v3  ;;  %14692 = vmatprep.mubr.f32.mxu0 %v35266_v9  ;;  %v10148_v12 = vpop.f32.mrf.mxu1  ;;  %v15081_v3 = vand.u32 4294901760, %v31147_v4  ;;  %v15087_v29 = vand.u32 4294901760, %v31170_v10 }
 0x3ec   :  { %v10243_v42 = vpop.f32.mrf.mxu0  ;;  %v31158_v54 = vadd.f32 %v10148_v12, %v10068_v59 }
 0x3ed   :  { %v10244_v32 = vadd.f32 %v10243_v42, %v31061_v55  ;;  %v10323_v30 = vpop.f32.mrf.mxu1  ;;  %14611 = vmatmul.mubr.f32.vlgmr.msra.gmra.mxu1 %v31052_v51  ;;  %v15088_v2 = vsub.f32 %v31170_v10, %v15087_v29 }
 0x3ee   :  { %v10407_v27 = vpop.f32.mrf.mxu0  ;;  %14695 = vmatmul.mubr.f32.vlgmr.msra.gmra.mxu0 %v31067_v46  ;;  %v10324_v17 = vadd.f32 %v10323_v30, %v10231_v0  ;;  %14742 = vmatpush1.msra.mxu1 %v31059_v43  ;;  %v15500_v30 = vrot.slane %v31182_v40, %v35263_v56 }
 0x3ef   :  { %14831 = vmatpush1.msra.mxu0 %v14573_v22  ;;  %14910 = vmatprep.subr.mxu1 %v31029_v52  ;;  %v10325_v44 = vpop.f32.mrf.mxu1  ;;  %v15082_v52 = vsub.f32 %v31147_v4, %v15081_v3  ;;  %v15485_v22 = vpop.permute.xlu0 %15484 }
 0x3f0   :  { %14991 = vmatprep.subr.mxu0 %v31128_v18  ;;  %v10409_v55 = vpop.f32.mrf.mxu0  ;;  %v10408_v62 = vadd.f32 %v10407_v27, %v10324_v17  ;;  %v10326_v31 = vadd.f32 %v10325_v44, %v10233_v1  ;;  %14616 = vmatprep.mubr.f32.mxu1 %v35266_v9  ;;  %v15491_v13 = vsel %vm6050_vm7, %v15485_v22, %v31187_v60  ;;  %v15089_v44 = vand.u32 4294901760, %v15088_v2 }
 0x3f1   :  { %14700 = vmatprep.mubr.f32.mxu0 %v35266_v9  ;;  %v10330_v14 = vpop.f32.mrf.mxu1  ;;  %14618 = vmatmul.mubr.f32.gmra.mxu1 %v31069_v50  ;;  %v15083_v19 = vand.u32 4294901760, %v15082_v52  ;;  %v15518_v58 = vmul.f32 %v15504_v20, %v15491_v13 }
 0x3f2   :  { %v10415_v16 = vpop.f32.mrf.mxu0  ;;  %14703 = vmatmul.mubr.f32.gmra.mxu0 %v31090_v11  ;;  %v10410_v53 = vadd.f32 %v10409_v55, %v10326_v31  ;;  %v10331_v7 = vadd.f32 %v10330_v14, %v10242_v41  ;;  %14775 = vmatprep.mubr.f32.mxu1 %v35266_v9 }
 0x3f3   :  { %14864 = vmatprep.mubr.f32.mxu0 %v35266_v9  ;;  %v10332_v49 = vpop.f32.mrf.mxu1  ;;  %v31206_v21 = vpop.permute.xlu0 %15482  ;;  %v31212_v55 = vand.u32 4294901760, %v15518_v58 }
 0x3f4   :  { %v10417_v39 = vpop.f32.mrf.mxu0  ;;  %v10416_v24 = vadd.f32 %v10415_v16, %v10331_v7  ;;  %v10333_v38 = vadd.f32 %v10332_v49, %v10244_v32  ;;  %v15522_v32 = vld [vmem:[#allocation4 + $0x60] sm:$0xff] }
 0x3f5   :  { %v10491_v35 = vpop.f32.mrf.mxu1  ;;  %14779 = vmatmul.mubr.f32.vlgmr.msra.gmra.mxu1 %v31087_v15  ;;  %v15525_v7 = vsel %vm9116_vm10, %v15522_v32, 0 }
 0x3f6   :  { %v10578_v36 = vpop.f32.mrf.mxu0  ;;  %14866 = vmatmul.mubr.f32.vlgmr.msra.gmra.mxu0 %v31052_v51  ;;  %v10418_v34 = vadd.f32 %v10417_v39, %v10333_v38  ;;  %v10492_v33 = vadd.f32 %v10491_v35, %v10408_v62  ;;  %14912 = vmatpush1.msra.mxu1 %v31059_v43  ;;  %v15492_v62 = vsel %vm6050_vm7, %v31206_v21, %v15485_v22  ;;  %v15523_v39 = vld [vmem:[#allocation4 + $0x68] sm:$0xff] }
 0x3f7   :  { %14993 = vmatpush1.msra.mxu0 %v31156_v8  ;;  %15084 = vmatprep.subr.mxu1 %v15083_v19  ;;  %v10493_v23 = vpop.f32.mrf.mxu1 }
 0x3f8   :  { %15170 = vmatprep.subr.mxu0 %v31147_v4  ;;  %v10580_v59 = vpop.f32.mrf.mxu0  ;;  %v10579_v0 = vadd.f32 %v10578_v36, %v10492_v33  ;;  %v10494_v63 = vadd.f32 %v10493_v23, %v10410_v53  ;;  %14784 = vmatprep.mubr.f32.mxu1 %v35266_v9  ;;  %v31237_v4 = vand.u32 4294901760, %v15525_v7 }
 0x3f9   :  { %14871 = vmatprep.mubr.f32.mxu0 %v35266_v9  ;;  %v10500_v1 = vpop.f32.mrf.mxu1  ;;  %14788 = vmatmul.mubr.f32.gmra.mxu1 %v31102_v25 }
 0x3fa   :  { %v10585_v43 = vpop.f32.mrf.mxu0  ;;  %14873 = vmatmul.mubr.f32.gmra.mxu0 %v31069_v50  ;;  %v10581_v37 = vadd.f32 %v10580_v59, %v10494_v63  ;;  %v10501_v41 = vadd.f32 %v10500_v1, %v10416_v24  ;;  %14945 = vmatprep.mubr.f32.mxu1 %v35266_v9  ;;  %v15517_v24 = vmul.f32 %v15500_v30, %v15492_v62 }
 0x3fb   :  { %15026 = vmatprep.mubr.f32.mxu0 %v35266_v9  ;;  %v10502_v12 = vpop.f32.mrf.mxu1  ;;  %v15512_v62 = vrot.slane %v31182_v40, %v35264_v6 }
 0x3fc   :  { %v10587_v42 = vpop.f32.mrf.mxu0  ;;  %v10586_v27 = vadd.f32 %v10585_v43, %v10501_v41  ;;  %v10503_v17 = vadd.f32 %v10502_v12, %v10418_v34  ;;  %v31245_v34 = vand.u32 4294901760, %v15517_v24 }
 0x3fd   :  { %v10659_v31 = vpop.f32.mrf.mxu1  ;;  %14947 = vmatmul.mubr.f32.vlgmr.msra.gmra.mxu1 %v31052_v51 }
 0x3fe   :  { %v10744_v14 = vpop.f32.mrf.mxu0  ;;  %15032 = vmatmul.mubr.f32.vlgmr.msra.gmra.mxu0 %v31117_v45  ;;  %v10588_v16 = vadd.f32 %v10587_v42, %v10503_v17  ;;  %v31219_v52 = vadd.f32 %v10659_v31, %v10579_v0  ;;  %15090 = vmatpush1.msra.mxu1 %v15089_v44  ;;  %v31254_v0 = vsub.f32 %v15525_v7, %v31237_v4 }
 0x3ff   :  { %v10745_v53 = vadd.f32 %v10744_v14, %v31134_v26  ;;  %15173 = vmatpush1.msra.mxu0 %v31170_v10  ;;  %15254 = vmatprep.subr.mxu1 %v31128_v18  ;;  %v10661_v22 = vpop.f32.mrf.mxu1  ;;  %v31233_v26 = vsub.f32 %v15518_v58, %v31212_v55  ;;  %v31264_v58 = vsub.f32 %v15517_v24, %v31245_v34 }
 0x400   :  { %15341 = vmatprep.subr.mxu0 %v15081_v3  ;;  %v10746_v49 = vpop.f32.mrf.mxu0  ;;  %v31227_v45 = vadd.f32 %v10661_v22, %v10581_v37  ;;  %14952 = vmatprep.mubr.f32.mxu1 %v35266_v9 }
 0x401   :  { %v10747_v38 = vadd.f32 %v10746_v49, %v31141_v47  ;;  %15037 = vmatprep.mubr.f32.mxu0 %v35266_v9  ;;  %v10666_v20 = vpop.f32.mrf.mxu1  ;;  %14954 = vmatmul.mubr.f32.gmra.mxu1 %v31069_v50  ;;  %v15528_v47 = vsel %vm9116_vm10, %v15523_v39, 0  ;;  %v15651_v59 = vand.u32 4294901760, %v31233_v26 }
 0x402   :  { %v10755_v35 = vpop.f32.mrf.mxu0  ;;  %15043 = vmatmul.mubr.f32.gmra.mxu0 %v31132_v61  ;;  %v31239_v3 = vadd.f32 %v10666_v20, %v10586_v27  ;;  %15123 = vmatprep.mubr.f32.mxu1 %v35266_v9  ;;  %v31256_v63 = vand.u32 4294901760, %v15528_v47  ;;  %v15657_v27 = vand.u32 4294901760, %v31264_v58 }
 0x403   :  { %v10756_v36 = vadd.f32 %v10755_v35, %v31151_v5  ;;  %15206 = vmatprep.mubr.f32.mxu0 %v35266_v9  ;;  %v10668_v19 = vpop.f32.mrf.mxu1 }
 0x404   :  { %v10757_v13 = vpop.f32.mrf.mxu0  ;;  %v31247_v33 = vadd.f32 %v10668_v19, %v10588_v16  ;;  %v31277_v41 = vsub.f32 %v15528_v47, %v31256_v63 }
 0x405   :  { %v10758_v61 = vadd.f32 %v10757_v13, %v31158_v54  ;;  %v10837_v23 = vpop.f32.mrf.mxu1  ;;  %15125 = vmatmul.mubr.f32.vlgmr.msra.gmra.mxu1 %v31052_v51 }
 0x406   :  { %15209 = vmatmul.mubr.f32.vlgmr.msra.gmra.mxu0 %v31067_v46  ;;  %v10921_v5 = vpop.f32.mrf.mxu0  ;;  %v10838_v2 = vadd.f32 %v10837_v23, %v10745_v53  ;;  %15256 = vmatpush1.msra.mxu1 %v31156_v8  ;;  %v31289_v7 = vand.u32 4294901760, %v31277_v41 }
 0x407   :  { %15345 = vmatpush1.msra.mxu0 %v15087_v29  ;;  %15424 = vmatprep.subr.mxu1 %v31128_v18  ;;  %v10839_v54 = vpop.f32.mrf.mxu1  ;;  %v15652_v18 = vsub.f32 %v31233_v26, %v15651_v59  ;;  %v31274_v29 = vand.u32 4294901760, %v31254_v0 }
 0x408   :  { %15561 = vmatprep.subr.mxu0 %v31212_v55  ;;  %v10923_v46 = vpop.f32.mrf.mxu0  ;;  %v10840_v1 = vadd.f32 %v10839_v54, %v10747_v38  ;;  %v10922_v43 = vadd.f32 %v10921_v5, %v10838_v2  ;;  %15130 = vmatprep.mubr.f32.mxu1 %v35266_v9  ;;  %v15611_v19 = vsub.f32 %v31277_v41, %v31289_v7 }
 0x409   :  { %15214 = vmatprep.mubr.f32.mxu0 %v35266_v9  ;;  %v10844_v37 = vpop.f32.mrf.mxu1  ;;  %15132 = vmatmul.mubr.f32.gmra.mxu1 %v31069_v50  ;;  %v15653_v14 = vand.u32 4294901760, %v15652_v18  ;;  %v15600_v53 = vsub.f32 %v31254_v0, %v31274_v29  ;;  %v15508_v2 = vrot.slane %v31182_v40, %v35265_v57 }
 0x40a   :  { %15217 = vmatmul.mubr.f32.gmra.mxu0 %v31090_v11  ;;  %v10929_v10 = vpop.f32.mrf.mxu0  ;;  %v10845_v12 = vadd.f32 %v10844_v37, %v10756_v36  ;;  %v10924_v42 = vadd.f32 %v10923_v46, %v10840_v1  ;;  %15289 = vmatprep.mubr.f32.mxu1 %v35266_v9  ;;  %v15489_v11 = vpop.permute.xlu1 %15488  ;;  %v31319_v18 = vand.u32 4294901760, %v15611_v19 }
 0x40b   :  { %15378 = vmatprep.mubr.f32.mxu0 %v35266_v9  ;;  %v10846_v32 = vpop.f32.mrf.mxu1  ;;  %v15493_v22 = vsel %vm6050_vm7, %v15489_v11, %v31206_v21  ;;  %v15658_v21 = vsub.f32 %v31264_v58, %v15657_v27  ;;  %v31304_v47 = vand.u32 4294901760, %v15600_v53  ;;  %v15490_v1 = vsel %vm6050_vm7, %v31187_v60, %v15489_v11 }
 0x40c   :  { %v10931_v30 = vpop.f32.mrf.mxu0  ;;  %v10847_v17 = vadd.f32 %v10846_v32, %v10758_v61  ;;  %v10930_v44 = vadd.f32 %v10929_v10, %v10845_v12  ;;  %v15520_v35 = vmul.f32 %v15512_v62, %v15493_v22  ;;  %v15519_v32 = vmul.f32 %v15508_v2, %v15490_v1 }
 0x40d   :  { %v11005_v31 = vpop.f32.mrf.mxu1  ;;  %15293 = vmatmul.mubr.f32.vlgmr.msra.gmra.mxu1 %v31087_v15  ;;  %v15659_v46 = vand.u32 4294901760, %v15658_v21 }
 0x40e   :  { %15380 = vmatmul.mubr.f32.vlgmr.msra.gmra.mxu0 %v31052_v51  ;;  %v11092_v16 = vpop.f32.mrf.mxu0  ;;  %v10932_v49 = vadd.f32 %v10931_v30, %v10847_v17  ;;  %v11006_v39 = vadd.f32 %v11005_v31, %v10922_v43  ;;  %15426 = vmatpush1.msra.mxu1 %v31156_v8  ;;  %v31315_v43 = vand.u32 4294901760, %v15520_v35  ;;  %v31340_v62 = vand.u32 4294901760, %v15519_v32 }
 0x40f   :  { %15563 = vmatpush1.msra.mxu0 %v31245_v34  ;;  %15654 = vmatprep.subr.mxu1 %v15653_v14  ;;  %v11007_v15 = vpop.f32.mrf.mxu1 }
 0x410   :  { %15740 = vmatprep.subr.mxu0 %v31233_v26  ;;  %v11094_v24 = vpop.f32.mrf.mxu0  ;;  %v11008_v38 = vadd.f32 %v11007_v15, %v10924_v42  ;;  %v11093_v20 = vadd.f32 %v11092_v16, %v11006_v39  ;;  %15298 = vmatprep.mubr.f32.mxu1 %v35266_v9  ;;  %v31332_v30 = vsub.f32 %v15520_v35, %v31315_v43 }
 0x411   :  { %15385 = vmatprep.mubr.f32.mxu0 %v35266_v9  ;;  %v11014_v36 = vpop.f32.mrf.mxu1  ;;  %15302 = vmatmul.mubr.f32.gmra.mxu1 %v31102_v25  ;;  %v31353_v39 = vsub.f32 %v15519_v32, %v31340_v62 }
 0x412   :  { %15387 = vmatmul.mubr.f32.gmra.mxu0 %v31069_v50  ;;  %v11099_v8 = vpop.f32.mrf.mxu0  ;;  %v11015_v13 = vadd.f32 %v11014_v36, %v10930_v44  ;;  %v11095_v61 = vadd.f32 %v11094_v24, %v11008_v38  ;;  %15459 = vmatprep.mubr.f32.mxu1 %v35266_v9  ;;  %v16165_v16 = vand.u32 4294901760, %v31332_v30 }
 0x413   :  { %15596 = vmatprep.mubr.f32.mxu0 %v35266_v9  ;;  %v11016_v23 = vpop.f32.mrf.mxu1  ;;  %v16171_v19 = vand.u32 4294901760, %v31353_v39 }
 0x414   :  { %v11101_v5 = vpop.f32.mrf.mxu0  ;;  %v11017_v25 = vadd.f32 %v11016_v23, %v10932_v49  ;;  %v11100_v54 = vadd.f32 %v11099_v8, %v11015_v13  ;;  %v31370_v13 = vpop.permute.xlu1 %16570 }
 0x415   :  { %v11173_v37 = vpop.f32.mrf.mxu1  ;;  %15461 = vmatmul.mubr.f32.vlgmr.msra.gmra.mxu1 %v31052_v51  ;;  %v16172_v32 = vsub.f32 %v31353_v39, %v16171_v19 }
 0x416   :  { %15602 = vmatmul.mubr.f32.vlgmr.msra.gmra.mxu0 %v31304_v47  ;;  %v11306_v10 = vpop.f32.mrf.mxu0  ;;  %v11102_v12 = vadd.f32 %v11101_v5, %v11017_v25  ;;  %v31321_v42 = vadd.f32 %v11173_v37, %v11093_v20  ;;  %15660 = vmatpush1.msra.mxu1 %v15659_v46  ;;  %v16569_v20 = vpop.permute.xlu0 %16568 }
 0x417   :  { %15743 = vmatpush1.msra.mxu0 %v31264_v58  ;;  %15824 = vmatprep.subr.mxu1 %v31212_v55  ;;  %v11175_v40 = vpop.f32.mrf.mxu1  ;;  %v16575_v46 = vsel %vm7041_vm8, %v16569_v20, %v31370_v13 }
 0x418   :  { %15911 = vmatprep.subr.mxu0 %v15651_v59  ;;  %v11308_v60 = vpop.f32.mrf.mxu0  ;;  %v31327_v51 = vadd.f32 %v11175_v40, %v11095_v61  ;;  %15466 = vmatprep.mubr.f32.mxu1 %v35266_v9 }
 0x419   :  { %15607 = vmatprep.mubr.f32.mxu0 %v35266_v9  ;;  %v11180_v11 = vpop.f32.mrf.mxu1  ;;  %15468 = vmatmul.mubr.f32.gmra.mxu1 %v31069_v50 }
 0x41a   :  { %15613 = vmatmul.mubr.f32.gmra.mxu0 %v31319_v18  ;;  %v11317_v17 = vpop.f32.mrf.mxu0  ;;  %v31336_v26 = vadd.f32 %v11180_v11, %v11100_v54  ;;  %15693 = vmatprep.mubr.f32.mxu1 %v35266_v9 }
 0x41b   :  { %15776 = vmatprep.mubr.f32.mxu0 %v35266_v9  ;;  %v11182_v59 = vpop.f32.mrf.mxu1 }
 0x41c   :  { %v11319_v44 = vpop.f32.mrf.mxu0  ;;  %v31342_v31 = vadd.f32 %v11182_v59, %v11102_v12  ;;  %v31389_v59 = vpop.permute.xlu0 %16566 }
 0x41d   :  { %v11399_v14 = vpop.f32.mrf.mxu1  ;;  %15695 = vmatmul.mubr.f32.vlgmr.msra.gmra.mxu1 %v31237_v4 }
 0x41e   :  { %15779 = vmatmul.mubr.f32.vlgmr.msra.gmra.mxu0 %v31254_v0  ;;  %v11483_v50 = vpop.f32.mrf.mxu0  ;;  %v11400_v53 = vadd.f32 %v11399_v14, %v11306_v10  ;;  %15826 = vmatpush1.msra.mxu1 %v31245_v34 }
 0x41f   :  { %15915 = vmatpush1.msra.mxu0 %v15657_v27  ;;  %15994 = vmatprep.subr.mxu1 %v31212_v55  ;;  %v11401_v22 = vpop.f32.mrf.mxu1  ;;  %v16166_v55 = vsub.f32 %v31332_v30, %v16165_v16  ;;  %v31365_v27 = vld [vmem:[%s34810_s6 + $0x1c] sm:$0xf] }
 0x420   :  { %16075 = vmatprep.subr.mxu0 %v31315_v43  ;;  %v11485_v49 = vpop.f32.mrf.mxu0  ;;  %v11402_v15 = vadd.f32 %v11401_v22, %v11308_v60  ;;  %v11484_v24 = vadd.f32 %v11483_v50, %v11400_v53  ;;  %15700 = vmatprep.mubr.f32.mxu1 %v35266_v9  ;;  %v16588_v5 = vrot.slane %v31365_v27, %v35261_v28  ;;  %v16606_v22 = vld [vmem:[#allocation4 + $0x70] sm:$0xff] }
 0x421   :  { %15784 = vmatprep.mubr.f32.mxu0 %v35266_v9  ;;  %v11406_v38 = vpop.f32.mrf.mxu1  ;;  %15702 = vmatmul.mubr.f32.gmra.mxu1 %v31256_v63  ;;  %v16167_v25 = vand.u32 4294901760, %v16166_v55  ;;  %v16576_v55 = vsel %vm7041_vm8, %v31389_v59, %v16569_v20 }
 0x422   :  { %15787 = vmatmul.mubr.f32.gmra.mxu0 %v31277_v41  ;;  %v11491_v58 = vpop.f32.mrf.mxu0  ;;  %v11407_v21 = vadd.f32 %v11406_v38, %v11317_v17  ;;  %v11486_v35 = vadd.f32 %v11485_v49, %v11402_v15  ;;  %15859 = vmatprep.mubr.f32.mxu1 %v35266_v9  ;;  %v16602_v11 = vmul.f32 %v16588_v5, %v16575_v46  ;;  %v16173_v38 = vand.u32 4294901760, %v16172_v32  ;;  %v16607_v5 = vld [vmem:[#allocation4 + $0x78] sm:$0xff] }
 0x423   :  { %15948 = vmatprep.mubr.f32.mxu0 %v35266_v9  ;;  %v11408_v36 = vpop.f32.mrf.mxu1  ;;  %v16584_v49 = vrot.slane %v31365_v27, %v35263_v56 }
 0x424   :  { %v11493_v8 = vpop.f32.mrf.mxu0  ;;  %v11409_v61 = vadd.f32 %v11408_v36, %v11319_v44  ;;  %v11492_v23 = vadd.f32 %v11491_v58, %v11407_v21  ;;  %v31395_v58 = vand.u32 4294901760, %v16602_v11 }
 0x425   :  { %v11567_v2 = vpop.f32.mrf.mxu1  ;;  %15863 = vmatmul.mubr.f32.vlgmr.msra.gmra.mxu1 %v31274_v29 }
 0x426   :  { %15950 = vmatmul.mubr.f32.vlgmr.msra.gmra.mxu0 %v31237_v4  ;;  %v11654_v54 = vpop.f32.mrf.mxu0  ;;  %v11494_v1 = vadd.f32 %v11493_v8, %v11409_v61  ;;  %v11568_v37 = vadd.f32 %v11567_v2, %v11484_v24  ;;  %15996 = vmatpush1.msra.mxu1 %v31245_v34  ;;  %v16609_v61 = vsel %vm9116_vm10, %v16606_v22, 0  ;;  %v16601_v2 = vmul.f32 %v16584_v49, %v16576_v55 }
 0x427   :  { %16077 = vmatpush1.msra.mxu0 %v31340_v62  ;;  %16168 = vmatprep.subr.mxu1 %v16167_v25  ;;  %v11569_v10 = vpop.f32.mrf.mxu1 }
 0x428   :  { %16254 = vmatprep.subr.mxu0 %v31332_v30  ;;  %v11656_v12 = vpop.f32.mrf.mxu0  ;;  %v11570_v40 = vadd.f32 %v11569_v10, %v11486_v35  ;;  %v11655_v60 = vadd.f32 %v11654_v54, %v11568_v37  ;;  %15868 = vmatprep.mubr.f32.mxu1 %v35266_v9  ;;  %v31413_v54 = vsub.f32 %v16602_v11, %v31395_v58  ;;  %v16612_v37 = vsel %vm9116_vm10, %v16607_v5, 0 }
 0x429   :  { %15955 = vmatprep.mubr.f32.mxu0 %v35266_v9  ;;  %v11576_v17 = vpop.f32.mrf.mxu1  ;;  %15872 = vmatmul.mubr.f32.gmra.mxu1 %v31289_v7 }
 0x42a   :  { %15957 = vmatmul.mubr.f32.gmra.mxu0 %v31256_v63  ;;  %v11661_v34 = vpop.f32.mrf.mxu0  ;;  %v11577_v44 = vadd.f32 %v11576_v17, %v11492_v23  ;;  %v11657_v14 = vadd.f32 %v11656_v12, %v11570_v40  ;;  %16029 = vmatprep.mubr.f32.mxu1 %v35266_v9  ;;  %v31425_v40 = vand.u32 4294901760, %v16601_v2  ;;  %v16735_v11 = vand.u32 4294901760, %v31413_v54 }
 0x42b   :  { %16110 = vmatprep.mubr.f32.mxu0 %v35266_v9  ;;  %v11578_v50 = vpop.f32.mrf.mxu1 }
 0x42c   :  { %v11663_v53 = vpop.f32.mrf.mxu0  ;;  %v11579_v15 = vadd.f32 %v11578_v50, %v11494_v1  ;;  %v11662_v24 = vadd.f32 %v11661_v34, %v11577_v44  ;;  %v31436_v34 = vand.u32 4294901760, %v16612_v37  ;;  %v31447_v50 = vsub.f32 %v16601_v2, %v31425_v40 }
 0x42d   :  { %v11735_v21 = vpop.f32.mrf.mxu1  ;;  %16031 = vmatmul.mubr.f32.vlgmr.msra.gmra.mxu1 %v31237_v4 }
 0x42e   :  { %16116 = vmatmul.mubr.f32.vlgmr.msra.gmra.mxu0 %v31304_v47  ;;  %v11820_v35 = vpop.f32.mrf.mxu0  ;;  %v11664_v36 = vadd.f32 %v11663_v53, %v11579_v15  ;;  %v11736_v8 = vadd.f32 %v11735_v21, %v11655_v60  ;;  %16174 = vmatpush1.msra.mxu1 %v16173_v38  ;;  %v31460_v49 = vsub.f32 %v16612_v37, %v31436_v34  ;;  %v16741_v21 = vand.u32 4294901760, %v31447_v50 }
 0x42f   :  { %16257 = vmatpush1.msra.mxu0 %v31353_v39  ;;  %16338 = vmatprep.subr.mxu1 %v31315_v43  ;;  %v11737_v23 = vpop.f32.mrf.mxu1 }
 0x430   :  { %16425 = vmatprep.subr.mxu0 %v16165_v16  ;;  %v11822_v20 = vpop.f32.mrf.mxu0  ;;  %v31408_v25 = vadd.f32 %v11736_v8, %v31219_v52  ;;  %v11738_v47 = vadd.f32 %v11737_v23, %v11657_v14  ;;  %16036 = vmatprep.mubr.f32.mxu1 %v35266_v9  ;;  %v31417_v16 = vand.u32 4294901760, %v16609_v61  ;;  %v16596_v8 = vrot.slane %v31365_v27, %v35264_v6 }
 0x431   :  { %16121 = vmatprep.mubr.f32.mxu0 %v35266_v9  ;;  %v11742_v46 = vpop.f32.mrf.mxu1  ;;  %16038 = vmatmul.mubr.f32.gmra.mxu1 %v31256_v63  ;;  %v31472_v2 = vand.u32 4294901760, %v31460_v49 }
 0x432   :  { %16127 = vmatmul.mubr.f32.gmra.mxu0 %v31319_v18  ;;  %v11831_v30 = vpop.f32.mrf.mxu0  ;;  %v31420_v1 = vadd.f32 %v11738_v47, %v31227_v45  ;;  %v11743_v52 = vadd.f32 %v11742_v46, %v11662_v24  ;;  %16207 = vmatprep.mubr.f32.mxu1 %v35266_v9  ;;  %v31434_v17 = vsub.f32 %v16609_v61, %v31417_v16 }
 0x433   :  { %16290 = vmatprep.mubr.f32.mxu0 %v35266_v9  ;;  %v11744_v10 = vpop.f32.mrf.mxu1 }
 0x434   :  { %v11833_v12 = vpop.f32.mrf.mxu0  ;;  %v31428_v60 = vadd.f32 %v11743_v52, %v31239_v3  ;;  %v11745_v18 = vadd.f32 %v11744_v10, %v11664_v36 }
 0x435   :  { %v11913_v32 = vpop.f32.mrf.mxu1  ;;  %16209 = vmatmul.mubr.f32.vlgmr.msra.gmra.mxu1 %v31237_v4 }
 0x436   :  { %16293 = vmatmul.mubr.f32.vlgmr.msra.gmra.mxu0 %v31254_v0  ;;  %v11997_v45 = vpop.f32.mrf.mxu0  ;;  %v31439_v44 = vadd.f32 %v11745_v18, %v31247_v33  ;;  %v11914_v14 = vadd.f32 %v11913_v32, %v11820_v35  ;;  %16340 = vmatpush1.msra.mxu1 %v31340_v62 }
 0x437   :  { %16429 = vmatpush1.msra.mxu0 %v16171_v19  ;;  %16508 = vmatprep.subr.mxu1 %v31315_v43  ;;  %v11915_v3 = vpop.f32.mrf.mxu1  ;;  %v16736_v43 = vsub.f32 %v31413_v54, %v16735_v11  ;;  %v31457_v19 = vand.u32 4294901760, %v31434_v17 }
 0x438   :  { %16645 = vmatprep.subr.mxu0 %v31395_v58  ;;  %v11999_v0 = vpop.f32.mrf.mxu0  ;;  %v11916_v53 = vadd.f32 %v11915_v3, %v11822_v20  ;;  %v11998_v22 = vadd.f32 %v11997_v45, %v11914_v14  ;;  %16214 = vmatprep.mubr.f32.mxu1 %v35266_v9  ;;  %v16695_v45 = vsub.f32 %v31460_v49, %v31472_v2 }
 0x439   :  { %16298 = vmatprep.mubr.f32.mxu0 %v35266_v9  ;;  %v11920_v33 = vpop.f32.mrf.mxu1  ;;  %16216 = vmatmul.mubr.f32.gmra.mxu1 %v31256_v63  ;;  %v16737_v23 = vand.u32 4294901760, %v16736_v43  ;;  %v16684_v5 = vsub.f32 %v31434_v17, %v31457_v19 }
 0x43a   :  { %16301 = vmatmul.mubr.f32.gmra.mxu0 %v31277_v41  ;;  %v12005_v39 = vpop.f32.mrf.mxu0  ;;  %v11921_v15 = vadd.f32 %v11920_v33, %v11831_v30  ;;  %v12000_v24 = vadd.f32 %v11999_v0, %v11916_v53  ;;  %16373 = vmatprep.mubr.f32.mxu1 %v35266_v9  ;;  %v16573_v41 = vpop.permute.xlu1 %16572 }
 0x43b   :  { %16462 = vmatprep.mubr.f32.mxu0 %v35266_v9  ;;  %v11922_v38 = vpop.f32.mrf.mxu1  ;;  %v16577_v47 = vsel %vm7041_vm8, %v16573_v41, %v31389_v59  ;;  %v16742_v59 = vsub.f32 %v31447_v50, %v16741_v21  ;;  %v31487_v32 = vand.u32 4294901760, %v16684_v5  ;;  %v16574_v43 = vsel %vm7041_vm8, %v31370_v13, %v16573_v41 }
 0x43c   :  { %v12007_v55 = vpop.f32.mrf.mxu0  ;;  %v11923_v35 = vadd.f32 %v11922_v38, %v11833_v12  ;;  %v12006_v36 = vadd.f32 %v12005_v39, %v11921_v15  ;;  %v16604_v12 = vmul.f32 %v16596_v8, %v16577_v47 }
 0x43d   :  { %v12081_v61 = vpop.f32.mrf.mxu1  ;;  %16377 = vmatmul.mubr.f32.vlgmr.msra.gmra.mxu1 %v31274_v29  ;;  %v16743_v39 = vand.u32 4294901760, %v16742_v59 }
 0x43e   :  { %16464 = vmatmul.mubr.f32.vlgmr.msra.gmra.mxu0 %v31237_v4  ;;  %v12168_v20 = vpop.f32.mrf.mxu0  ;;  %v12008_v46 = vadd.f32 %v12007_v55, %v11923_v35  ;;  %v12082_v30 = vadd.f32 %v12081_v61, %v11998_v22  ;;  %16510 = vmatpush1.msra.mxu1 %v31340_v62  ;;  %v16592_v22 = vrot.slane %v31365_v27, %v35265_v57  ;;  %v31498_v15 = vand.u32 4294901760, %v16604_v12 }
 0x43f   :  { %16647 = vmatpush1.msra.mxu0 %v31425_v40  ;;  %16738 = vmatprep.subr.mxu1 %v16737_v23  ;;  %v12083_v29 = vpop.f32.mrf.mxu1  ;;  %v31502_v55 = vand.u32 4294901760, %v16695_v45 }
 0x440   :  { %16824 = vmatprep.subr.mxu0 %v31413_v54  ;;  %v12170_v52 = vpop.f32.mrf.mxu0  ;;  %v12084_v37 = vadd.f32 %v12083_v29, %v12000_v24  ;;  %v12169_v10 = vadd.f32 %v12168_v20, %v12082_v30  ;;  %16382 = vmatprep.mubr.f32.mxu1 %v35266_v9  ;;  %v16603_v41 = vmul.f32 %v16592_v22, %v16574_v43  ;;  %v31557_v22 = vpop.permute.xlu1 %17654 }
 0x441   :  { %16469 = vmatprep.mubr.f32.mxu0 %v35266_v9  ;;  %v12090_v18 = vpop.f32.mrf.mxu1  ;;  %16386 = vmatmul.mubr.f32.gmra.mxu1 %v31289_v7  ;;  %v31514_v61 = vsub.f32 %v16604_v12, %v31498_v15 }
 0x442   :  { %16471 = vmatmul.mubr.f32.gmra.mxu0 %v31256_v63  ;;  %v12175_v62 = vpop.f32.mrf.mxu0  ;;  %v12091_v14 = vadd.f32 %v12090_v18, %v12006_v36  ;;  %v12171_v3 = vadd.f32 %v12170_v52, %v12084_v37  ;;  %16543 = vmatprep.mubr.f32.mxu1 %v35266_v9  ;;  %v31523_v47 = vand.u32 4294901760, %v16603_v41 }
 0x443   :  { %16680 = vmatprep.mubr.f32.mxu0 %v35266_v9  ;;  %v12092_v0 = vpop.f32.mrf.mxu1  ;;  %v17249_v29 = vand.u32 4294901760, %v31514_v61 }
 0x444   :  { %v12177_v53 = vpop.f32.mrf.mxu0  ;;  %v12093_v7 = vadd.f32 %v12092_v0, %v12008_v46  ;;  %v12176_v33 = vadd.f32 %v12175_v62, %v12091_v14  ;;  %v31540_v59 = vsub.f32 %v16603_v41, %v31523_v47  ;;  %v17653_v62 = vpop.permute.xlu0 %17652 }
 0x445   :  { %v12249_v24 = vpop.f32.mrf.mxu1  ;;  %16545 = vmatmul.mubr.f32.vlgmr.msra.gmra.mxu1 %v31237_v4 }
 0x446   :  { %16686 = vmatmul.mubr.f32.vlgmr.msra.gmra.mxu0 %v31487_v32  ;;  %v12390_v38 = vpop.f32.mrf.mxu0  ;;  %v12178_v35 = vadd.f32 %v12177_v53, %v12093_v7  ;;  %v12250_v36 = vadd.f32 %v12249_v24, %v12169_v10  ;;  %16744 = vmatpush1.msra.mxu1 %v16743_v39  ;;  %v17255_v53 = vand.u32 4294901760, %v31540_v59 }
 0x447   :  { %16827 = vmatpush1.msra.mxu0 %v31447_v50  ;;  %16908 = vmatprep.subr.mxu1 %v31395_v58  ;;  %v12251_v27 = vpop.f32.mrf.mxu1 }
 0x448   :  { %16995 = vmatprep.subr.mxu0 %v16735_v11  ;;  %v12392_v13 = vpop.f32.mrf.mxu0  ;;  %v31509_v4 = vadd.f32 %v12250_v36, %v31321_v42  ;;  %v12252_v8 = vadd.f32 %v12251_v27, %v12171_v3  ;;  %16550 = vmatprep.mubr.f32.mxu1 %v35266_v9 }
 0x449   :  { %16691 = vmatprep.mubr.f32.mxu0 %v35266_v9  ;;  %v12256_v23 = vpop.f32.mrf.mxu1  ;;  %16552 = vmatmul.mubr.f32.gmra.mxu1 %v31256_v63 }
 0x44a   :  { %16697 = vmatmul.mubr.f32.gmra.mxu0 %v31502_v55  ;;  %v12401_v54 = vpop.f32.mrf.mxu0  ;;  %v31519_v11 = vadd.f32 %v12252_v8, %v31327_v51  ;;  %v12257_v20 = vadd.f32 %v12256_v23, %v12176_v33  ;;  %16777 = vmatprep.mubr.f32.mxu1 %v35266_v9  ;;  %v17256_v23 = vsub.f32 %v31540_v59, %v17255_v53 }
 0x44b   :  { %16860 = vmatprep.mubr.f32.mxu0 %v35266_v9  ;;  %v12258_v42 = vpop.f32.mrf.mxu1 }
 0x44c   :  { %v12403_v5 = vpop.f32.mrf.mxu0  ;;  %v31526_v46 = vadd.f32 %v12257_v20, %v31336_v26  ;;  %v12259_v30 = vadd.f32 %v12258_v42, %v12178_v35  ;;  %v17659_v35 = vsel %vm8032_vm9, %v17653_v62, %v31557_v22  ;;  %v31576_v42 = vpop.permute.xlu0 %17650 }
 0x44d   :  { %v12483_v63 = vpop.f32.mrf.mxu1  ;;  %16779 = vmatmul.mubr.f32.vlgmr.msra.gmra.mxu1 %v31417_v16 }
 0x44e   :  { %16863 = vmatmul.mubr.f32.vlgmr.msra.gmra.mxu0 %v31434_v17  ;;  %v12567_v51 = vpop.f32.mrf.mxu0  ;;  %v31532_v52 = vadd.f32 %v12259_v30, %v31342_v31  ;;  %v12484_v37 = vadd.f32 %v12483_v63, %v12390_v38  ;;  %16910 = vmatpush1.msra.mxu1 %v31425_v40 }
 0x44f   :  { %16999 = vmatpush1.msra.mxu0 %v16741_v21  ;;  %17078 = vmatprep.subr.mxu1 %v31395_v58  ;;  %v12485_v26 = vpop.f32.mrf.mxu1  ;;  %v17250_v58 = vsub.f32 %v31514_v61, %v17249_v29  ;;  %v31552_v21 = vld [vmem:[%s34810_s6 + $0x20] sm:$0xf] }
 0x450   :  { %17159 = vmatprep.subr.mxu0 %v31498_v15  ;;  %v12569_v10 = vpop.f32.mrf.mxu0  ;;  %v12486_v12 = vadd.f32 %v12485_v26, %v12392_v13  ;;  %v12568_v18 = vadd.f32 %v12567_v51, %v12484_v37  ;;  %16784 = vmatprep.mubr.f32.mxu1 %v35266_v9  ;;  %v17672_v39 = vrot.slane %v31552_v21, %v35261_v28  ;;  %v17690_v37 = vld [vmem:[#allocation4 + $0x80] sm:$0xff] }
 0x451   :  { %16868 = vmatprep.mubr.f32.mxu0 %v35266_v9  ;;  %v12490_v31 = vpop.f32.mrf.mxu1  ;;  %16786 = vmatmul.mubr.f32.gmra.mxu1 %v31436_v34  ;;  %v17251_v24 = vand.u32 4294901760, %v17250_v58  ;;  %v17668_v26 = vrot.slane %v31552_v21, %v35263_v56  ;;  %v17693_v56 = vsel %vm9116_vm10, %v17690_v37, 0 }
 0x452   :  { %16871 = vmatmul.mubr.f32.gmra.mxu0 %v31460_v49  ;;  %v12575_v50 = vpop.f32.mrf.mxu0  ;;  %v12491_v45 = vadd.f32 %v12490_v31, %v12401_v54  ;;  %v12570_v14 = vadd.f32 %v12569_v10, %v12486_v12  ;;  %16943 = vmatprep.mubr.f32.mxu1 %v35266_v9  ;;  %v17686_v54 = vmul.f32 %v17672_v39, %v17659_v35 }
 0x453   :  { %17032 = vmatprep.mubr.f32.mxu0 %v35266_v9  ;;  %v12492_v3 = vpop.f32.mrf.mxu1 }
 0x454   :  { %v12577_v0 = vpop.f32.mrf.mxu0  ;;  %v12493_v7 = vadd.f32 %v12492_v3, %v12403_v5  ;;  %v12576_v33 = vadd.f32 %v12575_v50, %v12491_v45  ;;  %v31582_v31 = vand.u32 4294901760, %v17686_v54  ;;  %v17660_v50 = vsel %vm8032_vm9, %v31576_v42, %v17653_v62 }
 0x455   :  { %v12651_v43 = vpop.f32.mrf.mxu1  ;;  %16947 = vmatmul.mubr.f32.vlgmr.msra.gmra.mxu1 %v31457_v19 }
 0x456   :  { %17034 = vmatmul.mubr.f32.vlgmr.msra.gmra.mxu0 %v31417_v16  ;;  %v12738_v38 = vpop.f32.mrf.mxu0  ;;  %v12578_v36 = vadd.f32 %v12577_v0, %v12493_v7  ;;  %v12652_v27 = vadd.f32 %v12651_v43, %v12568_v18  ;;  %17080 = vmatpush1.msra.mxu1 %v31425_v40  ;;  %v17257_v18 = vand.u32 4294901760, %v17256_v23  ;;  %v17691_v7 = vld [vmem:[#allocation4 + $0x88] sm:$0xff]  ;;  %v18735_v43 = vld [vmem:[%s34809_s5 + $0x8] sm:$0xff] }
 0x457   :  { %17161 = vmatpush1.msra.mxu0 %v31523_v47  ;;  %17252 = vmatprep.subr.mxu1 %v17251_v24  ;;  %v12653_v28 = vpop.f32.mrf.mxu1  ;;  %v31603_v24 = vsub.f32 %v17686_v54, %v31582_v31 }
 0x458   :  { %17338 = vmatprep.subr.mxu0 %v31514_v61  ;;  %v12740_v13 = vpop.f32.mrf.mxu0  ;;  %v12654_v41 = vadd.f32 %v12653_v28, %v12570_v14  ;;  %v12739_v8 = vadd.f32 %v12738_v38, %v12652_v27  ;;  %16952 = vmatprep.mubr.f32.mxu1 %v35266_v9 }
 0x459   :  { %17039 = vmatprep.mubr.f32.mxu0 %v35266_v9  ;;  %v12660_v20 = vpop.f32.mrf.mxu1  ;;  %16956 = vmatmul.mubr.f32.gmra.mxu1 %v31472_v2  ;;  %v17819_v23 = vand.u32 4294901760, %v31603_v24 }
 0x45a   :  { %17041 = vmatmul.mubr.f32.gmra.mxu0 %v31436_v34  ;;  %v12745_v40 = vpop.f32.mrf.mxu0  ;;  %v12661_v5 = vadd.f32 %v12660_v20, %v12576_v33  ;;  %v12741_v30 = vadd.f32 %v12740_v13, %v12654_v41  ;;  %17113 = vmatprep.mubr.f32.mxu1 %v35266_v9  ;;  %v17685_v33 = vmul.f32 %v17668_v26, %v17660_v50 }
 0x45b   :  { %17194 = vmatprep.mubr.f32.mxu0 %v35266_v9  ;;  %v12662_v63 = vpop.f32.mrf.mxu1  ;;  %18743 = vperm.xlu1 %28852, %v18735_v43  }
 0x45c   :  { %v12747_v51 = vpop.f32.mrf.mxu0  ;;  %v12663_v10 = vadd.f32 %v12662_v63, %v12578_v36  ;;  %v12746_v12 = vadd.f32 %v12745_v40, %v12661_v5  ;;  %v17696_v36 = vsel %vm9116_vm10, %v17691_v7, 0  ;;  %v31615_v13 = vand.u32 4294901760, %v17685_v33 }
 0x45d   :  { %v12819_v58 = vpop.f32.mrf.mxu1  ;;  %17115 = vmatmul.mubr.f32.vlgmr.msra.gmra.mxu1 %v31417_v16  ;;  %v31626_v20 = vand.u32 4294901760, %v17696_v36 }
 0x45e   :  { %17200 = vmatmul.mubr.f32.vlgmr.msra.gmra.mxu0 %v31487_v32  ;;  %v12904_v45 = vpop.f32.mrf.mxu0  ;;  %v12748_v14 = vadd.f32 %v12747_v51, %v12663_v10  ;;  %v12820_v3 = vadd.f32 %v12819_v58, %v12739_v8  ;;  %17258 = vmatpush1.msra.mxu1 %v17257_v18 }
 0x45f   :  { %17341 = vmatpush1.msra.mxu0 %v31540_v59  ;;  %17422 = vmatprep.subr.mxu1 %v31498_v15  ;;  %v12821_v0 = vpop.f32.mrf.mxu1  ;;  %v31650_v37 = vsub.f32 %v17696_v36, %v31626_v20 }
 0x460   :  { %17509 = vmatprep.subr.mxu0 %v17249_v29  ;;  %v12906_v62 = vpop.f32.mrf.mxu0  ;;  %v31595_v39 = vadd.f32 %v12820_v3, %v31408_v25  ;;  %v12822_v32 = vadd.f32 %v12821_v0, %v12741_v30  ;;  %17120 = vmatprep.mubr.f32.mxu1 %v35266_v9  ;;  %v31607_v25 = vand.u32 4294901760, %v17693_v56  ;;  %v31637_v30 = vsub.f32 %v17685_v33, %v31615_v13 }
 0x461   :  { %17205 = vmatprep.mubr.f32.mxu0 %v35266_v9  ;;  %v12826_v61 = vpop.f32.mrf.mxu1  ;;  %17122 = vmatmul.mubr.f32.gmra.mxu1 %v31436_v34  ;;  %v31662_v7 = vand.u32 4294901760, %v31650_v37 }
 0x462   :  { %17211 = vmatmul.mubr.f32.gmra.mxu0 %v31502_v55  ;;  %v12915_v29 = vpop.f32.mrf.mxu0  ;;  %v31610_v38 = vadd.f32 %v12822_v32, %v31420_v1  ;;  %v12827_v35 = vadd.f32 %v12826_v61, %v12746_v12  ;;  %17291 = vmatprep.mubr.f32.mxu1 %v35266_v9  ;;  %v31624_v54 = vsub.f32 %v17693_v56, %v31607_v25  ;;  %v17825_v50 = vand.u32 4294901760, %v31637_v30 }
 0x463   :  { %17374 = vmatprep.mubr.f32.mxu0 %v35266_v9  ;;  %v12828_v27 = vpop.f32.mrf.mxu1 }
 0x464   :  { %v12917_v28 = vpop.f32.mrf.mxu0  ;;  %v31618_v55 = vadd.f32 %v12827_v35, %v31428_v60  ;;  %v12829_v41 = vadd.f32 %v12828_v27, %v12748_v14  ;;  %v17680_v14 = vrot.slane %v31552_v21, %v35264_v6 }
 0x465   :  { %v12997_v8 = vpop.f32.mrf.mxu1  ;;  %17293 = vmatmul.mubr.f32.vlgmr.msra.gmra.mxu1 %v31417_v16 }
 0x466   :  { %17377 = vmatmul.mubr.f32.vlgmr.msra.gmra.mxu0 %v31434_v17  ;;  %v13081_v1 = vpop.f32.mrf.mxu0  ;;  %v31629_v40 = vadd.f32 %v12829_v41, %v31439_v44  ;;  %v12998_v5 = vadd.f32 %v12997_v8, %v12904_v45  ;;  %17424 = vmatpush1.msra.mxu1 %v31523_v47 }
 0x467   :  { %17513 = vmatpush1.msra.mxu0 %v17255_v53  ;;  %17592 = vmatprep.subr.mxu1 %v31498_v15  ;;  %v12999_v60 = vpop.f32.mrf.mxu1  ;;  %v17820_v15 = vsub.f32 %v31603_v24, %v17819_v23  ;;  %v31647_v53 = vand.u32 4294901760, %v31624_v54 }
 0x468   :  { %17729 = vmatprep.subr.mxu0 %v31582_v31  ;;  %v13083_v17 = vpop.f32.mrf.mxu0  ;;  %v13000_v63 = vadd.f32 %v12999_v60, %v12906_v62  ;;  %v13082_v51 = vadd.f32 %v13081_v1, %v12998_v5  ;;  %17298 = vmatprep.mubr.f32.mxu1 %v35266_v9  ;;  %v17676_v60 = vrot.slane %v31552_v21, %v35265_v57 }
 0x469   :  { %17382 = vmatprep.mubr.f32.mxu0 %v35266_v9  ;;  %v13004_v44 = vpop.f32.mrf.mxu1  ;;  %17300 = vmatmul.mubr.f32.gmra.mxu1 %v31436_v34  ;;  %v17821_v56 = vand.u32 4294901760, %v17820_v15  ;;  %v17768_v62 = vsub.f32 %v31624_v54, %v31647_v53 }
 0x46a   :  { %17385 = vmatmul.mubr.f32.gmra.mxu0 %v31460_v49  ;;  %v13089_v59 = vpop.f32.mrf.mxu0  ;;  %v13005_v26 = vadd.f32 %v13004_v44, %v12915_v29  ;;  %v13084_v10 = vadd.f32 %v13083_v17, %v13000_v63  ;;  %17457 = vmatprep.mubr.f32.mxu1 %v35266_v9  ;;  %v17657_v49 = vpop.permute.xlu1 %17656 }
 0x46b   :  { %17546 = vmatprep.mubr.f32.mxu0 %v35266_v9  ;;  %v13006_v12 = vpop.f32.mrf.mxu1  ;;  %v17661_v33 = vsel %vm8032_vm9, %v17657_v49, %v31576_v42  ;;  %v17826_v42 = vsub.f32 %v31637_v30, %v17825_v50  ;;  %v31677_v27 = vand.u32 4294901760, %v17768_v62 }
 0x46c   :  { %v13091_v18 = vpop.f32.mrf.mxu0  ;;  %v13007_v58 = vadd.f32 %v13006_v12, %v12917_v28  ;;  %v13090_v45 = vadd.f32 %v13089_v59, %v13005_v26  ;;  %v17688_v35 = vmul.f32 %v17680_v14, %v17661_v33  ;;  %v17779_v28 = vsub.f32 %v31650_v37, %v31662_v7 }
 0x46d   :  { %v13165_v3 = vpop.f32.mrf.mxu1  ;;  %17461 = vmatmul.mubr.f32.vlgmr.msra.gmra.mxu1 %v31457_v19  ;;  %v17827_v63 = vand.u32 4294901760, %v17826_v42 }
 0x46e   :  { %17548 = vmatmul.mubr.f32.vlgmr.msra.gmra.mxu0 %v31417_v16  ;;  %v13252_v0 = vpop.f32.mrf.mxu0  ;;  %v13092_v32 = vadd.f32 %v13091_v18, %v13007_v58  ;;  %v13166_v43 = vadd.f32 %v13165_v3, %v13082_v51  ;;  %17594 = vmatpush1.msra.mxu1 %v31523_v47  ;;  %v17658_v51 = vsel %vm8032_vm9, %v31557_v22, %v17657_v49  ;;  %v31688_v44 = vand.u32 4294901760, %v17688_v35 }
 0x46f   :  { %17731 = vmatpush1.msra.mxu0 %v31615_v13  ;;  %17822 = vmatprep.subr.mxu1 %v17821_v56  ;;  %v13167_v6 = vpop.f32.mrf.mxu1  ;;  %v31692_v26 = vand.u32 4294901760, %v17779_v28  ;;  %v17687_v21 = vmul.f32 %v17676_v60, %v17658_v51 }
 0x470   :  { %17908 = vmatprep.subr.mxu0 %v31603_v24  ;;  %v13254_v19 = vpop.f32.mrf.mxu0  ;;  %v13168_v61 = vadd.f32 %v13167_v6, %v13084_v10  ;;  %v13253_v29 = vadd.f32 %v13252_v0, %v13166_v43  ;;  %17466 = vmatprep.mubr.f32.mxu1 %v35266_v9  ;;  %v31704_v18 = vsub.f32 %v17688_v35, %v31688_v44 }
 0x471   :  { %17553 = vmatprep.mubr.f32.mxu0 %v35266_v9  ;;  %v13174_v36 = vpop.f32.mrf.mxu1  ;;  %17470 = vmatmul.mubr.f32.gmra.mxu1 %v31472_v2  ;;  %v31713_v14 = vand.u32 4294901760, %v17687_v21 }
 0x472   :  { %17555 = vmatmul.mubr.f32.gmra.mxu0 %v31436_v34  ;;  %v13259_v47 = vpop.f32.mrf.mxu0  ;;  %v13175_v41 = vadd.f32 %v13174_v36, %v13090_v45  ;;  %v13255_v8 = vadd.f32 %v13254_v19, %v13168_v61  ;;  %17627 = vmatprep.mubr.f32.mxu1 %v35266_v9  ;;  %v18333_v0 = vand.u32 4294901760, %v31704_v18 }
 0x473   :  { %17764 = vmatprep.mubr.f32.mxu0 %v35266_v9  ;;  %v13176_v1 = vpop.f32.mrf.mxu1  ;;  %v31730_v43 = vsub.f32 %v17687_v21, %v31713_v14 }
 0x474   :  { %v13261_v5 = vpop.f32.mrf.mxu0  ;;  %v13177_v2 = vadd.f32 %v13176_v1, %v13092_v32  ;;  %v13260_v17 = vadd.f32 %v13259_v47, %v13175_v41 }
 0x475   :  { %v13333_v59 = vpop.f32.mrf.mxu1  ;;  %17629 = vmatmul.mubr.f32.vlgmr.msra.gmra.mxu1 %v31417_v16  ;;  %v18339_v35 = vand.u32 4294901760, %v31730_v43 }
 0x476   :  { %17770 = vmatmul.mubr.f32.vlgmr.msra.gmra.mxu0 %v31677_v27  ;;  %v13435_v15 = vpop.f32.mrf.mxu0  ;;  %v13262_v10 = vadd.f32 %v13261_v5, %v13177_v2  ;;  %v13334_v12 = vadd.f32 %v13333_v59, %v13253_v29  ;;  %17828 = vmatpush1.msra.mxu1 %v17827_v63 }
 0x477   :  { %17911 = vmatpush1.msra.mxu0 %v31637_v30  ;;  %17992 = vmatprep.subr.mxu1 %v31582_v31  ;;  %v13335_v48 = vpop.f32.mrf.mxu1  ;;  %v18340_v51 = vsub.f32 %v31730_v43, %v18339_v35 }
 0x478   :  { %18079 = vmatprep.subr.mxu0 %v17819_v23  ;;  %v13437_v57 = vpop.f32.mrf.mxu0  ;;  %v31699_v16 = vadd.f32 %v13334_v12, %v31509_v4  ;;  %v13336_v22 = vadd.f32 %v13335_v48, %v13255_v8  ;;  %17634 = vmatprep.mubr.f32.mxu1 %v35266_v9 }
 0x479   :  { %17775 = vmatprep.mubr.f32.mxu0 %v35266_v9  ;;  %v13340_v49 = vpop.f32.mrf.mxu1  ;;  %17636 = vmatmul.mubr.f32.gmra.mxu1 %v31436_v34  ;;  %v18341_v21 = vand.u32 4294901760, %v18340_v51 }
 0x47a   :  { %17781 = vmatmul.mubr.f32.gmra.mxu0 %v31692_v26  ;;  %v13446_v24 = vpop.f32.mrf.mxu0  ;;  %v31709_v23 = vadd.f32 %v13336_v22, %v31519_v11  ;;  %v13341_v58 = vadd.f32 %v13340_v49, %v13260_v17  ;;  %17861 = vmatprep.mubr.f32.mxu1 %v35266_v9 }
 0x47b   :  { %17944 = vmatprep.mubr.f32.mxu0 %v35266_v9  ;;  %v13342_v4 = vpop.f32.mrf.mxu1 }
 0x47c   :  { %35267 = vst [vmem:[#allocation29_spill] sm:$0xff] %v31709_v23  ;;  %v13448_v45 = vpop.f32.mrf.mxu0  ;;  %v31716_v3 = vadd.f32 %v13341_v58, %v31526_v46  ;;  %v13343_v56 = vadd.f32 %v13342_v4, %v13262_v10 }
 0x47d   :  { %v13528_v34 = vpop.f32.mrf.mxu1  ;;  %17863 = vmatmul.mubr.f32.vlgmr.msra.gmra.mxu1 %v31607_v25 }
 0x47e   :  { %17947 = vmatmul.mubr.f32.vlgmr.msra.gmra.mxu0 %v31624_v54  ;;  %v13612_v11 = vpop.f32.mrf.mxu0  ;;  %v31722_v62 = vadd.f32 %v13343_v56, %v31532_v52  ;;  %v13529_v33 = vadd.f32 %v13528_v34, %v13435_v15  ;;  %17994 = vmatpush1.msra.mxu1 %v31615_v13 }
 0x47f   :  { %18083 = vmatpush1.msra.mxu0 %v17825_v50  ;;  %18162 = vmatprep.subr.mxu1 %v31582_v31  ;;  %v13530_v46 = vpop.f32.mrf.mxu1  ;;  %v18334_v31 = vsub.f32 %v31704_v18, %v18333_v0 }
 0x480   :  { %35268 = vst [vmem:[#allocation22_spill] sm:$0xff] %v31722_v62  ;;  %18243 = vmatprep.subr.mxu0 %v31688_v44  ;;  %v13614_v32 = vpop.f32.mrf.mxu0  ;;  %v13531_v6 = vadd.f32 %v13530_v46, %v13437_v57  ;;  %v13613_v19 = vadd.f32 %v13612_v11, %v13529_v33  ;;  %17868 = vmatprep.mubr.f32.mxu1 %v35266_v9 }
 0x481   :  { %17952 = vmatprep.mubr.f32.mxu0 %v35266_v9  ;;  %v13535_v52 = vpop.f32.mrf.mxu1  ;;  %17870 = vmatmul.mubr.f32.gmra.mxu1 %v31626_v20  ;;  %v18335_v41 = vand.u32 4294901760, %v18334_v31 }
 0x482   :  { %17955 = vmatmul.mubr.f32.gmra.mxu0 %v31650_v37  ;;  %v13620_v30 = vpop.f32.mrf.mxu0  ;;  %v13536_v50 = vadd.f32 %v13535_v52, %v13446_v24  ;;  %v13615_v61 = vadd.f32 %v13614_v32, %v13531_v6  ;;  %18027 = vmatprep.mubr.f32.mxu1 %v35266_v9 }
 0x483   :  { %18116 = vmatprep.mubr.f32.mxu0 %v35266_v9  ;;  %v13537_v29 = vpop.f32.mrf.mxu1 }
 0x484   :  { %v13622_v42 = vpop.f32.mrf.mxu0  ;;  %v13538_v36 = vadd.f32 %v13537_v29, %v13448_v45  ;;  %v13621_v47 = vadd.f32 %v13620_v30, %v13536_v50 }
 0x485   :  { %v13696_v28 = vpop.f32.mrf.mxu1  ;;  %18031 = vmatmul.mubr.f32.vlgmr.msra.gmra.mxu1 %v31647_v53 }
 0x486   :  { %18118 = vmatmul.mubr.f32.vlgmr.msra.gmra.mxu0 %v31607_v25  ;;  %v13783_v8 = vpop.f32.mrf.mxu0  ;;  %v13623_v1 = vadd.f32 %v13622_v42, %v13538_v36  ;;  %v13697_v5 = vadd.f32 %v13696_v28, %v13613_v19  ;;  %18164 = vmatpush1.msra.mxu1 %v31615_v13 }
 0x487   :  { %18245 = vmatpush1.msra.mxu0 %v31713_v14  ;;  %18336 = vmatprep.subr.mxu1 %v18335_v41  ;;  %v13698_v60 = vpop.f32.mrf.mxu1 }
 0x488   :  { %18422 = vmatprep.subr.mxu0 %v31704_v18  ;;  %v13785_v2 = vpop.f32.mrf.mxu0  ;;  %v13699_v17 = vadd.f32 %v13698_v60, %v13615_v61  ;;  %v13784_v63 = vadd.f32 %v13783_v8, %v13697_v5  ;;  %18036 = vmatprep.mubr.f32.mxu1 %v35266_v9 }
 0x489   :  { %18123 = vmatprep.mubr.f32.mxu0 %v35266_v9  ;;  %v13705_v59 = vpop.f32.mrf.mxu1  ;;  %18040 = vmatmul.mubr.f32.gmra.mxu1 %v31662_v7 }
 0x48a   :  { %18125 = vmatmul.mubr.f32.gmra.mxu0 %v31626_v20  ;;  %v13790_v13 = vpop.f32.mrf.mxu0  ;;  %v13706_v15 = vadd.f32 %v13705_v59, %v13621_v47  ;;  %18197 = vmatprep.mubr.f32.mxu1 %v35266_v9  ;;  %v13786_v24 = vadd.f32 %v13785_v2, %v13699_v17 }
 0x48b   :  { %18278 = vmatprep.mubr.f32.mxu0 %v35266_v9  ;;  %v13707_v10 = vpop.f32.mrf.mxu1 }
 0x48c   :  { %v13792_v12 = vpop.f32.mrf.mxu0  ;;  %v13708_v48 = vadd.f32 %v13707_v10, %v13623_v1  ;;  %v13791_v57 = vadd.f32 %v13790_v13, %v13706_v15 }
 0x48d   :  { %v13864_v22 = vpop.f32.mrf.mxu1  ;;  %18199 = vmatmul.mubr.f32.vlgmr.msra.gmra.mxu1 %v31607_v25 }
 0x48e   :  { %18284 = vmatmul.mubr.f32.vlgmr.msra.gmra.mxu0 %v31677_v27  ;;  %v13949_v49 = vpop.f32.mrf.mxu0  ;;  %v13865_v58 = vadd.f32 %v13864_v22, %v13784_v63  ;;  %18342 = vmatpush1.msra.mxu1 %v18341_v21  ;;  %v13793_v33 = vadd.f32 %v13792_v12, %v13708_v48 }
 0x48f   :  { %18425 = vmatpush1.msra.mxu0 %v31730_v43  ;;  %18506 = vmatprep.subr.mxu1 %v31688_v44  ;;  %v13866_v4 = vpop.f32.mrf.mxu1 }
 0x490   :  { %18593 = vmatprep.subr.mxu0 %v18333_v0  ;;  %v31762_v45 = vpop.f32.mrf.mxu0  ;;  %v31765_v56 = vadd.f32 %v13865_v58, %v31595_v39  ;;  %v13867_v34 = vadd.f32 %v13866_v4, %v13786_v24  ;;  %18204 = vmatprep.mubr.f32.mxu1 %v35266_v9  ;;  %v18793_v4 = vld [vmem:[#allocation6 + $0xf8] sm:$0xff] }
 0x491   :  { %35269 = vst [vmem:[#allocation23_spill] sm:$0xff] %v31762_v45  ;;  %18289 = vmatprep.mubr.f32.mxu0 %v35266_v9  ;;  %v13871_v27 = vpop.f32.mrf.mxu1  ;;  %18206 = vmatmul.mubr.f32.gmra.mxu1 %v31626_v20 }
 0x492   :  { %18295 = vmatmul.mubr.f32.gmra.mxu0 %v31692_v26  ;;  %v13960_v11 = vpop.f32.mrf.mxu0  ;;  %v31772_v18 = vadd.f32 %v13867_v34, %v31610_v38  ;;  %v13872_v0 = vadd.f32 %v13871_v27, %v13791_v57  ;;  %18375 = vmatprep.mubr.f32.mxu1 %v35266_v9  ;;  %v31845_v27 = vand.u32 4294901760, %v18793_v4 }
 0x493   :  { %18458 = vmatprep.mubr.f32.mxu0 %v35266_v9  ;;  %v13873_v39 = vpop.f32.mrf.mxu1 }
 0x494   :  { %v31776_v46 = vpop.f32.mrf.mxu0  ;;  %v31779_v32 = vadd.f32 %v13872_v0, %v31618_v55  ;;  %v13874_v6 = vadd.f32 %v13873_v39, %v13793_v33  ;;  %35282 = vst [vmem:[#allocation35_spill] sm:$0xff] %v31845_v27  ;;  %v18792_v39 = vld [vmem:[#allocation6 + $0xf0] sm:$0xff] }
 0x495   :  { %35270 = vst [vmem:[#allocation26_spill] sm:$0xff] %v31776_v46  ;;  %v14042_v19 = vpop.f32.mrf.mxu1  ;;  %18377 = vmatmul.mubr.f32.vlgmr.msra.gmra.mxu1 %v31607_v25 }
 0x496   :  { %18461 = vmatmul.mubr.f32.vlgmr.msra.gmra.mxu0 %v31624_v54  ;;  %v14126_v26 = vpop.f32.mrf.mxu0  ;;  %v31784_v38 = vadd.f32 %v13874_v6, %v31629_v40  ;;  %v14043_v52 = vadd.f32 %v14042_v19, %v13949_v49  ;;  %18508 = vmatpush1.msra.mxu1 %v31713_v14  ;;  %v31850_v19 = vsub.f32 %v18793_v4, %v31845_v27 }
 0x497   :  { %18597 = vmatpush1.msra.mxu0 %v18339_v35  ;;  %18676 = vmatprep.subr.mxu1 %v31688_v44  ;;  %v31790_v55 = vpop.f32.mrf.mxu1 }
 0x498   :  { %35271 = vst [vmem:[#allocation28_spill] sm:$0xff] %v31784_v38  ;;  %35272 = vst [vmem:[#allocation33_spill] sm:$0xff] %v31790_v55  ;;  %18382 = vmatprep.mubr.f32.mxu1 %v35266_v9  ;;  %v31793_v30 = vpop.f32.mrf.mxu0  ;;  %v14127_v31 = vadd.f32 %v14126_v26, %v14043_v52  ;;  %18466 = vmatprep.mubr.f32.mxu0 %v35266_v9  ;;  %v31852_v26 = vand.u32 4294901760, %v18792_v39  ;;  %v18776_v52 = vld [vmem:[#allocation6 + $0x70] sm:$0xff] }
 0x499   :  { %35273 = vst [vmem:[#allocation34_spill] sm:$0xff] %v31793_v30  ;;  %v14049_v54 = vpop.f32.mrf.mxu1  ;;  %18384 = vmatmul.mubr.f32.gmra.mxu1 %v31626_v20  ;;  %35284 = vst [vmem:[#allocation51_spill] sm:$0xff] %v31850_v19  ;;  %27158 = vmatprep.subr.mxu0 %v31845_v27  ;;  %v18770_v30 = vld [vmem:[#allocation6 + $0x40] sm:$0xff] }
 0x49a   :  { %v14134_v40 = vpop.f32.mrf.mxu0  ;;  %18469 = vmatmul.mubr.f32.gmra.mxu0 %v31650_v37  ;;  %v14050_v50 = vadd.f32 %v14049_v54, %v13960_v11  ;;  %18541 = vmatprep.mubr.f32.mxu1 %v35266_v9  ;;  %35285 = vst [vmem:[#allocation52_spill] sm:$0xff] %v31852_v26 }
 0x49b   :  { %18630 = vmatprep.mubr.f32.mxu0 %v35266_v9  ;;  %v31800_v44 = vpop.f32.mrf.mxu1 }
 0x49c   :  { %35274 = vst [vmem:[#allocation37_spill] sm:$0xff] %v31800_v44  ;;  %v31802_v43 = vpop.f32.mrf.mxu0  ;;  %v14135_v61 = vadd.f32 %v14134_v40, %v14050_v50  ;;  %v31862_v50 = vand.u32 4294901760, %v18776_v52 }
 0x49d   :  { %35275 = vst [vmem:[#allocation31_spill] sm:$0xff] %v31802_v43  ;;  %v14210_v29 = vpop.f32.mrf.mxu1  ;;  %18545 = vmatmul.mubr.f32.vlgmr.msra.gmra.mxu1 %v31647_v53 }
 0x49e   :  { %v14297_v42 = vpop.f32.mrf.mxu0  ;;  %18632 = vmatmul.mubr.f32.vlgmr.msra.gmra.mxu0 %v31607_v25  ;;  %v14211_v35 = vadd.f32 %v14210_v29, %v14127_v31  ;;  %18678 = vmatpush1.msra.mxu1 %v31713_v14  ;;  %35287 = vst [vmem:[#allocation43_spill] sm:$0xff] %v31862_v50 }
 0x49f   :  { %18550 = vmatprep.mubr.f32.mxu1 %v35266_v9  ;;  %v31808_v37 = vpop.f32.mrf.mxu1  ;;  %18637 = vmatprep.mubr.f32.mxu0 %v35266_v9 }
 0x4a0   :  { %35276 = vst [vmem:[#allocation24_spill] sm:$0xff] %v31808_v37  ;;  %v31810_v36 = vpop.f32.mrf.mxu0  ;;  %v14298_v47 = vadd.f32 %v14297_v42, %v14211_v35  ;;  %v34834_v42 = vand.u32 4294901760, %v31850_v19  ;;  %v31867_v35 = vsub.f32 %v18792_v39, %v31852_v26 }
 0x4a1   :  { %35277 = vst [vmem:[#allocation41_spill] sm:$0xff] %v31810_v36  ;;  %v14219_v28 = vpop.f32.mrf.mxu1  ;;  %18554 = vmatmul.mubr.f32.gmra.mxu1 %v31662_v7 }
 0x4a2   :  { %v14304_v41 = vpop.f32.mrf.mxu0  ;;  %18639 = vmatmul.mubr.f32.gmra.mxu0 %v31626_v20  ;;  %v14220_v53 = vadd.f32 %v14219_v28, %v14135_v61  ;;  %18711 = vmatprep.mubr.f32.mxu1 %v35266_v9  ;;  %v18791_v61 = vld [vmem:[#allocation6 + $0xe8] sm:$0xff]  ;;  %35288 = vst [vmem:[#allocation45_spill] sm:$0xff] %v31867_v35 }
 0x4a3   :  { %v31816_v8 = vpop.f32.mrf.mxu1 }
 0x4a4   :  { %35278 = vst [vmem:[#allocation42_spill] sm:$0xff] %v31816_v8  ;;  %v31818_v14 = vpop.f32.mrf.mxu0  ;;  %v14305_v1 = vadd.f32 %v14304_v41, %v14220_v53 }
 0x4a5   :  { %35279 = vst [vmem:[#allocation57_spill] sm:$0xff] %v31818_v14  ;;  %v14378_v5 = vpop.f32.mrf.mxu1  ;;  %18713 = vmatmul.mubr.f32.vlgmr.msra.gmra.mxu1 %v31607_v25 }
 0x4a6   :  { %v14519_v60 = vpop.f32.mrf.mxu0  ;;  %v14379_v2 = vadd.f32 %v14378_v5, %v14298_v47  ;;  %18718 = vmatprep.mubr.f32.mxu1 %v35266_v9  ;;  %v18775_v47 = vld [vmem:[#allocation6 + $0x68] sm:$0xff]  ;;  %v31874_v5 = vand.u32 4294901760, %v18791_v61 }
 0x4a7   :  { %v31822_v17 = vpop.f32.mrf.mxu1 }
 0x4a8   :  { %35280 = vst [vmem:[#allocation25_spill] sm:$0xff] %v31822_v17  ;;  %v31824_v7 = vpop.f32.mrf.mxu0  ;;  %v31827_v63 = vadd.f32 %v14379_v2, %v31699_v16  ;;  %35290 = vst [vmem:[#allocation53_spill] sm:$0xff] %v31874_v5 }
 0x4a9   :  { %v14385_v51 = vpop.f32.mrf.mxu1  ;;  %18720 = vmatmul.mubr.f32.gmra.mxu1 %v31626_v20 }
 0x4aa   :  { %v14530_v59 = vpop.f32.mrf.mxu0  ;;  %v14386_v13 = vadd.f32 %v14385_v51, %v14305_v1  ;;  %v31872_v1 = vsub.f32 %v18776_v52, %v31862_v50  ;;  %v19069_v51 = vsub.f32 %v31850_v19, %v34834_v42 }
 0x4ab   :  { %v31830_v15 = vpop.f32.mrf.mxu1 }
 0x4ac   :  { %35281 = vst [vmem:[#allocation50_spill] sm:$0xff] %v31830_v15  ;;  %v31832_v10 = vpop.f32.mrf.mxu0  ;;  %v31835_v25 = vadd.f32 %v14386_v13, %v31716_v3  ;;  %v18777_v3 = vld [vmem:[#allocation6 + $0x78] sm:$0xff]  ;;  %35289 = vst [vmem:[#allocation54_spill] sm:$0xff] %v31872_v1  ;;  %v19070_v4 = vand.u32 4294901760, %v19069_v51 }
 0x4ad   :  { %v14612_v9 = vpop.f32.mrf.mxu1  ;;  %v31847_v0 = vand.u32 4294901760, %v18777_v3  ;;  %v18773_v51 = vld [vmem:[#allocation6 + $0x58] sm:$0xff] }
 0x4ae   :  { %v14696_v12 = vpop.f32.mrf.mxu0  ;;  %v14613_v48 = vadd.f32 %v14612_v9, %v14519_v60  ;;  %v31876_v60 = vand.u32 4294901760, %v18775_v47  ;;  %27196 = vmatprep.subr.mxu1 %v19070_v4 }
 0x4af   :  { %v31837_v57 = vpop.f32.mrf.mxu1  ;;  %35283 = vst [vmem:[#allocation36_spill] sm:$0xff] %v31847_v0  ;;  %v31860_v40 = vsub.f32 %v18777_v3, %v31847_v0  ;;  %27159 = vmatpush3.msra.mxu0 %v31847_v0  ;;  %v18774_v3 = vld [vmem:[#allocation6 + $0x60] sm:$0xff] }
 0x4b0   :  { %v31839_v21 = vpop.f32.mrf.mxu0  ;;  %v14697_v16 = vadd.f32 %v14696_v12, %v14613_v48  ;;  %27160 = vmatprep.subr.mxu0 %v31852_v26  ;;  %35291 = vst [vmem:[#allocation39_spill] sm:$0xff] %v31876_v60  ;;  %v34833_v48 = vand.u32 4294901760, %v31872_v1 }
 0x4b1   :  { %v14619_v22 = vpop.f32.mrf.mxu1  ;;  %35286 = vst [vmem:[#allocation30_spill] sm:$0xff] %v31860_v40  ;;  %v34832_v53 = vand.u32 4294901760, %v31860_v40  ;;  %27161 = vmatpush3.msra.mxu0 %v31862_v50 }
 0x4b2   :  { %v14704_v49 = vpop.f32.mrf.mxu0  ;;  %v14620_v20 = vadd.f32 %v14619_v22, %v14530_v59  ;;  %v34831_v59 = vand.u32 4294901760, %v31867_v35  ;;  %v31895_v22 = vsub.f32 %v18775_v47, %v31876_v60  ;;  %27162 = vmatprep.subr.mxu0 %v31874_v5  ;;  %v18789_v47 = vld [vmem:[#allocation6 + $0xd8] sm:$0xff] }
 0x4b3   :  { %v31841_v24 = vpop.f32.mrf.mxu1  ;;  %v18957_v12 = vsub.f32 %v31860_v40, %v34832_v53  ;;  %27163 = vmatpush3.msra.mxu0 %v31876_v60 }
 0x4b4   :  { %v31843_v58 = vpop.f32.mrf.mxu0  ;;  %v14705_v34 = vadd.f32 %v14704_v49, %v14620_v20  ;;  %35293 = vst [vmem:[#allocation56_spill] sm:$0xff] %v31895_v22  ;;  %v18790_v49 = vld [vmem:[#allocation6 + $0xe0] sm:$0xff] }
 0x4b5   :  { %v14780_v11 = vpop.f32.mrf.mxu1  ;;  %v18958_v39 = vand.u32 4294901760, %v18957_v12 }
 0x4b6   :  { %v14867_v33 = vpop.f32.mrf.mxu0  ;;  %v14781_v6 = vadd.f32 %v14780_v11, %v14697_v16  ;;  %v31892_v16 = vsub.f32 %v18791_v61, %v31874_v5  ;;  %v34836_v61 = vand.u32 4294901760, %v31895_v22 }
 0x4b7   :  { %v31855_v31 = vpop.f32.mrf.mxu1  ;;  %27197 = vmatpush3.msra.mxu1 %v18958_v39  ;;  %v18788_v39 = vld [vmem:[#allocation6 + $0xd0] sm:$0xff] }
 0x4b8   :  { %v31857_v54 = vpop.f32.mrf.mxu0  ;;  %v14868_v29 = vadd.f32 %v14867_v33, %v14781_v6  ;;  %35292 = vst [vmem:[#allocation55_spill] sm:$0xff] %v31892_v16  ;;  %v18964_v6 = vsub.f32 %v31872_v1, %v34833_v48  ;;  %v34835_v52 = vand.u32 4294901760, %v31892_v16  ;;  %v18971_v42 = vsub.f32 %v31895_v22, %v34836_v61  ;;  %v18762_v22 = vld [vmem:[#allocation6] sm:$0xff] }
 0x4b9   :  { %v14789_v28 = vpop.f32.mrf.mxu1 }
 0x4ba   :  { %v14874_v41 = vpop.f32.mrf.mxu0  ;;  %v14790_v2 = vadd.f32 %v14789_v28, %v14705_v34  ;;  %v19076_v34 = vsub.f32 %v31867_v35, %v34831_v59  ;;  %v18965_v12 = vand.u32 4294901760, %v18964_v6  ;;  %v19083_v48 = vsub.f32 %v31892_v16, %v34835_v52  ;;  %v18772_v6 = vld [vmem:[#allocation6 + $0x50] sm:$0xff] }
 0x4bb   :  { %v31883_v13 = vpop.f32.mrf.mxu1  ;;  %v18972_v61 = vand.u32 4294901760, %v18971_v42 }
 0x4bc   :  { %v31885_v9 = vpop.f32.mrf.mxu0  ;;  %v14875_v20 = vadd.f32 %v14874_v41, %v14790_v2  ;;  %v19077_v41 = vand.u32 4294901760, %v19076_v34  ;;  %v31907_v2 = vand.u32 4294901760, %v18790_v49  ;;  %v19084_v15 = vand.u32 4294901760, %v19083_v48 }
 0x4bd   :  { %v14948_v11 = vpop.f32.mrf.mxu1 }
 0x4be   :  { %v15033_v33 = vpop.f32.mrf.mxu0  ;;  %v14949_v28 = vadd.f32 %v14948_v11, %v14868_v29  ;;  %35294 = vst [vmem:[#allocation47_spill] sm:$0xff] %v31907_v2  ;;  %v31919_v29 = vand.u32 4294901760, %v18774_v3  ;;  %27198 = vmatprep.subr.mxu1 %v19077_v41  ;;  %v31925_v34 = vsub.f32 %v18790_v49, %v31907_v2  ;;  %v31927_v11 = vand.u32 4294901760, %v18789_v47  ;;  %27164 = vmatprep.subr.mxu0 %v31907_v2 }
 0x4bf   :  { %v31909_v59 = vpop.f32.mrf.mxu1  ;;  %27199 = vmatpush3.msra.mxu1 %v18965_v12 }
 0x4c0   :  { %v31911_v53 = vpop.f32.mrf.mxu0  ;;  %35296 = vst [vmem:[#allocation44_spill] sm:$0xff] %v31919_v29  ;;  %v31922_v4 = vadd.f32 %v14949_v28, %v31765_v56  ;;  %35297 = vst [vmem:[#allocation27_spill] sm:$0xff] %v31925_v34  ;;  %v31931_v23 = vsub.f32 %v18774_v3, %v31919_v29  ;;  %v31933_v56 = vand.u32 4294901760, %v18773_v51  ;;  %27165 = vmatpush3.msra.mxu0 %v31919_v29  ;;  %v34837_v28 = vand.u32 4294901760, %v31925_v34 }
 0x4c1   :  { %35295 = vst [vmem:[#allocation60_spill] sm:$0xff] %v31911_v53  ;;  %35298 = vst [vmem:[#allocation38_spill] sm:$0xff] %v31927_v11  ;;  %v14955_v52 = vpop.f32.mrf.mxu1  ;;  %v31938_v41 = vsub.f32 %v18789_v47, %v31927_v11  ;;  %27166 = vmatprep.subr.mxu0 %v31927_v11  ;;  %27200 = vmatprep.subr.mxu1 %v19084_v15  ;;  %v31949_v3 = vand.u32 4294901760, %v18788_v39  ;;  %v18771_v53 = vld [vmem:[#allocation6 + $0x48] sm:$0xff] }
 0x4c2   :  { %v15044_v62 = vpop.f32.mrf.mxu0  ;;  %35299 = vst [vmem:[#allocation32_spill] sm:$0xff] %v31931_v23  ;;  %35300 = vst [vmem:[#allocation46_spill] sm:$0xff] %v31933_v56  ;;  %v14956_v49 = vadd.f32 %v14955_v52, %v14875_v20  ;;  %v31947_v48 = vsub.f32 %v18773_v51, %v31933_v56  ;;  %v31951_v20 = vand.u32 4294901760, %v18772_v6  ;;  %27167 = vmatpush3.msra.mxu0 %v31933_v56  ;;  %27201 = vmatpush3.msra.mxu1 %v18972_v61  ;;  %v18787_v61 = vld [vmem:[#allocation6 + $0xc8] sm:$0xff] }
 0x4c3   :  { %35301 = vst [vmem:[#allocation58_spill] sm:$0xff] %v31938_v41  ;;  %v31941_v14 = vpop.f32.mrf.mxu1  ;;  %35304 = vst [vmem:[#allocation48_spill] sm:$0xff] %v31949_v3  ;;  %v19090_v47 = vsub.f32 %v31925_v34, %v34837_v28  ;;  %v34838_v15 = vand.u32 4294901760, %v31938_v41  ;;  %v35306_v51 = vand.u32 4294901760, %v31931_v23  ;;  %v31966_v43 = vsub.f32 %v18788_v39, %v31949_v3  ;;  %27168 = vmatprep.subr.mxu0 %v31949_v3 }
 0x4c4   :  { %v31943_v12 = vpop.f32.mrf.mxu0  ;;  %35303 = vst [vmem:[#allocation59_spill] sm:$0xff] %v31947_v48  ;;  %35305 = vst [vmem:[#allocation61_spill] sm:$0xff] %v31951_v20  ;;  %v31955_v52 = vadd.f32 %v14956_v49, %v31779_v32  ;;  %v31969_v32 = vsub.f32 %v18772_v6, %v31951_v20  ;;  %27169 = vmatpush3.msra.mxu0 %v31951_v20  ;;  %v35311_v6 = vand.u32 4294901760, %v31947_v48  ;;  %v31985_v46 = vand.u32 4294901760, %v18787_v61 }
 0x4c5   :  { %35302 = vst [vmem:[#allocation40_spill] sm:$0xff] %v31943_v12  ;;  %v15126_v42 = vpop.f32.mrf.mxu1  ;;  %v18978_v8 = vsub.f32 %v31931_v23, %v35306_v51  ;;  %35307 = vst [vmem:[#allocation49_spill] sm:$0xff] %v31966_v43  ;;  %v19091_v28 = vand.u32 4294901760, %v19090_v47  ;;  %v19097_v12 = vsub.f32 %v31938_v41, %v34838_v15  ;;  %v34839_v44 = vand.u32 4294901760, %v31966_v43 }
 0x4c6   :  { %v15210_v17 = vpop.f32.mrf.mxu0  ;;  %35308 = vst [vmem:[#allocation19_spill] sm:$0xff] %v31969_v32  ;;  %v15127_v49 = vadd.f32 %v15126_v42, %v15033_v33  ;;  %v18985_v37 = vsub.f32 %v31947_v48, %v35311_v6  ;;  %v34842_v33 = vand.u32 4294901760, %v31969_v32  ;;  %v18786_v42 = vld [vmem:[#allocation6 + $0xc0] sm:$0xff]  ;;  %35312 = vst [vmem:[#allocation21_spill] sm:$0xff] %v31985_v46  ;;  %v31993_v45 = vand.u32 4294901760, %v18771_v53  ;;  %27170 = vmatprep.subr.mxu0 %v31985_v46 }
 0x4c7   :  { %v31976_v51 = vpop.f32.mrf.mxu1  ;;  %v18979_v39 = vand.u32 4294901760, %v18978_v8  ;;  %27202 = vmatprep.subr.mxu1 %v19091_v28  ;;  %v19098_v15 = vand.u32 4294901760, %v19097_v12  ;;  %v19104_v8 = vsub.f32 %v31966_v43, %v34839_v44  ;;  %v31996_v28 = vsub.f32 %v18787_v61, %v31985_v46 }
 0x4c8   :  { %35309 = vst [vmem:[#allocation17_spill] sm:$0xff] %v31976_v51  ;;  %v31978_v36 = vpop.f32.mrf.mxu0  ;;  %v15211_v47 = vadd.f32 %v15210_v17, %v15127_v49  ;;  %v18992_v6 = vsub.f32 %v31969_v32, %v34842_v33  ;;  %35313 = vst [vmem:[#allocation20_spill] sm:$0xff] %v31993_v45  ;;  %v31998_v12 = vand.u32 4294901760, %v18786_v42  ;;  %v18785_v49 = vld [vmem:[#allocation6 + $0xb8] sm:$0xff]  ;;  %v32006_v32 = vsub.f32 %v18771_v53, %v31993_v45 }
 0x4c9   :  { %35310 = vst [vmem:[#allocation18_spill] sm:$0xff] %v31978_v36  ;;  %v15133_v55 = vpop.f32.mrf.mxu1  ;;  %27203 = vmatpush3.msra.mxu1 %v18979_v39  ;;  %v18986_v36 = vand.u32 4294901760, %v18985_v37  ;;  %35314 = vst [vmem:[#allocation62_spill] sm:$0xff] %v31996_v28  ;;  %v18769_v39 = vld [vmem:[#allocation6 + $0x38] sm:$0xff]  ;;  %v19105_v43 = vand.u32 4294901760, %v19104_v8  ;;  %27171 = vmatpush3.msra.mxu0 %v31993_v45  ;;  %v32020_v8 = vand.u32 4294901760, %v18785_v49 }
 0x4ca   :  { %v15218_v51 = vpop.f32.mrf.mxu0  ;;  %v15134_v17 = vadd.f32 %v15133_v55, %v15044_v62  ;;  %27204 = vmatprep.subr.mxu1 %v19098_v15  ;;  %35315 = vst [vmem:[#allocation63_spill] sm:$0xff] %v31998_v12  ;;  %v18993_v33 = vand.u32 4294901760, %v18992_v6  ;;  %35318 = vst [vmem:[#allocation66_spill] sm:$0xff] %v32006_v32  ;;  %v32008_v62 = vand.u32 4294901760, %v18770_v30  ;;  %v34851_v15 = vand.u32 4294901760, %v31996_v28  ;;  %27172 = vmatprep.subr.mxu0 %v31998_v12 }
 0x4cb   :  { %v32001_v37 = vpop.f32.mrf.mxu1  ;;  %27205 = vmatpush3.msra.mxu1 %v18986_v36  ;;  %v32013_v61 = vsub.f32 %v18786_v42, %v31998_v12  ;;  %35322 = vst [vmem:[#allocation70_spill] sm:$0xff] %v32020_v8  ;;  %v32022_v6 = vand.u32 4294901760, %v18769_v39 }
 0x4cc   :  { %35316 = vst [vmem:[#allocation64_spill] sm:$0xff] %v32001_v37  ;;  %v32003_v44 = vpop.f32.mrf.mxu0  ;;  %35319 = vst [vmem:[#allocation67_spill] sm:$0xff] %v32008_v62  ;;  %v15219_v55 = vadd.f32 %v15218_v51, %v15134_v17  ;;  %27206 = vmatprep.subr.mxu1 %v19105_v43  ;;  %v32018_v53 = vsub.f32 %v18770_v30, %v32008_v62  ;;  %27173 = vmatpush3.msra.mxu0 %v32008_v62  ;;  %v35326_v30 = vand.u32 4294901760, %v32006_v32 }
 0x4cd   :  { %35317 = vst [vmem:[#allocation65_spill] sm:$0xff] %v32003_v44  ;;  %35320 = vst [vmem:[#allocation68_spill] sm:$0xff] %v32013_v61  ;;  %v15294_v37 = vpop.f32.mrf.mxu1  ;;  %27207 = vmatpush3.msra.mxu1 %v18993_v33  ;;  %v19111_v42 = vsub.f32 %v31996_v28, %v34851_v15  ;;  %v34860_v17 = vand.u32 4294901760, %v32013_v61  ;;  %v32038_v62 = vsub.f32 %v18785_v49, %v32020_v8  ;;  %27174 = vmatprep.subr.mxu0 %v32020_v8 }
 0x4ce   :  { %v15381_v44 = vpop.f32.mrf.mxu0  ;;  %35321 = vst [vmem:[#allocation69_spill] sm:$0xff] %v32018_v53  ;;  %35323 = vst [vmem:[#allocation71_spill] sm:$0xff] %v32022_v6  ;;  %v15295_v51 = vadd.f32 %v15294_v37, %v15211_v47  ;;  %v18999_v48 = vsub.f32 %v32006_v32, %v35326_v30  ;;  %v32041_v33 = vsub.f32 %v18769_v39, %v32022_v6  ;;  %v18784_v47 = vld [vmem:[#allocation6 + $0xb0] sm:$0xff]  ;;  %27175 = vmatpush3.msra.mxu0 %v32022_v6 }
 0x4cf   :  { %v32029_v43 = vpop.f32.mrf.mxu1  ;;  %35327 = vst [vmem:[#allocation74_spill] sm:$0xff] %v32038_v62  ;;  %v19112_v15 = vand.u32 4294901760, %v19111_v42  ;;  %v35329_v49 = vand.u32 4294901760, %v32018_v53  ;;  %v34867_v28 = vand.u32 4294901760, %v32038_v62  ;;  %v32053_v23 = vand.u32 4294901760, %v18784_v47 }
 0x4d0   :  { %35324 = vst [vmem:[#allocation72_spill] sm:$0xff] %v32029_v43  ;;  %v32031_v36 = vpop.f32.mrf.mxu0  ;;  %35328 = vst [vmem:[#allocation75_spill] sm:$0xff] %v32041_v33  ;;  %v15382_v37 = vadd.f32 %v15381_v44, %v15295_v51  ;;  %v18768_v43 = vld [vmem:[#allocation6 + $0x30] sm:$0xff]  ;;  %v19000_v32 = vand.u32 4294901760, %v18999_v48  ;;  %v34870_v8 = vand.u32 4294901760, %v32041_v33  ;;  %v18783_v44 = vld [vmem:[#allocation6 + $0xa8] sm:$0xff] }
 0x4d1   :  { %35325 = vst [vmem:[#allocation73_spill] sm:$0xff] %v32031_v36  ;;  %v19118_v36 = vsub.f32 %v32013_v61, %v34860_v17  ;;  %v15303_v30 = vpop.f32.mrf.mxu1  ;;  %v19006_v39 = vsub.f32 %v32018_v53, %v35329_v49  ;;  %27208 = vmatprep.subr.mxu1 %v19112_v15  ;;  %35330 = vst [vmem:[#allocation76_spill] sm:$0xff] %v32053_v23  ;;  %v18767_v17 = vld [vmem:[#allocation6 + $0x28] sm:$0xff]  ;;  %v19125_v49 = vsub.f32 %v32038_v62, %v34867_v28 }
 0x4d2   :  { %v15388_v41 = vpop.f32.mrf.mxu0  ;;  %v15304_v51 = vadd.f32 %v15303_v30, %v15219_v55  ;;  %27209 = vmatpush3.msra.mxu1 %v19000_v32  ;;  %v19013_v53 = vsub.f32 %v32041_v33, %v34870_v8  ;;  %v32065_v55 = vand.u32 4294901760, %v18768_v43  ;;  %v32070_v30 = vand.u32 4294901760, %v18783_v44  ;;  %v18766_v32 = vld [vmem:[#allocation6 + $0x20] sm:$0xff]  ;;  %27176 = vmatprep.subr.mxu0 %v32053_v23 }
 0x4d3   :  { %v19119_v42 = vand.u32 4294901760, %v19118_v36  ;;  %v32055_v61 = vpop.f32.mrf.mxu1  ;;  %v19007_v48 = vand.u32 4294901760, %v19006_v39  ;;  %v32068_v36 = vsub.f32 %v18784_v47, %v32053_v23  ;;  %v19126_v28 = vand.u32 4294901760, %v19125_v49  ;;  %v18765_v23 = vld [vmem:[#allocation6 + $0x18] sm:$0xff] }
 0x4d4   :  { %35331 = vst [vmem:[#allocation77_spill] sm:$0xff] %v32055_v61  ;;  %v32057_v6 = vpop.f32.mrf.mxu0  ;;  %35333 = vst [vmem:[#allocation79_spill] sm:$0xff] %v32065_v55  ;;  %v15389_v15 = vadd.f32 %v15388_v41, %v15304_v51  ;;  %v19014_v62 = vand.u32 4294901760, %v19013_v53  ;;  %v32074_v8 = vsub.f32 %v18768_v43, %v32065_v55  ;;  %v32076_v33 = vand.u32 4294901760, %v18767_v17  ;;  %27177 = vmatpush3.msra.mxu0 %v32065_v55 }
 0x4d5   :  { %35332 = vst [vmem:[#allocation78_spill] sm:$0xff] %v32057_v6  ;;  %27210 = vmatprep.subr.mxu1 %v19119_v42  ;;  %35334 = vst [vmem:[#allocation80_spill] sm:$0xff] %v32068_v36  ;;  %v18782_v6 = vld [vmem:[#allocation6 + $0xa0] sm:$0xff]  ;;  %v15462_v39 = vpop.f32.mrf.mxu1  ;;  %v34879_v47 = vand.u32 4294901760, %v32068_v36  ;;  %v32081_v51 = vsub.f32 %v18783_v44, %v32070_v30  ;;  %27178 = vmatprep.subr.mxu0 %v32070_v30  ;;  %v32139_v34 = vand.u32 4294901760, %v18765_v23 }
 0x4d6   :  { %35335 = vst [vmem:[#allocation81_spill] sm:$0xff] %v32070_v30  ;;  %v15603_v61 = vpop.f32.mrf.mxu0  ;;  %27211 = vmatpush3.msra.mxu1 %v19007_v48  ;;  %35336 = vst [vmem:[#allocation82_spill] sm:$0xff] %v32074_v8  ;;  %v15463_v41 = vadd.f32 %v15462_v39, %v15382_v37  ;;  %v32090_v43 = vsub.f32 %v18767_v17, %v32076_v33  ;;  %v32092_v49 = vand.u32 4294901760, %v18782_v6  ;;  %v32094_v37 = vand.u32 4294901760, %v18766_v32 }
 0x4d7   :  { %35337 = vst [vmem:[#allocation83_spill] sm:$0xff] %v32076_v33  ;;  %35338 = vst [vmem:[#allocation84_spill] sm:$0xff] %v32081_v51  ;;  %v32084_v42 = vpop.f32.mrf.mxu1  ;;  %27212 = vmatprep.subr.mxu1 %v19126_v28  ;;  %27179 = vmatpush3.msra.mxu0 %v32076_v33  ;;  %v19132_v39 = vsub.f32 %v32068_v36, %v34879_v47  ;;  %v34888_v28 = vand.u32 4294901760, %v32081_v51  ;;  %v35343_v17 = vand.u32 4294901760, %v32074_v8 }
 0x4d8   :  { %35339 = vst [vmem:[#allocation85_spill] sm:$0xff] %v32084_v42  ;;  %v32086_v48 = vpop.f32.mrf.mxu0  ;;  %35340 = vst [vmem:[#allocation86_spill] sm:$0xff] %v32090_v43  ;;  %v32098_v44 = vadd.f32 %v15463_v41, %v31827_v63  ;;  %27213 = vmatpush3.msra.mxu1 %v19014_v62  ;;  %v32109_v33 = vsub.f32 %v18782_v6, %v32092_v49  ;;  %v32112_v63 = vsub.f32 %v18766_v32, %v32094_v37  ;;  %v18781_v62 = vld [vmem:[#allocation6 + $0x98] sm:$0xff] }
 0x4d9   :  { %35341 = vst [vmem:[#allocation87_spill] sm:$0xff] %v32092_v49  ;;  %35342 = vst [vmem:[#allocation88_spill] sm:$0xff] %v32094_v37  ;;  %v15469_v53 = vpop.f32.mrf.mxu1  ;;  %v19020_v30 = vsub.f32 %v32074_v8, %v35343_v17  ;;  %27180 = vmatprep.subr.mxu0 %v32092_v49  ;;  %v19133_v47 = vand.u32 4294901760, %v19132_v39  ;;  %v19139_v36 = vsub.f32 %v32081_v51, %v34888_v28  ;;  %v35347_v32 = vand.u32 4294901760, %v32090_v43 }
 0x4da   :  { %v15614_v42 = vpop.f32.mrf.mxu0  ;;  %35344 = vst [vmem:[#allocation89_spill] sm:$0xff] %v32109_v33  ;;  %35345 = vst [vmem:[#allocation90_spill] sm:$0xff] %v32112_v63  ;;  %v15470_v41 = vadd.f32 %v15469_v53, %v15389_v15  ;;  %27181 = vmatpush3.msra.mxu0 %v32094_v37  ;;  %v34899_v49 = vand.u32 4294901760, %v32109_v33  ;;  %v34902_v15 = vand.u32 4294901760, %v32112_v63  ;;  %v18780_v53 = vld [vmem:[#allocation6 + $0x90] sm:$0xff]  ;;  %v32131_v51 = vand.u32 4294901760, %v18781_v62 }
 0x4db   :  { %v32119_v17 = vpop.f32.mrf.mxu1  ;;  %v19021_v6 = vand.u32 4294901760, %v19020_v30  ;;  %v19027_v8 = vsub.f32 %v32090_v43, %v35347_v32  ;;  %27214 = vmatprep.subr.mxu1 %v19133_v47  ;;  %v19140_v28 = vand.u32 4294901760, %v19139_v36  ;;  %35349 = vst [vmem:[#allocation93_spill] sm:$0xff] %v32139_v34  ;;  %v32144_v47 = vand.u32 4294901760, %v18780_v53 }
 0x4dc   :  { %35346 = vst [vmem:[#allocation91_spill] sm:$0xff] %v32119_v17  ;;  %v32121_v55 = vpop.f32.mrf.mxu0  ;;  %v32129_v39 = vadd.f32 %v15470_v41, %v31835_v25  ;;  %35348 = vst [vmem:[#allocation92_spill] sm:$0xff] %v32131_v51  ;;  %v18764_v17 = vld [vmem:[#allocation6 + $0x10] sm:$0xff]  ;;  %v19146_v32 = vsub.f32 %v32109_v33, %v34899_v49  ;;  %v19034_v43 = vsub.f32 %v32112_v63, %v34902_v15  ;;  %v18779_v41 = vld [vmem:[#allocation6 + $0x88] sm:$0xff]  ;;  %27182 = vmatprep.subr.mxu0 %v32131_v51 }
 0x4dd   :  { %v15696_v37 = vpop.f32.mrf.mxu1  ;;  %27215 = vmatpush3.msra.mxu1 %v19021_v6  ;;  %v19028_v30 = vand.u32 4294901760, %v19027_v8  ;;  %v32142_v36 = vsub.f32 %v18781_v62, %v32131_v51  ;;  %35351 = vst [vmem:[#allocation95_spill] sm:$0xff] %v32144_v47  ;;  %v18763_v6 = vld [vmem:[#allocation6 + $0x8] sm:$0xff]  ;;  %v32152_v63 = vsub.f32 %v18765_v23, %v32139_v34  ;;  %27183 = vmatpush3.msra.mxu0 %v32139_v34 }
 0x4de   :  { %v15780_v12 = vpop.f32.mrf.mxu0  ;;  %v15697_v25 = vadd.f32 %v15696_v37, %v15603_v61  ;;  %27216 = vmatprep.subr.mxu1 %v19140_v28  ;;  %v19147_v33 = vand.u32 4294901760, %v19146_v32  ;;  %v19035_v15 = vand.u32 4294901760, %v19034_v43  ;;  %v32154_v61 = vand.u32 4294901760, %v18764_v17  ;;  %27184 = vmatprep.subr.mxu0 %v32144_v47 }
 0x4df   :  { %35350 = vst [vmem:[#allocation94_spill] sm:$0xff] %v32142_v36  ;;  %v32147_v8 = vpop.f32.mrf.mxu1  ;;  %27217 = vmatpush3.msra.mxu1 %v19028_v30  ;;  %35352 = vst [vmem:[#allocation96_spill] sm:$0xff] %v32152_v63  ;;  %v34915_v28 = vand.u32 4294901760, %v32142_v36  ;;  %v32159_v62 = vsub.f32 %v18780_v53, %v32144_v47  ;;  %v32166_v30 = vand.u32 4294901760, %v18779_v41  ;;  %v32168_v32 = vand.u32 4294901760, %v18763_v6 }
 0x4e0   :  { %v32149_v49 = vpop.f32.mrf.mxu0  ;;  %35353 = vst [vmem:[#allocation97_spill] sm:$0xff] %v32154_v61  ;;  %v15781_v37 = vadd.f32 %v15780_v12, %v15697_v25  ;;  %27218 = vmatprep.subr.mxu1 %v19147_v33  ;;  %v32164_v23 = vsub.f32 %v18764_v17, %v32154_v61  ;;  %27185 = vmatpush3.msra.mxu0 %v32154_v61  ;;  %v35358_v17 = vand.u32 4294901760, %v32152_v63 }
 0x4e1   :  { %35354 = vst [vmem:[#allocation98_spill] sm:$0xff] %v32159_v62  ;;  %v15703_v51 = vpop.f32.mrf.mxu1  ;;  %35356 = vst [vmem:[#allocation100_spill] sm:$0xff] %v32166_v30  ;;  %27219 = vmatpush3.msra.mxu1 %v19035_v15  ;;  %v19153_v53 = vsub.f32 %v32142_v36, %v34915_v28  ;;  %v34926_v25 = vand.u32 4294901760, %v32159_v62  ;;  %v32184_v61 = vsub.f32 %v18779_v41, %v32166_v30  ;;  %27186 = vmatprep.subr.mxu0 %v32166_v30 }
 0x4e2   :  { %v15788_v45 = vpop.f32.mrf.mxu0  ;;  %35355 = vst [vmem:[#allocation99_spill] sm:$0xff] %v32164_v23  ;;  %35357 = vst [vmem:[#allocation101_spill] sm:$0xff] %v32168_v32  ;;  %v15704_v12 = vadd.f32 %v15703_v51, %v15614_v42  ;;  %v19041_v47 = vsub.f32 %v32152_v63, %v35358_v17  ;;  %v32187_v51 = vsub.f32 %v18763_v6, %v32168_v32  ;;  %v18778_v42 = vld [vmem:[#allocation6 + $0x80] sm:$0xff]  ;;  %27187 = vmatpush3.msra.mxu0 %v32168_v32 }
 0x4e3   :  { %v32175_v33 = vpop.f32.mrf.mxu1  ;;  %35359 = vst [vmem:[#allocation102_spill] sm:$0xff] %v32184_v61  ;;  %v19154_v28 = vand.u32 4294901760, %v19153_v53  ;;  %v19160_v36 = vsub.f32 %v32159_v62, %v34926_v25  ;;  %v35361_v41 = vand.u32 4294901760, %v32164_v23  ;;  %v34933_v46 = vand.u32 4294901760, %v32184_v61 }
 0x4e4   :  { %v32177_v43 = vpop.f32.mrf.mxu0  ;;  %35360 = vst [vmem:[#allocation103_spill] sm:$0xff] %v32187_v51  ;;  %v15789_v15 = vadd.f32 %v15788_v45, %v15704_v12  ;;  %v19042_v63 = vand.u32 4294901760, %v19041_v47  ;;  %v34934_v30 = vand.u32 4294901760, %v32187_v51  ;;  %v32199_v53 = vand.u32 4294901760, %v18778_v42 }
 0x4e5   :  { %v15864_v17 = vpop.f32.mrf.mxu1  ;;  %v19048_v6 = vsub.f32 %v32164_v23, %v35361_v41  ;;  %27220 = vmatprep.subr.mxu1 %v19154_v28  ;;  %v19161_v12 = vand.u32 4294901760, %v19160_v36  ;;  %v19167_v47 = vsub.f32 %v32184_v61, %v34933_v46  ;;  %v32211_v23 = vand.u32 4294901760, %v18762_v22 }
 0x4e6   :  { %v15951_v34 = vpop.f32.mrf.mxu0  ;;  %v15865_v45 = vadd.f32 %v15864_v17, %v15781_v37  ;;  %35362 = vst [vmem:[#allocation104_spill] sm:$0xff] %v32199_v53  ;;  %27221 = vmatpush3.msra.mxu1 %v19042_v63  ;;  %v19055_v41 = vsub.f32 %v32187_v51, %v34934_v30  ;;  %v32214_v36 = vsub.f32 %v18778_v42, %v32199_v53 }
 0x4e7   :  { %v32201_v25 = vpop.f32.mrf.mxu1  ;;  %v19049_v32 = vand.u32 4294901760, %v19048_v6  ;;  %35363 = vst [vmem:[#allocation105_spill] sm:$0xff] %v32211_v23  ;;  %27222 = vmatprep.subr.mxu1 %v19161_v12  ;;  %27188 = vmatprep.subr.mxu0 %v32199_v53  ;;  %v19168_v17 = vand.u32 4294901760, %v19167_v47  ;;  %v32218_v46 = vsub.f32 %v18762_v22, %v32211_v23 }
 0x4e8   :  { %v32203_v62 = vpop.f32.mrf.mxu0  ;;  %v15952_v37 = vadd.f32 %v15951_v34, %v15865_v45  ;;  %35364 = vst [vmem:[#allocation106_spill] sm:$0xff] %v32214_v36  ;;  %v19056_v6 = vand.u32 4294901760, %v19055_v41  ;;  %27189 = vmatpush3.msra.mxu0 %v32211_v23  ;;  %v34940_v51 = vand.u32 4294901760, %v32214_v36 }
 0x4e9   :  { %v15873_v28 = vpop.f32.mrf.mxu1  ;;  %27223 = vmatpush3.msra.mxu1 %v19049_v32  ;;  %35365 = vst [vmem:[#allocation107_spill] sm:$0xff] %v32218_v46  ;;  %27234 = vmatprep.subr.mxu0 %v31850_v19  ;;  %v34943_v45 = vand.u32 4294901760, %v32218_v46 }
 0x4ea   :  { %v15958_v63 = vpop.f32.mrf.mxu0  ;;  %v15874_v30 = vadd.f32 %v15873_v28, %v15789_v15  ;;  %27224 = vmatprep.subr.mxu1 %v19168_v17  ;;  %v19174_v22 = vsub.f32 %v32214_v36, %v34940_v51 }
 0x4eb   :  { %v32223_v34 = vpop.f32.mrf.mxu1  ;;  %27225 = vmatpush3.msra.mxu1 %v19056_v6  ;;  %v19062_v15 = vsub.f32 %v32218_v46, %v34943_v45 }
 0x4ec   :  { %v32225_v42 = vpop.f32.mrf.mxu0  ;;  %v15959_v32 = vadd.f32 %v15958_v63, %v15874_v30  ;;  %v19175_v28 = vand.u32 4294901760, %v19174_v22 }
 0x4ed   :  { %v16032_v12 = vpop.f32.mrf.mxu1  ;;  %v19063_v17 = vand.u32 4294901760, %v19062_v15 }
 0x4ee   :  { %v16117_v47 = vpop.f32.mrf.mxu0  ;;  %v16033_v41 = vadd.f32 %v16032_v12, %v15952_v37  ;;  %27226 = vmatprep.subr.mxu1 %v19175_v28 }
 0x4ef   :  { %v32234_v19 = vpop.f32.mrf.mxu1  ;;  %27227 = vmatpush3.msra.mxu1 %v19063_v17 }
 0x4f0   :  { %v32236_v61 = vpop.f32.mrf.mxu0  ;;  %v32239_v30 = vadd.f32 %v16033_v41, %v31922_v4  ;;  %27272 = vmatprep.subr.mxu1 %v31845_v27 }
 0x4f1   :  { %35366 = vst [vmem:[#allocation108_spill] sm:$0xff] %v32236_v61  ;;  %v16039_v63 = vpop.f32.mrf.mxu1 }
 0x4f2   :  { %35367 = vst [vmem:[#allocation109_spill] sm:$0xff] %v32239_v30  ;;  %v16128_v6 = vpop.f32.mrf.mxu0  ;;  %v16040_v51 = vadd.f32 %v16039_v63, %v15959_v32 }
 0x4f3   :  { %v32242_v36 = vpop.f32.mrf.mxu1 }
 0x4f4   :  { %35368 = vst [vmem:[#allocation110_spill] sm:$0xff] %v32242_v36  ;;  %v32244_v45 = vpop.f32.mrf.mxu0  ;;  %v32247_v37 = vadd.f32 %v16040_v51, %v31955_v52 }
 0x4f5   :  { %35369 = vst [vmem:[#allocation111_spill] sm:$0xff] %v32244_v45  ;;  %v16210_v22 = vpop.f32.mrf.mxu1 }
 0x4f6   :  { %35370 = vst [vmem:[#allocation112_spill] sm:$0xff] %v32247_v37  ;;  %v16294_v12 = vpop.f32.mrf.mxu0  ;;  %v16211_v15 = vadd.f32 %v16210_v22, %v16117_v47 }
 0x4f7   :  { %v32249_v46 = vpop.f32.mrf.mxu1 }
 0x4f8   :  { %35371 = vst [vmem:[#allocation113_spill] sm:$0xff] %v32249_v46  ;;  %v32251_v4 = vpop.f32.mrf.mxu0  ;;  %v16295_v41 = vadd.f32 %v16294_v12, %v16211_v15 }
 0x4f9   :  { %35372 = vst [vmem:[#allocation114_spill] sm:$0xff] %v32251_v4  ;;  %v16217_v28 = vpop.f32.mrf.mxu1 }
 0x4fa   :  { %v16302_v17 = vpop.f32.mrf.mxu0  ;;  %v16218_v32 = vadd.f32 %v16217_v28, %v16128_v6 }
 0x4fb   :  { %v32253_v63 = vpop.f32.mrf.mxu1 }
 0x4fc   :  { %35373 = vst [vmem:[#allocation115_spill] sm:$0xff] %v32253_v63  ;;  %v32255_v61 = vpop.f32.mrf.mxu0  ;;  %v16303_v27 = vadd.f32 %v16302_v17, %v16218_v32 }
 0x4fd   :  { %35374 = vst [vmem:[#allocation116_spill] sm:$0xff] %v32255_v61  ;;  %v16378_v45 = vpop.f32.mrf.mxu1 }
 0x4fe   :  { %v16465_v23 = vpop.f32.mrf.mxu0  ;;  %v16379_v52 = vadd.f32 %v16378_v45, %v16295_v41 }
 0x4ff   :  { %v32257_v51 = vpop.f32.mrf.mxu1 }
 0x500   :  { %35375 = vst [vmem:[#allocation117_spill] sm:$0xff] %v32257_v51  ;;  %v32259_v53 = vpop.f32.mrf.mxu0  ;;  %v16466_v47 = vadd.f32 %v16465_v23, %v16379_v52 }
 0x501   :  { %35376 = vst [vmem:[#allocation118_spill] sm:$0xff] %v32259_v53  ;;  %v16387_v22 = vpop.f32.mrf.mxu1 }
 0x502   :  { %v16472_v46 = vpop.f32.mrf.mxu0  ;;  %v16388_v4 = vadd.f32 %v16387_v22, %v16303_v27 }
 0x503   :  { %v32261_v12 = vpop.f32.mrf.mxu1 }
 0x504   :  { %35377 = vst [vmem:[#allocation119_spill] sm:$0xff] %v32261_v12  ;;  %v32263_v15 = vpop.f32.mrf.mxu0  ;;  %v16473_v6 = vadd.f32 %v16472_v46, %v16388_v4 }
 0x505   :  { %35378 = vst [vmem:[#allocation120_spill] sm:$0xff] %v32263_v15  ;;  %v16546_v28 = vpop.f32.mrf.mxu1 }
 0x506   :  { %v32265_v63 = vpop.f32.mrf.mxu0  ;;  %v16547_v17 = vadd.f32 %v16546_v28, %v16466_v47 }
 0x507   :  { %v32267_v32 = vpop.f32.mrf.mxu1 }
 0x508   :  { %35379 = vst [vmem:[#allocation121_spill] sm:$0xff] %v32267_v32  ;;  %v32269_v45 = vpop.f32.mrf.mxu0  ;;  %v16560_v41 = vadd.f32 %v16547_v17, %v32098_v44 }
 0x509   :  { %v16553_v53 = vpop.f32.mrf.mxu1 }
 0x50a   :  { %v32272_v23 = vpop.f32.mrf.mxu0  ;;  %v16554_v52 = vadd.f32 %v16553_v53, %v16473_v6 }
 0x50b   :  { %v32274_v27 = vpop.f32.mrf.mxu1 }
 0x50c   :  { %35380 = vst [vmem:[#allocation122_spill] sm:$0xff] %v32274_v27  ;;  %v32276_v22 = vpop.f32.mrf.mxu0  ;;  %v16564_v46 = vadd.f32 %v16554_v52, %v32129_v39 }
 0x50d   :  { %v32279_v4 = vpop.f32.mrf.mxu1 }
 0x50e   :  { %v32281_v15 = vpop.f32.mrf.mxu0 }
 0x50f   :  { %v32283_v47 = vpop.f32.mrf.mxu1 }
 0x510   :  { %v32285_v28 = vpop.f32.mrf.mxu0 }
 0x511   :  { %v32287_v32 = vpop.f32.mrf.mxu1 }
 0x512   :  { %v32289_v44 = vpop.f32.mrf.mxu0 }
 0x513   :  { %v32291_v17 = vpop.f32.mrf.mxu1 }
 0x514   :  { %v32293_v53 = vpop.f32.mrf.mxu0 }
 0x515   :  { %v32295_v6 = vpop.f32.mrf.mxu1 }
 0x516   :  { %v32297_v27 = vpop.f32.mrf.mxu0 }
 0x517   :  { %v32299_v39 = vpop.f32.mrf.mxu1 }
 0x518   :  { %v32301_v52 = vpop.f32.mrf.mxu0 }
 0x519   :  { %v32303_v12 = vpop.f32.mrf.mxu1 }
 0x51a   :  { %v32305_v61 = vpop.f32.mrf.mxu0 }
 0x51b   :  { %35381 = vst [vmem:[#allocation123_spill] sm:$0xff] %v32305_v61  ;;  %v32307_v51 = vpop.f32.mrf.mxu1 }
 0x51c   :  { %v32309_v16 = vpop.f32.mrf.mxu0 }
 0x51d   :  { %35382 = vst [vmem:[#allocation124_spill] sm:$0xff] %v32309_v16  ;;  %v32311_v20 = vpop.f32.mrf.mxu1 }
 0x51e   :  { %v17201_v1 = vpop.f32.mrf.mxu0 }
 0x51f   :  { %v32313_v3 = vpop.f32.mrf.mxu1 }
 0x520   :  { %35383 = vst [vmem:[#allocation125_spill] sm:$0xff] %v32313_v3  ;;  %v32315_v35 = vpop.f32.mrf.mxu0 }
 0x521   :  { %35384 = vst [vmem:[#allocation126_spill] sm:$0xff] %v32315_v35  ;;  %v32317_v56 = vpop.f32.mrf.mxu1 }
 0x522   :  { %35385 = vst [vmem:[#allocation127_spill] sm:$0xff] %v32317_v56  ;;  %v17212_v40 = vpop.f32.mrf.mxu0 }
 0x523   :  { %v32319_v11 = vpop.f32.mrf.mxu1 }
 0x524   :  { %35386 = vst [vmem:[#allocation128_spill] sm:$0xff] %v32319_v11  ;;  %v32321_v29 = vpop.f32.mrf.mxu0 }
 0x525   :  { %35387 = vst [vmem:[#allocation129_spill] sm:$0xff] %v32321_v29  ;;  %v17294_v2 = vpop.f32.mrf.mxu1 }
 0x526   :  { %v17378_v60 = vpop.f32.mrf.mxu0  ;;  %v17295_v5 = vadd.f32 %v17294_v2, %v17201_v1 }
 0x527   :  { %v32323_v50 = vpop.f32.mrf.mxu1 }
 0x528   :  { %35388 = vst [vmem:[#allocation130_spill] sm:$0xff] %v32323_v50  ;;  %v32325_v26 = vpop.f32.mrf.mxu0  ;;  %v17379_v0 = vadd.f32 %v17378_v60, %v17295_v5 }
 0x529   :  { %35389 = vst [vmem:[#allocation131_spill] sm:$0xff] %v32325_v26  ;;  %v17301_v37 = vpop.f32.mrf.mxu1 }
 0x52a   :  { %v17386_v38 = vpop.f32.mrf.mxu0  ;;  %v17302_v30 = vadd.f32 %v17301_v37, %v17212_v40 }
 0x52b   :  { %v32327_v16 = vpop.f32.mrf.mxu1 }
 0x52c   :  { %35390 = vst [vmem:[#allocation132_spill] sm:$0xff] %v32327_v16  ;;  %v32329_v35 = vpop.f32.mrf.mxu0  ;;  %v17387_v56 = vadd.f32 %v17386_v38, %v17302_v30 }
 0x52d   :  { %35391 = vst [vmem:[#allocation133_spill] sm:$0xff] %v32329_v35  ;;  %v17462_v36 = vpop.f32.mrf.mxu1 }
 0x52e   :  { %v17549_v11 = vpop.f32.mrf.mxu0  ;;  %v17463_v3 = vadd.f32 %v17462_v36, %v17379_v0 }
 0x52f   :  { %v32331_v29 = vpop.f32.mrf.mxu1 }
 0x530   :  { %35392 = vst [vmem:[#allocation134_spill] sm:$0xff] %v32331_v29  ;;  %v32333_v61 = vpop.f32.mrf.mxu0  ;;  %v17550_v1 = vadd.f32 %v17549_v11, %v17463_v3  ;;  %v14615_v11 = vadd.f32 %v31837_v57, %v31824_v7 }
 0x531   :  { %v17471_v2 = vpop.f32.mrf.mxu1 }
 0x532   :  { %v17556_v50 = vpop.f32.mrf.mxu0  ;;  %v17472_v26 = vadd.f32 %v17471_v2, %v17387_v56 }
 0x533   :  { %v32335_v5 = vpop.f32.mrf.mxu1 }
 0x534   :  { %35393 = vst [vmem:[#allocation135_spill] sm:$0xff] %v32335_v5  ;;  %v32337_v60 = vpop.f32.mrf.mxu0  ;;  %v17557_v40 = vadd.f32 %v17556_v50, %v17472_v26  ;;  %v15699_v26 = vadd.f32 %v32147_v8, %v32086_v48  ;;  %v15706_v48 = vadd.f32 %v32175_v33, %v32121_v55 }
 0x535   :  { %35394 = vst [vmem:[#allocation136_spill] sm:$0xff] %v32337_v60  ;;  %v17630_v37 = vpop.f32.mrf.mxu1  ;;  %v35463_v60 = vld [vmem:[#allocation80_spill] sm:$0xff] }
 0x536   :  { %v17771_v16 = vpop.f32.mrf.mxu0  ;;  %v17631_v35 = vadd.f32 %v17630_v37, %v17550_v1  ;;  %v14699_v37 = vadd.f32 %v31839_v21, %v14615_v11  ;;  %v16788_v21 = vadd.f32 %v32287_v32, %v32272_v23 }
 0x537   :  { %v32339_v38 = vpop.f32.mrf.mxu1 }
 0x538   :  { %v17773_v30 = vpop.f32.mrf.mxu0  ;;  %v32341_v0 = vadd.f32 %v17631_v35, %v16560_v41  ;;  %v16781_v35 = vadd.f32 %v32279_v4, %v32265_v63  ;;  %v14622_v41 = vadd.f32 %v31841_v24, %v31832_v10 }
 0x539   :  { %v17637_v36 = vpop.f32.mrf.mxu1 }
 0x53a   :  { %35395 = vst [vmem:[#allocation137_spill] sm:$0xff] %v32341_v0  ;;  %v17782_v29 = vpop.f32.mrf.mxu0  ;;  %v17638_v3 = vadd.f32 %v17637_v36, %v17557_v40  ;;  %v14783_v40 = vadd.f32 %v31855_v31, %v14699_v37  ;;  %v15783_v36 = vadd.f32 %v32149_v49, %v15699_v26  ;;  %v16865_v4 = vadd.f32 %v32281_v15, %v16781_v35  ;;  %v35460_v0 = vld [vmem:[#allocation92_spill] sm:$0xff] }
 0x53b   :  { %v32345_v56 = vpop.f32.mrf.mxu1  ;;  %v14707_v24 = vadd.f32 %v31843_v58, %v14622_v41  ;;  %v16873_v58 = vadd.f32 %v32289_v44, %v16788_v21  ;;  %v35400_v21 = vld [vmem:[#allocation110_spill] sm:$0xff] }
 0x53c   :  { %35396 = vst [vmem:[#allocation138_spill] sm:$0xff] %v32345_v56  ;;  %v17784_v2 = vpop.f32.mrf.mxu0  ;;  %v32347_v5 = vadd.f32 %v17638_v3, %v16564_v46  ;;  %v16783_v46 = vadd.f32 %v32283_v47, %v32269_v45  ;;  %v15867_v31 = vadd.f32 %v32201_v25, %v15783_v36  ;;  %v16790_v45 = vadd.f32 %v32291_v17, %v32276_v22  ;;  %v35461_v56 = vld [vmem:[#allocation75_spill] sm:$0xff] }
 0x53d   :  { %v17864_v50 = vpop.f32.mrf.mxu1  ;;  %v14870_v11 = vadd.f32 %v31857_v54, %v14783_v40  ;;  %v16949_v33 = vadd.f32 %v32295_v6, %v16865_v4  ;;  %v14792_v23 = vadd.f32 %v31883_v13, %v14707_v24  ;;  %v16958_v13 = vadd.f32 %v32303_v12, %v16873_v58  ;;  %v35402_v4 = vld [vmem:[#allocation127_spill] sm:$0xff] }
 0x53e   :  { %35397 = vst [vmem:[#allocation139_spill] sm:$0xff] %v32347_v5  ;;  %v17948_v1 = vpop.f32.mrf.mxu0  ;;  %v17865_v10 = vadd.f32 %v17864_v50, %v17771_v16  ;;  %v16867_v55 = vadd.f32 %v32285_v28, %v16783_v46  ;;  %v15791_v16 = vadd.f32 %v32177_v43, %v15706_v48  ;;  %v15954_v54 = vadd.f32 %v32203_v62, %v15867_v31  ;;  %v35459_v5 = vld [vmem:[#allocation74_spill] sm:$0xff] }
 0x53f   :  { %v17866_v7 = vpop.f32.mrf.mxu1  ;;  %v14951_v3 = vadd.f32 %v31909_v59, %v14870_v11  ;;  %v16875_v6 = vadd.f32 %v32293_v53, %v16790_v45  ;;  %v17036_v44 = vadd.f32 %v32297_v27, %v16949_v33  ;;  %v14877_v59 = vadd.f32 %v31885_v9, %v14792_v23 }
 0x540   :  { %v17950_v57 = vpop.f32.mrf.mxu0  ;;  %v17867_v32 = vadd.f32 %v17866_v7, %v17773_v30  ;;  %v16951_v22 = vadd.f32 %v32299_v39, %v16867_v55  ;;  %v17949_v17 = vadd.f32 %v17948_v1, %v17865_v10  ;;  %v15876_v28 = vadd.f32 %v32223_v34, %v15791_v16  ;;  %v35398_v7 = vld [vmem:[#allocation123_spill] sm:$0xff]  ;;  %v35405_v55 = vld [vmem:[#allocation128_spill] sm:$0xff] }
 0x541   :  { %v17871_v8 = vpop.f32.mrf.mxu1  ;;  %v16035_v39 = vadd.f32 %v32234_v19, %v15954_v54  ;;  %v17117_v53 = vadd.f32 %v32311_v20, %v17036_v44  ;;  %v15475_v41 = vadd.f32 %v14951_v3, %v31772_v18  ;;  %v14958_v27 = vadd.f32 %v31941_v14, %v14877_v59  ;;  %v35399_v19 = vld [vmem:[#allocation125_spill] sm:$0xff]  ;;  %v32402_v44 = vpop.permute.xlu1 %18743 }
 0x542   :  { %v17956_v63 = vpop.f32.mrf.mxu0  ;;  %v17872_v26 = vadd.f32 %v17871_v8, %v17782_v29  ;;  %v17951_v50 = vadd.f32 %v17950_v57, %v17867_v32  ;;  %v16960_v29 = vadd.f32 %v32307_v51, %v16875_v6  ;;  %v17038_v34 = vadd.f32 %v32301_v52, %v16951_v22  ;;  %v35401_v8 = vld [vmem:[#allocation124_spill] sm:$0xff]  ;;  %v35403_v14 = vld [vmem:[#allocation109_spill] sm:$0xff]  ;;  %35408 = vst [vmem:[#allocation125_spill] sm:$0xff] %v32402_v44 }
 0x543   :  { %v17873_v47 = vpop.f32.mrf.mxu1  ;;  %v17043_v57 = vadd.f32 %v35398_v7, %v16958_v13  ;;  %v16559_v52 = vadd.f32 %v16035_v39, %v15475_v41  ;;  %v17642_v24 = vadd.f32 %v17117_v53, %v35403_v14  ;;  %v35407_v22 = vld [vmem:[#allocation112_spill] sm:$0xff]  ;;  %v35417_v14 = vld [vmem:[#allocation47_spill] sm:$0xff] }
 0x544   :  { %v17958_v49 = vpop.f32.mrf.mxu0  ;;  %v17874_v37 = vadd.f32 %v17873_v47, %v17784_v2  ;;  %v17957_v1 = vadd.f32 %v17956_v63, %v17872_v26  ;;  %v15961_v2 = vadd.f32 %v32225_v42, %v15876_v28  ;;  %v17119_v46 = vadd.f32 %v35399_v19, %v17038_v34  ;;  %v35404_v47 = vld [vmem:[#allocation28_spill] sm:$0xff] }
 0x545   :  { %v18032_v15 = vpop.f32.mrf.mxu1  ;;  %v17045_v63 = vadd.f32 %v35401_v8, %v16960_v29  ;;  %v17124_v18 = vadd.f32 %v35402_v4, %v17043_v57  ;;  %v15479_v11 = vadd.f32 %v14958_v27, %v35404_v47  ;;  %v35415_v8 = vld [vmem:[#allocation53_spill] sm:$0xff]  ;;  %v35416_v4 = vld [vmem:[#allocation39_spill] sm:$0xff] }
 0x546   :  { %v18119_v25 = vpop.f32.mrf.mxu0  ;;  %v18033_v35 = vadd.f32 %v18032_v15, %v17949_v17  ;;  %v17959_v51 = vadd.f32 %v17958_v49, %v17874_v37  ;;  %v16042_v20 = vadd.f32 %v35400_v21, %v15961_v2  ;;  %v17643_v23 = vadd.f32 %v17119_v46, %v16559_v52  ;;  %v35414_v52 = vld [vmem:[#allocation43_spill] sm:$0xff] }
 0x547   :  { %v18034_v30 = vpop.f32.mrf.mxu1  ;;  %v17126_v33 = vadd.f32 %v35405_v55, %v17045_v63  ;;  %v17646_v17 = vadd.f32 %v17124_v18, %v35407_v22  ;;  %v35421_v55 = vld [vmem:[#allocation30_spill] sm:$0xff] }
 0x548   :  { %v18121_v43 = vpop.f32.mrf.mxu0  ;;  %v18035_v12 = vadd.f32 %v18034_v30, %v17951_v50  ;;  %v18120_v36 = vadd.f32 %v18119_v25, %v18033_v35  ;;  %v32398_v25 = vpop.permute.xlu0 %18738  ;;  %v16563_v3 = vadd.f32 %v16042_v20, %v15479_v11 }
 0x549   :  { %v18041_v62 = vpop.f32.mrf.mxu1  ;;  %35406 = vst [vmem:[#allocation123_spill] sm:$0xff] %v32398_v25 }
 0x54a   :  { %v18126_v40 = vpop.f32.mrf.mxu0  ;;  %v18042_v48 = vadd.f32 %v18041_v62, %v17957_v1  ;;  %v18122_v42 = vadd.f32 %v18121_v43, %v18035_v12  ;;  %v17647_v30 = vadd.f32 %v17126_v33, %v16563_v3  ;;  %v35422_v33 = vld [vmem:[#allocation46_spill] sm:$0xff] }
 0x54b   :  { %v18043_v9 = vpop.f32.mrf.mxu1 }
 0x54c   :  { %v18044_v31 = vadd.f32 %v18043_v9, %v17959_v51  ;;  %v18128_v49 = vpop.f32.mrf.mxu0  ;;  %v18127_v16 = vadd.f32 %v18126_v40, %v18042_v48  ;;  %v35412_v40 = vld [vmem:[#allocation36_spill] sm:$0xff] }
 0x54d   :  { %v18200_v10 = vpop.f32.mrf.mxu1 }
 0x54e   :  { %v18201_v45 = vadd.f32 %v18200_v10, %v18120_v36  ;;  %v18129_v54 = vadd.f32 %v18128_v49, %v18044_v31  ;;  %v35413_v36 = vld [vmem:[#allocation52_spill] sm:$0xff]  ;;  %v32449_v11 = vpop.f32.mrf.mxu0  ;;  %v35423_v49 = vld [vmem:[#allocation45_spill] sm:$0xff] }
 0x54f   :  { %v18202_v32 = vpop.f32.mrf.mxu1  ;;  %35420 = vst [vmem:[#allocation109_spill] sm:$0xff] %v32449_v11 }
 0x550   :  { %v18726_v58 = vadd.f32 %v18201_v45, %v17642_v24  ;;  %v18203_v15 = vadd.f32 %v18202_v32, %v18122_v42  ;;  %v35418_v42 = vld [vmem:[#allocation44_spill] sm:$0xff]  ;;  %v35419_v45 = vld [vmem:[#allocation38_spill] sm:$0xff]  ;;  %v32458_v3 = vpop.f32.mrf.mxu0 }
 0x551   :  { %v18207_v26 = vpop.f32.mrf.mxu1  ;;  %v35424_v32 = vld [vmem:[#allocation48_spill] sm:$0xff] }
 0x552   :  { %v18746_v28 = vadd.f32 %v32398_v25, %v18726_v58  ;;  %v18727_v6 = vadd.f32 %v18203_v15, %v17643_v23  ;;  %v18208_v13 = vadd.f32 %v18207_v26, %v18127_v16  ;;  %v35425_v23 = vld [vmem:[#allocation54_spill] sm:$0xff]  ;;  %v35426_v16 = vld [vmem:[#allocation61_spill] sm:$0xff]  ;;  %v35427_v15 = vld [vmem:[#allocation55_spill] sm:$0xff] }
 0x553   :  { %v18209_v43 = vpop.f32.mrf.mxu1  ;;  %v35430_v26 = vld [vmem:[#allocation56_spill] sm:$0xff] }
 0x554   :  { %v18754_v50 = vmax.f32 %v18746_v28, 0.0  ;;  %v18747_v37 = vadd.f32 %v32398_v25, %v18727_v6  ;;  %v18730_v35 = vadd.f32 %v18208_v13, %v17646_v17  ;;  %v18210_v59 = vadd.f32 %v18209_v43, %v18129_v54  ;;  %v35429_v17 = vld [vmem:[#allocation21_spill] sm:$0xff]  ;;  %v35431_v54 = vld [vmem:[#allocation20_spill] sm:$0xff]  ;;  %v35432_v28 = vld [vmem:[#allocation27_spill] sm:$0xff] }
 0x555   :  { %v32460_v22 = vpop.f32.mrf.mxu1  ;;  %v35433_v6 = vld [vmem:[#allocation63_spill] sm:$0xff]  ;;  %v35434_v13 = vld [vmem:[#allocation32_spill] sm:$0xff] }
 0x556   :  { %v32405_v39 = vand.u32 4294901760, %v18754_v50  ;;  %v18755_v29 = vmax.f32 %v18747_v37, 0.0  ;;  %v18731_v62 = vadd.f32 %v18210_v59, %v17647_v30  ;;  %v18750_v34 = vadd.f32 %v32402_v44, %v18730_v35  ;;  %35428 = vst [vmem:[#allocation28_spill] sm:$0xff] %v32460_v22  ;;  %v32468_v30 = vpop.f32.mrf.mxu0  ;;  %v35437_v37 = vld [vmem:[#allocation58_spill] sm:$0xff]  ;;  %v35439_v59 = vld [vmem:[#allocation59_spill] sm:$0xff]  ;;  %v35471_v22 = vld [vmem:[#allocation37_spill] sm:$0xff] }
 0x557   :  { %35435 = vst [vmem:[#allocation128_spill] sm:$0xff] %v32468_v30  ;;  %v18380_v43 = vpop.f32.mrf.mxu1  ;;  %v35438_v35 = vld [vmem:[#allocation70_spill] sm:$0xff] }
 0x558   :  { %35409 = vst [vmem:[#allocation110_spill] sm:$0xff] %v32405_v39  ;;  %v32409_v53 = vsub.f32 %v18754_v50, %v32405_v39  ;;  %v18751_v1 = vadd.f32 %v32402_v44, %v18731_v62  ;;  %v18758_v12 = vmax.f32 %v18750_v34, 0.0  ;;  %v32412_v41 = vand.u32 4294901760, %v18755_v29  ;;  %v35436_v50 = vld [vmem:[#allocation67_spill] sm:$0xff]  ;;  %v35441_v62 = vld [vmem:[#allocation49_spill] sm:$0xff]  ;;  %v35442_v34 = vld [vmem:[#allocation76_spill] sm:$0xff] }
 0x559   :  { %v35458_v44 = vld [vmem:[#allocation88_spill] sm:$0xff] }
 0x55a   :  { %v34983_v27 = vand.u32 4294901760, %v32409_v53  ;;  %v18759_v2 = vmax.f32 %v18751_v1, 0.0  ;;  %19178 = vmatprep.mubr.f32.mxu1 %v32412_v41  ;;  %v32416_v7 = vand.u32 4294901760, %v18758_v12  ;;  %v18923_v57 = vsub.f32 %v18755_v29, %v32412_v41  ;;  %v35440_v29 = vld [vmem:[#allocation71_spill] sm:$0xff] }
 0x55b   :  { %19180 = vmatmul.mubr.f32.vlgmr.msra.gmra.mxu1 %v32405_v39  ;;  %v35443_v1 = vld [vmem:[#allocation19_spill] sm:$0xff]  ;;  %v35465_v39 = vld [vmem:[#allocation82_spill] sm:$0xff] }
 0x55c   :  { %35410 = vst [vmem:[#allocation124_spill] sm:$0xff] %v32416_v7  ;;  %v32420_v9 = vand.u32 4294901760, %v18759_v2  ;;  %27273 = vmatpush3.msra.mxu1 %v35412_v40  ;;  %v18924_v19 = vand.u32 4294901760, %v18923_v57  ;;  %v32424_v46 = vsub.f32 %v18758_v12, %v32416_v7  ;;  %v18931_v51 = vsub.f32 %v32409_v53, %v34983_v27  ;;  %v32478_v12 = vpop.f32.mrf.mxu0 }
 0x55d   :  { %27274 = vmatprep.subr.mxu1 %v35413_v36  ;;  %35444 = vst [vmem:[#allocation112_spill] sm:$0xff] %v32478_v12  ;;  %v35470_v12 = vld [vmem:[#allocation26_spill] sm:$0xff] }
 0x55e   :  { %35411 = vst [vmem:[#allocation127_spill] sm:$0xff] %v32420_v9  ;;  %19185 = vmatprep.mubr.f32.mxu1 %v32420_v9  ;;  %v32432_v48 = vsub.f32 %v18759_v2, %v32420_v9  ;;  %27275 = vmatpush3.msra.mxu1 %v35414_v52  ;;  %v18925_v21 = vsub.f32 %v18923_v57, %v18924_v19  ;;  %v34981_v20 = vand.u32 4294901760, %v32424_v46  ;;  %v18932_v10 = vand.u32 4294901760, %v18931_v51  ;;  %v32480_v2 = vpop.f32.mrf.mxu1  ;;  %v35448_v51 = vld [vmem:[#allocation81_spill] sm:$0xff]  ;;  %v32494_v27 = vpop.f32.mrf.mxu0  ;;  %v35464_v9 = vld [vmem:[#allocation95_spill] sm:$0xff] }
 0x55f   :  { %27276 = vmatprep.subr.mxu1 %v35415_v8  ;;  %19187 = vmatmul.mubr.f32.gmra.mxu1 %v32416_v7  ;;  %35445 = vst [vmem:[#allocation36_spill] sm:$0xff] %v32480_v2  ;;  %35457 = vst [vmem:[#allocation43_spill] sm:$0xff] %v32494_v27  ;;  %v35462_v7 = vld [vmem:[#allocation93_spill] sm:$0xff]  ;;  %v14052_v11 = vadd.f32 %v35471_v22, %v35470_v12 }
 0x560   :  { %v34982_v63 = vand.u32 4294901760, %v32432_v48  ;;  %27277 = vmatpush3.msra.mxu1 %v35416_v4  ;;  %19438 = vmatprep.mubr.f32.mxu1 %v18924_v19  ;;  %v18926_v18 = vand.u32 4294901760, %v18925_v21  ;;  %v18946_v31 = vsub.f32 %v32424_v46, %v34981_v20  ;;  %v35447_v19 = vld [vmem:[#allocation62_spill] sm:$0xff]  ;;  %v18464_v2 = vpop.f32.mrf.mxu0  ;;  %v35468_v27 = vld [vmem:[#allocation97_spill] sm:$0xff] }
 0x561   :  { %27278 = vmatprep.subr.mxu1 %v35417_v14  ;;  %v35449_v21 = vld [vmem:[#allocation66_spill] sm:$0xff] }
 0x562   :  { %v18940_v24 = vsub.f32 %v32432_v48, %v34982_v63  ;;  %27279 = vmatpush3.msra.mxu1 %v35418_v42  ;;  %18927 = vmatprep.mubr.f32.mxu0 %v18926_v18  ;;  %v18947_v58 = vand.u32 4294901760, %v18946_v31  ;;  %v35450_v18 = vld [vmem:[#allocation83_spill] sm:$0xff]  ;;  %v35453_v31 = vld [vmem:[#allocation69_spill] sm:$0xff]  ;;  %v32492_v63 = vpop.f32.mrf.mxu1  ;;  %v32522_v12 = vpop.f32.mrf.mxu0 }
 0x563   :  { %27280 = vmatprep.subr.mxu1 %v35419_v45  ;;  %18933 = vmatmul.mubr.f32.vlgmr.msra.gmra.mxu0 %v18932_v10  ;;  %v35451_v10 = vld [vmem:[#allocation68_spill] sm:$0xff]  ;;  %35456 = vst [vmem:[#allocation52_spill] sm:$0xff] %v32492_v63  ;;  %35483 = vst [vmem:[#allocation39_spill] sm:$0xff] %v32522_v12 }
 0x564   :  { %v18941_v47 = vand.u32 4294901760, %v18940_v24  ;;  %27235 = vmatpush3.msra.mxu0 %v35421_v55  ;;  %27281 = vmatpush3.msra.mxu1 %v35422_v33  ;;  %v35452_v24 = vld [vmem:[#allocation87_spill] sm:$0xff]  ;;  %v32505_v30 = vpop.f32.mrf.mxu1  ;;  %v35469_v63 = vld [vmem:[#allocation84_spill] sm:$0xff]  ;;  %v32543_v25 = vpop.f32.mrf.mxu0 }
 0x565   :  { %27236 = vmatprep.subr.mxu0 %v35423_v49  ;;  %27282 = vmatprep.subr.mxu1 %v35424_v32  ;;  %35467 = vst [vmem:[#allocation53_spill] sm:$0xff] %v32505_v30  ;;  %v35479_v30 = vld [vmem:[#allocation60_spill] sm:$0xff]  ;;  %35499 = vst [vmem:[#allocation47_spill] sm:$0xff] %v32543_v25 }
 0x566   :  { %27237 = vmatpush3.msra.mxu0 %v35425_v23  ;;  %27283 = vmatpush3.msra.mxu1 %v35426_v16  ;;  %v35493_v12 = vld [vmem:[#allocation108_spill] sm:$0xff] }
 0x567   :  { %18942 = vmatprep.mubr.f32.mxu0 %v18941_v47  ;;  %27238 = vmatprep.subr.mxu0 %v35427_v15  ;;  %v35454_v47 = vld [vmem:[#allocation23_spill] sm:$0xff] }
 0x568   :  { %27284 = vmatprep.subr.mxu1 %v35429_v17  ;;  %18948 = vmatmul.mubr.f32.gmra.mxu0 %v18947_v58  ;;  %v35455_v58 = vld [vmem:[#allocation33_spill] sm:$0xff] }
 0x569   :  { %27239 = vmatpush3.msra.mxu0 %v35430_v26  ;;  %27285 = vmatpush3.msra.mxu1 %v35431_v54  ;;  %v14045_v20 = vadd.f32 %v35455_v58, %v35454_v47  ;;  %v35466_v47 = vld [vmem:[#allocation34_spill] sm:$0xff] }
 0x56a   :  { %27240 = vmatprep.subr.mxu0 %v35432_v28  ;;  %19322 = vmatprep.mubr.f32.mxu0 %v18923_v57  ;;  %v35446_v57 = vld [vmem:[#allocation79_spill] sm:$0xff] }
 0x56b   :  { %27286 = vmatprep.subr.mxu1 %v35433_v6  ;;  %27241 = vmatpush3.msra.mxu0 %v35434_v13  ;;  %v14129_v58 = vadd.f32 %v35466_v47, %v14045_v20  ;;  %v35477_v20 = vld [vmem:[#allocation104_spill] sm:$0xff]  ;;  %v35478_v47 = vld [vmem:[#allocation90_spill] sm:$0xff] }
 0x56c   :  { %27287 = vmatpush3.msra.mxu1 %v35436_v50  ;;  %27242 = vmatprep.subr.mxu0 %v35437_v37 }
 0x56d   :  { %27288 = vmatprep.subr.mxu1 %v35438_v35  ;;  %27243 = vmatpush3.msra.mxu0 %v35439_v59 }
 0x56e   :  { %27289 = vmatpush3.msra.mxu1 %v35440_v29  ;;  %27244 = vmatprep.subr.mxu0 %v35441_v62 }
 0x56f   :  { %27290 = vmatprep.subr.mxu1 %v35442_v34  ;;  %27245 = vmatpush3.msra.mxu0 %v35443_v1 }
 0x570   :  { %27291 = vmatpush3.msra.mxu1 %v35446_v57  ;;  %27246 = vmatprep.subr.mxu0 %v35447_v19 }
 0x571   :  { %27292 = vmatprep.subr.mxu1 %v35448_v51  ;;  %27247 = vmatpush3.msra.mxu0 %v35449_v21 }
 0x572   :  { %27293 = vmatpush3.msra.mxu1 %v35450_v18  ;;  %27248 = vmatprep.subr.mxu0 %v35451_v10 }
 0x573   :  { %27294 = vmatprep.subr.mxu1 %v35452_v24  ;;  %27249 = vmatpush3.msra.mxu0 %v35453_v31 }
 0x574   :  { %27295 = vmatpush3.msra.mxu1 %v35458_v44  ;;  %27250 = vmatprep.subr.mxu0 %v35459_v5  ;;  %v35481_v5 = vld [vmem:[#allocation40_spill] sm:$0xff] }
 0x575   :  { %27296 = vmatprep.subr.mxu1 %v35460_v0  ;;  %27251 = vmatpush3.msra.mxu0 %v35461_v56  ;;  %v35472_v56 = vld [vmem:[#allocation100_spill] sm:$0xff]  ;;  %v35475_v0 = vld [vmem:[#allocation101_spill] sm:$0xff] }
 0x576   :  { %27297 = vmatpush3.msra.mxu1 %v35462_v7  ;;  %27252 = vmatprep.subr.mxu0 %v35463_v60  ;;  %v35473_v7 = vld [vmem:[#allocation86_spill] sm:$0xff]  ;;  %v35474_v60 = vld [vmem:[#allocation24_spill] sm:$0xff] }
 0x577   :  { %27298 = vmatprep.subr.mxu1 %v35464_v9  ;;  %27253 = vmatpush3.msra.mxu0 %v35465_v39  ;;  %v14213_v9 = vadd.f32 %v35474_v60, %v14129_v58  ;;  %v35476_v39 = vld [vmem:[#allocation89_spill] sm:$0xff]  ;;  %v35482_v44 = vld [vmem:[#allocation64_spill] sm:$0xff]  ;;  %v35485_v60 = vld [vmem:[#allocation94_spill] sm:$0xff] }
 0x578   :  { %27299 = vmatpush3.msra.mxu1 %v35468_v27  ;;  %27254 = vmatprep.subr.mxu0 %v35469_v63  ;;  %v35480_v27 = vld [vmem:[#allocation17_spill] sm:$0xff]  ;;  %v15136_v22 = vadd.f32 %v35482_v44, %v35481_v5  ;;  %v35486_v58 = vld [vmem:[#allocation31_spill] sm:$0xff]  ;;  %v35491_v5 = vand.u32 4294901760, %v32432_v48  ;;  %v35492_v44 = vld [vmem:[#allocation42_spill] sm:$0xff] }
 0x579   :  { %27300 = vmatprep.subr.mxu1 %v35472_v56  ;;  %27255 = vmatpush3.msra.mxu0 %v35473_v7  ;;  %v15129_v63 = vadd.f32 %v35480_v27, %v35479_v30  ;;  %v18548_v56 = vpop.f32.mrf.mxu1  ;;  %v35484_v7 = vld [vmem:[#allocation105_spill] sm:$0xff]  ;;  %v35490_v27 = vld [vmem:[#allocation96_spill] sm:$0xff] }
 0x57a   :  { %27301 = vmatpush3.msra.mxu1 %v35475_v0  ;;  %27256 = vmatprep.subr.mxu0 %v35476_v39  ;;  %v14137_v0 = vadd.f32 %v35486_v58, %v14052_v11  ;;  %v35487_v39 = vand.u32 4294901760, %v32409_v53  ;;  %v35495_v11 = vld [vmem:[#allocation98_spill] sm:$0xff] }
 0x57b   :  { %27302 = vmatprep.subr.mxu1 %v35477_v20  ;;  %27257 = vmatpush3.msra.mxu0 %v35478_v47  ;;  %v35488_v20 = vld [vmem:[#allocation35_spill] sm:$0xff]  ;;  %v35489_v47 = vld [vmem:[#allocation41_spill] sm:$0xff]  ;;  %v35497_v58 = vld [vmem:[#allocation18_spill] sm:$0xff] }
 0x57c   :  { %27303 = vmatpush3.msra.mxu1 %v35484_v7  ;;  %27258 = vmatprep.subr.mxu0 %v35485_v60  ;;  %v14300_v31 = vadd.f32 %v35489_v47, %v14213_v9  ;;  %v14222_v30 = vadd.f32 %v35492_v44, %v14137_v0  ;;  %v35494_v7 = vld [vmem:[#allocation113_spill] sm:$0xff]  ;;  %v18381_v60 = vadd.f32 %v18380_v43, %v32458_v3  ;;  %v35501_v0 = vld [vmem:[#allocation99_spill] sm:$0xff]  ;;  %v35502_v3 = vld [vmem:[#allocation126_spill] sm:$0xff] }
 0x57d   :  { %19442 = vmatmul.mubr.f32.vlgmr.msra.gmra.mxu1 %v35487_v39  ;;  %27348 = vmatprep.subr.mxu1 %v35488_v20  ;;  %v16213_v24 = vadd.f32 %v35494_v7, %v35493_v12  ;;  %v35496_v39 = vld [vmem:[#allocation25_spill] sm:$0xff]  ;;  %v15213_v9 = vadd.f32 %v35497_v58, %v15129_v63  ;;  %v18825_v7 = vld [vmem:[#allocation6 + $0x1f8] sm:$0xff]  ;;  %v35505_v44 = vld [vmem:[#allocation72_spill] sm:$0xff] }
 0x57e   :  { %27259 = vmatpush3.msra.mxu0 %v35490_v27  ;;  %19449 = vmatprep.mubr.f32.mxu1 %v35491_v5  ;;  %v14381_v20 = vadd.f32 %v35496_v39, %v14300_v31  ;;  %v35498_v47 = vld [vmem:[#allocation65_spill] sm:$0xff]  ;;  %v32545_v5 = vpop.f32.mrf.mxu1  ;;  %v35503_v43 = vld [vmem:[#allocation130_spill] sm:$0xff]  ;;  %v18465_v25 = vadd.f32 %v18464_v2, %v18381_v60 }
 0x57f   :  { %27349 = vmatpush3.msra.mxu1 %v35412_v40  ;;  %27260 = vmatprep.subr.mxu0 %v35495_v11  ;;  %v15221_v27 = vadd.f32 %v35498_v47, %v15136_v22  ;;  %35500 = vst [vmem:[#allocation44_spill] sm:$0xff] %v32545_v5  ;;  %v17297_v40 = vadd.f32 %v35503_v43, %v35502_v3  ;;  %v35504_v12 = vld [vmem:[#allocation102_spill] sm:$0xff]  ;;  %v35506_v39 = vld [vmem:[#allocation77_spill] sm:$0xff]  ;;  %v35507_v47 = vld [vmem:[#allocation111_spill] sm:$0xff] }
 0x580   :  { %27350 = vmatprep.subr.mxu1 %v35413_v36  ;;  %27261 = vmatpush3.msra.mxu0 %v35501_v0  ;;  %v18809_v31 = vld [vmem:[#allocation6 + $0x178] sm:$0xff]  ;;  %v18824_v63 = vld [vmem:[#allocation6 + $0x1f0] sm:$0xff]  ;;  %v15297_v22 = vadd.f32 %v35505_v44, %v15213_v9  ;;  %v35509_v36 = vand.u32 4294901760, %v32424_v46  ;;  %v32564_v9 = vand.u32 4294901760, %v18825_v7 }
 0x581   :  { %27351 = vmatpush3.msra.mxu1 %v35414_v52  ;;  %27262 = vmatprep.subr.mxu0 %v35504_v12  ;;  %v15306_v58 = vadd.f32 %v35506_v39, %v15221_v27  ;;  %v35508_v5 = vld [vmem:[#allocation115_spill] sm:$0xff]  ;;  %v35510_v0 = vld [vmem:[#allocation57_spill] sm:$0xff]  ;;  %v35511_v43 = vld [vmem:[#allocation114_spill] sm:$0xff]  ;;  %v32575_v2 = vand.u32 4294901760, %v18824_v63 }
 0x582   :  { %v16220_v11 = vadd.f32 %v35508_v5, %v35507_v47  ;;  %19453 = vmatmul.mubr.f32.gmra.mxu1 %v35509_v36  ;;  %27352 = vmatprep.subr.mxu1 %v35415_v8  ;;  %v14307_v3 = vadd.f32 %v35510_v0, %v14222_v30  ;;  %v16297_v52 = vadd.f32 %v35511_v43, %v16213_v24  ;;  %v35512_v12 = vld [vmem:[#allocation103_spill] sm:$0xff]  ;;  %v18808_v27 = vld [vmem:[#allocation6 + $0x170] sm:$0xff]  ;;  %v32567_v5 = vpop.f32.mrf.mxu1  ;;  %v32569_v47 = vpop.f32.mrf.mxu0  ;;  %v32573_v30 = vand.u32 4294901760, %v18809_v31 }
 0x583   :  { %27263 = vmatpush3.msra.mxu0 %v35512_v12  ;;  %27353 = vmatpush3.msra.mxu1 %v35416_v4  ;;  %v35513_v44 = vld [vmem:[#allocation29_spill] sm:$0xff]  ;;  %35514 = vst [vmem:[#allocation38_spill] sm:$0xff] %v32567_v5  ;;  %35515 = vst [vmem:[#allocation30_spill] sm:$0xff] %v32569_v47  ;;  %v35516_v8 = vld [vmem:[#allocation106_spill] sm:$0xff] }
 0x584   :  { %v14393_v39 = vadd.f32 %v14381_v20, %v35513_v44  ;;  %19730 = vmatprep.mubr.f32.mxu1 %v32412_v41  ;;  %27264 = vmatprep.subr.mxu0 %v35516_v8  ;;  %v35517_v24 = vld [vmem:[#allocation50_spill] sm:$0xff]  ;;  %v35518_v4 = vld [vmem:[#allocation117_spill] sm:$0xff]  ;;  %v35519_v36 = vld [vmem:[#allocation131_spill] sm:$0xff] }
 0x585   :  { %v14388_v60 = vadd.f32 %v35517_v24, %v14307_v3  ;;  %v16381_v0 = vadd.f32 %v35518_v4, %v16297_v52  ;;  %v17381_v43 = vadd.f32 %v35519_v36, %v17297_v40  ;;  %27354 = vmatprep.subr.mxu1 %v35417_v14  ;;  %v35520_v20 = vld [vmem:[#allocation107_spill] sm:$0xff]  ;;  %v18823_v44 = vld [vmem:[#allocation6 + $0x1e8] sm:$0xff]  ;;  %v35522_v5 = vld [vmem:[#allocation78_spill] sm:$0xff]  ;;  %v32587_v3 = vand.u32 4294901760, %v18808_v27 }
 0x586   :  { %27265 = vmatpush3.msra.mxu0 %v35520_v20  ;;  %v35521_v47 = vld [vmem:[#allocation73_spill] sm:$0xff]  ;;  %v15391_v10 = vadd.f32 %v35522_v5, %v15306_v58  ;;  %v35523_v8 = vld [vmem:[#allocation116_spill] sm:$0xff]  ;;  %27355 = vmatpush3.msra.mxu1 %v35418_v42  ;;  %v35524_v24 = vld [vmem:[#allocation134_spill] sm:$0xff]  ;;  %v18549_v4 = vadd.f32 %v18548_v56, %v18465_v25  ;;  %v32603_v56 = vsub.f32 %v18809_v31, %v32573_v30 }
 0x587   :  { %v15384_v12 = vadd.f32 %v35521_v47, %v15297_v22  ;;  %v16305_v18 = vadd.f32 %v35523_v8, %v16220_v11  ;;  %19325 = vmatmul.mubr.f32.vlgmr.msra.gmra.mxu0 %v32409_v53  ;;  %v18807_v52 = vld [vmem:[#allocation6 + $0x168] sm:$0xff]  ;;  %v17465_v40 = vadd.f32 %v35524_v24, %v17381_v43  ;;  %v35525_v14 = vld [vmem:[#allocation51_spill] sm:$0xff]  ;;  %27356 = vmatprep.subr.mxu1 %v35419_v45  ;;  %v18635_v47 = vpop.f32.mrf.mxu0  ;;  %v32597_v53 = vpop.f32.mrf.mxu1  ;;  %v35529_v8 = vand.u32 4294901760, %v35421_v55 }
 0x588   :  { %v35526_v36 = vand.u32 4294901760, %v35525_v14  ;;  %v32594_v22 = vsub.f32 %v18825_v7, %v32564_v9  ;;  %v18822_v58 = vld [vmem:[#allocation6 + $0x1e0] sm:$0xff]  ;;  %19331 = vmatprep.mubr.f32.mxu0 %v32432_v48  ;;  %35530 = vst [vmem:[#allocation45_spill] sm:$0xff] %v32603_v56  ;;  %v32606_v25 = vsub.f32 %v18824_v63, %v32575_v2  ;;  %v32608_v45 = vand.u32 4294901760, %v18823_v44  ;;  %v35532_v7 = vld [vmem:[#allocation22_spill] sm:$0xff]  ;;  %v35533_v24 = vld [vmem:[#allocation85_spill] sm:$0xff]  ;;  %27357 = vmatpush3.msra.mxu1 %v35422_v33 }
 0x589   :  { %v18806_v11 = vld [vmem:[#allocation6 + $0x160] sm:$0xff]  ;;  %v14397_v43 = vadd.f32 %v14388_v60, %v35532_v7  ;;  %v35534_v14 = vld [vmem:[#allocation118_spill] sm:$0xff]  ;;  %v35535_v48 = vand.u32 4294901760, %v35423_v49  ;;  %v32616_v55 = vand.u32 4294901760, %v18807_v52  ;;  %27358 = vmatprep.subr.mxu1 %v35424_v32  ;;  %v35537_v63 = vand.u32 4294901760, %v35425_v23 }
 0x58a   :  { %27310 = vmatprep.subr.mxu0 %v35526_v36  ;;  %35527 = vst [vmem:[#allocation46_spill] sm:$0xff] %v32594_v22  ;;  %v35528_v5 = vld [vmem:[#allocation119_spill] sm:$0xff]  ;;  %35531 = vst [vmem:[#allocation48_spill] sm:$0xff] %v32606_v25  ;;  %v16468_v36 = vadd.f32 %v35534_v14, %v16381_v0  ;;  %v32623_v60 = vsub.f32 %v18808_v27, %v32587_v3  ;;  %v32627_v0 = vand.u32 4294901760, %v18806_v11  ;;  %27359 = vmatpush3.msra.mxu1 %v35426_v16  ;;  %v35540_v23 = vld [vmem:[#allocation120_spill] sm:$0xff]  ;;  %v18716_v27 = vpop.f32.mrf.mxu1 }
 0x58b   :  { %v16390_v42 = vadd.f32 %v35528_v5, %v16305_v18  ;;  %27311 = vmatpush3.msra.mxu0 %v35529_v8  ;;  %v15465_v18 = vadd.f32 %v35533_v24, %v15384_v12  ;;  %v35536_v31 = vld [vmem:[#allocation91_spill] sm:$0xff]  ;;  %v32625_v12 = vand.u32 4294901760, %v18822_v58  ;;  %v35539_v8 = vld [vmem:[#allocation121_spill] sm:$0xff]  ;;  %v17552_v7 = vadd.f32 %v32333_v61, %v17465_v40  ;;  %27360 = vmatprep.subr.mxu1 %v35429_v17 }
 0x58c   :  { %27312 = vmatprep.subr.mxu0 %v35535_v48  ;;  %v15472_v5 = vadd.f32 %v35536_v31, %v15391_v10  ;;  %35538 = vst [vmem:[#allocation54_spill] sm:$0xff] %v32623_v60  ;;  %v18821_v33 = vld [vmem:[#allocation6 + $0x1d8] sm:$0xff]  ;;  %v16549_v49 = vadd.f32 %v35539_v8, %v16468_v36  ;;  %v18636_v24 = vadd.f32 %v18635_v47, %v18549_v4  ;;  %v35001_v32 = vand.u32 4294901760, %v32594_v22  ;;  %v18804_v8 = vld [vmem:[#allocation6 + $0x150] sm:$0xff] }
 0x58d   :  { %27313 = vmatpush3.msra.mxu0 %v35537_v63  ;;  %v16475_v10 = vadd.f32 %v35540_v23, %v16390_v42  ;;  %v35541_v14 = vand.u32 4294901760, %v35427_v15  ;;  %v35000_v48 = vand.u32 4294901760, %v32603_v56  ;;  %v34999_v36 = vand.u32 4294901760, %v32606_v25  ;;  %v18805_v16 = vld [vmem:[#allocation6 + $0x158] sm:$0xff]  ;;  %27361 = vmatpush3.msra.mxu1 %v35431_v54 }
 0x58e   :  { %19334 = vmatmul.mubr.f32.gmra.mxu0 %v32424_v46  ;;  %v32641_v61 = vsub.f32 %v18823_v44, %v32608_v45  ;;  %v15477_v40 = vadd.f32 %v15465_v18, %v14393_v39  ;;  %v17633_v46 = vadd.f32 %v32339_v38, %v17552_v7  ;;  %v35543_v4 = vand.u32 4294901760, %v35430_v26  ;;  %v35545_v42 = vld [vmem:[#allocation122_spill] sm:$0xff]  ;;  %27362 = vmatprep.subr.mxu1 %v35433_v6  ;;  %v18819_v7 = vld [vmem:[#allocation6 + $0x1c8] sm:$0xff] }
 0x58f   :  { %27314 = vmatprep.subr.mxu0 %v35541_v14  ;;  %19619 = vmatprep.mubr.f32.mxu0 %v32412_v41  ;;  %v32648_v15 = vsub.f32 %v18807_v52, %v32616_v55  ;;  %v32650_v17 = vand.u32 4294901760, %v18821_v33  ;;  %v16556_v47 = vadd.f32 %v35545_v42, %v16475_v10  ;;  %v35546_v44 = vand.u32 4294901760, %v35432_v28  ;;  %v18820_v41 = vld [vmem:[#allocation6 + $0x1d0] sm:$0xff] }
 0x590   :  { %35542 = vst [vmem:[#allocation61_spill] sm:$0xff] %v32641_v61  ;;  %27315 = vmatpush3.msra.mxu0 %v35543_v4  ;;  %v34998_v39 = vand.u32 4294901760, %v32623_v60  ;;  %v32658_v38 = vsub.f32 %v18822_v58, %v32625_v12  ;;  %v32661_v26 = vsub.f32 %v18806_v11, %v32627_v0  ;;  %v16561_v52 = vadd.f32 %v16549_v49, %v15477_v40 }
 0x591   :  { %35544 = vst [vmem:[#allocation55_spill] sm:$0xff] %v32648_v15  ;;  %27316 = vmatprep.subr.mxu0 %v35546_v44  ;;  %v18717_v18 = vadd.f32 %v18716_v27, %v18636_v24  ;;  %v35549_v31 = vand.u32 4294901760, %v35434_v13  ;;  %v32669_v54 = vsub.f32 %v32594_v22, %v35001_v32  ;;  %v32671_v28 = vand.u32 4294901760, %v18805_v16  ;;  %27363 = vmatpush3.msra.mxu1 %v35436_v50  ;;  %v18803_v24 = vld [vmem:[#allocation6 + $0x148] sm:$0xff]  ;;  %v35629_v22 = vld [vmem:[#allocation127_spill] sm:$0xff] }
 0x592   :  { %35547 = vst [vmem:[#allocation21_spill] sm:$0xff] %v32658_v38  ;;  %35548 = vst [vmem:[#allocation56_spill] sm:$0xff] %v32661_v26  ;;  %v15481_v58 = vadd.f32 %v15472_v5, %v14397_v43  ;;  %v35550_v11 = vand.u32 4294901760, %v35437_v37  ;;  %v32679_v6 = vsub.f32 %v32603_v56, %v35000_v48  ;;  %v32684_v13 = vsub.f32 %v32606_v25, %v34999_v36  ;;  %v35581_v32 = vld [vmem:[#allocation132_spill] sm:$0xff] }
 0x593   :  { %27317 = vmatpush3.msra.mxu0 %v35549_v31  ;;  %v34997_v63 = vand.u32 4294901760, %v32641_v61  ;;  %v17645_v49 = vadd.f32 %v17633_v46, %v16561_v52  ;;  %27364 = vmatprep.subr.mxu1 %v35438_v35  ;;  %v35551_v50 = vand.u32 4294901760, %v35439_v59  ;;  %v34995_v37 = vand.u32 4294901760, %v32648_v15  ;;  %v18818_v46 = vld [vmem:[#allocation6 + $0x1c0] sm:$0xff]  ;;  %v18817_v31 = vld [vmem:[#allocation6 + $0x1b8] sm:$0xff] }
 0x594   :  { %27318 = vmatprep.subr.mxu0 %v35550_v11  ;;  %v32692_v43 = vsub.f32 %v18821_v33, %v32650_v17  ;;  %v32694_v5 = vand.u32 4294901760, %v18820_v41  ;;  %v32696_v23 = vadd.f32 %v16556_v47, %v15481_v58  ;;  %27365 = vmatpush3.msra.mxu1 %v35440_v29  ;;  %v35553_v10 = vand.u32 4294901760, %v35441_v62  ;;  %v35560_v58 = vld [vmem:[#allocation83_spill] sm:$0xff]  ;;  %v35561_v11 = vld [vmem:[#allocation68_spill] sm:$0xff] }
 0x595   :  { %27319 = vmatpush3.msra.mxu0 %v35551_v50  ;;  %v32704_v35 = vsub.f32 %v32623_v60, %v34998_v39  ;;  %v34994_v59 = vand.u32 4294901760, %v32658_v38  ;;  %v34996_v33 = vand.u32 4294901760, %v32661_v26  ;;  %v18729_v27 = vadd.f32 %v18717_v18, %v17645_v49  ;;  %27366 = vmatprep.subr.mxu1 %v35442_v34  ;;  %v35586_v29 = vld [vmem:[#allocation95_spill] sm:$0xff]  ;;  %v35627_v56 = vld [vmem:[#allocation96_spill] sm:$0xff] }
 0x596   :  { %35552 = vst [vmem:[#allocation20_spill] sm:$0xff] %v32692_v43  ;;  %27320 = vmatprep.subr.mxu0 %v35553_v10  ;;  %v35554_v14 = vand.u32 4294901760, %v35443_v1  ;;  %v32713_v62 = vsub.f32 %v18805_v16, %v32671_v28  ;;  %v32715_v40 = vand.u32 4294901760, %v18804_v8  ;;  %27367 = vmatpush3.msra.mxu1 %v35446_v57  ;;  %v35556_v4 = vand.u32 4294901760, %v35447_v19  ;;  %v18802_v16 = vld [vmem:[#allocation6 + $0x140] sm:$0xff]  ;;  %v18801_v10 = vld [vmem:[#allocation6 + $0x138] sm:$0xff] }
 0x597   :  { %v32724_v34 = vsub.f32 %v32641_v61, %v34997_v63  ;;  %v32726_v1 = vand.u32 4294901760, %v18819_v7  ;;  %v32728_v47 = vand.u32 4294901760, %v18803_v24  ;;  %27368 = vmatprep.subr.mxu1 %v35448_v51  ;;  %v35558_v44 = vand.u32 4294901760, %v35449_v21  ;;  %v35571_v63 = vld [vmem:[#allocation74_spill] sm:$0xff]  ;;  %v35582_v21 = vld [vmem:[#allocation93_spill] sm:$0xff] }
 0x598   :  { %27321 = vmatpush3.msra.mxu0 %v35554_v14  ;;  %35555 = vst [vmem:[#allocation27_spill] sm:$0xff] %v32713_v62  ;;  %v32737_v19 = vsub.f32 %v32648_v15, %v34995_v37  ;;  %v35002_v52 = vand.u32 4294901760, %v32692_v43  ;;  %v32741_v18 = vsub.f32 %v18820_v41, %v32694_v5  ;;  %27369 = vmatpush3.msra.mxu1 %v35560_v58  ;;  %v35562_v51 = vand.u32 4294901760, %v35561_v11  ;;  %v35564_v14 = vld [vmem:[#allocation123_spill] sm:$0xff]  ;;  %v35566_v58 = vld [vmem:[#allocation69_spill] sm:$0xff] }
 0x599   :  { %27322 = vmatprep.subr.mxu0 %v35556_v4  ;;  %35557 = vst [vmem:[#allocation63_spill] sm:$0xff] %v32728_v47  ;;  %v32750_v49 = vsub.f32 %v32658_v38, %v34994_v59  ;;  %v32755_v50 = vsub.f32 %v32661_v26, %v34996_v33  ;;  %v32757_v41 = vand.u32 4294901760, %v18818_v46  ;;  %v32760_v4 = vadd.f32 %v35564_v14, %v18729_v27  ;;  %v35570_v33 = vld [vmem:[#allocation88_spill] sm:$0xff]  ;;  %v35606_v38 = vld [vmem:[#allocation101_spill] sm:$0xff]  ;;  %v35617_v26 = vld [vmem:[#allocation94_spill] sm:$0xff] }
 0x59a   :  { %27323 = vmatpush3.msra.mxu0 %v35558_v44  ;;  %35559 = vst [vmem:[#allocation32_spill] sm:$0xff] %v32741_v18  ;;  %v35565_v44 = vld [vmem:[#allocation87_spill] sm:$0xff]  ;;  %v35567_v11 = vand.u32 4294901760, %v35566_v58  ;;  %v32767_v59 = vsub.f32 %v18804_v8, %v32715_v40  ;;  %v32769_v37 = vand.u32 4294901760, %v18802_v16  ;;  %v35572_v39 = vand.u32 4294901760, %v35571_v63  ;;  %v35587_v63 = vld [vmem:[#allocation82_spill] sm:$0xff] }
 0x59b   :  { %27324 = vmatprep.subr.mxu0 %v35562_v51  ;;  %35563 = vst [vmem:[#allocation67_spill] sm:$0xff] %v32757_v41  ;;  %27370 = vmatprep.subr.mxu1 %v35565_v44  ;;  %v32776_v36 = vsub.f32 %v18819_v7, %v32726_v1  ;;  %v32779_v44 = vsub.f32 %v18803_v24, %v32728_v47  ;;  %v32781_v58 = vand.u32 4294901760, %v18817_v31  ;;  %v35577_v8 = vld [vmem:[#allocation75_spill] sm:$0xff]  ;;  %v32793_v7 = vand.u32 4294901760, %v18801_v10  ;;  %v35580_v24 = vld [vmem:[#allocation129_spill] sm:$0xff] }
 0x59c   :  { %27325 = vmatpush3.msra.mxu0 %v35567_v11  ;;  %35568 = vst [vmem:[#allocation58_spill] sm:$0xff] %v32767_v59  ;;  %35569 = vst [vmem:[#allocation70_spill] sm:$0xff] %v32769_v37  ;;  %27371 = vmatpush3.msra.mxu1 %v35570_v33  ;;  %v35576_v11 = vld [vmem:[#allocation92_spill] sm:$0xff]  ;;  %v35578_v48 = vand.u32 4294901760, %v35577_v8  ;;  %v17304_v27 = vadd.f32 %v35581_v32, %v35580_v24  ;;  %v32803_v33 = vsub.f32 %v18818_v46, %v32757_v41  ;;  %v18800_v46 = vld [vmem:[#allocation6 + $0x130] sm:$0xff] }
 0x59d   :  { %27326 = vmatprep.subr.mxu0 %v35572_v39  ;;  %35573 = vst [vmem:[#allocation59_spill] sm:$0xff] %v32776_v36  ;;  %35574 = vst [vmem:[#allocation71_spill] sm:$0xff] %v32779_v44  ;;  %27372 = vmatprep.subr.mxu1 %v35576_v11  ;;  %v32790_v39 = vsub.f32 %v32692_v43, %v35002_v52  ;;  %v35583_v11 = vld [vmem:[#allocation80_spill] sm:$0xff]  ;;  %v18816_v52 = vld [vmem:[#allocation6 + $0x1b0] sm:$0xff]  ;;  %v18757_v42 = vmax.f32 %v32760_v4, 0.0  ;;  %v35588_v51 = vand.u32 4294901760, %v35587_v63 }
 0x59e   :  { %35575 = vst [vmem:[#allocation49_spill] sm:$0xff] %v32781_v58  ;;  %27327 = vmatpush3.msra.mxu0 %v35578_v48  ;;  %35579 = vst [vmem:[#allocation76_spill] sm:$0xff] %v32793_v7  ;;  %27373 = vmatpush3.msra.mxu1 %v35582_v21  ;;  %v35584_v57 = vand.u32 4294901760, %v35583_v11  ;;  %v35589_v32 = vand.u32 4294901760, %v32713_v62  ;;  %v32816_v24 = vsub.f32 %v18802_v16, %v32769_v37  ;;  %v35591_v11 = vld [vmem:[#allocation109_spill] sm:$0xff]  ;;  %v35592_v8 = vld [vmem:[#allocation28_spill] sm:$0xff] }
 0x59f   :  { %35585 = vst [vmem:[#allocation19_spill] sm:$0xff] %v32803_v33  ;;  %27374 = vmatprep.subr.mxu1 %v35586_v29  ;;  %v18379_v48 = vadd.f32 %v35592_v8, %v35591_v11  ;;  %v35593_v4 = vld [vmem:[#allocation97_spill] sm:$0xff]  ;;  %v35594_v29 = vld [vmem:[#allocation84_spill] sm:$0xff]  ;;  %v35598_v16 = vld [vmem:[#allocation86_spill] sm:$0xff]  ;;  %v35600_v8 = vand.u32 4294901760, %v32741_v18  ;;  %v32849_v15 = vand.u32 4294901760, %v18800_v46 }
 0x5a0   :  { %27328 = vmatprep.subr.mxu0 %v35584_v57  ;;  %v32812_v21 = vsub.f32 %v32713_v62, %v35589_v32  ;;  %35590 = vst [vmem:[#allocation79_spill] sm:$0xff] %v32816_v24  ;;  %27375 = vmatpush3.msra.mxu1 %v35593_v4  ;;  %v35595_v43 = vand.u32 4294901760, %v35594_v29  ;;  %v32826_v32 = vsub.f32 %v18817_v31, %v32781_v58  ;;  %v35597_v57 = vld [vmem:[#allocation100_spill] sm:$0xff]  ;;  %v35599_v62 = vand.u32 4294901760, %v35598_v16  ;;  %v35603_v29 = vld [vmem:[#allocation133_spill] sm:$0xff]  ;;  %v35654_v37 = vld [vmem:[#allocation30_spill] sm:$0xff] }
 0x5a1   :  { %27329 = vmatpush3.msra.mxu0 %v35588_v51  ;;  %27376 = vmatprep.subr.mxu1 %v35597_v57  ;;  %v32835_v11 = vsub.f32 %v32741_v18, %v35600_v8  ;;  %v32840_v4 = vand.u32 4294901760, %v18816_v52  ;;  %v17389_v31 = vadd.f32 %v35603_v29, %v17304_v27  ;;  %v35604_v63 = vld [vmem:[#allocation112_spill] sm:$0xff]  ;;  %35609 = vst [vmem:[#allocation23_spill] sm:$0xff] %v32849_v15  ;;  %v32854_v61 = vand.u32 4294901760, %v18757_v42  ;;  %v35615_v29 = vld [vmem:[#allocation43_spill] sm:$0xff] }
 0x5a2   :  { %27330 = vmatprep.subr.mxu0 %v35595_v43  ;;  %35596 = vst [vmem:[#allocation62_spill] sm:$0xff] %v32826_v32  ;;  %v32838_v43 = vsub.f32 %v18801_v10, %v32793_v7  ;;  %v35605_v51 = vld [vmem:[#allocation52_spill] sm:$0xff]  ;;  %27377 = vmatpush3.msra.mxu1 %v35606_v38  ;;  %v35611_v10 = vld [vmem:[#allocation90_spill] sm:$0xff]  ;;  %v35620_v27 = vand.u32 4294901760, %v32779_v44  ;;  %v35642_v7 = vld [vmem:[#allocation39_spill] sm:$0xff]  ;;  %v35659_v47 = vand.u32 4294901760, %v35520_v20 }
 0x5a3   :  { %27331 = vmatpush3.msra.mxu0 %v35599_v62  ;;  %35602 = vst [vmem:[#allocation66_spill] sm:$0xff] %v32840_v4  ;;  %v18388_v57 = vadd.f32 %v35605_v51, %v35604_v63  ;;  %v35607_v62 = vld [vmem:[#allocation89_spill] sm:$0xff]  ;;  %v35610_v8 = vld [vmem:[#allocation104_spill] sm:$0xff]  ;;  %v35612_v18 = vand.u32 4294901760, %v35611_v10  ;;  %35613 = vst [vmem:[#allocation33_spill] sm:$0xff] %v32854_v61  ;;  %v35614_v51 = vand.u32 4294901760, %v32767_v59 }
 0x5a4   :  { %35601 = vst [vmem:[#allocation81_spill] sm:$0xff] %v32838_v43  ;;  %v35608_v16 = vand.u32 4294901760, %v35607_v62  ;;  %27378 = vmatprep.subr.mxu1 %v35610_v8  ;;  %v18463_v62 = vadd.f32 %v35615_v29, %v18379_v48  ;;  %v35618_v8 = vand.u32 4294901760, %v35617_v26  ;;  %v32875_v60 = vsub.f32 %v32779_v44, %v35620_v27  ;;  %v18815_v63 = vld [vmem:[#allocation6 + $0x1a8] sm:$0xff]  ;;  %v35624_v26 = vld [vmem:[#allocation110_spill] sm:$0xff]  ;;  %v35626_v27 = vld [vmem:[#allocation47_spill] sm:$0xff] }
 0x5a5   :  { %v32860_v38 = vsub.f32 %v32767_v59, %v35614_v51  ;;  %v35621_v59 = vld [vmem:[#allocation135_spill] sm:$0xff]  ;;  %v35622_v29 = vld [vmem:[#allocation128_spill] sm:$0xff]  ;;  %v18473_v44 = vadd.f32 %v35626_v27, %v18388_v57  ;;  %v35628_v51 = vand.u32 4294901760, %v35627_v56  ;;  %v35632_v57 = vld [vmem:[#allocation98_spill] sm:$0xff]  ;;  %v35634_v27 = vand.u32 4294901760, %v32816_v24 }
 0x5a6   :  { %27332 = vmatprep.subr.mxu0 %v35608_v16  ;;  %v35616_v16 = vld [vmem:[#allocation105_spill] sm:$0xff]  ;;  %v17474_v48 = vadd.f32 %v35621_v59, %v17389_v31  ;;  %v35630_v31 = vand.u32 4294901760, %v32803_v33  ;;  %v35633_v56 = vand.u32 4294901760, %v35632_v57  ;;  %v35648_v58 = vld [vmem:[#allocation124_spill] sm:$0xff] }
 0x5a7   :  { %27333 = vmatpush3.msra.mxu0 %v35612_v18  ;;  %27379 = vmatpush3.msra.mxu1 %v35616_v16  ;;  %v35619_v18 = vand.u32 4294901760, %v32776_v36  ;;  %v35623_v16 = vld [vmem:[#allocation36_spill] sm:$0xff] }
 0x5a8   :  { %27334 = vmatprep.subr.mxu0 %v35618_v8  ;;  %v18386_v25 = vadd.f32 %v35623_v16, %v35622_v29  ;;  %19732 = vmatmul.mubr.f32.vlgmr.msra.gmra.mxu1 %v35624_v26  ;;  %v35625_v8 = vand.u32 4294901760, %v32669_v54  ;;  %v32896_v29 = vsub.f32 %v32803_v33, %v35630_v31  ;;  %v32899_v54 = vsub.f32 %v18800_v46, %v32849_v15  ;;  %v32901_v16 = vpop.f32.mrf.mxu0  ;;  %v18799_v59 = vld [vmem:[#allocation6 + $0x128] sm:$0xff] }
 0x5a9   :  { %v32870_v10 = vsub.f32 %v32776_v36, %v35619_v18  ;;  %v32886_v36 = vsub.f32 %v18816_v52, %v32840_v4  ;;  %27335 = vmatpush3.msra.mxu0 %v35628_v51  ;;  %19737 = vmatprep.mubr.f32.mxu1 %v35629_v22  ;;  %v35631_v52 = vand.u32 4294901760, %v32679_v6  ;;  %v32914_v31 = vsub.f32 %v32816_v24, %v35634_v27  ;;  %v35636_v18 = vld [vmem:[#allocation53_spill] sm:$0xff]  ;;  %v18814_v24 = vld [vmem:[#allocation6 + $0x1a0] sm:$0xff] }
 0x5aa   :  { %27424 = vmatprep.subr.mxu1 %v35625_v8  ;;  %27336 = vmatprep.subr.mxu0 %v35633_v56  ;;  %v32909_v8 = vsub.f32 %v18757_v42, %v32854_v61  ;;  %v32916_v46 = vand.u32 4294901760, %v18815_v63  ;;  %v18547_v33 = vadd.f32 %v35636_v18, %v18463_v62  ;;  %v35637_v6 = vand.u32 4294901760, %v32684_v13  ;;  %v35641_v15 = vld [vmem:[#allocation136_spill] sm:$0xff]  ;;  %v35644_v18 = vld [vmem:[#allocation102_spill] sm:$0xff] }
 0x5ab   :  { %27425 = vmatpush3.msra.mxu1 %v35631_v52  ;;  %v35638_v52 = vld [vmem:[#allocation99_spill] sm:$0xff]  ;;  %v35640_v51 = vand.u32 4294901760, %v32826_v32  ;;  %v17559_v4 = vadd.f32 %v35641_v15, %v17474_v48  ;;  %v18471_v62 = vadd.f32 %v35642_v7, %v18386_v25  ;;  %v35643_v13 = vand.u32 4294901760, %v32704_v35  ;;  %v35647_v56 = vld [vmem:[#allocation38_spill] sm:$0xff] }
 0x5ac   :  { %35635 = vst [vmem:[#allocation34_spill] sm:$0xff] %v32916_v46  ;;  %27426 = vmatprep.subr.mxu1 %v35637_v6  ;;  %v35639_v57 = vand.u32 4294901760, %v35638_v52  ;;  %v35645_v6 = vand.u32 4294901760, %v35644_v18  ;;  %v35646_v52 = vand.u32 4294901760, %v32838_v43  ;;  %19739 = vmatmul.mubr.f32.gmra.mxu1 %v35648_v58  ;;  %v35649_v25 = vand.u32 4294901760, %v32724_v34  ;;  %v18813_v48 = vld [vmem:[#allocation6 + $0x198] sm:$0xff]  ;;  %v32950_v18 = vpop.f32.mrf.mxu1 }
 0x5ad   :  { %v32928_v27 = vsub.f32 %v32826_v32, %v35640_v51  ;;  %27427 = vmatpush3.msra.mxu1 %v35643_v13  ;;  %v18798_v51 = vld [vmem:[#allocation6 + $0x120] sm:$0xff]  ;;  %v18558_v32 = vadd.f32 %v35647_v56, %v18473_v44  ;;  %v32948_v7 = vand.u32 4294901760, %v18799_v59  ;;  %v18642_v13 = vpop.f32.mrf.mxu0  ;;  %v35652_v44 = vand.u32 4294901760, %v32737_v19  ;;  %v18797_v35 = vld [vmem:[#allocation6 + $0x118] sm:$0xff]  ;;  %20096 = vmatprep.mubr.f32.mxu1 %v32854_v61  ;;  %v18812_v34 = vld [vmem:[#allocation6 + $0x190] sm:$0xff] }
 0x5ae   :  { %27337 = vmatpush3.msra.mxu0 %v35639_v57  ;;  %v32939_v57 = vsub.f32 %v32838_v43, %v35646_v52  ;;  %27428 = vmatprep.subr.mxu1 %v35649_v25  ;;  %v32959_v25 = vsub.f32 %v18815_v63, %v32916_v46  ;;  %v32961_v15 = vand.u32 4294901760, %v18814_v24  ;;  %v35653_v42 = vld [vmem:[#allocation138_spill] sm:$0xff]  ;;  %v18634_v41 = vadd.f32 %v35654_v37, %v18547_v33  ;;  %v35657_v56 = vld [vmem:[#allocation44_spill] sm:$0xff] }
 0x5af   :  { %27338 = vmatprep.subr.mxu0 %v35645_v6  ;;  %v35650_v6 = vld [vmem:[#allocation103_spill] sm:$0xff]  ;;  %27429 = vmatpush3.msra.mxu1 %v35652_v44  ;;  %v17640_v43 = vadd.f32 %v35653_v42, %v17559_v4  ;;  %v32969_v44 = vand.u32 4294901760, %v18798_v51  ;;  %v18556_v63 = vadd.f32 %v35657_v56, %v18471_v62  ;;  %v35658_v46 = vand.u32 4294901760, %v32750_v49  ;;  %v18811_v62 = vld [vmem:[#allocation6 + $0x188] sm:$0xff]  ;;  %v18723_v56 = vpop.f32.mrf.mxu1 }
 0x5b0   :  { %v35651_v52 = vand.u32 4294901760, %v35650_v6  ;;  %v35655_v6 = vld [vmem:[#allocation106_spill] sm:$0xff]  ;;  %v35660_v33 = vand.u32 4294901760, %v32886_v36  ;;  %v32982_v42 = vand.u32 4294901760, %v18813_v48  ;;  %v35661_v19 = vand.u32 4294901760, %v32755_v50 }
 0x5b1   :  { %27430 = vmatprep.subr.mxu1 %v35658_v46  ;;  %v35662_v49 = vand.u32 4294901760, %v32899_v54  ;;  %v32995_v46 = vand.u32 4294901760, %v18797_v35  ;;  %v35665_v50 = vand.u32 4294901760, %v32909_v8  ;;  %v18715_v37 = vadd.f32 %v32597_v53, %v18634_v41  ;;  %v18794_v41 = vld [vmem:[#allocation6 + $0x100] sm:$0xff] }
 0x5b2   :  { %27339 = vmatpush3.msra.mxu0 %v35651_v52  ;;  %v35656_v52 = vand.u32 4294901760, %v35655_v6  ;;  %v32980_v4 = vsub.f32 %v32886_v36, %v35660_v33  ;;  %v18796_v6 = vld [vmem:[#allocation6 + $0x110] sm:$0xff]  ;;  %27431 = vmatpush3.msra.mxu1 %v35661_v19  ;;  %v33005_v19 = vsub.f32 %v18814_v24, %v32961_v15  ;;  %v18795_v33 = vld [vmem:[#allocation6 + $0x108] sm:$0xff]  ;;  %v18641_v24 = vadd.f32 %v32901_v16, %v18556_v63 }
 0x5b3   :  { %v32990_v20 = vsub.f32 %v32899_v54, %v35662_v49  ;;  %v17649_v49 = vadd.f32 %v17640_v43, %v32696_v23  ;;  %v33024_v53 = vsub.f32 %v18813_v48, %v32982_v42  ;;  %v33035_v63 = vand.u32 4294901760, %v18795_v33 }
 0x5b4   :  { %27340 = vmatprep.subr.mxu0 %v35656_v52  ;;  %v18643_v52 = vadd.f32 %v18642_v13, %v18558_v32  ;;  %v35664_v32 = vand.u32 4294901760, %v32790_v39  ;;  %v33014_v39 = vsub.f32 %v18798_v51, %v32969_v44  ;;  %v35667_v13 = vand.u32 4294901760, %v32812_v21 }
 0x5b5   :  { %27341 = vmatpush3.msra.mxu0 %v35659_v47  ;;  %v32993_v47 = vsub.f32 %v18799_v59, %v32948_v7  ;;  %v33007_v59 = vand.u32 4294901760, %v18812_v34  ;;  %v20051_v23 = vand.u32 4294901760, %v32980_v4  ;;  %v35668_v51 = vand.u32 4294901760, %v32835_v11 }
 0x5b6   :  { %19621 = vmatmul.mubr.f32.vlgmr.msra.gmra.mxu0 %v35624_v26  ;;  %27386 = vmatprep.subr.mxu0 %v32564_v9  ;;  %v19843_v26 = vsub.f32 %v32909_v8, %v35665_v50  ;;  %v18810_v50 = vld [vmem:[#allocation6 + $0x180] sm:$0xff]  ;;  %v18724_v43 = vadd.f32 %v18723_v56, %v18643_v52  ;;  %v33033_v21 = vsub.f32 %v18797_v35, %v32995_v46  ;;  %v35669_v4 = vand.u32 4294901760, %v32860_v38 }
 0x5b7   :  { %35663 = vst [vmem:[#allocation26_spill] sm:$0xff] %v32993_v47  ;;  %27432 = vmatprep.subr.mxu1 %v35664_v32  ;;  %19626 = vmatprep.mubr.f32.mxu0 %v35629_v22  ;;  %v33016_v32 = vand.u32 4294901760, %v18796_v6  ;;  %v33026_v22 = vand.u32 4294901760, %v18811_v62  ;;  %v35056_v16 = vand.u32 4294901760, %v32993_v47  ;;  %v35055_v52 = vand.u32 4294901760, %v33005_v19 }
 0x5b8   :  { %27387 = vmatpush3.msra.mxu0 %v32573_v30  ;;  %27433 = vmatpush3.msra.mxu1 %v35667_v13  ;;  %v19844_v48 = vand.u32 4294901760, %v19843_v26  ;;  %v33042_v11 = vsub.f32 %v18812_v34, %v33007_v59  ;;  %v33044_v56 = vand.u32 4294901760, %v18810_v50  ;;  %v35670_v13 = vld [vmem:[#allocation137_spill] sm:$0xff]  ;;  %v35671_v35 = vand.u32 4294901760, %v32870_v10 }
 0x5b9   :  { %35666 = vst [vmem:[#allocation37_spill] sm:$0xff] %v33016_v32  ;;  %27388 = vmatprep.subr.mxu0 %v32575_v2  ;;  %27434 = vmatprep.subr.mxu1 %v35668_v51  ;;  %v18728_v51 = vadd.f32 %v18715_v37, %v35670_v13  ;;  %v35057_v38 = vand.u32 4294901760, %v33014_v39  ;;  %v18722_v26 = vadd.f32 %v32950_v18, %v18641_v24  ;;  %v35672_v34 = vand.u32 4294901760, %v32959_v25 }
 0x5ba   :  { %27389 = vmatpush3.msra.mxu0 %v32587_v3  ;;  %27435 = vmatpush3.msra.mxu1 %v35669_v4  ;;  %v33052_v4 = vsub.f32 %v18796_v6, %v33016_v32  ;;  %v35059_v13 = vand.u32 4294901760, %v33024_v53  ;;  %v33063_v10 = vsub.f32 %v18811_v62, %v33026_v22  ;;  %v35673_v6 = vand.u32 4294901760, %v32875_v60 }
 0x5bb   :  { %19628 = vmatmul.mubr.f32.gmra.mxu0 %v35648_v58  ;;  %27390 = vmatprep.subr.mxu0 %v32608_v45  ;;  %v33054_v58 = vand.u32 4294901760, %v18794_v41  ;;  %v20057_v37 = vsub.f32 %v32959_v25, %v35672_v34  ;;  %v19945_v18 = vsub.f32 %v32993_v47, %v35056_v16  ;;  %v35058_v24 = vand.u32 4294901760, %v33033_v21 }
 0x5bc   :  { %27436 = vmatprep.subr.mxu1 %v35671_v35  ;;  %27391 = vmatpush3.msra.mxu0 %v32616_v55  ;;  %v18733_v35 = vadd.f32 %v18724_v43, %v17649_v49  ;;  %v35674_v34 = vand.u32 4294901760, %v32896_v29  ;;  %v19939_v62 = vand.u32 4294901760, %v32990_v20  ;;  %v20064_v60 = vsub.f32 %v33005_v19, %v35055_v52  ;;  %v35677_v52 = vld [vmem:[#allocation139_spill] sm:$0xff] }
 0x5bd   :  { %19845 = vmatprep.mubr.f32.mxu0 %v19844_v48  ;;  %27437 = vmatpush3.msra.mxu1 %v35673_v6  ;;  %v33073_v48 = vsub.f32 %v18795_v33, %v33035_v63  ;;  %v35060_v49 = vand.u32 4294901760, %v33042_v11  ;;  %v33084_v43 = vsub.f32 %v18810_v50, %v33044_v56  ;;  %v18748_v6 = vadd.f32 %v35564_v14, %v18728_v51 }
 0x5be   :  { %27392 = vmatprep.subr.mxu0 %v32625_v12  ;;  %27438 = vmatprep.subr.mxu1 %v35674_v34  ;;  %v35676_v33 = vand.u32 4294901760, %v32914_v31  ;;  %v19952_v29 = vsub.f32 %v33014_v39, %v35057_v38  ;;  %v33095_v34 = vsub.f32 %v18794_v41, %v33054_v58  ;;  %v18732_v16 = vadd.f32 %v18722_v26, %v35677_v52 }
 0x5bf   :  { %27393 = vmatpush3.msra.mxu0 %v32627_v0  ;;  %35675 = vst [vmem:[#allocation24_spill] sm:$0xff] %v33084_v43  ;;  %v35678_v50 = vand.u32 4294901760, %v32928_v27  ;;  %v20058_v14 = vand.u32 4294901760, %v20057_v37  ;;  %v20071_v31 = vsub.f32 %v33024_v53, %v35059_v13  ;;  %v35061_v51 = vand.u32 4294901760, %v33063_v10 }
 0x5c0   :  { %27439 = vmatpush3.msra.mxu1 %v35676_v33  ;;  %27394 = vmatprep.subr.mxu0 %v32650_v17  ;;  %v35679_v33 = vld [vmem:[#allocation125_spill] sm:$0xff]  ;;  %v35680_v20 = vand.u32 4294901760, %v32939_v57  ;;  %v19946_v41 = vand.u32 4294901760, %v19945_v18  ;;  %v19959_v27 = vsub.f32 %v33033_v21, %v35058_v24  ;;  %v35062_v52 = vand.u32 4294901760, %v33073_v48 }
 0x5c1   :  { %27440 = vmatprep.subr.mxu1 %v35678_v50  ;;  %27395 = vmatpush3.msra.mxu0 %v32671_v28  ;;  %v18753_v38 = vadd.f32 %v35679_v33, %v18733_v35  ;;  %v20065_v26 = vand.u32 4294901760, %v20064_v60  ;;  %v20078_v37 = vsub.f32 %v33042_v11, %v35060_v49  ;;  %v35065_v57 = vand.u32 4294901760, %v33084_v43  ;;  %v35682_v60 = vld [vmem:[#allocation63_spill] sm:$0xff] }
 0x5c2   :  { %27441 = vmatpush3.msra.mxu1 %v35680_v20  ;;  %27396 = vmatprep.subr.mxu0 %v32694_v5  ;;  %v18756_v35 = vmax.f32 %v18748_v6, 0.0  ;;  %v19953_v18 = vand.u32 4294901760, %v19952_v29  ;;  %v35681_v20 = vand.u32 4294901760, %v33052_v4  ;;  %v18752_v24 = vadd.f32 %v35679_v33, %v18732_v16  ;;  %v35683_v49 = vld [vmem:[#allocation67_spill] sm:$0xff] }
 0x5c3   :  { %27442 = vmatprep.subr.mxu1 %v20051_v23  ;;  %27397 = vmatpush3.msra.mxu0 %v32715_v40  ;;  %v20072_v13 = vand.u32 4294901760, %v20071_v31  ;;  %v20085_v6 = vsub.f32 %v33063_v10, %v35061_v51  ;;  %v19960_v29 = vand.u32 4294901760, %v19959_v27  ;;  %v35684_v23 = vld [vmem:[#allocation70_spill] sm:$0xff]  ;;  %v20079_v16 = vand.u32 4294901760, %v20078_v37 }
 0x5c4   :  { %27443 = vmatpush3.msra.mxu1 %v19939_v62  ;;  %27398 = vmatprep.subr.mxu0 %v32726_v1  ;;  %v19966_v50 = vsub.f32 %v33052_v4, %v35681_v20  ;;  %v18761_v62 = vmax.f32 %v18753_v38, 0.0  ;;  %v19973_v20 = vsub.f32 %v33073_v48, %v35062_v52  ;;  %v33136_v31 = vand.u32 4294901760, %v18756_v35  ;;  %v35686_v38 = vld [vmem:[#allocation49_spill] sm:$0xff]  ;;  %v35689_v37 = vld [vmem:[#allocation66_spill] sm:$0xff] }
 0x5c5   :  { %27444 = vmatprep.subr.mxu1 %v20058_v14  ;;  %27399 = vmatpush3.msra.mxu0 %v35682_v60  ;;  %v20092_v14 = vsub.f32 %v33084_v43, %v35065_v57  ;;  %v18760_v51 = vmax.f32 %v18752_v24, 0.0  ;;  %v20086_v52 = vand.u32 4294901760, %v20085_v6 }
 0x5c6   :  { %27445 = vmatpush3.msra.mxu1 %v19946_v41  ;;  %27400 = vmatprep.subr.mxu0 %v35683_v49  ;;  %35685 = vst [vmem:[#allocation60_spill] sm:$0xff] %v33136_v31  ;;  %v19967_v33 = vand.u32 4294901760, %v19966_v50  ;;  %v35687_v41 = vand.u32 4294901760, %v33095_v34  ;;  %v19974_v61 = vand.u32 4294901760, %v19973_v20  ;;  %v33144_v57 = vand.u32 4294901760, %v18761_v62 }
 0x5c7   :  { %27446 = vmatprep.subr.mxu1 %v20065_v26  ;;  %27401 = vmatpush3.msra.mxu0 %v35684_v23  ;;  %v35688_v26 = vld [vmem:[#allocation76_spill] sm:$0xff]  ;;  %v20093_v43 = vand.u32 4294901760, %v20092_v14  ;;  %v33148_v50 = vsub.f32 %v18756_v35, %v33136_v31  ;;  %v33151_v24 = vand.u32 4294901760, %v18760_v51  ;;  %v35694_v20 = vand.u32 4294901760, %v32909_v8 }
 0x5c8   :  { %27447 = vmatpush3.msra.mxu1 %v19953_v18  ;;  %27402 = vmatprep.subr.mxu0 %v35686_v38  ;;  %v19980_v27 = vsub.f32 %v33095_v34, %v35687_v41  ;;  %35690 = vst [vmem:[#allocation17_spill] sm:$0xff] %v33144_v57  ;;  %v35691_v18 = vld [vmem:[#allocation23_spill] sm:$0xff]  ;;  %v35692_v41 = vld [vmem:[#allocation34_spill] sm:$0xff]  ;;  %v33156_v6 = vsub.f32 %v18761_v62, %v33144_v57 }
 0x5c9   :  { %27448 = vmatprep.subr.mxu1 %v20072_v13  ;;  %27403 = vmatpush3.msra.mxu0 %v35688_v26  ;;  %35693 = vst [vmem:[#allocation40_spill] sm:$0xff] %v33151_v24  ;;  %v35070_v35 = vand.u32 4294901760, %v33148_v50 }
 0x5ca   :  { %27449 = vmatpush3.msra.mxu1 %v19960_v29  ;;  %27404 = vmatprep.subr.mxu0 %v35689_v37  ;;  %v19981_v13 = vand.u32 4294901760, %v19980_v27  ;;  %v33162_v29 = vsub.f32 %v18760_v51, %v33151_v24  ;;  %v35696_v27 = vld [vmem:[#allocation45_spill] sm:$0xff] }
 0x5cb   :  { %27450 = vmatprep.subr.mxu1 %v20079_v16  ;;  %27405 = vmatpush3.msra.mxu0 %v35691_v18 }
 0x5cc   :  { %27451 = vmatpush3.msra.mxu1 %v19967_v33  ;;  %27406 = vmatprep.subr.mxu0 %v35692_v41  ;;  %v35068_v51 = vand.u32 4294901760, %v33162_v29  ;;  %v35695_v33 = vld [vmem:[#allocation46_spill] sm:$0xff] }
 0x5cd   :  { %27452 = vmatprep.subr.mxu1 %v20086_v52  ;;  %27407 = vmatpush3.msra.mxu0 %v32948_v7 }
 0x5ce   :  { %27453 = vmatpush3.msra.mxu1 %v19974_v61  ;;  %27408 = vmatprep.subr.mxu0 %v32961_v15  ;;  %v35069_v61 = vand.u32 4294901760, %v33156_v6  ;;  %v19864_v16 = vsub.f32 %v33162_v29, %v35068_v51  ;;  %v35703_v51 = vld [vmem:[#allocation20_spill] sm:$0xff] }
 0x5cf   :  { %27454 = vmatprep.subr.mxu1 %v20093_v43  ;;  %27409 = vmatpush3.msra.mxu0 %v32969_v44  ;;  %v19849_v43 = vsub.f32 %v33148_v50, %v35070_v35  ;;  %v35707_v35 = vld [vmem:[#allocation59_spill] sm:$0xff] }
 0x5d0   :  { %27455 = vmatpush3.msra.mxu1 %v19981_v13  ;;  %27410 = vmatprep.subr.mxu0 %v32982_v42  ;;  %v19858_v52 = vsub.f32 %v33156_v6, %v35069_v61  ;;  %v35697_v13 = vld [vmem:[#allocation48_spill] sm:$0xff] }
 0x5d1   :  { %20098 = vmatmul.mubr.f32.vlgmr.msra.gmra.mxu1 %v33136_v31  ;;  %27500 = vmatprep.subr.mxu1 %v32564_v9  ;;  %v19850_v62 = vand.u32 4294901760, %v19849_v43  ;;  %v19865_v43 = vand.u32 4294901760, %v19864_v16  ;;  %v35702_v16 = vld [vmem:[#allocation56_spill] sm:$0xff]  ;;  %v35710_v31 = vld [vmem:[#allocation79_spill] sm:$0xff] }
 0x5d2   :  { %27411 = vmatpush3.msra.mxu0 %v32995_v46  ;;  %20103 = vmatprep.mubr.f32.mxu1 %v33144_v57  ;;  %v19859_v14 = vand.u32 4294901760, %v19858_v52  ;;  %v35699_v52 = vld [vmem:[#allocation61_spill] sm:$0xff]  ;;  %v35705_v61 = vld [vmem:[#allocation32_spill] sm:$0xff]  ;;  %v35709_v57 = vld [vmem:[#allocation19_spill] sm:$0xff] }
 0x5d3   :  { %27501 = vmatpush3.msra.mxu1 %v32573_v30  ;;  %27412 = vmatprep.subr.mxu0 %v33007_v59 }
 0x5d4   :  { %27502 = vmatprep.subr.mxu1 %v32575_v2  ;;  %27413 = vmatpush3.msra.mxu0 %v33016_v32 }
 0x5d5   :  { %27503 = vmatpush3.msra.mxu1 %v32587_v3  ;;  %27414 = vmatprep.subr.mxu0 %v33026_v22 }
 0x5d6   :  { %20105 = vmatmul.mubr.f32.gmra.mxu1 %v33151_v24  ;;  %27504 = vmatprep.subr.mxu1 %v32608_v45  ;;  %v35708_v24 = vld [vmem:[#allocation71_spill] sm:$0xff] }
 0x5d7   :  { %27415 = vmatpush3.msra.mxu0 %v33035_v63  ;;  %27505 = vmatpush3.msra.mxu1 %v32616_v55 }
 0x5d8   :  { %20356 = vmatprep.mubr.f32.mxu1 %v35694_v20  ;;  %27416 = vmatprep.subr.mxu0 %v33044_v56  ;;  %v35698_v20 = vld [vmem:[#allocation54_spill] sm:$0xff] }
 0x5d9   :  { %27506 = vmatprep.subr.mxu1 %v32625_v12  ;;  %27417 = vmatpush3.msra.mxu0 %v33054_v58 }
 0x5da   :  { %27507 = vmatpush3.msra.mxu1 %v32627_v0  ;;  %19851 = vmatmul.mubr.f32.vlgmr.msra.gmra.mxu0 %v19850_v62  ;;  %v35700_v62 = vld [vmem:[#allocation55_spill] sm:$0xff] }
 0x5db   :  { %27462 = vmatprep.subr.mxu0 %v35695_v33  ;;  %27508 = vmatprep.subr.mxu1 %v32650_v17 }
 0x5dc   :  { %19860 = vmatprep.mubr.f32.mxu0 %v19859_v14  ;;  %27463 = vmatpush3.msra.mxu0 %v35696_v27  ;;  %v35701_v14 = vld [vmem:[#allocation21_spill] sm:$0xff] }
 0x5dd   :  { %27509 = vmatpush3.msra.mxu1 %v32671_v28  ;;  %27464 = vmatprep.subr.mxu0 %v35697_v13 }
 0x5de   :  { %27510 = vmatprep.subr.mxu1 %v32694_v5  ;;  %27465 = vmatpush3.msra.mxu0 %v35698_v20 }
 0x5df   :  { %27511 = vmatpush3.msra.mxu1 %v32715_v40  ;;  %19866 = vmatmul.mubr.f32.gmra.mxu0 %v19865_v43  ;;  %v35704_v43 = vld [vmem:[#allocation27_spill] sm:$0xff] }
 0x5e0   :  { %27466 = vmatprep.subr.mxu0 %v35699_v52  ;;  %27512 = vmatprep.subr.mxu1 %v32726_v1 }
 0x5e1   :  { %27467 = vmatpush3.msra.mxu0 %v35700_v62  ;;  %20240 = vmatprep.mubr.f32.mxu0 %v32909_v8  ;;  %v35706_v8 = vld [vmem:[#allocation58_spill] sm:$0xff] }
 0x5e2   :  { %27513 = vmatpush3.msra.mxu1 %v35682_v60  ;;  %27468 = vmatprep.subr.mxu0 %v35701_v14 }
 0x5e3   :  { %27514 = vmatprep.subr.mxu1 %v35683_v49  ;;  %27469 = vmatpush3.msra.mxu0 %v35702_v16 }
 0x5e4   :  { %27515 = vmatpush3.msra.mxu1 %v35684_v23  ;;  %27470 = vmatprep.subr.mxu0 %v35703_v51 }
 0x5e5   :  { %27516 = vmatprep.subr.mxu1 %v35686_v38  ;;  %27471 = vmatpush3.msra.mxu0 %v35704_v43 }
 0x5e6   :  { %27517 = vmatpush3.msra.mxu1 %v35688_v26  ;;  %27472 = vmatprep.subr.mxu0 %v35705_v61 }
 0x5e7   :  { %27518 = vmatprep.subr.mxu1 %v35689_v37  ;;  %27473 = vmatpush3.msra.mxu0 %v35706_v8  ;;  %v35711_v37 = vld [vmem:[#allocation62_spill] sm:$0xff] }
 0x5e8   :  { %27519 = vmatpush3.msra.mxu1 %v35691_v18  ;;  %27474 = vmatprep.subr.mxu0 %v35707_v35  ;;  %v35712_v18 = vld [vmem:[#allocation81_spill] sm:$0xff] }
 0x5e9   :  { %27520 = vmatprep.subr.mxu1 %v35692_v41  ;;  %27475 = vmatpush3.msra.mxu0 %v35708_v24 }
 0x5ea   :  { %27521 = vmatpush3.msra.mxu1 %v32948_v7  ;;  %27476 = vmatprep.subr.mxu0 %v35709_v57 }
 0x5eb   :  { %27522 = vmatprep.subr.mxu1 %v32961_v15  ;;  %27477 = vmatpush3.msra.mxu0 %v35710_v31 }
 0x5ec   :  { %27523 = vmatpush3.msra.mxu1 %v32969_v44  ;;  %27478 = vmatprep.subr.mxu0 %v35711_v37 }
 0x5ed   :  { %27524 = vmatprep.subr.mxu1 %v32982_v42  ;;  %27479 = vmatpush3.msra.mxu0 %v35712_v18 }
 0x5ee   :  { %27525 = vmatpush3.msra.mxu1 %v32995_v46  ;;  %27480 = vmatprep.subr.mxu0 %v32886_v36 }
 0x5ef   :  { %27526 = vmatprep.subr.mxu1 %v33007_v59  ;;  %27481 = vmatpush3.msra.mxu0 %v32899_v54 }
 0x5f0   :  { %27527 = vmatpush3.msra.mxu1 %v33016_v32  ;;  %27482 = vmatprep.subr.mxu0 %v32959_v25  ;;  %v35713_v32 = vand.u32 4294901760, %v33148_v50 }
 0x5f1   :  { %27528 = vmatprep.subr.mxu1 %v33026_v22  ;;  %27483 = vmatpush3.msra.mxu0 %v32993_v47  ;;  %v35714_v47 = vand.u32 4294901760, %v33156_v6 }
 0x5f2   :  { %27529 = vmatpush3.msra.mxu1 %v33035_v63  ;;  %27484 = vmatprep.subr.mxu0 %v33005_v19 }
 0x5f3   :  { %27530 = vmatprep.subr.mxu1 %v33044_v56  ;;  %27485 = vmatpush3.msra.mxu0 %v33014_v39 }
 0x5f4   :  { %27531 = vmatpush3.msra.mxu1 %v33054_v58  ;;  %27486 = vmatprep.subr.mxu0 %v33024_v53 }
 0x5f5   :  { %20360 = vmatmul.mubr.f32.vlgmr.msra.gmra.mxu1 %v35713_v32  ;;  %27576 = vmatprep.subr.mxu1 %v32564_v9  ;;  %v35715_v32 = vand.u32 4294901760, %v33162_v29  ;;  %v35716_v9 = vld [vmem:[#allocation33_spill] sm:$0xff] }
 0x5f6   :  { %27487 = vmatpush3.msra.mxu0 %v33033_v21  ;;  %20367 = vmatprep.mubr.f32.mxu1 %v35714_v47  ;;  %v35729_v47 = vld [vmem:[#allocation66_spill] sm:$0xff] }
 0x5f7   :  { %27577 = vmatpush3.msra.mxu1 %v32573_v30  ;;  %27488 = vmatprep.subr.mxu0 %v33042_v11  ;;  %v35717_v30 = vld [vmem:[#allocation24_spill] sm:$0xff] }
 0x5f8   :  { %27578 = vmatprep.subr.mxu1 %v32575_v2  ;;  %27489 = vmatpush3.msra.mxu0 %v33052_v4  ;;  %v35718_v2 = vand.u32 4294901760, %v35695_v33 }
 0x5f9   :  { %27579 = vmatpush3.msra.mxu1 %v32587_v3  ;;  %27490 = vmatprep.subr.mxu0 %v33063_v10  ;;  %v35719_v3 = vand.u32 4294901760, %v35696_v27 }
 0x5fa   :  { %20371 = vmatmul.mubr.f32.gmra.mxu1 %v35715_v32  ;;  %27580 = vmatprep.subr.mxu1 %v32608_v45  ;;  %v35720_v45 = vand.u32 4294901760, %v35697_v13 }
 0x5fb   :  { %27491 = vmatpush3.msra.mxu0 %v33073_v48  ;;  %27581 = vmatpush3.msra.mxu1 %v32616_v55  ;;  %v35721_v55 = vand.u32 4294901760, %v35698_v20 }
 0x5fc   :  { %20648 = vmatprep.mubr.f32.mxu1 %v35716_v9  ;;  %27492 = vmatprep.subr.mxu0 %v35717_v30 }
 0x5fd   :  { %27582 = vmatprep.subr.mxu1 %v32625_v12  ;;  %27493 = vmatpush3.msra.mxu0 %v33095_v34  ;;  %v35722_v12 = vand.u32 4294901760, %v35699_v52 }
 0x5fe   :  { %27583 = vmatpush3.msra.mxu1 %v32627_v0  ;;  %20243 = vmatmul.mubr.f32.vlgmr.msra.gmra.mxu0 %v33148_v50  ;;  %v35723_v0 = vand.u32 4294901760, %v35700_v62  ;;  %v35735_v50 = vand.u32 4294901760, %v35710_v31 }
 0x5ff   :  { %27538 = vmatprep.subr.mxu0 %v35718_v2  ;;  %27584 = vmatprep.subr.mxu1 %v32650_v17  ;;  %v35724_v17 = vand.u32 4294901760, %v35701_v14 }
 0x600   :  { %20249 = vmatprep.mubr.f32.mxu0 %v33156_v6  ;;  %27539 = vmatpush3.msra.mxu0 %v35719_v3  ;;  %v35736_v6 = vand.u32 4294901760, %v35711_v37 }
 0x601   :  { %27585 = vmatpush3.msra.mxu1 %v32671_v28  ;;  %27540 = vmatprep.subr.mxu0 %v35720_v45  ;;  %v35725_v28 = vand.u32 4294901760, %v35702_v16 }
 0x602   :  { %27586 = vmatprep.subr.mxu1 %v32694_v5  ;;  %27541 = vmatpush3.msra.mxu0 %v35721_v55  ;;  %v35726_v5 = vand.u32 4294901760, %v35703_v51 }
 0x603   :  { %27587 = vmatpush3.msra.mxu1 %v32715_v40  ;;  %20252 = vmatmul.mubr.f32.gmra.mxu0 %v33162_v29  ;;  %v35727_v40 = vand.u32 4294901760, %v35704_v43 }
 0x604   :  { %27542 = vmatprep.subr.mxu0 %v35722_v12  ;;  %27588 = vmatprep.subr.mxu1 %v32726_v1  ;;  %v35728_v1 = vand.u32 4294901760, %v35705_v61 }
 0x605   :  { %27543 = vmatpush3.msra.mxu0 %v35723_v0  ;;  %20537 = vmatprep.mubr.f32.mxu0 %v35716_v9 }
 0x606   :  { %27589 = vmatpush3.msra.mxu1 %v35682_v60  ;;  %27544 = vmatprep.subr.mxu0 %v35724_v17  ;;  %v35731_v60 = vld [vmem:[#allocation23_spill] sm:$0xff] }
 0x607   :  { %27590 = vmatprep.subr.mxu1 %v35683_v49  ;;  %27545 = vmatpush3.msra.mxu0 %v35725_v28  ;;  %v35730_v49 = vand.u32 4294901760, %v35706_v8 }
 0x608   :  { %27591 = vmatpush3.msra.mxu1 %v35684_v23  ;;  %27546 = vmatprep.subr.mxu0 %v35726_v5  ;;  %v35732_v23 = vand.u32 4294901760, %v35707_v35 }
 0x609   :  { %27592 = vmatprep.subr.mxu1 %v35686_v38  ;;  %27547 = vmatpush3.msra.mxu0 %v35727_v40  ;;  %v35733_v38 = vand.u32 4294901760, %v35708_v24 }
 0x60a   :  { %27593 = vmatpush3.msra.mxu1 %v35688_v26  ;;  %27548 = vmatprep.subr.mxu0 %v35728_v1  ;;  %v35734_v26 = vand.u32 4294901760, %v35709_v57  ;;  %v35740_v57 = vld [vmem:[#allocation37_spill] sm:$0xff] }
 0x60b   :  { %27594 = vmatprep.subr.mxu1 %v35729_v47  ;;  %27549 = vmatpush3.msra.mxu0 %v35730_v49 }
 0x60c   :  { %27595 = vmatpush3.msra.mxu1 %v35731_v60  ;;  %27550 = vmatprep.subr.mxu0 %v35732_v23 }
 0x60d   :  { %27596 = vmatprep.subr.mxu1 %v35692_v41  ;;  %27551 = vmatpush3.msra.mxu0 %v35733_v38  ;;  %v35737_v41 = vand.u32 4294901760, %v35712_v18 }
 0x60e   :  { %27597 = vmatpush3.msra.mxu1 %v32948_v7  ;;  %27552 = vmatprep.subr.mxu0 %v35734_v26  ;;  %v35738_v7 = vand.u32 4294901760, %v32886_v36  ;;  %v35744_v36 = vand.u32 4294901760, %v33005_v19  ;;  %v35750_v19 = vand.u32 4294901760, %v33042_v11 }
 0x60f   :  { %27598 = vmatprep.subr.mxu1 %v32961_v15  ;;  %27553 = vmatpush3.msra.mxu0 %v35735_v50  ;;  %v35739_v15 = vand.u32 4294901760, %v32899_v54  ;;  %v35745_v54 = vand.u32 4294901760, %v33014_v39  ;;  %v35752_v39 = vand.u32 4294901760, %v33063_v10 }
 0x610   :  { %27599 = vmatpush3.msra.mxu1 %v32969_v44  ;;  %27554 = vmatprep.subr.mxu0 %v35736_v6  ;;  %v35741_v44 = vand.u32 4294901760, %v32959_v25  ;;  %v35746_v25 = vand.u32 4294901760, %v33024_v53  ;;  %v35754_v53 = vand.u32 4294901760, %v33073_v48 }
 0x611   :  { %27600 = vmatprep.subr.mxu1 %v32982_v42  ;;  %27555 = vmatpush3.msra.mxu0 %v35737_v41  ;;  %v35742_v42 = vld [vmem:[#allocation26_spill] sm:$0xff] }
 0x612   :  { %27601 = vmatpush3.msra.mxu1 %v32995_v46  ;;  %27556 = vmatprep.subr.mxu0 %v35738_v7  ;;  %v35743_v31 = vand.u32 4294901760, %v35742_v42  ;;  %v35747_v46 = vld [vmem:[#allocation60_spill] sm:$0xff] }
 0x613   :  { %27602 = vmatprep.subr.mxu1 %v33007_v59  ;;  %27557 = vmatpush3.msra.mxu0 %v35739_v15  ;;  %v35748_v59 = vand.u32 4294901760, %v33033_v21  ;;  %v35756_v21 = vand.u32 4294901760, %v33095_v34 }
 0x614   :  { %27603 = vmatpush3.msra.mxu1 %v35740_v57  ;;  %27558 = vmatprep.subr.mxu0 %v35741_v44 }
 0x615   :  { %27604 = vmatprep.subr.mxu1 %v33026_v22  ;;  %27559 = vmatpush3.msra.mxu0 %v35743_v31  ;;  %v35749_v22 = vld [vmem:[#allocation17_spill] sm:$0xff] }
 0x616   :  { %27605 = vmatpush3.msra.mxu1 %v33035_v63  ;;  %27560 = vmatprep.subr.mxu0 %v35744_v36  ;;  %v35751_v63 = vand.u32 4294901760, %v33052_v4 }
 0x617   :  { %27606 = vmatprep.subr.mxu1 %v33044_v56  ;;  %27561 = vmatpush3.msra.mxu0 %v35745_v54  ;;  %v35753_v56 = vld [vmem:[#allocation40_spill] sm:$0xff] }
 0x618   :  { %27607 = vmatpush3.msra.mxu1 %v33054_v58  ;;  %27562 = vmatprep.subr.mxu0 %v35746_v25  ;;  %v35755_v58 = vand.u32 4294901760, %v35717_v30 }
 0x619   :  { %20650 = vmatmul.mubr.f32.vlgmr.msra.gmra.mxu1 %v35747_v46  ;;  %27563 = vmatpush3.msra.mxu0 %v35748_v59 }
 0x61a   :  { %20655 = vmatprep.mubr.f32.mxu1 %v35749_v22  ;;  %27564 = vmatprep.subr.mxu0 %v35750_v19 }
 0x61b   :  { %27565 = vmatpush3.msra.mxu0 %v35751_v63  ;;  %v27228_v11 = vpop.f32.mrf.mxu1 }
 0x61c   :  { %27566 = vmatprep.subr.mxu0 %v35752_v39 }
 0x61d   :  { %20657 = vmatmul.mubr.f32.gmra.mxu1 %v35753_v56  ;;  %27567 = vmatpush3.msra.mxu0 %v35754_v53  ;;  %v27229_v4 = vpop.f32.mrf.mxu1 }
 0x61e   :  { %27568 = vmatprep.subr.mxu0 %v35755_v58  ;;  %v27230_v0 = vadd.f32 %v27229_v4, %v27228_v11 }
 0x61f   :  { %27569 = vmatpush3.msra.mxu0 %v35756_v21  ;;  %v27231_v37 = vpop.f32.mrf.mxu1 }
 0x620   :  { %20539 = vmatmul.mubr.f32.vlgmr.msra.gmra.mxu0 %v35747_v46 }
 0x621   :  { %20544 = vmatprep.mubr.f32.mxu0 %v35749_v22  ;;  %v27232_v24 = vpop.f32.mrf.mxu1 }
 0x622   :  { %v27233_v49 = vadd.f32 %v27232_v24, %v27231_v37 }
 0x623   :  { %v27190_v10 = vpop.f32.mrf.mxu0 }
 0x624   :  { %20546 = vmatmul.mubr.f32.gmra.mxu0 %v35753_v56 }
 0x625   :  { %v27191_v18 = vpop.f32.mrf.mxu0 }
 0x626   :  { %v27192_v12 = vadd.f32 %v27191_v18, %v27190_v10  ;;  %v20708_v18 = vld [vmem:[#allocation7 + $0x20] sm:$0xff] }
 0x628   :  { %v27193_v48 = vpop.f32.mrf.mxu0  ;;  %v19182_v40 = vadd.f32 %v27230_v0, %v27192_v12 }
 0x62a   :  { %v27194_v29 = vpop.f32.mrf.mxu0 }
 0x62b   :  { %v27195_v1 = vadd.f32 %v27194_v29, %v27193_v48 }
 0x62d   :  { %v19189_v26 = vadd.f32 %v27233_v49, %v27195_v1  ;;  %v26261_v49 = vld [vmem:[#allocation9 + $0x8] sm:$0xff] }
 0x63d   :  { %v27304_v35 = vpop.f32.mrf.mxu1 }
 0x63f   :  { %v27305_v61 = vpop.f32.mrf.mxu1 }
 0x640   :  { %v27306_v50 = vadd.f32 %v27305_v61, %v27304_v35  ;;  %v20714_v35 = vsel %vm20712_vm11, %v20708_v18, 0 }
 0x641   :  { %v33366_v61 = vand.u32 4294901760, %v20714_v35 }
 0x642   :  { %v27307_v33 = vpop.f32.mrf.mxu1 }
 0x643   :  { %28072 = vmatprep.mubr.f32.mxu1 %v33366_v61 }
 0x644   :  { %v27308_v27 = vpop.f32.mrf.mxu1 }
 0x645   :  { %v27309_v44 = vadd.f32 %v27308_v27, %v27307_v33 }
 0x647   :  { %v27266_v51 = vpop.f32.mrf.mxu0 }
 0x649   :  { %v27267_v34 = vpop.f32.mrf.mxu0 }
 0x64a   :  { %v27268_v17 = vadd.f32 %v27267_v34, %v27266_v51 }
 0x64c   :  { %v19327_v60 = vadd.f32 %v27268_v17, %v19182_v40 }
 0x64e   :  { %v27269_v13 = vpop.f32.mrf.mxu0  ;;  %v19444_v57 = vadd.f32 %v27306_v50, %v19327_v60  ;;  %v26263_v60 = vld [vmem:[#allocation9 + $0x18] sm:$0xff]  ;;  %v20710_v50 = vld [vmem:[#allocation7 + $0x30] sm:$0xff] }
 0x650   :  { %v27270_v52 = vpop.f32.mrf.mxu0 }
 0x651   :  { %v27271_v23 = vadd.f32 %v27270_v52, %v27269_v13  ;;  %v33369_v13 = vsub.f32 %v20714_v35, %v33366_v61 }
 0x653   :  { %v19336_v15 = vadd.f32 %v27271_v23, %v19189_v26  ;;  %v26260_v23 = vld [vmem:[#allocation9] sm:$0xff]  ;;  %v20709_v26 = vld [vmem:[#allocation7 + $0x28] sm:$0xff] }
 0x655   :  { %v19455_v46 = vadd.f32 %v27309_v44, %v19336_v15 }
 0x668   :  { %v27380_v20 = vpop.f32.mrf.mxu1 }
 0x66a   :  { %v27381_v62 = vpop.f32.mrf.mxu1 }
 0x66b   :  { %v27382_v25 = vadd.f32 %v27381_v62, %v27380_v20 }
 0x66c   :  { %v27383_v16 = vpop.f32.mrf.mxu1 }
 0x66e   :  { %v27384_v8 = vpop.f32.mrf.mxu1 }
 0x66f   :  { %v27385_v56 = vadd.f32 %v27384_v8, %v27383_v16  ;;  %v20794_v16 = vand.u32 4294901760, %v33369_v13 }
 0x676   :  { %v27342_v14 = vpop.f32.mrf.mxu0 }
 0x678   :  { %v27343_v43 = vpop.f32.mrf.mxu0 }
 0x679   :  { %v27344_v6 = vadd.f32 %v27343_v43, %v27342_v14 }
 0x67b   :  { %v27345_v32 = vpop.f32.mrf.mxu0  ;;  %v19623_v42 = vadd.f32 %v27344_v6, %v19444_v57  ;;  %v20717_v6 = vsel %vm20712_vm11, %v20709_v26, 0 }
 0x67c   :  { %v33416_v15 = vand.u32 4294901760, %v20717_v6 }
 0x67d   :  { %v27346_v30 = vpop.f32.mrf.mxu0  ;;  %v19734_v19 = vadd.f32 %v27382_v25, %v19623_v42 }
 0x67e   :  { %v27347_v31 = vadd.f32 %v27346_v30, %v27345_v32  ;;  %v20795_v30 = vsub.f32 %v33369_v13, %v20794_v16  ;;  %v33422_v42 = vsub.f32 %v20717_v6, %v33416_v15 }
 0x680   :  { %v19630_v22 = vadd.f32 %v27347_v31, %v19455_v46  ;;  %v20796_v0 = vand.u32 4294901760, %v20795_v30  ;;  %v27147_v31 = vld [vmem:[#allocation10 + $0x1] ss:$0 sm:$0xff]  ;;  %v20690_v30 = vld [vmem:[#allocation7 + $0x8] sm:$0xff] }
 0x682   :  { %v19741_v4 = vadd.f32 %v27385_v56, %v19630_v22  ;;  %28062 = vmatprep.mubr.f32.mxu0 %v20796_v0  ;;  %v21317_v0 = vsel %vm20712_vm11, %v20690_v30, 0 }
 0x691   :  { %v27456_v9 = vpop.f32.mrf.mxu1 }
 0x693   :  { %v27457_v2 = vpop.f32.mrf.mxu1 }
 0x694   :  { %v27458_v11 = vadd.f32 %v27457_v2, %v27456_v9 }
 0x696   :  { %v27459_v45 = vpop.f32.mrf.mxu1 }
 0x698   :  { %v27460_v28 = vpop.f32.mrf.mxu1 }
 0x699   :  { %v27461_v51 = vadd.f32 %v27460_v28, %v27459_v45 }
 0x69a   :  { %v27418_v3 = vpop.f32.mrf.mxu0 }
 0x69c   :  { %v27419_v55 = vpop.f32.mrf.mxu0 }
 0x69d   :  { %v27420_v59 = vadd.f32 %v27419_v55, %v27418_v3 }
 0x69f   :  { %v27421_v5 = vpop.f32.mrf.mxu0  ;;  %v19853_v53 = vadd.f32 %v27420_v59, %v19734_v19  ;;  %v20804_v59 = vand.u32 4294901760, %v33422_v42 }
 0x6a1   :  { %v27422_v38 = vpop.f32.mrf.mxu0  ;;  %v20100_v48 = vadd.f32 %v27458_v11, %v19853_v53 }
 0x6a2   :  { %v27423_v58 = vadd.f32 %v27422_v38, %v27421_v5  ;;  %v26262_v38 = vld [vmem:[#allocation9 + $0x10] sm:$0xff] }
 0x6a4   :  { %v19868_v24 = vadd.f32 %v27423_v58, %v19741_v4  ;;  %v20805_v58 = vsub.f32 %v33422_v42, %v20804_v59 }
 0x6a6   :  { %v20107_v52 = vadd.f32 %v27461_v51, %v19868_v24 }
 0x6b5   :  { %v27532_v47 = vpop.f32.mrf.mxu1 }
 0x6b7   :  { %v27533_v41 = vpop.f32.mrf.mxu1 }
 0x6b8   :  { %v27534_v20 = vadd.f32 %v27533_v41, %v27532_v47  ;;  %v20720_v41 = vsel %vm20712_vm11, %v20710_v50, 0 }
 0x6b9   :  { %v33418_v57 = vand.u32 4294901760, %v20720_v41 }
 0x6ba   :  { %v27535_v36 = vpop.f32.mrf.mxu1 }
 0x6bc   :  { %v27536_v63 = vpop.f32.mrf.mxu1 }
 0x6bd   :  { %v27537_v2 = vadd.f32 %v27536_v63, %v27535_v36  ;;  %v33425_v36 = vsub.f32 %v20720_v41, %v33418_v57 }
 0x6be   :  { %v27494_v7 = vpop.f32.mrf.mxu0 }
 0x6bf   :  { %v20814_v22 = vand.u32 4294901760, %v33425_v36 }
 0x6c0   :  { %v27495_v54 = vpop.f32.mrf.mxu0 }
 0x6c1   :  { %v27496_v10 = vadd.f32 %v27495_v54, %v27494_v7  ;;  %v20711_v7 = vld [vmem:[#allocation7 + $0x38] sm:$0xff]  ;;  %v20815_v11 = vsub.f32 %v33425_v36, %v20814_v22 }
 0x6c2   :  { %v20723_v44 = vsel %vm20712_vm11, %v20711_v7, 0 }
 0x6c3   :  { %v27497_v39 = vpop.f32.mrf.mxu0  ;;  %v20245_v33 = vadd.f32 %v27496_v10, %v20100_v48  ;;  %v33427_v54 = vand.u32 4294901760, %v20723_v44  ;;  %v20806_v48 = vand.u32 4294901760, %v20805_v58  ;;  %v20816_v35 = vand.u32 4294901760, %v20815_v11 }
 0x6c5   :  { %v27498_v37 = vpop.f32.mrf.mxu0  ;;  %v20362_v8 = vadd.f32 %v27534_v20, %v20245_v33  ;;  %v33432_v19 = vsub.f32 %v20723_v44, %v33427_v54  ;;  %v20689_v20 = vld [vmem:[#allocation7] sm:$0xff] }
 0x6c6   :  { %v27499_v34 = vadd.f32 %v27498_v37, %v27497_v39 }
 0x6c7   :  { %v20824_v4 = vand.u32 4294901760, %v33432_v19 }
 0x6c8   :  { %v20254_v43 = vadd.f32 %v27499_v34, %v20107_v52  ;;  %v27146_v52 = vld [vmem:[#allocation10] ss:$0 sm:$0xff] }
 0x6ca   :  { %v20373_v28 = vadd.f32 %v27537_v2, %v20254_v43 }
 0x6d9   :  { %v27608_v21 = vpop.f32.mrf.mxu1 }
 0x6db   :  { %v27609_v29 = vpop.f32.mrf.mxu1 }
 0x6dc   :  { %v27610_v3 = vadd.f32 %v27609_v29, %v27608_v21  ;;  %v20825_v29 = vsub.f32 %v33432_v19, %v20824_v4 }
 0x6dd   :  { %v27611_v62 = vpop.f32.mrf.mxu1 }
 0x6df   :  { %v27612_v55 = vpop.f32.mrf.mxu1 }
 0x6e0   :  { %v27570_v27 = vpop.f32.mrf.mxu0  ;;  %v27613_v40 = vadd.f32 %v27612_v55, %v27611_v62  ;;  %v20826_v62 = vand.u32 4294901760, %v20825_v29 }
 0x6e2   :  { %v27571_v14 = vpop.f32.mrf.mxu0 }
 0x6e3   :  { %v27572_v32 = vadd.f32 %v27571_v14, %v27570_v27 }
 0x6e4   :  { %v27573_v9 = vpop.f32.mrf.mxu0 }
 0x6e5   :  { %v20541_v45 = vadd.f32 %v27572_v32, %v20362_v8 }
 0x6e6   :  { %v27574_v12 = vpop.f32.mrf.mxu0 }
 0x6e7   :  { %v33376_v17 = vadd.f32 %v27610_v3, %v20541_v45  ;;  %v27575_v5 = vadd.f32 %v27574_v12, %v27573_v9  ;;  %v21314_v9 = vsel %vm20712_vm11, %v20689_v20, 0  ;;  %v21928_v20 = vld [vmem:[#allocation7 + $0x40] sm:$0xff] }
 0x6e8   :  { %v33467_v12 = vand.u32 4294901760, %v21314_v9 }
 0x6e9   :  { %v20548_v1 = vadd.f32 %v27575_v5, %v20373_v28  ;;  %20693 = vrot.lane.b32.xlu1 %v33376_v17, %s29009_s17  ;;  %20663 = vst.msk [vmem:[%s34817_s13] sm:$0xff] %vm20662_vm12, %v33376_v17  ;;  %v20691_v28 = vld [vmem:[#allocation7 + $0x10] sm:$0xff] }
 0x6eb   :  { %v33385_v47 = vadd.f32 %v27613_v40, %v20548_v1  ;;  %v33473_v40 = vand.u32 4294901760, %v21317_v0  ;;  %v20692_v1 = vld [vmem:[#allocation7 + $0x18] sm:$0xff] }
 0x6ec   :  { %v21323_v50 = vsel %vm20712_vm11, %v20692_v1, 0 }
 0x6ed   :  { %20676 = vrot.lane.b32.xlu1 %v33376_v17, %s29026_s19  ;;  %20695 = vrot.lane.b32.xlu0 %v33385_v47, %s29009_s17  ;;  %20664 = vst.msk [vmem:[%s34817_s13 + $0x8] sm:$0xff] %vm20662_vm12, %v33385_v47  ;;  %s29028_s17 = smov 121   ;;  %v33495_v41 = vsub.f32 %v21317_v0, %v33473_v40 }
 0x6f1   :  { %21913 = vrot.lane.b32.xlu1 %v33376_v17, %s29027_s21  ;;  %20678 = vrot.lane.b32.xlu0 %v33385_v47, %s29026_s19 }
 0x6f5   :  { %22536 = vrot.lane.b32.xlu1 %v33376_v17, %s29013_s29  ;;  %21915 = vrot.lane.b32.xlu0 %v33385_v47, %s29027_s21 }
 0x6f9   :  { %23768 = vrot.lane.b32.xlu1 %v33376_v17, %s29021_s22  ;;  %22538 = vrot.lane.b32.xlu0 %v33385_v47, %s29013_s29  ;;  %s29031_s29 = smov 64  }
 0x6fd   :  { %24391 = vrot.lane.b32.xlu1 %v33376_v17, %s29028_s17  ;;  %23770 = vrot.lane.b32.xlu0 %v33385_v47, %s29021_s22 }
 0x701   :  { %25014 = vrot.lane.b32.xlu1 %v33376_v17, %s29029_s11  ;;  %24393 = vrot.lane.b32.xlu0 %v33385_v47, %s29028_s17 }
 0x705   :  { %25637 = vrot.lane.b32.xlu1 %v33376_v17, %s29030_s23  ;;  %25016 = vrot.lane.b32.xlu0 %v33385_v47, %s29029_s11 }
 0x709   :  { %26271 = vperm.xlu1 %28852, %v26261_v49   ;;  %25639 = vrot.lane.b32.xlu0 %v33385_v47, %s29030_s23 }
 0x70d   :  { %26281 = vperm.xlu1 %28852, %v26263_v60   ;;  %26266 = vperm.xlu0 %28851, %v26260_v23   ;;  %v33482_v23 = vsub.f32 %v21314_v9, %v33467_v12 }
 0x711   :  { %20669 = vrot.lane.b32.xlu1 %v33385_v47, %s29031_s29  ;;  %26276 = vperm.xlu0 %28851, %v26262_v38   ;;  %v21320_v38 = vsel %vm20712_vm11, %v20691_v28, 0  ;;  %v21931_v28 = vld [vmem:[#allocation7 + $0x58] sm:$0xff] }
 0x712   :  { %v33497_v7 = vand.u32 4294901760, %v21320_v38 }
 0x715   :  { %20667 = vrot.lane.b32.xlu0 %v33376_v17, %s29031_s29 }
 0x75b   :  { %v20694_v25 = vpop.permute.xlu1 %20693 }
 0x75c   :  { %v20705_v46 = vmul.f32 %v27147_v31, %v20694_v25  ;;  %v33507_v25 = vand.u32 4294901760, %v21323_v50 }
 0x75e   :  { %v33434_v63 = vand.u32 4294901760, %v20705_v46 }
 0x75f   :  { %v20677_v39 = vpop.permute.xlu1 %20676  ;;  %v20696_v56 = vpop.permute.xlu0 %20695 }
 0x760   :  { %v20706_v53 = vmul.f32 %v27147_v31, %v20696_v56  ;;  %v20869_v21 = vsub.f32 %v20705_v46, %v33434_v63  ;;  %v20687_v5 = vmul.f32 %v27146_v52, %v20677_v39  ;;  %v21394_v31 = vand.u32 4294901760, %v33482_v23 }
 0x761   :  { %v21404_v56 = vand.u32 4294901760, %v33495_v41 }
 0x762   :  { %v33444_v10 = vand.u32 4294901760, %v20706_v53  ;;  %v20870_v51 = vand.u32 4294901760, %v20869_v21  ;;  %v33490_v6 = vand.u32 4294901760, %v20687_v5  ;;  %v21395_v11 = vsub.f32 %v33482_v23, %v21394_v31 }
 0x763   :  { %v33446_v37 = vpop.permute.xlu1 %21913  ;;  %v20679_v18 = vpop.permute.xlu0 %20678 }
 0x764   :  { %v20862_v24 = vsub.f32 %v20706_v53, %v33444_v10  ;;  %28058 = vmatprep.subr.mxu0 %v33444_v10  ;;  %v20871_v43 = vsub.f32 %v20869_v21, %v20870_v51  ;;  %v20688_v8 = vmul.f32 %v27146_v52, %v20679_v18  ;;  %v21469_v39 = vsub.f32 %v20687_v5, %v33490_v6  ;;  %v27148_v52 = vld [vmem:[#allocation10 + $0x2] ss:$0 sm:$0xff] }
 0x765   :  { %28059 = vmatpush3.msra.mxu0 %v33444_v10  ;;  %v33518_v53 = vsub.f32 %v21320_v38, %v33497_v7 }
 0x766   :  { %28060 = vmatprep.subr.mxu0 %v33434_v63  ;;  %v20863_v33 = vand.u32 4294901760, %v20862_v24  ;;  %v20872_v3 = vand.u32 4294901760, %v20871_v43  ;;  %v33463_v45 = vand.u32 4294901760, %v20688_v8  ;;  %v33540_v18 = vand.u32 4294901760, %v21469_v39 }
 0x767   :  { %28061 = vmatpush3.msra.mxu0 %v33434_v63  ;;  %v33456_v34 = vpop.permute.xlu0 %21915  ;;  %v33458_v27 = vpop.permute.xlu1 %22536 }
 0x768   :  { %28063 = vmatmul.mubr.f32.vlgmr.msra.gmra.mxu0 %v20806_v48  ;;  %28078 = vmatprep.subr.mxu0 %v20862_v24  ;;  %v20864_v14 = vsub.f32 %v20862_v24, %v20863_v33  ;;  %v33476_v49 = vsub.f32 %v20688_v8, %v33463_v45  ;;  %v21471_v29 = vsub.f32 %v21469_v39, %v33540_v18  ;;  %v21929_v8 = vld [vmem:[#allocation7 + $0x48] sm:$0xff] }
 0x769   :  { %28065 = vmatprep.mubr.f32.mxu0 %v20816_v35  ;;  %28079 = vmatpush3.msra.mxu0 %v20862_v24  ;;  %v21396_v24 = vand.u32 4294901760, %v21395_v11  ;;  %v21936_v30 = vsel %vm20712_vm11, %v21929_v8, 0 }
 0x76a   :  { %28080 = vmatprep.subr.mxu0 %v20869_v21  ;;  %v20865_v32 = vand.u32 4294901760, %v20864_v14  ;;  %v33502_v44 = vand.u32 4294901760, %v33476_v49  ;;  %v33597_v0 = vand.u32 4294901760, %v21936_v30 }
 0x76b   :  { %28081 = vmatpush3.msra.mxu0 %v20869_v21  ;;  %v33461_v2 = vpop.permute.xlu0 %22538  ;;  %v33465_v55 = vpop.permute.xlu1 %23768 }
 0x76c   :  { %28066 = vmatmul.mubr.f32.gmra.mxu0 %v20826_v62  ;;  %28068 = vmatprep.subr.mxu1 %v20865_v32  ;;  %v21464_v21 = vsub.f32 %v33476_v49, %v33502_v44  ;;  %v21926_v62 = vmul.f32 %v27148_v52, %v33456_v34 }
 0x76d   :  { %28098 = vmatprep.subr.mxu0 %v20863_v33  ;;  %28069 = vmatpush3.msra.mxu1 %v20865_v32 }
 0x76e   :  { %28070 = vmatprep.subr.mxu1 %v20872_v3  ;;  %28082 = vmatprep.mubr.f32.mxu0 %v33369_v13  ;;  %v33531_v13 = vsub.f32 %v21323_v50, %v33507_v25  ;;  %v33581_v34 = vand.u32 4294901760, %v21926_v62 }
 0x76f   :  { %28071 = vmatpush3.msra.mxu1 %v20872_v3  ;;  %v33478_v60 = vpop.permute.xlu0 %23770  ;;  %v33486_v26 = vpop.permute.xlu1 %24391  ;;  %v21925_v3 = vmul.f32 %v27148_v52, %v33446_v37  ;;  %v21942_v37 = vsel %vm20712_vm11, %v21931_v28, 0 }
 0x770   :  { %28073 = vmatmul.mubr.f32.vlgmr.msra.gmra.mxu1 %v33416_v15  ;;  %28083 = vmatmul.mubr.f32.vlgmr.msra.gmra.mxu0 %v33422_v42  ;;  %v21414_v42 = vand.u32 4294901760, %v33518_v53  ;;  %v21424_v48 = vand.u32 4294901760, %v33531_v13  ;;  %v22081_v5 = vsub.f32 %v21926_v62, %v33581_v34 }
 0x771   :  { %28088 = vmatprep.subr.mxu1 %v33444_v10  ;;  %28099 = vmatpush3.msra.mxu0 %v20863_v33  ;;  %v33615_v50 = vand.u32 4294901760, %v21925_v3 }
 0x772   :  { %28089 = vmatpush3.msra.mxu1 %v33444_v10  ;;  %28100 = vmatprep.subr.mxu0 %v20870_v51 }
 0x773   :  { %28090 = vmatprep.subr.mxu1 %v33434_v63  ;;  %28101 = vmatpush3.msra.mxu0 %v20870_v51  ;;  %v33509_v46 = vpop.permute.xlu0 %24393  ;;  %v33520_v58 = vpop.permute.xlu1 %25014 }
 0x774   :  { %28075 = vmatprep.mubr.f32.mxu1 %v33418_v57  ;;  %28085 = vmatprep.mubr.f32.mxu0 %v33425_v36  ;;  %v21415_v36 = vsub.f32 %v33518_v53, %v21414_v42 }
 0x775   :  { %28091 = vmatpush3.msra.mxu1 %v33434_v63  ;;  %28118 = vmatprep.subr.mxu0 %v33463_v45 }
 0x776   :  { %28076 = vmatmul.mubr.f32.gmra.mxu1 %v33427_v54  ;;  %28086 = vmatmul.mubr.f32.gmra.mxu0 %v33432_v19  ;;  %v21416_v33 = vand.u32 4294901760, %v21415_v36 }
 0x777   :  { %28108 = vmatprep.subr.mxu1 %v33444_v10  ;;  %28092 = vmatprep.mubr.f32.mxu1 %v20794_v16  ;;  %v21405_v16 = vsub.f32 %v33495_v41, %v21404_v56  ;;  %v33551_v35 = vpop.permute.xlu1 %25637 }
 0x778   :  { %28102 = vmatprep.mubr.f32.mxu0 %v33366_v61 }
 0x77a   :  { %28093 = vmatmul.mubr.f32.vlgmr.msra.gmra.mxu1 %v20804_v59  ;;  %28103 = vmatmul.mubr.f32.vlgmr.msra.gmra.mxu0 %v33416_v15  ;;  %v33543_v59 = vpop.permute.xlu0 %25016 }
 0x77b   :  { %28109 = vmatpush3.msra.mxu1 %v33444_v10  ;;  %28119 = vmatpush3.msra.mxu0 %v33463_v45  ;;  %v21465_v10 = vand.u32 4294901760, %v21464_v21  ;;  %v33626_v21 = vand.u32 4294901760, %v22081_v5 }
 0x77c   :  { %28110 = vmatprep.subr.mxu1 %v33434_v63  ;;  %28120 = vmatprep.subr.mxu0 %v33490_v6 }
 0x77d   :  { %28111 = vmatpush3.msra.mxu1 %v33434_v63  ;;  %28121 = vmatpush3.msra.mxu0 %v33490_v6  ;;  %v21406_v63 = vand.u32 4294901760, %v21405_v16  ;;  %v33631_v16 = vand.u32 4294901760, %v21942_v37 }
 0x77e   :  { %28095 = vmatprep.mubr.f32.mxu1 %v20814_v22  ;;  %28105 = vmatprep.mubr.f32.mxu0 %v33418_v57  ;;  %v21425_v22 = vsub.f32 %v33531_v13, %v21424_v48  ;;  %v33565_v51 = vpop.permute.xlu0 %25639 }
 0x77f   :  { %28128 = vmatprep.subr.mxu1 %v21465_v10  ;;  %28138 = vmatprep.subr.mxu0 %v33476_v49 }
 0x780   :  { %28096 = vmatmul.mubr.f32.gmra.mxu1 %v20824_v4  ;;  %28106 = vmatmul.mubr.f32.gmra.mxu0 %v33427_v54  ;;  %v21472_v4 = vand.u32 4294901760, %v21471_v29 }
 0x781   :  { %28112 = vmatprep.mubr.f32.mxu1 %v33366_v61  ;;  %28122 = vmatprep.mubr.f32.mxu0 %v21396_v24  ;;  %v21426_v61 = vand.u32 4294901760, %v21425_v22 }
 0x784   :  { %v33567_v19 = vpop.permute.xlu1 %26271  ;;  %28113 = vmatmul.mubr.f32.vlgmr.msra.gmra.mxu1 %v33416_v15  ;;  %28123 = vmatmul.mubr.f32.vlgmr.msra.gmra.mxu0 %v21406_v63  ;;  %v21933_v15 = vsel %vm20712_vm11, %v21928_v20, 0  ;;  %v22083_v63 = vsub.f32 %v22081_v5, %v33626_v21  ;;  %v27149_v20 = vld [vmem:[#allocation10 + $0x3] ss:$0 sm:$0xff] }
 0x785   :  { %35757 = vst [vmem:[#allocation64_spill] sm:$0xff] %v33567_v19  ;;  %28129 = vmatpush3.msra.mxu1 %v21465_v10  ;;  %28139 = vmatpush3.msra.mxu0 %v33476_v49  ;;  %v22548_v8 = vmul.f32 %v27149_v20, %v33458_v27 }
 0x786   :  { %28130 = vmatprep.subr.mxu1 %v21472_v4  ;;  %28140 = vmatprep.subr.mxu0 %v21469_v39 }
 0x787   :  { %28131 = vmatpush3.msra.mxu1 %v21472_v4  ;;  %28141 = vmatpush3.msra.mxu0 %v21469_v39  ;;  %v33704_v28 = vand.u32 4294901760, %v22548_v8 }
 0x788   :  { %v33572_v14 = vpop.permute.xlu1 %26281  ;;  %v33574_v43 = vpop.permute.xlu0 %26266  ;;  %28115 = vmatprep.mubr.f32.mxu1 %v33418_v57  ;;  %28125 = vmatprep.mubr.f32.mxu0 %v21416_v33  ;;  %v33587_v57 = vand.u32 4294901760, %v21933_v15 }
 0x789   :  { %35758 = vst [vmem:[#allocation31_spill] sm:$0xff] %v33572_v14  ;;  %35759 = vst [vmem:[#allocation35_spill] sm:$0xff] %v33574_v43  ;;  %28148 = vmatprep.subr.mxu1 %v33463_v45  ;;  %28158 = vmatprep.subr.mxu0 %v33502_v44 }
 0x78a   :  { %28116 = vmatmul.mubr.f32.gmra.mxu1 %v33427_v54  ;;  %28126 = vmatmul.mubr.f32.gmra.mxu0 %v21426_v61  ;;  %v21930_v54 = vld [vmem:[#allocation7 + $0x50] sm:$0xff]  ;;  %v33603_v49 = vsub.f32 %v21933_v15, %v33587_v57  ;;  %v22549_v61 = vmul.f32 %v27149_v20, %v33461_v2 }
 0x78b   :  { %28132 = vmatprep.mubr.f32.mxu1 %v33467_v12  ;;  %28142 = vmatprep.mubr.f32.mxu0 %v33482_v23  ;;  %v21939_v38 = vsel %vm20712_vm11, %v21930_v54, 0  ;;  %v33649_v23 = vsub.f32 %v21942_v37, %v33631_v16  ;;  %v22553_v15 = vld [vmem:[#allocation7 + $0x70] sm:$0xff] }
 0x78c   :  { %v20670_v32 = vpop.permute.xlu1 %20669  ;;  %v33585_v9 = vpop.permute.xlu0 %26276  ;;  %v33622_v39 = vand.u32 4294901760, %v21939_v38  ;;  %v22013_v11 = vand.u32 4294901760, %v33603_v49  ;;  %v33682_v62 = vand.u32 4294901760, %v22549_v61 }
 0x78d   :  { %35760 = vst [vmem:[#allocation41_spill] sm:$0xff] %v33585_v9  ;;  %27145 = vst.msk [vmem:[%s34817_s13 + $0x18] sm:$0xff] %vm20662_vm12, %v20670_v32 }
 0x78e   :  { %28133 = vmatmul.mubr.f32.vlgmr.msra.gmra.mxu1 %v33473_v40  ;;  %28143 = vmatmul.mubr.f32.vlgmr.msra.gmra.mxu0 %v33495_v41  ;;  %v33639_v24 = vsub.f32 %v21939_v38, %v33622_v39  ;;  %v22014_v29 = vsub.f32 %v33603_v49, %v22013_v11 }
 0x78f   :  { %28149 = vmatpush3.msra.mxu1 %v33463_v45  ;;  %28159 = vmatpush3.msra.mxu0 %v33502_v44  ;;  %v33620_v44 = vsub.f32 %v21936_v30, %v33597_v0  ;;  %v22704_v30 = vsub.f32 %v22549_v61, %v33682_v62 }
 0x790   :  { %v20668_v1 = vpop.permute.xlu0 %20667  ;;  %28150 = vmatprep.subr.mxu1 %v33490_v6  ;;  %28160 = vmatprep.subr.mxu0 %v33540_v18  ;;  %v22033_v41 = vand.u32 4294901760, %v33639_v24  ;;  %v22015_v22 = vand.u32 4294901760, %v22014_v29 }
 0x791   :  { %27144 = vst.msk [vmem:[%s34817_s13 + $0x10] sm:$0xff] %vm20662_vm12, %v20668_v1  ;;  %28151 = vmatpush3.msra.mxu1 %v33490_v6  ;;  %28161 = vmatpush3.msra.mxu0 %v33540_v18  ;;  %v22088_v18 = vsub.f32 %v21925_v3, %v33615_v50  ;;  %v22023_v10 = vand.u32 4294901760, %v33620_v44  ;;  %v22562_v3 = vsel %vm20712_vm11, %v22553_v15, 0  ;;  %v33715_v38 = vand.u32 4294901760, %v22704_v30 }
 0x792   :  { %28135 = vmatprep.mubr.f32.mxu1 %v33497_v7  ;;  %28145 = vmatprep.mubr.f32.mxu0 %v33518_v53  ;;  %v22034_v33 = vsub.f32 %v33639_v24, %v22033_v41  ;;  %v33711_v1 = vand.u32 4294901760, %v22562_v3 }
 0x793   :  { %28168 = vmatprep.subr.mxu1 %v33463_v45  ;;  %28178 = vmatprep.subr.mxu0 %v33581_v34  ;;  %v22089_v36 = vand.u32 4294901760, %v22088_v18 }
 0x794   :  { %28136 = vmatmul.mubr.f32.gmra.mxu1 %v33507_v25  ;;  %28146 = vmatmul.mubr.f32.gmra.mxu0 %v33531_v13  ;;  %v33728_v29 = vsub.f32 %v22562_v3, %v33711_v1 }
 0x795   :  { %28152 = vmatprep.mubr.f32.mxu1 %v21394_v31  ;;  %28162 = vmatprep.mubr.f32.mxu0 %v33467_v12  ;;  %v22024_v31 = vsub.f32 %v33620_v44, %v22023_v10 }
 0x797   :  { %v22025_v4 = vand.u32 4294901760, %v22024_v31  ;;  %v22706_v31 = vsub.f32 %v22704_v30, %v33715_v38 }
 0x798   :  { %28153 = vmatmul.mubr.f32.vlgmr.msra.gmra.mxu1 %v21404_v56  ;;  %28163 = vmatmul.mubr.f32.vlgmr.msra.gmra.mxu0 %v33473_v40  ;;  %v22084_v56 = vand.u32 4294901760, %v22083_v63 }
 0x799   :  { %28169 = vmatpush3.msra.mxu1 %v33463_v45  ;;  %28179 = vmatpush3.msra.mxu0 %v33581_v34  ;;  %v22043_v45 = vand.u32 4294901760, %v33649_v23 }
 0x79a   :  { %28170 = vmatprep.subr.mxu1 %v33490_v6  ;;  %28180 = vmatprep.subr.mxu0 %v33615_v50 }
 0x79b   :  { %28171 = vmatpush3.msra.mxu1 %v33490_v6  ;;  %28181 = vmatpush3.msra.mxu0 %v33615_v50  ;;  %v22090_v6 = vsub.f32 %v22088_v18, %v22089_v36  ;;  %v22044_v53 = vsub.f32 %v33649_v23, %v22043_v45 }
 0x79c   :  { %28155 = vmatprep.mubr.f32.mxu1 %v21414_v42  ;;  %28165 = vmatprep.mubr.f32.mxu0 %v33497_v7  ;;  %v22035_v42 = vand.u32 4294901760, %v22034_v33 }
 0x79d   :  { %28188 = vmatprep.subr.mxu1 %v22084_v56  ;;  %28198 = vmatprep.subr.mxu0 %v22081_v5  ;;  %v22091_v13 = vand.u32 4294901760, %v22090_v6  ;;  %v22045_v52 = vand.u32 4294901760, %v22044_v53  ;;  %v23161_v53 = vld [vmem:[#allocation7 + $0x88] sm:$0xff] }
 0x79e   :  { %28156 = vmatmul.mubr.f32.gmra.mxu1 %v21424_v48  ;;  %28166 = vmatmul.mubr.f32.gmra.mxu0 %v33507_v25  ;;  %v22551_v48 = vld [vmem:[#allocation7 + $0x60] sm:$0xff] }
 0x79f   :  { %28172 = vmatprep.mubr.f32.mxu1 %v33467_v12  ;;  %28182 = vmatprep.mubr.f32.mxu0 %v22015_v22  ;;  %v22556_v12 = vsel %vm20712_vm11, %v22551_v48, 0 }
 0x7a0   :  { %v33686_v2 = vand.u32 4294901760, %v22556_v12 }
 0x7a2   :  { %28173 = vmatmul.mubr.f32.vlgmr.msra.gmra.mxu1 %v33473_v40  ;;  %28183 = vmatmul.mubr.f32.vlgmr.msra.gmra.mxu0 %v22025_v4  ;;  %v22552_v40 = vld [vmem:[#allocation7 + $0x68] sm:$0xff]  ;;  %v33698_v54 = vsub.f32 %v22556_v12, %v33686_v2 }
 0x7a3   :  { %28189 = vmatpush3.msra.mxu1 %v22084_v56  ;;  %28199 = vmatpush3.msra.mxu0 %v22081_v5 }
 0x7a4   :  { %28190 = vmatprep.subr.mxu1 %v22091_v13  ;;  %28200 = vmatprep.subr.mxu0 %v22088_v18  ;;  %v22636_v37 = vand.u32 4294901760, %v33698_v54 }
 0x7a5   :  { %28191 = vmatpush3.msra.mxu1 %v22091_v13  ;;  %28201 = vmatpush3.msra.mxu0 %v22088_v18  ;;  %v22711_v18 = vsub.f32 %v22548_v8, %v33704_v28 }
 0x7a6   :  { %28175 = vmatprep.mubr.f32.mxu1 %v33497_v7  ;;  %28185 = vmatprep.mubr.f32.mxu0 %v22035_v42  ;;  %v22559_v7 = vsel %vm20712_vm11, %v22552_v40, 0  ;;  %v23162_v42 = vld [vmem:[#allocation7 + $0x90] sm:$0xff]  ;;  %v33796_v40 = vand.u32 4294901760, %v33376_v17 }
 0x7a7   :  { %28208 = vmatprep.subr.mxu1 %v33581_v34  ;;  %28218 = vmatprep.subr.mxu0 %v33626_v21  ;;  %v33692_v32 = vand.u32 4294901760, %v22559_v7  ;;  %v22712_v56 = vand.u32 4294901760, %v22711_v18  ;;  %v23171_v61 = vsel %vm20712_vm11, %v23162_v42, 0 }
 0x7a8   :  { %28176 = vmatmul.mubr.f32.gmra.mxu1 %v33507_v25  ;;  %28186 = vmatmul.mubr.f32.gmra.mxu0 %v22045_v52  ;;  %v22554_v25 = vld [vmem:[#allocation7 + $0x78] sm:$0xff]  ;;  %v23320_v3 = vsub.f32 %v33376_v17, %v33796_v40 }
 0x7a9   :  { %28192 = vmatprep.mubr.f32.mxu1 %v33587_v57  ;;  %28202 = vmatprep.mubr.f32.mxu0 %v33603_v49  ;;  %v22565_v27 = vsel %vm20712_vm11, %v22554_v25, 0  ;;  %v33709_v5 = vsub.f32 %v22559_v7, %v33692_v32  ;;  %v33801_v7 = vand.u32 4294901760, %v23171_v61 }
 0x7ab   :  { %v22646_v63 = vand.u32 4294901760, %v33709_v5 }
 0x7ac   :  { %28193 = vmatmul.mubr.f32.vlgmr.msra.gmra.mxu1 %v33597_v0  ;;  %28203 = vmatmul.mubr.f32.vlgmr.msra.gmra.mxu0 %v33620_v44  ;;  %v22656_v44 = vand.u32 4294901760, %v33728_v29 }
 0x7ad   :  { %28209 = vmatpush3.msra.mxu1 %v33581_v34  ;;  %28219 = vmatpush3.msra.mxu0 %v33626_v21  ;;  %v33720_v21 = vand.u32 4294901760, %v22565_v27 }
 0x7ae   :  { %28210 = vmatprep.subr.mxu1 %v33615_v50  ;;  %28220 = vmatprep.subr.mxu0 %v22089_v36  ;;  %v22657_v6 = vsub.f32 %v33728_v29, %v22656_v44 }
 0x7af   :  { %28211 = vmatpush3.msra.mxu1 %v33615_v50  ;;  %28221 = vmatpush3.msra.mxu0 %v22089_v36  ;;  %v22637_v36 = vsub.f32 %v33698_v54, %v22636_v37  ;;  %v33738_v49 = vsub.f32 %v22565_v27, %v33720_v21  ;;  %v33819_v27 = vsub.f32 %v23171_v61, %v33801_v7 }
 0x7b0   :  { %28195 = vmatprep.mubr.f32.mxu1 %v33622_v39  ;;  %28205 = vmatprep.mubr.f32.mxu0 %v33639_v24 }
 0x7b1   :  { %28228 = vmatprep.subr.mxu1 %v33581_v34  ;;  %28238 = vmatprep.subr.mxu0 %v33682_v62  ;;  %v22638_v22 = vand.u32 4294901760, %v22637_v36 }
 0x7b2   :  { %28196 = vmatmul.mubr.f32.gmra.mxu1 %v33631_v16  ;;  %28206 = vmatmul.mubr.f32.gmra.mxu0 %v33649_v23 }
 0x7b3   :  { %28212 = vmatprep.mubr.f32.mxu1 %v22013_v11  ;;  %28222 = vmatprep.mubr.f32.mxu0 %v33587_v57  ;;  %v22647_v11 = vsub.f32 %v33709_v5, %v22646_v63 }
 0x7b5   :  { %v22648_v4 = vand.u32 4294901760, %v22647_v11 }
 0x7b6   :  { %28213 = vmatmul.mubr.f32.vlgmr.msra.gmra.mxu1 %v22023_v10  ;;  %28223 = vmatmul.mubr.f32.vlgmr.msra.gmra.mxu0 %v33597_v0  ;;  %v22707_v10 = vand.u32 4294901760, %v22706_v31 }
 0x7b7   :  { %28229 = vmatpush3.msra.mxu1 %v33581_v34  ;;  %28239 = vmatpush3.msra.mxu0 %v33682_v62  ;;  %v22666_v34 = vand.u32 4294901760, %v33738_v49 }
 0x7b8   :  { %28230 = vmatprep.subr.mxu1 %v33615_v50  ;;  %28240 = vmatprep.subr.mxu0 %v33704_v28 }
 0x7b9   :  { %28231 = vmatpush3.msra.mxu1 %v33615_v50  ;;  %28241 = vmatpush3.msra.mxu0 %v33704_v28  ;;  %v22713_v50 = vsub.f32 %v22711_v18, %v22712_v56  ;;  %v22667_v24 = vsub.f32 %v33738_v49, %v22666_v34 }
 0x7ba   :  { %28215 = vmatprep.mubr.f32.mxu1 %v22033_v41  ;;  %28225 = vmatprep.mubr.f32.mxu0 %v33622_v39  ;;  %v22658_v41 = vand.u32 4294901760, %v22657_v6 }
 0x7bb   :  { %28248 = vmatprep.subr.mxu1 %v22707_v10  ;;  %28258 = vmatprep.subr.mxu0 %v22704_v30  ;;  %v22714_v23 = vand.u32 4294901760, %v22713_v50  ;;  %v22668_v33 = vand.u32 4294901760, %v22667_v24  ;;  %v23785_v50 = vld [vmem:[#allocation7 + $0xb0] sm:$0xff] }
 0x7bc   :  { %28216 = vmatmul.mubr.f32.gmra.mxu1 %v22043_v45  ;;  %28226 = vmatmul.mubr.f32.gmra.mxu0 %v33631_v16  ;;  %v23160_v45 = vld [vmem:[#allocation7 + $0x80] sm:$0xff] }
 0x7bd   :  { %28232 = vmatprep.mubr.f32.mxu1 %v33587_v57  ;;  %28242 = vmatprep.mubr.f32.mxu0 %v22638_v22  ;;  %v23165_v57 = vsel %vm20712_vm11, %v23160_v45, 0  ;;  %v23794_v45 = vsel %vm20712_vm11, %v23785_v50, 0 }
 0x7be   :  { %v33775_v13 = vand.u32 4294901760, %v23165_v57 }
 0x7c0   :  { %28233 = vmatmul.mubr.f32.vlgmr.msra.gmra.mxu1 %v33597_v0  ;;  %28243 = vmatmul.mubr.f32.vlgmr.msra.gmra.mxu0 %v22648_v4  ;;  %v33773_v0 = vand.u32 4294901760, %v33385_v47  ;;  %v33787_v52 = vsub.f32 %v23165_v57, %v33775_v13 }
 0x7c1   :  { %28249 = vmatpush3.msra.mxu1 %v22707_v10  ;;  %28259 = vmatpush3.msra.mxu0 %v22704_v30  ;;  %v27150_v10 = vld [vmem:[#allocation10 + $0x5] ss:$0 sm:$0xff] }
 0x7c2   :  { %28250 = vmatprep.subr.mxu1 %v22714_v23  ;;  %28260 = vmatprep.subr.mxu0 %v22711_v18  ;;  %v23313_v20 = vsub.f32 %v33385_v47, %v33773_v0  ;;  %v23245_v8 = vand.u32 4294901760, %v33787_v52  ;;  %v23780_v6 = vmul.f32 %v27150_v10, %v33465_v55 }
 0x7c3   :  { %28251 = vmatpush3.msra.mxu1 %v22714_v23  ;;  %28261 = vmatpush3.msra.mxu0 %v22711_v18 }
 0x7c4   :  { %28235 = vmatprep.mubr.f32.mxu1 %v33622_v39  ;;  %28245 = vmatprep.mubr.f32.mxu0 %v22658_v41  ;;  %v23168_v39 = vsel %vm20712_vm11, %v23161_v53, 0  ;;  %v33805_v15 = vand.u32 4294901760, %v23313_v20  ;;  %v23246_v18 = vsub.f32 %v33787_v52, %v23245_v8  ;;  %v33891_v53 = vand.u32 4294901760, %v23794_v45 }
 0x7c5   :  { %28268 = vmatprep.subr.mxu1 %v33682_v62  ;;  %28278 = vmatprep.subr.mxu0 %v33715_v38  ;;  %v33780_v48 = vand.u32 4294901760, %v23168_v39 }
 0x7c6   :  { %28236 = vmatmul.mubr.f32.gmra.mxu1 %v33631_v16  ;;  %28246 = vmatmul.mubr.f32.gmra.mxu0 %v22668_v33  ;;  %v23163_v16 = vld [vmem:[#allocation7 + $0x98] sm:$0xff]  ;;  %v23247_v31 = vand.u32 4294901760, %v23246_v18  ;;  %v33884_v33 = vand.u32 4294901760, %v23780_v6 }
 0x7c7   :  { %28252 = vmatprep.mubr.f32.mxu1 %v33686_v2  ;;  %28262 = vmatprep.mubr.f32.mxu0 %v33698_v54  ;;  %v23174_v12 = vsel %vm20712_vm11, %v23163_v16, 0  ;;  %v33799_v47 = vsub.f32 %v23168_v39, %v33780_v48 }
 0x7c8   :  { %v33810_v25 = vand.u32 4294901760, %v23174_v12 }
 0x7c9   :  { %v23255_v30 = vand.u32 4294901760, %v33799_v47 }
 0x7ca   :  { %28253 = vmatmul.mubr.f32.vlgmr.msra.gmra.mxu1 %v33692_v32  ;;  %28263 = vmatmul.mubr.f32.vlgmr.msra.gmra.mxu0 %v33709_v5  ;;  %v33829_v54 = vsub.f32 %v23174_v12, %v33810_v25  ;;  %v23265_v5 = vand.u32 4294901760, %v33819_v27  ;;  %v33908_v12 = vsub.f32 %v23794_v45, %v33891_v53 }
 0x7cb   :  { %28269 = vmatpush3.msra.mxu1 %v33682_v62  ;;  %28279 = vmatpush3.msra.mxu0 %v33715_v38  ;;  %v23315_v38 = vsub.f32 %v23313_v20, %v33805_v15  ;;  %v23256_v17 = vsub.f32 %v33799_v47, %v23255_v30 }
 0x7cc   :  { %28270 = vmatprep.subr.mxu1 %v33704_v28  ;;  %28280 = vmatprep.subr.mxu0 %v22712_v56  ;;  %v23266_v11 = vsub.f32 %v33819_v27, %v23265_v5 }
 0x7cd   :  { %28271 = vmatpush3.msra.mxu1 %v33704_v28  ;;  %28281 = vmatpush3.msra.mxu0 %v22712_v56  ;;  %v23257_v36 = vand.u32 4294901760, %v23256_v17 }
 0x7ce   :  { %28255 = vmatprep.mubr.f32.mxu1 %v33711_v1  ;;  %28265 = vmatprep.mubr.f32.mxu0 %v33728_v29  ;;  %v23267_v56 = vand.u32 4294901760, %v23266_v11  ;;  %v24408_v11 = vld [vmem:[#allocation7 + $0xd0] sm:$0xff] }
 0x7cf   :  { %28288 = vmatprep.subr.mxu1 %v33682_v62  ;;  %28298 = vmatprep.subr.mxu0 %v33773_v0 }
 0x7d0   :  { %28256 = vmatmul.mubr.f32.gmra.mxu1 %v33720_v21  ;;  %28266 = vmatmul.mubr.f32.gmra.mxu0 %v33738_v49 }
 0x7d1   :  { %28272 = vmatprep.mubr.f32.mxu1 %v22636_v37  ;;  %28282 = vmatprep.mubr.f32.mxu0 %v33686_v2  ;;  %v23321_v37 = vand.u32 4294901760, %v23320_v3 }
 0x7d4   :  { %28273 = vmatmul.mubr.f32.vlgmr.msra.gmra.mxu1 %v22646_v63  ;;  %28283 = vmatmul.mubr.f32.vlgmr.msra.gmra.mxu0 %v33692_v32  ;;  %v23316_v63 = vand.u32 4294901760, %v23315_v38 }
 0x7d5   :  { %28289 = vmatpush3.msra.mxu1 %v33682_v62  ;;  %28299 = vmatpush3.msra.mxu0 %v33773_v0  ;;  %v23275_v62 = vand.u32 4294901760, %v33829_v54 }
 0x7d6   :  { %28290 = vmatprep.subr.mxu1 %v33704_v28  ;;  %28300 = vmatprep.subr.mxu0 %v33796_v40 }
 0x7d7   :  { %28291 = vmatpush3.msra.mxu1 %v33704_v28  ;;  %28301 = vmatpush3.msra.mxu0 %v33796_v40  ;;  %v23322_v28 = vsub.f32 %v23320_v3, %v23321_v37  ;;  %v23276_v29 = vsub.f32 %v33829_v54, %v23275_v62 }
 0x7d8   :  { %28275 = vmatprep.mubr.f32.mxu1 %v22656_v44  ;;  %28285 = vmatprep.mubr.f32.mxu0 %v33711_v1  ;;  %v23783_v44 = vld [vmem:[#allocation7 + $0xa0] sm:$0xff] }
 0x7d9   :  { %28308 = vmatprep.subr.mxu1 %v23316_v63  ;;  %28318 = vmatprep.subr.mxu0 %v23313_v20  ;;  %v23323_v49 = vand.u32 4294901760, %v23322_v28  ;;  %v23277_v22 = vand.u32 4294901760, %v23276_v29 }
 0x7da   :  { %28276 = vmatmul.mubr.f32.gmra.mxu1 %v22666_v34  ;;  %28286 = vmatmul.mubr.f32.gmra.mxu0 %v33720_v21  ;;  %v23781_v34 = vmul.f32 %v27150_v10, %v33478_v60  ;;  %v24417_v10 = vsel %vm20712_vm11, %v24408_v11, 0 }
 0x7db   :  { %28292 = vmatprep.mubr.f32.mxu1 %v33686_v2  ;;  %28302 = vmatprep.mubr.f32.mxu0 %v23247_v31  ;;  %v23788_v2 = vsel %vm20712_vm11, %v23783_v44, 0  ;;  %v27151_v31 = vld [vmem:[#allocation10 + $0x6] ss:$0 sm:$0xff] }
 0x7dc   :  { %v33862_v4 = vand.u32 4294901760, %v23781_v34  ;;  %v33866_v60 = vand.u32 4294901760, %v23788_v2  ;;  %v24403_v29 = vmul.f32 %v27151_v31, %v33486_v26 }
 0x7de   :  { %28293 = vmatmul.mubr.f32.vlgmr.msra.gmra.mxu1 %v33692_v32  ;;  %28303 = vmatmul.mubr.f32.vlgmr.msra.gmra.mxu0 %v23257_v36  ;;  %v23784_v32 = vld [vmem:[#allocation7 + $0xa8] sm:$0xff]  ;;  %v23936_v23 = vsub.f32 %v23781_v34, %v33862_v4  ;;  %v33878_v41 = vsub.f32 %v23788_v2, %v33866_v60  ;;  %v24404_v36 = vmul.f32 %v27151_v31, %v33509_v46  ;;  %v33980_v2 = vand.u32 4294901760, %v24417_v10 }
 0x7df   :  { %28309 = vmatpush3.msra.mxu1 %v23316_v63  ;;  %28319 = vmatpush3.msra.mxu0 %v23313_v20  ;;  %v23943_v20 = vsub.f32 %v23780_v6, %v33884_v33  ;;  %v24406_v63 = vld [vmem:[#allocation7 + $0xc0] sm:$0xff] }
 0x7e0   :  { %28310 = vmatprep.subr.mxu1 %v23323_v49  ;;  %28320 = vmatprep.subr.mxu0 %v23320_v3  ;;  %v33895_v39 = vand.u32 4294901760, %v23936_v23  ;;  %v23868_v42 = vand.u32 4294901760, %v33878_v41  ;;  %v33951_v28 = vand.u32 4294901760, %v24404_v36 }
 0x7e1   :  { %28311 = vmatpush3.msra.mxu1 %v23323_v49  ;;  %28321 = vmatpush3.msra.mxu0 %v23320_v3  ;;  %v23944_v38 = vand.u32 4294901760, %v23943_v20 }
 0x7e2   :  { %28295 = vmatprep.mubr.f32.mxu1 %v33711_v1  ;;  %28305 = vmatprep.mubr.f32.mxu0 %v23267_v56  ;;  %v23791_v1 = vsel %vm20712_vm11, %v23784_v32, 0  ;;  %v23869_v3 = vsub.f32 %v33878_v41, %v23868_v42  ;;  %v24559_v56 = vsub.f32 %v24404_v36, %v33951_v28 }
 0x7e3   :  { %28328 = vmatprep.subr.mxu1 %v33773_v0  ;;  %28338 = vmatprep.subr.mxu0 %v33805_v15  ;;  %v33872_v24 = vand.u32 4294901760, %v23791_v1 }
 0x7e4   :  { %28296 = vmatmul.mubr.f32.gmra.mxu1 %v33720_v21  ;;  %28306 = vmatmul.mubr.f32.gmra.mxu0 %v23277_v22  ;;  %v23786_v21 = vld [vmem:[#allocation7 + $0xb8] sm:$0xff]  ;;  %v23870_v18 = vand.u32 4294901760, %v23869_v3  ;;  %v33973_v22 = vand.u32 4294901760, %v24403_v29  ;;  %v33984_v32 = vand.u32 4294901760, %v24559_v56 }
 0x7e5   :  { %28312 = vmatprep.mubr.f32.mxu1 %v33775_v13  ;;  %28322 = vmatprep.mubr.f32.mxu0 %v33787_v52  ;;  %v23797_v55 = vsel %vm20712_vm11, %v23786_v21, 0  ;;  %v33889_v57 = vsub.f32 %v23791_v1, %v33872_v24 }
 0x7e6   :  { %v33900_v16 = vand.u32 4294901760, %v23797_v55  ;;  %v24566_v6 = vsub.f32 %v24403_v29, %v33973_v22  ;;  %v24561_v45 = vsub.f32 %v24559_v56, %v33984_v32 }
 0x7e7   :  { %v23878_v61 = vand.u32 4294901760, %v33889_v57 }
 0x7e8   :  { %28313 = vmatmul.mubr.f32.vlgmr.msra.gmra.mxu1 %v33780_v48  ;;  %28323 = vmatmul.mubr.f32.vlgmr.msra.gmra.mxu0 %v33799_v47  ;;  %v33918_v52 = vsub.f32 %v23797_v55, %v33900_v16  ;;  %v23888_v47 = vand.u32 4294901760, %v33908_v12 }
 0x7e9   :  { %28329 = vmatpush3.msra.mxu1 %v33773_v0  ;;  %28339 = vmatpush3.msra.mxu0 %v33805_v15  ;;  %v23938_v15 = vsub.f32 %v23936_v23, %v33895_v39 }
 0x7ea   :  { %28330 = vmatprep.subr.mxu1 %v33796_v40  ;;  %28340 = vmatprep.subr.mxu0 %v23321_v37 }
 0x7eb   :  { %28331 = vmatpush3.msra.mxu1 %v33796_v40  ;;  %28341 = vmatpush3.msra.mxu0 %v23321_v37  ;;  %v23889_v37 = vsub.f32 %v33908_v12, %v23888_v47 }
 0x7ec   :  { %28315 = vmatprep.mubr.f32.mxu1 %v33801_v7  ;;  %28325 = vmatprep.mubr.f32.mxu0 %v33819_v27 }
 0x7ed   :  { %28348 = vmatprep.subr.mxu1 %v33773_v0  ;;  %28358 = vmatprep.subr.mxu0 %v33862_v4 }
 0x7ee   :  { %28316 = vmatmul.mubr.f32.gmra.mxu1 %v33810_v25  ;;  %28326 = vmatmul.mubr.f32.gmra.mxu0 %v33829_v54 }
 0x7ef   :  { %28332 = vmatprep.mubr.f32.mxu1 %v23245_v8  ;;  %28342 = vmatprep.mubr.f32.mxu0 %v33775_v13  ;;  %v23879_v8 = vsub.f32 %v33889_v57, %v23878_v61 }
 0x7f1   :  { %v23880_v17 = vand.u32 4294901760, %v23879_v8 }
 0x7f2   :  { %28333 = vmatmul.mubr.f32.vlgmr.msra.gmra.mxu1 %v23255_v30  ;;  %28343 = vmatmul.mubr.f32.vlgmr.msra.gmra.mxu0 %v33780_v48  ;;  %v23939_v30 = vand.u32 4294901760, %v23938_v15 }
 0x7f3   :  { %28349 = vmatpush3.msra.mxu1 %v33773_v0  ;;  %28359 = vmatpush3.msra.mxu0 %v33862_v4  ;;  %v23898_v0 = vand.u32 4294901760, %v33918_v52 }
 0x7f4   :  { %28350 = vmatprep.subr.mxu1 %v33796_v40  ;;  %28360 = vmatprep.subr.mxu0 %v33884_v33 }
 0x7f5   :  { %28351 = vmatpush3.msra.mxu1 %v33796_v40  ;;  %28361 = vmatpush3.msra.mxu0 %v33884_v33  ;;  %v23945_v40 = vsub.f32 %v23943_v20, %v23944_v38  ;;  %v23899_v27 = vsub.f32 %v33918_v52, %v23898_v0 }
 0x7f6   :  { %28335 = vmatprep.mubr.f32.mxu1 %v23265_v5  ;;  %28345 = vmatprep.mubr.f32.mxu0 %v33801_v7  ;;  %v23890_v5 = vand.u32 4294901760, %v23889_v37 }
 0x7f7   :  { %28368 = vmatprep.subr.mxu1 %v23939_v30  ;;  %28378 = vmatprep.subr.mxu0 %v23936_v23  ;;  %v23946_v54 = vand.u32 4294901760, %v23945_v40 }
 0x7f8   :  { %28336 = vmatmul.mubr.f32.gmra.mxu1 %v23275_v62  ;;  %28346 = vmatmul.mubr.f32.gmra.mxu0 %v33810_v25  ;;  %v23900_v62 = vand.u32 4294901760, %v23899_v27 }
 0x7f9   :  { %28352 = vmatprep.mubr.f32.mxu1 %v33775_v13  ;;  %28362 = vmatprep.mubr.f32.mxu0 %v23870_v18  ;;  %v24411_v13 = vsel %vm20712_vm11, %v24406_v63, 0 }
 0x7fa   :  { %v33955_v46 = vand.u32 4294901760, %v24411_v13 }
 0x7fc   :  { %28353 = vmatmul.mubr.f32.vlgmr.msra.gmra.mxu1 %v33780_v48  ;;  %28363 = vmatmul.mubr.f32.vlgmr.msra.gmra.mxu0 %v23880_v17  ;;  %v24407_v48 = vld [vmem:[#allocation7 + $0xc8] sm:$0xff]  ;;  %v33967_v44 = vsub.f32 %v24411_v13, %v33955_v46  ;;  %v25031_v17 = vld [vmem:[#allocation7 + $0xf0] sm:$0xff] }
 0x7fd   :  { %28369 = vmatpush3.msra.mxu1 %v23939_v30  ;;  %28379 = vmatpush3.msra.mxu0 %v23936_v23  ;;  %v33997_v23 = vsub.f32 %v24417_v10, %v33980_v2 }
 0x7fe   :  { %28370 = vmatprep.subr.mxu1 %v23946_v54  ;;  %28380 = vmatprep.subr.mxu0 %v23943_v20  ;;  %v24491_v1 = vand.u32 4294901760, %v33967_v44 }
 0x7ff   :  { %28371 = vmatpush3.msra.mxu1 %v23946_v54  ;;  %28381 = vmatpush3.msra.mxu0 %v23943_v20  ;;  %v24562_v20 = vand.u32 4294901760, %v24561_v45 }
 0x800   :  { %28355 = vmatprep.mubr.f32.mxu1 %v33801_v7  ;;  %28365 = vmatprep.mubr.f32.mxu0 %v23890_v5  ;;  %v24414_v7 = vsel %vm20712_vm11, %v24407_v48, 0  ;;  %v24492_v55 = vsub.f32 %v33967_v44, %v24491_v1  ;;  %v25040_v5 = vsel %vm20712_vm11, %v25031_v17, 0 }
 0x801   :  { %28388 = vmatprep.subr.mxu1 %v33862_v4  ;;  %28398 = vmatprep.subr.mxu0 %v33895_v39  ;;  %v33961_v49 = vand.u32 4294901760, %v24414_v7  ;;  %v34071_v36 = vand.u32 4294901760, %v25040_v5 }
 0x802   :  { %28356 = vmatmul.mubr.f32.gmra.mxu1 %v33810_v25  ;;  %28366 = vmatmul.mubr.f32.gmra.mxu0 %v23900_v62  ;;  %v24409_v25 = vld [vmem:[#allocation7 + $0xd8] sm:$0xff] }
 0x803   :  { %28372 = vmatprep.mubr.f32.mxu1 %v33866_v60  ;;  %28382 = vmatprep.mubr.f32.mxu0 %v33878_v41  ;;  %v24420_v26 = vsel %vm20712_vm11, %v24409_v25, 0  ;;  %v33978_v34 = vsub.f32 %v24414_v7, %v33961_v49 }
 0x804   :  { %v33989_v50 = vand.u32 4294901760, %v24420_v26 }
 0x805   :  { %v24501_v21 = vand.u32 4294901760, %v33978_v34 }
 0x806   :  { %28373 = vmatmul.mubr.f32.vlgmr.msra.gmra.mxu1 %v33872_v24  ;;  %28383 = vmatmul.mubr.f32.vlgmr.msra.gmra.mxu0 %v33889_v57  ;;  %v34007_v41 = vsub.f32 %v24420_v26, %v33989_v50  ;;  %v24511_v57 = vand.u32 4294901760, %v33997_v23 }
 0x807   :  { %28389 = vmatpush3.msra.mxu1 %v33862_v4  ;;  %28399 = vmatpush3.msra.mxu0 %v33895_v39  ;;  %v24502_v39 = vsub.f32 %v33978_v34, %v24501_v21 }
 0x808   :  { %28390 = vmatprep.subr.mxu1 %v33884_v33  ;;  %28400 = vmatprep.subr.mxu0 %v23944_v38  ;;  %v24512_v3 = vsub.f32 %v33997_v23, %v24511_v57 }
 0x809   :  { %28391 = vmatpush3.msra.mxu1 %v33884_v33  ;;  %28401 = vmatpush3.msra.mxu0 %v23944_v38  ;;  %v24503_v15 = vand.u32 4294901760, %v24502_v39  ;;  %v25029_v38 = vld [vmem:[#allocation7 + $0xe0] sm:$0xff] }
 0x80a   :  { %28375 = vmatprep.mubr.f32.mxu1 %v33891_v53  ;;  %28385 = vmatprep.mubr.f32.mxu0 %v33908_v12  ;;  %v24513_v8 = vand.u32 4294901760, %v24512_v3 }
 0x80b   :  { %28408 = vmatprep.subr.mxu1 %v33862_v4  ;;  %28418 = vmatprep.subr.mxu0 %v33951_v28 }
 0x80c   :  { %28376 = vmatmul.mubr.f32.gmra.mxu1 %v33900_v16  ;;  %28386 = vmatmul.mubr.f32.gmra.mxu0 %v33918_v52 }
 0x80d   :  { %28392 = vmatprep.mubr.f32.mxu1 %v23868_v42  ;;  %28402 = vmatprep.mubr.f32.mxu0 %v33866_v60  ;;  %v24567_v42 = vand.u32 4294901760, %v24566_v6 }
 0x810   :  { %28393 = vmatmul.mubr.f32.vlgmr.msra.gmra.mxu1 %v23878_v61  ;;  %28403 = vmatmul.mubr.f32.vlgmr.msra.gmra.mxu0 %v33872_v24  ;;  %v24493_v61 = vand.u32 4294901760, %v24492_v55 }
 0x811   :  { %28409 = vmatpush3.msra.mxu1 %v33862_v4  ;;  %28419 = vmatpush3.msra.mxu0 %v33951_v28  ;;  %v24521_v4 = vand.u32 4294901760, %v34007_v41 }
 0x812   :  { %28410 = vmatprep.subr.mxu1 %v33884_v33  ;;  %28420 = vmatprep.subr.mxu0 %v33973_v22 }
 0x813   :  { %28411 = vmatpush3.msra.mxu1 %v33884_v33  ;;  %28421 = vmatpush3.msra.mxu0 %v33973_v22  ;;  %v24568_v33 = vsub.f32 %v24566_v6, %v24567_v42  ;;  %v24522_v12 = vsub.f32 %v34007_v41, %v24521_v4 }
 0x814   :  { %28395 = vmatprep.mubr.f32.mxu1 %v23888_v47  ;;  %28405 = vmatprep.mubr.f32.mxu0 %v33891_v53  ;;  %v27152_v47 = vld [vmem:[#allocation10 + $0x7] ss:$0 sm:$0xff] }
 0x815   :  { %28428 = vmatprep.subr.mxu1 %v24562_v20  ;;  %28438 = vmatprep.subr.mxu0 %v24559_v56  ;;  %v24569_v52 = vand.u32 4294901760, %v24568_v33  ;;  %v24523_v30 = vand.u32 4294901760, %v24522_v12  ;;  %v25027_v18 = vmul.f32 %v27152_v47, %v33543_v59  ;;  %v25026_v40 = vmul.f32 %v27152_v47, %v33520_v58 }
 0x816   :  { %28396 = vmatmul.mubr.f32.gmra.mxu1 %v23898_v0  ;;  %28406 = vmatmul.mubr.f32.gmra.mxu0 %v33900_v16 }
 0x817   :  { %28412 = vmatprep.mubr.f32.mxu1 %v33866_v60  ;;  %28422 = vmatprep.mubr.f32.mxu0 %v24493_v61  ;;  %v25034_v60 = vsel %vm20712_vm11, %v25029_v38, 0  ;;  %v34040_v0 = vand.u32 4294901760, %v25027_v18  ;;  %v34064_v31 = vand.u32 4294901760, %v25026_v40 }
 0x818   :  { %v34044_v59 = vand.u32 4294901760, %v25034_v60 }
 0x819   :  { %v34053_v27 = vsub.f32 %v25027_v18, %v34040_v0  ;;  %v25189_v29 = vsub.f32 %v25026_v40, %v34064_v31 }
 0x81a   :  { %28413 = vmatmul.mubr.f32.vlgmr.msra.gmra.mxu1 %v33872_v24  ;;  %28423 = vmatmul.mubr.f32.vlgmr.msra.gmra.mxu0 %v24503_v15  ;;  %v25030_v24 = vld [vmem:[#allocation7 + $0xe8] sm:$0xff]  ;;  %v34058_v54 = vsub.f32 %v25034_v60, %v34044_v59 }
 0x81b   :  { %28429 = vmatpush3.msra.mxu1 %v24562_v20  ;;  %28439 = vmatpush3.msra.mxu0 %v24559_v56  ;;  %v34076_v13 = vand.u32 4294901760, %v34053_v27  ;;  %v34091_v56 = vsub.f32 %v25040_v5, %v34071_v36 }
 0x81c   :  { %28430 = vmatprep.subr.mxu1 %v24569_v52  ;;  %28440 = vmatprep.subr.mxu0 %v24566_v6  ;;  %v25114_v48 = vand.u32 4294901760, %v34058_v54 }
 0x81d   :  { %28431 = vmatpush3.msra.mxu1 %v24569_v52  ;;  %28441 = vmatpush3.msra.mxu0 %v24566_v6  ;;  %v25184_v26 = vsub.f32 %v34053_v27, %v34076_v13  ;;  %v34113_v6 = vand.u32 4294901760, %v25189_v29 }
 0x81e   :  { %28415 = vmatprep.mubr.f32.mxu1 %v33891_v53  ;;  %28425 = vmatprep.mubr.f32.mxu0 %v24513_v8  ;;  %v25037_v53 = vsel %vm20712_vm11, %v25030_v24, 0 }
 0x81f   :  { %28448 = vmatprep.subr.mxu1 %v33951_v28  ;;  %28458 = vmatprep.subr.mxu0 %v33984_v32  ;;  %v34050_v37 = vand.u32 4294901760, %v25037_v53  ;;  %v25191_v3 = vsub.f32 %v25189_v29, %v34113_v6 }
 0x820   :  { %28416 = vmatmul.mubr.f32.gmra.mxu1 %v33900_v16  ;;  %28426 = vmatmul.mubr.f32.gmra.mxu0 %v24523_v30  ;;  %v25032_v16 = vld [vmem:[#allocation7 + $0xf8] sm:$0xff]  ;;  %v27153_v30 = vld [vmem:[#allocation10 + $0x8] ss:$0 sm:$0xff] }
 0x821   :  { %28432 = vmatprep.mubr.f32.mxu1 %v33955_v46  ;;  %28442 = vmatprep.mubr.f32.mxu0 %v33967_v44  ;;  %v25043_v58 = vsel %vm20712_vm11, %v25032_v16, 0  ;;  %v34069_v62 = vsub.f32 %v25037_v53, %v34050_v37  ;;  %v25650_v60 = vmul.f32 %v27153_v30, %v33565_v51 }
 0x822   :  { %v34083_v11 = vand.u32 4294901760, %v25043_v58 }
 0x823   :  { %v25124_v25 = vand.u32 4294901760, %v34069_v62 }
 0x824   :  { %28433 = vmatmul.mubr.f32.vlgmr.msra.gmra.mxu1 %v33961_v49  ;;  %28443 = vmatmul.mubr.f32.vlgmr.msra.gmra.mxu0 %v33978_v34  ;;  %v34102_v44 = vsub.f32 %v25043_v58, %v34083_v11 }
 0x825   :  { %28449 = vmatpush3.msra.mxu1 %v33951_v28  ;;  %28459 = vmatpush3.msra.mxu0 %v33984_v32  ;;  %v25115_v32 = vsub.f32 %v34058_v54, %v25114_v48  ;;  %v25125_v34 = vsub.f32 %v34069_v62, %v25124_v25 }
 0x826   :  { %28450 = vmatprep.subr.mxu1 %v33973_v22  ;;  %28460 = vmatprep.subr.mxu0 %v24567_v42  ;;  %v25144_v20 = vand.u32 4294901760, %v34102_v44 }
 0x827   :  { %28451 = vmatpush3.msra.mxu1 %v33973_v22  ;;  %28461 = vmatpush3.msra.mxu0 %v24567_v42  ;;  %v25116_v39 = vand.u32 4294901760, %v25115_v32 }
 0x828   :  { %v28064_v63 = vpop.f32.mrf.mxu0  ;;  %28435 = vmatprep.mubr.f32.mxu1 %v33980_v2  ;;  %28445 = vmatprep.mubr.f32.mxu0 %v33997_v23 }
 0x829   :  { %28468 = vmatprep.subr.mxu1 %v33951_v28  ;;  %28478 = vmatprep.subr.mxu0 %v34040_v0 }
 0x82a   :  { %v34079_v7 = vpop.f32.mrf.mxu0  ;;  %28436 = vmatmul.mubr.f32.gmra.mxu1 %v33989_v50  ;;  %28446 = vmatmul.mubr.f32.gmra.mxu0 %v34007_v41 }
 0x82b   :  { %28452 = vmatprep.mubr.f32.mxu1 %v24491_v1  ;;  %28462 = vmatprep.mubr.f32.mxu0 %v33955_v46 }
 0x82c   :  { %v28067_v10 = vpop.f32.mrf.mxu0 }
 0x82e   :  { %28453 = vmatmul.mubr.f32.vlgmr.msra.gmra.mxu1 %v24501_v21  ;;  %28463 = vmatmul.mubr.f32.vlgmr.msra.gmra.mxu0 %v33961_v49  ;;  %v34104_v1 = vpop.f32.mrf.mxu0  ;;  %v25134_v21 = vand.u32 4294901760, %v34091_v56 }
 0x82f   :  { %28469 = vmatpush3.msra.mxu1 %v33951_v28  ;;  %28479 = vmatpush3.msra.mxu0 %v34040_v0  ;;  %v25185_v28 = vand.u32 4294901760, %v25184_v26 }
 0x830   :  { %28470 = vmatprep.subr.mxu1 %v33973_v22  ;;  %28480 = vmatprep.subr.mxu0 %v34064_v31  ;;  %v28074_v45 = vpop.f32.mrf.mxu1  ;;  %v28084_v55 = vpop.f32.mrf.mxu0  ;;  %v25135_v23 = vsub.f32 %v34091_v56, %v25134_v21 }
 0x831   :  { %28471 = vmatpush3.msra.mxu1 %v33973_v22  ;;  %28481 = vmatpush3.msra.mxu0 %v34064_v31  ;;  %v20916_v42 = vadd.f32 %v28074_v45, %v28064_v63  ;;  %v25126_v22 = vand.u32 4294901760, %v25125_v34  ;;  %v34142_v63 = vand.u32 4294901760, %v25650_v60 }
 0x832   :  { %28455 = vmatprep.mubr.f32.mxu1 %v24511_v57  ;;  %28465 = vmatprep.mubr.f32.mxu0 %v33980_v2  ;;  %v20909_v61 = vpop.f32.mrf.mxu1  ;;  %v21003_v15 = vpop.f32.mrf.mxu0  ;;  %v25145_v57 = vsub.f32 %v34102_v44, %v25144_v20  ;;  %v25136_v8 = vand.u32 4294901760, %v25135_v23 }
 0x833   :  { %28488 = vmatprep.subr.mxu1 %v25185_v28  ;;  %28498 = vmatprep.subr.mxu0 %v34053_v27  ;;  %v21011_v33 = vadd.f32 %v28084_v55, %v20916_v42  ;;  %v25655_v42 = vld [vmem:[#allocation7 + $0x118] sm:$0xff] }
 0x834   :  { %28456 = vmatmul.mubr.f32.gmra.mxu1 %v24521_v4  ;;  %28466 = vmatmul.mubr.f32.gmra.mxu0 %v33989_v50  ;;  %v25192_v4 = vand.u32 4294901760, %v25191_v3  ;;  %v25146_v24 = vand.u32 4294901760, %v25145_v57  ;;  %v25666_v23 = vsel %vm20712_vm11, %v25655_v42, 0 }
 0x835   :  { %28472 = vmatprep.mubr.f32.mxu1 %v33955_v46  ;;  %28482 = vmatprep.mubr.f32.mxu0 %v25116_v39  ;;  %v25652_v46 = vld [vmem:[#allocation7 + $0x100] sm:$0xff] }
 0x836   :  { %v28077_v12 = vpop.f32.mrf.mxu1  ;;  %v28087_v52 = vpop.f32.mrf.mxu0  ;;  %v25657_v16 = vsel %vm20712_vm11, %v25652_v46, 0 }
 0x837   :  { %v20928_v41 = vadd.f32 %v28077_v12, %v28067_v10  ;;  %v25654_v10 = vld [vmem:[#allocation7 + $0x110] sm:$0xff] }
 0x838   :  { %28473 = vmatmul.mubr.f32.vlgmr.msra.gmra.mxu1 %v33961_v49  ;;  %28483 = vmatmul.mubr.f32.vlgmr.msra.gmra.mxu0 %v25126_v22  ;;  %v20921_v38 = vpop.f32.mrf.mxu1  ;;  %v21017_v47 = vpop.f32.mrf.mxu0  ;;  %v20910_v49 = vadd.f32 %v20909_v61, %v34079_v7 }
 0x839   :  { %28489 = vmatpush3.msra.mxu1 %v25185_v28  ;;  %28499 = vmatpush3.msra.mxu0 %v34053_v27  ;;  %v21025_v18 = vadd.f32 %v28087_v52, %v20928_v41  ;;  %v25653_v27 = vld [vmem:[#allocation7 + $0x108] sm:$0xff]  ;;  %v20922_v34 = vadd.f32 %v20921_v38, %v34104_v1  ;;  %v25649_v28 = vmul.f32 %v27153_v30, %v33551_v35  ;;  %v25663_v35 = vsel %vm20712_vm11, %v25654_v10, 0 }
 0x83a   :  { %28490 = vmatprep.subr.mxu1 %v25192_v4  ;;  %28500 = vmatprep.subr.mxu0 %v25189_v29  ;;  %v28094_v53 = vpop.f32.mrf.mxu1  ;;  %v28104_v17 = vpop.f32.mrf.mxu0  ;;  %v25660_v7 = vsel %vm20712_vm11, %v25653_v27, 0 }
 0x83b   :  { %28491 = vmatpush3.msra.mxu1 %v25192_v4  ;;  %28501 = vmatpush3.msra.mxu0 %v25189_v29  ;;  %v21108_v40 = vadd.f32 %v28094_v53, %v21011_v33  ;;  %v21004_v29 = vadd.f32 %v21003_v15, %v20910_v49  ;;  %v34157_v39 = vand.u32 4294901760, %v25660_v7  ;;  %v21018_v57 = vadd.f32 %v21017_v47, %v20922_v34 }
 0x83c   :  { %28475 = vmatprep.mubr.f32.mxu1 %v33980_v2  ;;  %28485 = vmatprep.mubr.f32.mxu0 %v25136_v8  ;;  %v21099_v5 = vpop.f32.mrf.mxu1  ;;  %v21200_v58 = vpop.f32.mrf.mxu0  ;;  %v34147_v2 = vand.u32 4294901760, %v25657_v16  ;;  %v34170_v52 = vand.u32 4294901760, %v25649_v28  ;;  %v34180_v8 = vand.u32 4294901760, %v25663_v35 }
 0x83d   :  { %28508 = vmatprep.subr.mxu1 %v34040_v0  ;;  %28518 = vmatprep.subr.mxu0 %v34076_v13  ;;  %v21207_v51 = vadd.f32 %v28104_v17, %v21108_v40  ;;  %v21100_v45 = vadd.f32 %v21099_v5, %v21004_v29  ;;  %v34178_v4 = vsub.f32 %v25660_v7, %v34157_v39 }
 0x83e   :  { %28476 = vmatmul.mubr.f32.gmra.mxu1 %v33989_v50  ;;  %28486 = vmatmul.mubr.f32.gmra.mxu0 %v25146_v24  ;;  %v34153_v50 = vsub.f32 %v25650_v60, %v34142_v63  ;;  %v34162_v1 = vsub.f32 %v25657_v16, %v34147_v2  ;;  %v34187_v60 = vand.u32 4294901760, %v25666_v23  ;;  %v34193_v53 = vsub.f32 %v25649_v28, %v34170_v52 }
 0x83f   :  { %28492 = vmatprep.mubr.f32.mxu1 %v34044_v59  ;;  %28502 = vmatprep.mubr.f32.mxu0 %v34058_v54  ;;  %v25747_v17 = vand.u32 4294901760, %v34178_v4  ;;  %v34197_v49 = vsub.f32 %v25663_v35, %v34180_v8 }
 0x840   :  { %v28097_v26 = vpop.f32.mrf.mxu1  ;;  %v28107_v32 = vpop.f32.mrf.mxu0  ;;  %v34175_v41 = vand.u32 4294901760, %v34153_v50  ;;  %v25737_v47 = vand.u32 4294901760, %v34162_v1 }
 0x841   :  { %v21124_v55 = vadd.f32 %v28097_v26, %v21025_v18  ;;  %v25757_v26 = vand.u32 4294901760, %v34197_v49 }
 0x842   :  { %28493 = vmatmul.mubr.f32.vlgmr.msra.gmra.mxu1 %v34050_v37  ;;  %28503 = vmatmul.mubr.f32.vlgmr.msra.gmra.mxu0 %v34069_v62  ;;  %v21115_v61 = vpop.f32.mrf.mxu1  ;;  %v21212_v15 = vpop.f32.mrf.mxu0  ;;  %v25807_v27 = vsub.f32 %v34153_v50, %v34175_v41  ;;  %v25738_v54 = vsub.f32 %v34162_v1, %v25737_v47  ;;  %v25748_v62 = vsub.f32 %v34178_v4, %v25747_v17 }
 0x843   :  { %28509 = vmatpush3.msra.mxu1 %v34040_v0  ;;  %28519 = vmatpush3.msra.mxu0 %v34076_v13  ;;  %v21219_v33 = vadd.f32 %v28107_v32, %v21124_v55  ;;  %v21201_v13 = vadd.f32 %v21200_v58, %v21100_v45  ;;  %v21116_v30 = vadd.f32 %v21115_v61, %v21018_v57 }
 0x844   :  { %28510 = vmatprep.subr.mxu1 %v34064_v31  ;;  %28520 = vmatprep.subr.mxu0 %v34113_v6  ;;  %v28114_v22 = vpop.f32.mrf.mxu1  ;;  %v28124_v3 = vpop.f32.mrf.mxu0  ;;  %v34208_v58 = vsub.f32 %v25666_v23, %v34187_v60  ;;  %v25739_v45 = vand.u32 4294901760, %v25738_v54 }
 0x845   :  { %28511 = vmatpush3.msra.mxu1 %v34064_v31  ;;  %28521 = vmatpush3.msra.mxu0 %v34113_v6  ;;  %v21298_v12 = vadd.f32 %v28114_v22, %v21207_v51 }
 0x846   :  { %28495 = vmatprep.mubr.f32.mxu1 %v34071_v36  ;;  %28505 = vmatprep.mubr.f32.mxu0 %v34091_v56  ;;  %v21291_v6 = vpop.f32.mrf.mxu1  ;;  %v21398_v38 = vpop.f32.mrf.mxu0  ;;  %v25767_v42 = vand.u32 4294901760, %v34208_v58 }
 0x847   :  { %28528 = vmatprep.subr.mxu1 %v34040_v0  ;;  %28538 = vmatprep.subr.mxu0 %v34142_v63  ;;  %v21292_v46 = vadd.f32 %v21291_v6, %v21201_v13  ;;  %v21409_v18 = vadd.f32 %v28124_v3, %v21298_v12 }
 0x848   :  { %28496 = vmatmul.mubr.f32.gmra.mxu1 %v34083_v11  ;;  %28506 = vmatmul.mubr.f32.gmra.mxu0 %v34102_v44  ;;  %v25768_v3 = vsub.f32 %v34208_v58, %v25767_v42 }
 0x849   :  { %28512 = vmatprep.mubr.f32.mxu1 %v25114_v48  ;;  %28522 = vmatprep.mubr.f32.mxu0 %v34044_v59  ;;  %v21399_v24 = vadd.f32 %v21398_v38, %v21292_v46  ;;  %v21213_v48 = vadd.f32 %v21212_v15, %v21116_v30 }
 0x84a   :  { %v28117_v40 = vpop.f32.mrf.mxu1  ;;  %v28127_v16 = vpop.f32.mrf.mxu0  ;;  %v25769_v30 = vand.u32 4294901760, %v25768_v3 }
 0x84b   :  { %v21310_v5 = vadd.f32 %v28117_v40, %v21219_v33  ;;  %v25749_v33 = vand.u32 4294901760, %v25748_v62 }
 0x84c   :  { %28513 = vmatmul.mubr.f32.vlgmr.msra.gmra.mxu1 %v25124_v25  ;;  %28523 = vmatmul.mubr.f32.vlgmr.msra.gmra.mxu0 %v34050_v37  ;;  %v21303_v51 = vpop.f32.mrf.mxu1  ;;  %v21418_v7 = vpop.f32.mrf.mxu0  ;;  %v34218_v25 = vand.u32 4294901760, %v34193_v53 }
 0x84d   :  { %28529 = vmatpush3.msra.mxu1 %v34040_v0  ;;  %28539 = vmatpush3.msra.mxu0 %v34142_v63  ;;  %v21304_v29 = vadd.f32 %v21303_v51, %v21213_v48  ;;  %v21429_v10 = vadd.f32 %v28127_v16, %v21310_v5  ;;  %v25808_v0 = vand.u32 4294901760, %v25807_v27 }
 0x84e   :  { %28530 = vmatprep.subr.mxu1 %v34064_v31  ;;  %28540 = vmatprep.subr.mxu0 %v34170_v52  ;;  %v28134_v32 = vpop.f32.mrf.mxu1  ;;  %v28144_v34 = vpop.f32.mrf.mxu0  ;;  %v25814_v56 = vsub.f32 %v34193_v53, %v34218_v25 }
 0x84f   :  { %28531 = vmatpush3.msra.mxu1 %v34064_v31  ;;  %28541 = vmatpush3.msra.mxu0 %v34170_v52  ;;  %v21419_v55 = vadd.f32 %v21418_v7, %v21304_v29  ;;  %v21516_v28 = vadd.f32 %v28134_v32, %v21409_v18 }
 0x850   :  { %28515 = vmatprep.mubr.f32.mxu1 %v25134_v21  ;;  %28525 = vmatprep.mubr.f32.mxu0 %v34071_v36  ;;  %v21509_v61 = vpop.f32.mrf.mxu1  ;;  %v21603_v15 = vpop.f32.mrf.mxu0  ;;  %v25758_v21 = vsub.f32 %v34197_v49, %v25757_v26  ;;  %v25815_v57 = vand.u32 4294901760, %v25814_v56 }
 0x851   :  { %28548 = vmatprep.subr.mxu1 %v25808_v0  ;;  %28558 = vmatprep.subr.mxu0 %v34153_v50  ;;  %v21510_v35 = vadd.f32 %v21509_v61, %v21399_v24  ;;  %v21611_v31 = vadd.f32 %v28144_v34, %v21516_v28 }
 0x852   :  { %28516 = vmatmul.mubr.f32.gmra.mxu1 %v25144_v20  ;;  %28526 = vmatmul.mubr.f32.gmra.mxu0 %v34083_v11  ;;  %v25759_v13 = vand.u32 4294901760, %v25758_v21 }
 0x853   :  { %28532 = vmatprep.mubr.f32.mxu1 %v34044_v59  ;;  %28542 = vmatprep.mubr.f32.mxu0 %v25739_v45  ;;  %v21604_v22 = vadd.f32 %v21603_v15, %v21510_v35 }
 0x854   :  { %v28137_v44 = vpop.f32.mrf.mxu1  ;;  %v28147_v20 = vpop.f32.mrf.mxu0 }
 0x855   :  { %v21528_v23 = vadd.f32 %v28137_v44, %v21429_v10 }
 0x856   :  { %28533 = vmatmul.mubr.f32.vlgmr.msra.gmra.mxu1 %v34050_v37  ;;  %28543 = vmatmul.mubr.f32.vlgmr.msra.gmra.mxu0 %v25749_v33  ;;  %v21521_v12 = vpop.f32.mrf.mxu1  ;;  %v21617_v6 = vpop.f32.mrf.mxu0 }
 0x857   :  { %28549 = vmatpush3.msra.mxu1 %v25808_v0  ;;  %28559 = vmatpush3.msra.mxu0 %v34153_v50  ;;  %v21522_v59 = vadd.f32 %v21521_v12, %v21419_v55  ;;  %v21625_v38 = vadd.f32 %v28147_v20, %v21528_v23 }
 0x858   :  { %28550 = vmatprep.subr.mxu1 %v25815_v57  ;;  %28560 = vmatprep.subr.mxu0 %v34193_v53  ;;  %v28154_v46 = vpop.f32.mrf.mxu1  ;;  %v28164_v18 = vpop.f32.mrf.mxu0 }
 0x859   :  { %28551 = vmatpush3.msra.mxu1 %v25815_v57  ;;  %28561 = vmatpush3.msra.mxu0 %v34193_v53  ;;  %v21618_v37 = vadd.f32 %v21617_v6, %v21522_v59  ;;  %v21708_v24 = vadd.f32 %v28154_v46, %v21611_v31 }
 0x85a   :  { %28535 = vmatprep.mubr.f32.mxu1 %v34071_v36  ;;  %28545 = vmatprep.mubr.f32.mxu0 %v25759_v13  ;;  %v21699_v40 = vpop.f32.mrf.mxu1  ;;  %v21800_v16 = vpop.f32.mrf.mxu0 }
 0x85b   :  { %28568 = vmatprep.subr.mxu1 %v34142_v63  ;;  %28578 = vmatprep.subr.mxu0 %v34175_v41  ;;  %v21700_v50 = vadd.f32 %v21699_v40, %v21604_v22  ;;  %v21807_v27 = vadd.f32 %v28164_v18, %v21708_v24 }
 0x85c   :  { %28536 = vmatmul.mubr.f32.gmra.mxu1 %v34083_v11  ;;  %28546 = vmatmul.mubr.f32.gmra.mxu0 %v25769_v30 }
 0x85d   :  { %28552 = vmatprep.mubr.f32.mxu1 %v34147_v2  ;;  %28562 = vmatprep.mubr.f32.mxu0 %v34162_v1  ;;  %v21801_v53 = vadd.f32 %v21800_v16, %v21700_v50 }
 0x85e   :  { %v28157_v54 = vpop.f32.mrf.mxu1  ;;  %v28167_v48 = vpop.f32.mrf.mxu0 }
 0x85f   :  { %v21724_v36 = vadd.f32 %v28157_v54, %v21625_v38 }
 0x860   :  { %28553 = vmatmul.mubr.f32.vlgmr.msra.gmra.mxu1 %v34157_v39  ;;  %28563 = vmatmul.mubr.f32.vlgmr.msra.gmra.mxu0 %v34178_v4  ;;  %v21715_v5 = vpop.f32.mrf.mxu1  ;;  %v21812_v51 = vpop.f32.mrf.mxu0 }
 0x861   :  { %28569 = vmatpush3.msra.mxu1 %v34142_v63  ;;  %28579 = vmatpush3.msra.mxu0 %v34175_v41  ;;  %v21716_v11 = vadd.f32 %v21715_v5, %v21618_v37  ;;  %v21819_v7 = vadd.f32 %v28167_v48, %v21724_v36 }
 0x862   :  { %28570 = vmatprep.subr.mxu1 %v34170_v52  ;;  %28580 = vmatprep.subr.mxu0 %v34218_v25  ;;  %v28174_v29 = vpop.f32.mrf.mxu1  ;;  %v28184_v10 = vpop.f32.mrf.mxu0 }
 0x863   :  { %28571 = vmatpush3.msra.mxu1 %v34170_v52  ;;  %28581 = vmatpush3.msra.mxu0 %v34218_v25  ;;  %v21813_v62 = vadd.f32 %v21812_v51, %v21716_v11  ;;  %v34258_v32 = vadd.f32 %v28174_v29, %v21807_v27 }
 0x864   :  { %28555 = vmatprep.mubr.f32.mxu1 %v34180_v8  ;;  %28588 = vmatprep.subr.mxu1 %v34142_v63  ;;  %v21891_v41 = vpop.f32.mrf.mxu1  ;;  %v22017_v34 = vpop.f32.mrf.mxu0 }
 0x865   :  { %28556 = vmatmul.mubr.f32.gmra.mxu1 %v34187_v60  ;;  %28565 = vmatprep.mubr.f32.mxu0 %v34197_v49  ;;  %v21892_v0 = vadd.f32 %v21891_v41, %v21801_v53 }
 0x866   :  { %28566 = vmatmul.mubr.f32.gmra.mxu0 %v34208_v58  ;;  %28572 = vmatprep.mubr.f32.mxu1 %v25737_v47 }
 0x867   :  { %28582 = vmatprep.mubr.f32.mxu0 %v34147_v2 }
 0x868   :  { %v28177_v25 = vpop.f32.mrf.mxu1  ;;  %v28187_v45 = vpop.f32.mrf.mxu0 }
 0x869   :  { %28573 = vmatmul.mubr.f32.vlgmr.msra.gmra.mxu1 %v25747_v17  ;;  %v21910_v55 = vadd.f32 %v28177_v25, %v21819_v7 }
 0x86a   :  { %28589 = vmatpush3.msra.mxu1 %v34142_v63  ;;  %28583 = vmatmul.mubr.f32.vlgmr.msra.gmra.mxu0 %v34157_v39  ;;  %v21903_v28 = vpop.f32.mrf.mxu1  ;;  %v22037_v61 = vpop.f32.mrf.mxu0 }
 0x86b   :  { %28590 = vmatprep.subr.mxu1 %v34170_v52  ;;  %28575 = vmatprep.mubr.f32.mxu1 %v25757_v26  ;;  %v21904_v1 = vadd.f32 %v21903_v28, %v21813_v62 }
 0x86c   :  { %28591 = vmatpush3.msra.mxu1 %v34170_v52  ;;  %28585 = vmatprep.mubr.f32.mxu0 %v34180_v8  ;;  %v28194_v47 = vpop.f32.mrf.mxu1  ;;  %v28204_v4 = vpop.f32.mrf.mxu0 }
 0x86d   :  { %28576 = vmatmul.mubr.f32.gmra.mxu1 %v25767_v42  ;;  %v22135_v63 = vadd.f32 %v28194_v47, %v28184_v10 }
 0x86e   :  { %28586 = vmatmul.mubr.f32.gmra.mxu0 %v34187_v60  ;;  %28592 = vmatprep.mubr.f32.mxu1 %v34147_v2  ;;  %v22128_v17 = vpop.f32.mrf.mxu1  ;;  %v22222_v15 = vpop.f32.mrf.mxu0 }
 0x86f   :  { %v22129_v35 = vadd.f32 %v22128_v17, %v22017_v34  ;;  %v22230_v49 = vadd.f32 %v28204_v4, %v22135_v63 }
 0x871   :  { %28593 = vmatmul.mubr.f32.vlgmr.msra.gmra.mxu1 %v34157_v39  ;;  %v22223_v26 = vadd.f32 %v22222_v15, %v22129_v35 }
 0x872   :  { %28595 = vmatprep.mubr.f32.mxu1 %v34180_v8  ;;  %v28197_v52 = vpop.f32.mrf.mxu1  ;;  %v28207_v31 = vpop.f32.mrf.mxu0 }
 0x873   :  { %v22147_v33 = vadd.f32 %v28197_v52, %v28187_v45 }
 0x874   :  { %v22140_v56 = vpop.f32.mrf.mxu1  ;;  %v22236_v58 = vpop.f32.mrf.mxu0 }
 0x875   :  { %28596 = vmatmul.mubr.f32.gmra.mxu1 %v34187_v60  ;;  %v22141_v42 = vadd.f32 %v22140_v56, %v22037_v61  ;;  %v22244_v21 = vadd.f32 %v28207_v31, %v22147_v33  ;;  %v26306_v56 = vld [vmem:[#allocation12 + $0x70] sm:$0xff] }
 0x876   :  { %v28214_v22 = vpop.f32.mrf.mxu1  ;;  %v28224_v2 = vpop.f32.mrf.mxu0 }
 0x877   :  { %v22237_v3 = vadd.f32 %v22236_v58, %v22141_v42  ;;  %v22327_v44 = vadd.f32 %v28214_v22, %v22230_v49  ;;  %v26307_v49 = vld [vmem:[#allocation12 + $0x78] sm:$0xff]  ;;  %v34298_v22 = vand.u32 4294901760, %v26306_v56 }
 0x878   :  { %v22318_v20 = vpop.f32.mrf.mxu1  ;;  %v22419_v23 = vpop.f32.mrf.mxu0 }
 0x879   :  { %v22319_v57 = vadd.f32 %v22318_v20, %v22223_v26  ;;  %v22426_v39 = vadd.f32 %v28224_v2, %v22327_v44  ;;  %35763 = vst [vmem:[#allocation113_spill] sm:$0xff] %v34298_v22  ;;  %v26305_v2 = vld [vmem:[#allocation12 + $0x68] sm:$0xff]  ;;  %v34306_v20 = vsub.f32 %v26306_v56, %v34298_v22 }
 0x87b   :  { %v22420_v13 = vadd.f32 %v22419_v23, %v22319_v57  ;;  %35765 = vst [vmem:[#allocation18_spill] sm:$0xff] %v34306_v20  ;;  %v34308_v23 = vand.u32 4294901760, %v26305_v2 }
 0x87c   :  { %v28217_v12 = vpop.f32.mrf.mxu1  ;;  %v28227_v8 = vpop.f32.mrf.mxu0 }
 0x87d   :  { %v22343_v6 = vadd.f32 %v28217_v12, %v22244_v21  ;;  %35766 = vst [vmem:[#allocation65_spill] sm:$0xff] %v34308_v23 }
 0x87e   :  { %v22334_v59 = vpop.f32.mrf.mxu1  ;;  %v22431_v38 = vpop.f32.mrf.mxu0 }
 0x87f   :  { %v22335_v30 = vadd.f32 %v22334_v59, %v22237_v3  ;;  %v22438_v46 = vadd.f32 %v28227_v8, %v22343_v6  ;;  %v34315_v6 = vand.u32 4294901760, %v34306_v20  ;;  %v34318_v59 = vsub.f32 %v26305_v2, %v34308_v23 }
 0x880   :  { %v28234_v18 = vpop.f32.mrf.mxu1  ;;  %v28244_v60 = vpop.f32.mrf.mxu0 }
 0x881   :  { %v22432_v37 = vadd.f32 %v22431_v38, %v22335_v30  ;;  %v22517_v24 = vadd.f32 %v28234_v18, %v22426_v39  ;;  %35767 = vst [vmem:[#allocation126_spill] sm:$0xff] %v34315_v6  ;;  %35768 = vst [vmem:[#allocation130_spill] sm:$0xff] %v34318_v59  ;;  %v26303_v18 = vld [vmem:[#allocation12 + $0x58] sm:$0xff] }
 0x882   :  { %v22510_v40 = vpop.f32.mrf.mxu1  ;;  %v22640_v16 = vpop.f32.mrf.mxu0 }
 0x883   :  { %v34285_v50 = vadd.f32 %v22517_v24, %v34258_v32  ;;  %v22511_v27 = vadd.f32 %v22510_v40, %v22420_v13  ;;  %v26304_v13 = vld [vmem:[#allocation12 + $0x60] sm:$0xff]  ;;  %v26440_v40 = vsub.f32 %v34306_v20, %v34315_v6 }
 0x885   :  { %v34287_v53 = vadd.f32 %v22511_v27, %v21892_v0 }
 0x886   :  { %v28237_v54 = vpop.f32.mrf.mxu1  ;;  %v28247_v48 = vpop.f32.mrf.mxu0 }
 0x887   :  { %v22529_v36 = vadd.f32 %v28237_v54, %v22438_v46  ;;  %v34321_v46 = vand.u32 4294901760, %v26304_v13  ;;  %v34329_v54 = vand.u32 4294901760, %v34318_v59 }
 0x888   :  { %v22522_v5 = vpop.f32.mrf.mxu1  ;;  %v22660_v51 = vpop.f32.mrf.mxu0 }
 0x889   :  { %v34289_v11 = vadd.f32 %v22529_v36, %v21910_v55  ;;  %v22523_v7 = vadd.f32 %v22522_v5, %v22432_v37  ;;  %35769 = vst [vmem:[#allocation72_spill] sm:$0xff] %v34321_v46  ;;  %35770 = vst [vmem:[#allocation77_spill] sm:$0xff] %v34329_v54  ;;  %v34334_v36 = vand.u32 4294901760, %v26303_v18  ;;  %v26302_v5 = vld [vmem:[#allocation12 + $0x50] sm:$0xff] }
 0x88a   :  { %v28254_v29 = vpop.f32.mrf.mxu1  ;;  %v28264_v10 = vpop.f32.mrf.mxu0 }
 0x88b   :  { %v34291_v62 = vadd.f32 %v22523_v7, %v21904_v1  ;;  %v22758_v41 = vadd.f32 %v28254_v29, %v28244_v60  ;;  %v34293_v1 = vand.u32 4294901760, %v26307_v49  ;;  %35772 = vst [vmem:[#allocation115_spill] sm:$0xff] %v34334_v36  ;;  %v26441_v29 = vand.u32 4294901760, %v26440_v40 }
 0x88c   :  { %v22751_v34 = vpop.f32.mrf.mxu1  ;;  %v22845_v25 = vpop.f32.mrf.mxu0 }
 0x88d   :  { %v22752_v32 = vadd.f32 %v22751_v34, %v22640_v16  ;;  %v22853_v45 = vadd.f32 %v28264_v10, %v22758_v41  ;;  %35761 = vst [vmem:[#allocation42_spill] sm:$0xff] %v34293_v1  ;;  %v34296_v21 = vsub.f32 %v26307_v49, %v34293_v1  ;;  %28598 = vmatprep.subr.mxu0 %v34293_v1  ;;  %v34337_v10 = vand.u32 4294901760, %v26302_v5 }
 0x88e   :  { %28599 = vmatpush3.msra.mxu0 %v34293_v1 }
 0x88f   :  { %v22846_v28 = vadd.f32 %v22845_v25, %v22752_v32  ;;  %35762 = vst [vmem:[#allocation108_spill] sm:$0xff] %v34296_v21  ;;  %v34303_v44 = vand.u32 4294901760, %v34296_v21  ;;  %28600 = vmatprep.subr.mxu0 %v34298_v22  ;;  %35773 = vst [vmem:[#allocation57_spill] sm:$0xff] %v34337_v10  ;;  %v26447_v25 = vsub.f32 %v34318_v59, %v34329_v54 }
 0x890   :  { %v28257_v0 = vpop.f32.mrf.mxu1  ;;  %v28267_v61 = vpop.f32.mrf.mxu0  ;;  %28601 = vmatpush3.msra.mxu0 %v34298_v22 }
 0x891   :  { %v22770_v47 = vadd.f32 %v28257_v0, %v28247_v48  ;;  %35764 = vst [vmem:[#allocation25_spill] sm:$0xff] %v34303_v44  ;;  %v26433_v8 = vsub.f32 %v34296_v21, %v34303_v44  ;;  %28602 = vmatprep.subr.mxu0 %v34308_v23  ;;  %v34332_v48 = vsub.f32 %v26304_v13, %v34321_v46 }
 0x892   :  { %v22763_v4 = vpop.f32.mrf.mxu1  ;;  %v22859_v63 = vpop.f32.mrf.mxu0  ;;  %28603 = vmatpush3.msra.mxu0 %v34308_v23 }
 0x893   :  { %v22764_v17 = vadd.f32 %v22763_v4, %v22660_v51  ;;  %v22867_v15 = vadd.f32 %v28267_v61, %v22770_v47  ;;  %v26434_v24 = vand.u32 4294901760, %v26433_v8  ;;  %35771 = vst [vmem:[#allocation111_spill] sm:$0xff] %v34332_v48  ;;  %28604 = vmatprep.subr.mxu0 %v34321_v46  ;;  %v34345_v32 = vand.u32 4294901760, %v34332_v48  ;;  %v26298_v8 = vld [vmem:[#allocation12 + $0x30] sm:$0xff] }
 0x894   :  { %v28274_v55 = vpop.f32.mrf.mxu1  ;;  %v28284_v35 = vpop.f32.mrf.mxu0  ;;  %28605 = vmatpush3.msra.mxu0 %v34321_v46  ;;  %v34355_v47 = vsub.f32 %v26302_v5, %v34337_v10  ;;  %v34409_v5 = vand.u32 4294901760, %v26298_v8 }
 0x895   :  { %v22860_v26 = vadd.f32 %v22859_v63, %v22764_v17  ;;  %v22950_v52 = vadd.f32 %v28274_v55, %v22853_v45  ;;  %28636 = vmatprep.subr.mxu1 %v26434_v24  ;;  %35774 = vst [vmem:[#allocation114_spill] sm:$0xff] %v34345_v32  ;;  %v34348_v45 = vsub.f32 %v26303_v18, %v34334_v36  ;;  %v26448_v63 = vand.u32 4294901760, %v26447_v25  ;;  %v26300_v55 = vld [vmem:[#allocation12 + $0x40] sm:$0xff] }
 0x896   :  { %v22941_v31 = vpop.f32.mrf.mxu1  ;;  %v23042_v33 = vpop.f32.mrf.mxu0  ;;  %28637 = vmatpush3.msra.mxu1 %v26434_v24  ;;  %28606 = vmatprep.subr.mxu0 %v34334_v36  ;;  %35776 = vst [vmem:[#allocation50_spill] sm:$0xff] %v34355_v47  ;;  %v26454_v17 = vsub.f32 %v34332_v48, %v34345_v32  ;;  %35787 = vst [vmem:[#allocation85_spill] sm:$0xff] %v34409_v5 }
 0x897   :  { %v22942_v58 = vadd.f32 %v22941_v31, %v22846_v28  ;;  %v23049_v42 = vadd.f32 %v28284_v35, %v22950_v52  ;;  %35775 = vst [vmem:[#allocation29_spill] sm:$0xff] %v34348_v45  ;;  %v26301_v28 = vld [vmem:[#allocation12 + $0x48] sm:$0xff]  ;;  %28638 = vmatprep.subr.mxu1 %v26441_v29  ;;  %28607 = vmatpush3.msra.mxu0 %v34334_v36  ;;  %v34370_v35 = vand.u32 4294901760, %v34355_v47 }
 0x898   :  { %v34357_v4 = vand.u32 4294901760, %v26301_v28  ;;  %28639 = vmatpush3.msra.mxu1 %v26441_v29  ;;  %28608 = vmatprep.subr.mxu0 %v34337_v10 }
 0x899   :  { %v23043_v3 = vadd.f32 %v23042_v33, %v22942_v58  ;;  %35779 = vst [vmem:[#allocation107_spill] sm:$0xff] %v34370_v35  ;;  %28609 = vmatpush3.msra.mxu0 %v34337_v10  ;;  %28640 = vmatprep.subr.mxu1 %v26448_v63  ;;  %v26455_v33 = vand.u32 4294901760, %v26454_v17  ;;  %v26296_v17 = vld [vmem:[#allocation12 + $0x20] sm:$0xff] }
 0x89a   :  { %v28277_v57 = vpop.f32.mrf.mxu1  ;;  %v28287_v39 = vpop.f32.mrf.mxu0  ;;  %35777 = vst [vmem:[#allocation117_spill] sm:$0xff] %v34357_v4  ;;  %v34373_v49 = vsub.f32 %v26301_v28, %v34357_v4  ;;  %28610 = vmatprep.subr.mxu0 %v34357_v4  ;;  %28641 = vmatpush3.msra.mxu1 %v26448_v63 }
 0x89b   :  { %v22966_v12 = vadd.f32 %v28277_v57, %v22867_v15  ;;  %v34363_v15 = vand.u32 4294901760, %v34348_v45  ;;  %28611 = vmatpush3.msra.mxu0 %v34357_v4  ;;  %28642 = vmatprep.subr.mxu1 %v26455_v33 }
 0x89c   :  { %v22957_v38 = vpop.f32.mrf.mxu1  ;;  %v23054_v30 = vpop.f32.mrf.mxu0  ;;  %35780 = vst [vmem:[#allocation73_spill] sm:$0xff] %v34373_v49  ;;  %v34386_v2 = vand.u32 4294901760, %v34373_v49  ;;  %28643 = vmatpush3.msra.mxu1 %v26455_v33  ;;  %v34432_v33 = vand.u32 4294901760, %v26296_v17 }
 0x89d   :  { %v22958_v60 = vadd.f32 %v22957_v38, %v22860_v26  ;;  %v23061_v37 = vadd.f32 %v28287_v39, %v22966_v12  ;;  %35778 = vst [vmem:[#allocation131_spill] sm:$0xff] %v34363_v15  ;;  %v34375_v26 = vand.u32 4294901760, %v26300_v55  ;;  %v26461_v56 = vsub.f32 %v34348_v45, %v34363_v15 }
 0x89e   :  { %v28294_v16 = vpop.f32.mrf.mxu1  ;;  %v34326_v27 = vpop.f32.mrf.mxu0  ;;  %35782 = vst [vmem:[#allocation116_spill] sm:$0xff] %v34386_v2  ;;  %35792 = vst [vmem:[#allocation122_spill] sm:$0xff] %v34432_v33 }
 0x89f   :  { %v23055_v51 = vadd.f32 %v23054_v30, %v22958_v60  ;;  %v23140_v7 = vadd.f32 %v28294_v16, %v23049_v42  ;;  %35781 = vst [vmem:[#allocation78_spill] sm:$0xff] %v34375_v26  ;;  %v26468_v42 = vsub.f32 %v34355_v47, %v34370_v35  ;;  %v26462_v13 = vand.u32 4294901760, %v26461_v56  ;;  %28612 = vmatprep.subr.mxu0 %v34375_v26 }
 0x8a0   :  { %v23133_v41 = vpop.f32.mrf.mxu1  ;;  %v34340_v34 = vpop.f32.mrf.mxu0  ;;  %v26475_v60 = vsub.f32 %v34373_v49, %v34386_v2  ;;  %28613 = vmatpush3.msra.mxu0 %v34375_v26 }
 0x8a1   :  { %v34352_v0 = vadd.f32 %v23140_v7, %v34285_v50  ;;  %v23134_v61 = vadd.f32 %v23133_v41, %v23043_v3  ;;  %v34389_v3 = vsub.f32 %v26300_v55, %v34375_v26  ;;  %v26469_v18 = vand.u32 4294901760, %v26468_v42  ;;  %28644 = vmatprep.subr.mxu1 %v26462_v13  ;;  %v26295_v42 = vld [vmem:[#allocation12 + $0x18] sm:$0xff] }
 0x8a2   :  { %28645 = vmatpush3.msra.mxu1 %v26462_v13  ;;  %v26476_v29 = vand.u32 4294901760, %v26475_v60  ;;  %v34445_v13 = vsub.f32 %v26296_v17, %v34432_v33 }
 0x8a3   :  { %v34367_v50 = vadd.f32 %v23134_v61, %v34287_v53  ;;  %v26299_v53 = vld [vmem:[#allocation12 + $0x38] sm:$0xff]  ;;  %35783 = vst [vmem:[#allocation134_spill] sm:$0xff] %v34389_v3  ;;  %v34404_v40 = vand.u32 4294901760, %v34389_v3  ;;  %28646 = vmatprep.subr.mxu1 %v26469_v18 }
 0x8a4   :  { %v28297_v52 = vpop.f32.mrf.mxu1  ;;  %v34378_v31 = vpop.f32.mrf.mxu0  ;;  %v34394_v12 = vand.u32 4294901760, %v26299_v53  ;;  %28647 = vmatpush3.msra.mxu1 %v26469_v18  ;;  %35795 = vst [vmem:[#allocation123_spill] sm:$0xff] %v34445_v13 }
 0x8a5   :  { %v23152_v58 = vadd.f32 %v28297_v52, %v23061_v37  ;;  %35785 = vst [vmem:[#allocation119_spill] sm:$0xff] %v34404_v40  ;;  %v26482_v61 = vsub.f32 %v34389_v3, %v34404_v40  ;;  %28648 = vmatprep.subr.mxu1 %v26476_v29 }
 0x8a6   :  { %v23145_v57 = vpop.f32.mrf.mxu1  ;;  %v34392_v39 = vpop.f32.mrf.mxu0  ;;  %35784 = vst [vmem:[#allocation51_spill] sm:$0xff] %v34394_v12  ;;  %v34407_v16 = vsub.f32 %v26299_v53, %v34394_v12  ;;  %28614 = vmatprep.subr.mxu0 %v34394_v12  ;;  %28649 = vmatpush3.msra.mxu1 %v26476_v29  ;;  %v34457_v29 = vand.u32 4294901760, %v34445_v13 }
 0x8a7   :  { %v34398_v38 = vadd.f32 %v23152_v58, %v34289_v11  ;;  %v23146_v30 = vadd.f32 %v23145_v57, %v23055_v51  ;;  %v26297_v11 = vld [vmem:[#allocation12 + $0x28] sm:$0xff]  ;;  %28615 = vmatpush3.msra.mxu0 %v34394_v12  ;;  %v26483_v56 = vand.u32 4294901760, %v26482_v61 }
 0x8a8   :  { %v28314_v37 = vpop.f32.mrf.mxu1  ;;  %v28324_v24 = vpop.f32.mrf.mxu0  ;;  %35786 = vst [vmem:[#allocation22_spill] sm:$0xff] %v34407_v16  ;;  %v34416_v41 = vand.u32 4294901760, %v26297_v11  ;;  %v34422_v63 = vand.u32 4294901760, %v34407_v16  ;;  %28616 = vmatprep.subr.mxu0 %v34409_v5  ;;  %35797 = vst [vmem:[#allocation69_spill] sm:$0xff] %v34457_v29 }
 0x8a9   :  { %v34413_v51 = vadd.f32 %v23146_v30, %v34291_v62  ;;  %v23367_v7 = vadd.f32 %v28314_v37, %v34326_v27  ;;  %v34425_v62 = vsub.f32 %v26298_v8, %v34409_v5  ;;  %28617 = vmatpush3.msra.mxu0 %v34409_v5  ;;  %v34447_v8 = vand.u32 4294901760, %v26295_v42  ;;  %28650 = vmatprep.subr.mxu1 %v26483_v56 }
 0x8aa   :  { %35788 = vst [vmem:[#allocation118_spill] sm:$0xff] %v34416_v41  ;;  %v23360_v25 = vpop.f32.mrf.mxu1  ;;  %v23454_v28 = vpop.f32.mrf.mxu0  ;;  %35789 = vst [vmem:[#allocation91_spill] sm:$0xff] %v34422_v63  ;;  %v34430_v52 = vsub.f32 %v26297_v11, %v34416_v41  ;;  %v26489_v53 = vsub.f32 %v34407_v16, %v34422_v63  ;;  %28618 = vmatprep.subr.mxu0 %v34416_v41  ;;  %28651 = vmatpush3.msra.mxu1 %v26483_v56 }
 0x8ab   :  { %35790 = vst [vmem:[#allocation121_spill] sm:$0xff] %v34425_v62  ;;  %v23361_v27 = vadd.f32 %v23360_v25, %v34340_v34  ;;  %v23462_v55 = vadd.f32 %v28324_v24, %v23367_v7  ;;  %v34438_v58 = vand.u32 4294901760, %v34425_v62  ;;  %35796 = vst [vmem:[#allocation87_spill] sm:$0xff] %v34447_v8  ;;  %28619 = vmatpush3.msra.mxu0 %v34416_v41  ;;  %v26294_v24 = vld [vmem:[#allocation12 + $0x10] sm:$0xff] }
 0x8ac   :  { %35791 = vst [vmem:[#allocation120_spill] sm:$0xff] %v34430_v52  ;;  %v34442_v57 = vand.u32 4294901760, %v34430_v52  ;;  %v26490_v60 = vand.u32 4294901760, %v26489_v53  ;;  %28620 = vmatprep.subr.mxu0 %v34432_v33  ;;  %v34460_v25 = vsub.f32 %v26295_v42, %v34447_v8  ;;  %v26293_v53 = vld [vmem:[#allocation12 + $0x8] sm:$0xff]  ;;  %v26510_v42 = vsub.f32 %v34445_v13, %v34457_v29 }
 0x8ad   :  { %35793 = vst [vmem:[#allocation83_spill] sm:$0xff] %v34438_v58  ;;  %v23455_v34 = vadd.f32 %v23454_v28, %v23361_v27  ;;  %v26496_v37 = vsub.f32 %v34425_v62, %v34438_v58  ;;  %28621 = vmatpush3.msra.mxu0 %v34432_v33  ;;  %v34463_v27 = vand.u32 4294901760, %v26294_v24  ;;  %v34476_v40 = vand.u32 4294901760, %v26293_v53 }
 0x8ae   :  { %35794 = vst [vmem:[#allocation68_spill] sm:$0xff] %v34442_v57  ;;  %v28317_v30 = vpop.f32.mrf.mxu1  ;;  %v28327_v18 = vpop.f32.mrf.mxu0  ;;  %v26503_v7 = vsub.f32 %v34430_v52, %v34442_v57  ;;  %35798 = vst [vmem:[#allocation88_spill] sm:$0xff] %v34460_v25  ;;  %28652 = vmatprep.subr.mxu1 %v26490_v60  ;;  %28622 = vmatprep.subr.mxu0 %v34447_v8 }
 0x8af   :  { %v23379_v11 = vadd.f32 %v28317_v30, %v34378_v31  ;;  %v26497_v17 = vand.u32 4294901760, %v26496_v37  ;;  %35799 = vst [vmem:[#allocation74_spill] sm:$0xff] %v34463_v27  ;;  %28653 = vmatpush3.msra.mxu1 %v26490_v60  ;;  %28623 = vmatpush3.msra.mxu0 %v34447_v8  ;;  %v34471_v37 = vand.u32 4294901760, %v34460_v25  ;;  %v34474_v63 = vsub.f32 %v26294_v24, %v34463_v27 }
 0x8b0   :  { %v23372_v28 = vpop.f32.mrf.mxu1  ;;  %v23468_v61 = vpop.f32.mrf.mxu0  ;;  %v26504_v30 = vand.u32 4294901760, %v26503_v7  ;;  %35802 = vst [vmem:[#allocation129_spill] sm:$0xff] %v34476_v40  ;;  %28624 = vmatprep.subr.mxu0 %v34463_v27  ;;  %v34488_v35 = vsub.f32 %v26293_v53, %v34476_v40 }
 0x8b1   :  { %v23373_v31 = vadd.f32 %v23372_v28, %v34392_v39  ;;  %v23476_v56 = vadd.f32 %v28327_v18, %v23379_v11  ;;  %28654 = vmatprep.subr.mxu1 %v26497_v17  ;;  %35800 = vst [vmem:[#allocation92_spill] sm:$0xff] %v34471_v37  ;;  %35801 = vst [vmem:[#allocation75_spill] sm:$0xff] %v34474_v63  ;;  %v26292_v39 = vld [vmem:[#allocation12] sm:$0xff]  ;;  %v26511_v11 = vand.u32 4294901760, %v26510_v42  ;;  %28625 = vmatpush3.msra.mxu0 %v34463_v27 }
 0x8b2   :  { %v28334_v57 = vpop.f32.mrf.mxu1  ;;  %v28344_v58 = vpop.f32.mrf.mxu0  ;;  %28655 = vmatpush3.msra.mxu1 %v26497_v17  ;;  %v34479_v7 = vand.u32 4294901760, %v26292_v39  ;;  %v26517_v24 = vsub.f32 %v34460_v25, %v34471_v37  ;;  %v34485_v2 = vand.u32 4294901760, %v34474_v63  ;;  %35805 = vst [vmem:[#allocation80_spill] sm:$0xff] %v34488_v35  ;;  %28626 = vmatprep.subr.mxu0 %v34476_v40  ;;  %v34498_v42 = vand.u32 4294901760, %v34488_v35 }
 0x8b3   :  { %v23469_v18 = vadd.f32 %v23468_v61, %v23373_v31  ;;  %v23559_v60 = vadd.f32 %v28334_v57, %v23462_v55  ;;  %28656 = vmatprep.subr.mxu1 %v26504_v30  ;;  %28627 = vmatpush3.msra.mxu0 %v34476_v40 }
 0x8b4   :  { %35803 = vst [vmem:[#allocation132_spill] sm:$0xff] %v34479_v7  ;;  %v23550_v28 = vpop.f32.mrf.mxu1  ;;  %v23651_v29 = vpop.f32.mrf.mxu0  ;;  %35804 = vst [vmem:[#allocation93_spill] sm:$0xff] %v34485_v2  ;;  %28657 = vmatpush3.msra.mxu1 %v26504_v30  ;;  %v34492_v61 = vsub.f32 %v26292_v39, %v34479_v7  ;;  %v26518_v17 = vand.u32 4294901760, %v26517_v24  ;;  %v26524_v31 = vsub.f32 %v34474_v63, %v34485_v2  ;;  %28628 = vmatprep.subr.mxu0 %v34479_v7 }
 0x8b5   :  { %v23551_v55 = vadd.f32 %v23550_v28, %v23455_v34  ;;  %v23658_v57 = vadd.f32 %v28344_v58, %v23559_v60  ;;  %28658 = vmatprep.subr.mxu1 %v26511_v11  ;;  %35807 = vst [vmem:[#allocation82_spill] sm:$0xff] %v34498_v42  ;;  %28629 = vmatpush3.msra.mxu0 %v34479_v7 }
 0x8b6   :  { %35806 = vst [vmem:[#allocation95_spill] sm:$0xff] %v34492_v61  ;;  %28659 = vmatpush3.msra.mxu1 %v26511_v11  ;;  %v34502_v58 = vand.u32 4294901760, %v34492_v61  ;;  %v26525_v39 = vand.u32 4294901760, %v26524_v31  ;;  %v26531_v60 = vsub.f32 %v34488_v35, %v34498_v42  ;;  %28674 = vmatprep.subr.mxu0 %v34296_v21 }
 0x8b7   :  { %v23652_v53 = vadd.f32 %v23651_v29, %v23551_v55  ;;  %28660 = vmatprep.subr.mxu1 %v26518_v17 }
 0x8b8   :  { %35808 = vst [vmem:[#allocation109_spill] sm:$0xff] %v34502_v58  ;;  %v28337_v34 = vpop.f32.mrf.mxu1  ;;  %v28347_v30 = vpop.f32.mrf.mxu0  ;;  %28661 = vmatpush3.msra.mxu1 %v26518_v17  ;;  %v26538_v29 = vsub.f32 %v34492_v61, %v34502_v58  ;;  %v26532_v55 = vand.u32 4294901760, %v26531_v60 }
 0x8b9   :  { %v23575_v28 = vadd.f32 %v28337_v34, %v23476_v56  ;;  %28662 = vmatprep.subr.mxu1 %v26525_v39 }
 0x8ba   :  { %v23566_v11 = vpop.f32.mrf.mxu1  ;;  %v23663_v24 = vpop.f32.mrf.mxu0  ;;  %28663 = vmatpush3.msra.mxu1 %v26525_v39  ;;  %v26539_v15 = vand.u32 4294901760, %v26538_v29 }
 0x8bb   :  { %v23567_v2 = vadd.f32 %v23566_v11, %v23469_v18  ;;  %v23670_v37 = vadd.f32 %v28347_v30, %v23575_v28  ;;  %28664 = vmatprep.subr.mxu1 %v26532_v55 }
 0x8bc   :  { %v28354_v32 = vpop.f32.mrf.mxu1  ;;  %v28364_v31 = vpop.f32.mrf.mxu0  ;;  %28665 = vmatpush3.msra.mxu1 %v26532_v55 }
 0x8bd   :  { %v23664_v54 = vadd.f32 %v23663_v24, %v23567_v2  ;;  %v23749_v42 = vadd.f32 %v28354_v32, %v23658_v57  ;;  %28666 = vmatprep.subr.mxu1 %v26539_v15 }
 0x8be   :  { %v23742_v6 = vpop.f32.mrf.mxu1  ;;  %v23872_v56 = vpop.f32.mrf.mxu0  ;;  %28667 = vmatpush3.msra.mxu1 %v26539_v15 }
 0x8bf   :  { %v23765_v17 = vadd.f32 %v23749_v42, %v34352_v0  ;;  %v23743_v34 = vadd.f32 %v23742_v6, %v23652_v53  ;;  %28712 = vmatprep.subr.mxu1 %v34293_v1 }
 0x8c1   :  { %v23764_v18 = vadd.f32 %v23743_v34, %v34367_v50 }
 0x8c2   :  { %v28357_v30 = vpop.f32.mrf.mxu1  ;;  %v28367_v39 = vpop.f32.mrf.mxu0 }
 0x8c3   :  { %v23761_v60 = vadd.f32 %v28357_v30, %v23670_v37 }
 0x8c4   :  { %v23754_v28 = vpop.f32.mrf.mxu1  ;;  %v23892_v29 = vpop.f32.mrf.mxu0 }
 0x8c5   :  { %v23767_v2 = vadd.f32 %v23761_v60, %v34398_v38  ;;  %v23755_v32 = vadd.f32 %v23754_v28, %v23664_v54 }
 0x8c6   :  { %v28374_v57 = vpop.f32.mrf.mxu1  ;;  %v28384_v11 = vpop.f32.mrf.mxu0 }
 0x8c7   :  { %v23766_v24 = vadd.f32 %v23755_v32, %v34413_v51  ;;  %v23990_v55 = vadd.f32 %v28374_v57, %v28364_v31 }
 0x8c8   :  { %v23983_v0 = vpop.f32.mrf.mxu1  ;;  %v24077_v6 = vpop.f32.mrf.mxu0 }
 0x8c9   :  { %v23984_v15 = vadd.f32 %v23983_v0, %v23872_v56  ;;  %v24085_v42 = vadd.f32 %v28384_v11, %v23990_v55 }
 0x8cb   :  { %v24078_v53 = vadd.f32 %v24077_v6, %v23984_v15 }
 0x8cc   :  { %v28377_v58 = vpop.f32.mrf.mxu1  ;;  %v28387_v50 = vpop.f32.mrf.mxu0 }
 0x8cd   :  { %v24002_v34 = vadd.f32 %v28377_v58, %v28367_v39 }
 0x8ce   :  { %v23995_v44 = vpop.f32.mrf.mxu1  ;;  %v24091_v37 = vpop.f32.mrf.mxu0 }
 0x8cf   :  { %v23996_v30 = vadd.f32 %v23995_v44, %v23892_v29  ;;  %v24099_v61 = vadd.f32 %v28387_v50, %v24002_v34 }
 0x8d0   :  { %v28394_v35 = vpop.f32.mrf.mxu1  ;;  %v28404_v38 = vpop.f32.mrf.mxu0 }
 0x8d1   :  { %v24092_v54 = vadd.f32 %v24091_v37, %v23996_v30  ;;  %v24182_v60 = vadd.f32 %v28394_v35, %v24085_v42 }
 0x8d2   :  { %v24173_v28 = vpop.f32.mrf.mxu1  ;;  %v24274_v63 = vpop.f32.mrf.mxu0 }
 0x8d3   :  { %v24174_v51 = vadd.f32 %v24173_v28, %v24078_v53  ;;  %v24281_v31 = vadd.f32 %v28404_v38, %v24182_v60 }
 0x8d5   :  { %v24275_v32 = vadd.f32 %v24274_v63, %v24174_v51 }
 0x8d6   :  { %v28397_v57 = vpop.f32.mrf.mxu1  ;;  %v28407_v56 = vpop.f32.mrf.mxu0 }
 0x8d7   :  { %v24198_v11 = vadd.f32 %v28397_v57, %v24099_v61 }
 0x8d8   :  { %v24189_v55 = vpop.f32.mrf.mxu1  ;;  %v24286_v0 = vpop.f32.mrf.mxu0 }
 0x8d9   :  { %v24190_v6 = vadd.f32 %v24189_v55, %v24092_v54  ;;  %v24293_v58 = vadd.f32 %v28407_v56, %v24198_v11 }
 0x8da   :  { %v28414_v39 = vpop.f32.mrf.mxu1  ;;  %v34515_v15 = vpop.f32.mrf.mxu0 }
 0x8db   :  { %v24287_v44 = vadd.f32 %v24286_v0, %v24190_v6  ;;  %v24372_v29 = vadd.f32 %v28414_v39, %v24281_v31 }
 0x8dc   :  { %v24365_v50 = vpop.f32.mrf.mxu1  ;;  %v24495_v34 = vpop.f32.mrf.mxu0 }
 0x8dd   :  { %v34517_v35 = vadd.f32 %v24372_v29, %v23765_v17  ;;  %v24366_v42 = vadd.f32 %v24365_v50, %v24275_v32 }
 0x8df   :  { %35809 = vst [vmem:[#allocation28_spill] sm:$0xff] %v34517_v35  ;;  %v34519_v53 = vadd.f32 %v24366_v42, %v23764_v18 }
 0x8e0   :  { %v28417_v63 = vpop.f32.mrf.mxu1  ;;  %v34521_v37 = vpop.f32.mrf.mxu0 }
 0x8e1   :  { %35810 = vst [vmem:[#allocation97_spill] sm:$0xff] %v34519_v53  ;;  %v24384_v61 = vadd.f32 %v28417_v63, %v24293_v58 }
 0x8e2   :  { %v24377_v30 = vpop.f32.mrf.mxu1  ;;  %v34523_v38 = vpop.f32.mrf.mxu0 }
 0x8e3   :  { %v34525_v54 = vadd.f32 %v24384_v61, %v23767_v2  ;;  %v24378_v60 = vadd.f32 %v24377_v30, %v24287_v44 }
 0x8e4   :  { %v28434_v28 = vpop.f32.mrf.mxu1  ;;  %v28444_v51 = vpop.f32.mrf.mxu0 }
 0x8e5   :  { %35811 = vst [vmem:[#allocation84_spill] sm:$0xff] %v34525_v54  ;;  %v34527_v31 = vadd.f32 %v24378_v60, %v23766_v24  ;;  %v24613_v46 = vadd.f32 %v28434_v28, %v34515_v15 }
 0x8e6   :  { %v24606_v57 = vpop.f32.mrf.mxu1  ;;  %v24700_v17 = vpop.f32.mrf.mxu0 }
 0x8e7   :  { %35812 = vst [vmem:[#allocation100_spill] sm:$0xff] %v34527_v31  ;;  %v24607_v23 = vadd.f32 %v24606_v57, %v24495_v34  ;;  %v24708_v19 = vadd.f32 %v28444_v51, %v24613_v46 }
 0x8e9   :  { %v24701_v54 = vadd.f32 %v24700_v17, %v24607_v23 }
 0x8ea   :  { %v28437_v56 = vpop.f32.mrf.mxu1  ;;  %v28447_v32 = vpop.f32.mrf.mxu0 }
 0x8eb   :  { %v24625_v31 = vadd.f32 %v28437_v56, %v34521_v37 }
 0x8ec   :  { %v24618_v18 = vpop.f32.mrf.mxu1  ;;  %v34529_v11 = vpop.f32.mrf.mxu0 }
 0x8ed   :  { %v24722_v34 = vadd.f32 %v28447_v32, %v24625_v31 }
 0x8ee   :  { %v28454_v55 = vpop.f32.mrf.mxu1  ;;  %v34531_v0 = vpop.f32.mrf.mxu0 }
 0x8f0   :  { %v24796_v6 = vpop.f32.mrf.mxu1  ;;  %v34533_v58 = vpop.f32.mrf.mxu0 }
 0x8f4   :  { %v34535_v2 = vpop.f32.mrf.mxu1  ;;  %v34537_v39 = vpop.f32.mrf.mxu0 }
 0x8f6   :  { %v34539_v44 = vpop.f32.mrf.mxu1  ;;  %v34541_v24 = vpop.f32.mrf.mxu0 }
 0x8f8   :  { %v34543_v29 = vpop.f32.mrf.mxu1  ;;  %v28484_v50 = vpop.f32.mrf.mxu0 }
 0x8fa   :  { %v34545_v42 = vpop.f32.mrf.mxu1  ;;  %v25118_v63 = vpop.f32.mrf.mxu0 }
 0x8fe   :  { %v34547_v61 = vpop.f32.mrf.mxu1  ;;  %v28487_v30 = vpop.f32.mrf.mxu0 }
 0x8ff   :  { %35813 = vst [vmem:[#allocation86_spill] sm:$0xff] %v34547_v61 }
 0x900   :  { %v34549_v60 = vpop.f32.mrf.mxu1  ;;  %v25138_v25 = vpop.f32.mrf.mxu0 }
 0x901   :  { %35814 = vst [vmem:[#allocation133_spill] sm:$0xff] %v34549_v60  ;;  %v24619_v60 = vadd.f32 %v24618_v18, %v34523_v38 }
 0x902   :  { %v28494_v7 = vpop.f32.mrf.mxu1  ;;  %v28504_v13 = vpop.f32.mrf.mxu0 }
 0x903   :  { %v25236_v9 = vadd.f32 %v28494_v7, %v28484_v50  ;;  %v24715_v37 = vadd.f32 %v34529_v11, %v24619_v60 }
 0x904   :  { %v25229_v40 = vpop.f32.mrf.mxu1  ;;  %v25323_v52 = vpop.f32.mrf.mxu0 }
 0x908   :  { %v28497_v27 = vpop.f32.mrf.mxu1  ;;  %v28507_v62 = vpop.f32.mrf.mxu0 }
 0x909   :  { %v25248_v53 = vadd.f32 %v28497_v27, %v28487_v30  ;;  %v35828_v30 = vld [vmem:[#allocation84_spill] sm:$0xff] }
 0x90a   :  { %v25241_v8 = vpop.f32.mrf.mxu1  ;;  %v25337_v16 = vpop.f32.mrf.mxu0 }
 0x90b   :  { %v25242_v28 = vadd.f32 %v25241_v8, %v25138_v25  ;;  %v24813_v8 = vadd.f32 %v34539_v44, %v24715_v37 }
 0x90c   :  { %v28514_v33 = vpop.f32.mrf.mxu1  ;;  %v28524_v3 = vpop.f32.mrf.mxu0 }
 0x90e   :  { %v25419_v41 = vpop.f32.mrf.mxu1  ;;  %v34551_v49 = vpop.f32.mrf.mxu0 }
 0x912   :  { %v28517_v5 = vpop.f32.mrf.mxu1  ;;  %v34553_v47 = vpop.f32.mrf.mxu0 }
 0x913   :  { %35815 = vst [vmem:[#allocation112_spill] sm:$0xff] %v34553_v47  ;;  %v25331_v47 = vadd.f32 %v28504_v13, %v25236_v9 }
 0x914   :  { %v25435_v12 = vpop.f32.mrf.mxu1  ;;  %v34555_v45 = vpop.f32.mrf.mxu0 }
 0x915   :  { %35816 = vst [vmem:[#allocation52_spill] sm:$0xff] %v34555_v45  ;;  %v25230_v45 = vadd.f32 %v25229_v40, %v25118_v63  ;;  %v25428_v50 = vadd.f32 %v28514_v33, %v25331_v47  ;;  %v24821_v40 = vadd.f32 %v34535_v2, %v24722_v34 }
 0x916   :  { %v28534_v26 = vpop.f32.mrf.mxu1  ;;  %v28544_v48 = vpop.f32.mrf.mxu0 }
 0x917   :  { %v25324_v7 = vadd.f32 %v25323_v52, %v25230_v45  ;;  %v25527_v52 = vadd.f32 %v28524_v3, %v25428_v50  ;;  %v35821_v3 = vld [vmem:[#allocation86_spill] sm:$0xff] }
 0x918   :  { %v34557_v4 = vpop.f32.mrf.mxu1  ;;  %v25741_v59 = vpop.f32.mrf.mxu0 }
 0x919   :  { %35817 = vst [vmem:[#allocation101_spill] sm:$0xff] %v34557_v4  ;;  %v25420_v9 = vadd.f32 %v25419_v41, %v25324_v7 }
 0x91c   :  { %v34559_v10 = vpop.f32.mrf.mxu1  ;;  %v28547_v20 = vpop.f32.mrf.mxu0 }
 0x91d   :  { %35818 = vst [vmem:[#allocation89_spill] sm:$0xff] %v34559_v10  ;;  %v24805_v10 = vadd.f32 %v28454_v55, %v24708_v19  ;;  %v25345_v19 = vadd.f32 %v28507_v62, %v25248_v53  ;;  %v24916_v62 = vadd.f32 %v34537_v39, %v24821_v40 }
 0x91e   :  { %v34561_v21 = vpop.f32.mrf.mxu1  ;;  %v25761_v36 = vpop.f32.mrf.mxu0 }
 0x91f   :  { %35819 = vst [vmem:[#allocation104_spill] sm:$0xff] %v34561_v21  ;;  %v24797_v21 = vadd.f32 %v24796_v6, %v24701_v54  ;;  %v24904_v23 = vadd.f32 %v34531_v0, %v24805_v10  ;;  %v35824_v0 = vld [vmem:[#allocation97_spill] sm:$0xff] }
 0x920   :  { %v28554_v22 = vpop.f32.mrf.mxu1  ;;  %v28564_v1 = vpop.f32.mrf.mxu0  ;;  %v35823_v32 = vld [vmem:[#allocation101_spill] sm:$0xff] }
 0x921   :  { %v25859_v61 = vadd.f32 %v28554_v22, %v28544_v48  ;;  %v24898_v38 = vadd.f32 %v34533_v58, %v24797_v21  ;;  %v24995_v45 = vadd.f32 %v34543_v29, %v24904_v23  ;;  %v35826_v58 = vld [vmem:[#allocation52_spill] sm:$0xff] }
 0x922   :  { %v25852_v14 = vpop.f32.mrf.mxu1  ;;  %v25946_v43 = vpop.f32.mrf.mxu0  ;;  %v35830_v23 = vld [vmem:[#allocation100_spill] sm:$0xff] }
 0x923   :  { %v25853_v35 = vadd.f32 %v25852_v14, %v25741_v59  ;;  %v25954_v22 = vadd.f32 %v28564_v1, %v25859_v61  ;;  %v25338_v14 = vadd.f32 %v25337_v16, %v25242_v28  ;;  %v25444_v59 = vadd.f32 %v28517_v5, %v25345_v19  ;;  %v35820_v5 = vld [vmem:[#allocation28_spill] sm:$0xff] }
 0x924   :  { %v24989_v21 = vadd.f32 %v34545_v42, %v24898_v38  ;;  %v24910_v16 = vadd.f32 %v34541_v24, %v24813_v8  ;;  %v25011_v31 = vadd.f32 %v24995_v45, %v35820_v5  ;;  %v35827_v39 = vld [vmem:[#allocation89_spill] sm:$0xff] }
 0x925   :  { %v28557_v4 = vpop.f32.mrf.mxu1  ;;  %v25947_v33 = vadd.f32 %v25946_v43, %v25853_v35  ;;  %v25436_v41 = vadd.f32 %v25435_v12, %v25338_v14  ;;  %v25007_v43 = vadd.f32 %v35821_v3, %v24916_v62 }
 0x926   :  { %v28567_v15 = vpop.f32.mrf.mxu0  ;;  %v25871_v48 = vadd.f32 %v28557_v4, %v28547_v20  ;;  %v25521_v20 = vadd.f32 %v34551_v49, %v25420_v9  ;;  %v25618_v4 = vadd.f32 %v28534_v26, %v25527_v52  ;;  %v25010_v49 = vadd.f32 %v24989_v21, %v35824_v0  ;;  %v35825_v26 = vld [vmem:[#allocation133_spill] sm:$0xff]  ;;  %v35831_v9 = vld [vmem:[#allocation64_spill] sm:$0xff] }
 0x927   :  { %v25864_v57 = vpop.f32.mrf.mxu1  ;;  %v25001_v6 = vadd.f32 %v35825_v26, %v24910_v16  ;;  %v25533_v2 = vadd.f32 %v35826_v58, %v25436_v41  ;;  %v25013_v60 = vadd.f32 %v25007_v43, %v35828_v30  ;;  %v35838_v26 = vld [vmem:[#allocation72_spill] sm:$0xff]  ;;  %v35845_v30 = vld [vmem:[#allocation111_spill] sm:$0xff] }
 0x928   :  { %v25960_v46 = vpop.f32.mrf.mxu0  ;;  %v25865_v10 = vadd.f32 %v25864_v57, %v25761_v36  ;;  %v25968_v53 = vadd.f32 %v28567_v15, %v25871_v48  ;;  %v35822_v36 = vld [vmem:[#allocation112_spill] sm:$0xff]  ;;  %v25612_v18 = vadd.f32 %v35823_v32, %v25521_v20  ;;  %v25634_v29 = vadd.f32 %v25618_v4, %v25011_v31  ;;  %v35834_v4 = vld [vmem:[#allocation41_spill] sm:$0xff] }
 0x929   :  { %v28574_v27 = vpop.f32.mrf.mxu1  ;;  %v25539_v35 = vadd.f32 %v35822_v36, %v25444_v59  ;;  %v35829_v15 = vld [vmem:[#allocation104_spill] sm:$0xff]  ;;  %v25012_v40 = vadd.f32 %v25001_v6, %v35830_v23  ;;  %v35832_v59 = vld [vmem:[#allocation35_spill] sm:$0xff]  ;;  %v35835_v36 = vld [vmem:[#allocation42_spill] sm:$0xff] }
 0x92a   :  { %v28584_v13 = vpop.f32.mrf.mxu0  ;;  %v26051_v25 = vadd.f32 %v28574_v27, %v25954_v22  ;;  %v25961_v11 = vadd.f32 %v25960_v46, %v25865_v10  ;;  %v25624_v34 = vadd.f32 %v35829_v15, %v25533_v2  ;;  %v25633_v7 = vadd.f32 %v25612_v18, %v25010_v49  ;;  %v35839_v2 = vld [vmem:[#allocation115_spill] sm:$0xff]  ;;  %v35847_v15 = vld [vmem:[#allocation29_spill] sm:$0xff]  ;;  %v35855_v23 = vld [vmem:[#allocation22_spill] sm:$0xff] }
 0x92b   :  { %v26042_v47 = vpop.f32.mrf.mxu1  ;;  %v25630_v44 = vadd.f32 %v35827_v39, %v25539_v35  ;;  %v35840_v39 = vld [vmem:[#allocation108_spill] sm:$0xff] }
 0x92c   :  { %v26143_v54 = vpop.f32.mrf.mxu0  ;;  %v26043_v51 = vadd.f32 %v26042_v47, %v25947_v33  ;;  %v26150_v12 = vadd.f32 %v28584_v13, %v26051_v25  ;;  %v25635_v8 = vadd.f32 %v25624_v34, %v25012_v40  ;;  %v35848_v34 = vld [vmem:[#allocation51_spill] sm:$0xff] }
 0x92d   :  { %v28577_v1 = vpop.f32.mrf.mxu1  ;;  %v25636_v19 = vadd.f32 %v25630_v44, %v25013_v60  ;;  %v35846_v60 = vld [vmem:[#allocation78_spill] sm:$0xff]  ;;  %v35856_v40 = vld [vmem:[#allocation87_spill] sm:$0xff] }
 0x92e   :  { %v28587_v56 = vpop.f32.mrf.mxu0  ;;  %v26067_v55 = vadd.f32 %v28577_v1, %v25968_v53  ;;  %v26144_v42 = vadd.f32 %v26143_v54, %v26043_v51  ;;  %v35833_v54 = vld [vmem:[#allocation31_spill] sm:$0xff] }
 0x92f   :  { %v26058_v17 = vpop.f32.mrf.mxu1 }
 0x930   :  { %v26059_v63 = vadd.f32 %v26058_v17, %v25961_v11  ;;  %v26155_v28 = vpop.f32.mrf.mxu0  ;;  %v26162_v50 = vadd.f32 %v28587_v56, %v26067_v55  ;;  %v35836_v56 = vld [vmem:[#allocation113_spill] sm:$0xff] }
 0x931   :  { %v28594_v24 = vpop.f32.mrf.mxu1 }
 0x932   :  { %v26241_v61 = vadd.f32 %v28594_v24, %v26150_v12  ;;  %v26156_v38 = vadd.f32 %v26155_v28, %v26059_v63  ;;  %v35837_v12 = vld [vmem:[#allocation65_spill] sm:$0xff]  ;;  %v35841_v24 = vld [vmem:[#allocation18_spill] sm:$0xff] }
 0x933   :  { %v26234_v57 = vpop.f32.mrf.mxu1  ;;  %v35843_v63 = vld [vmem:[#allocation130_spill] sm:$0xff] }
 0x934   :  { %v26257_v46 = vadd.f32 %v26241_v61, %v25634_v29  ;;  %v26235_v37 = vadd.f32 %v26234_v57, %v26144_v42  ;;  %v35842_v29 = vld [vmem:[#allocation57_spill] sm:$0xff]  ;;  %v35849_v28 = vld [vmem:[#allocation50_spill] sm:$0xff] }
 0x935   :  { %v28597_v27 = vpop.f32.mrf.mxu1  ;;  %v35844_v61 = vld [vmem:[#allocation117_spill] sm:$0xff] }
 0x936   :  { %v26285_v22 = vadd.f32 %v35831_v9, %v26257_v46  ;;  %v26256_v48 = vadd.f32 %v26235_v37, %v25633_v7  ;;  %v26253_v13 = vadd.f32 %v28597_v27, %v26162_v50  ;;  %v35850_v57 = vld [vmem:[#allocation85_spill] sm:$0xff]  ;;  %v35852_v50 = vld [vmem:[#allocation118_spill] sm:$0xff] }
 0x937   :  { %v26246_v45 = vpop.f32.mrf.mxu1  ;;  %v35851_v7 = vld [vmem:[#allocation73_spill] sm:$0xff]  ;;  %v35853_v46 = vld [vmem:[#allocation134_spill] sm:$0xff] }
 0x938   :  { %v26289_v14 = vmax.f32 %v26285_v22, 0.0  ;;  %v26284_v47 = vadd.f32 %v35832_v59, %v26256_v48  ;;  %v26259_v52 = vadd.f32 %v26253_v13, %v25636_v19  ;;  %v26247_v33 = vadd.f32 %v26246_v45, %v26156_v38  ;;  %v35854_v37 = vld [vmem:[#allocation122_spill] sm:$0xff]  ;;  %v35857_v19 = vld [vmem:[#allocation121_spill] sm:$0xff]  ;;  %v35859_v38 = vld [vmem:[#allocation120_spill] sm:$0xff] }
 0x939   :  { %v35858_v27 = vld [vmem:[#allocation74_spill] sm:$0xff]  ;;  %v35860_v9 = vld [vmem:[#allocation129_spill] sm:$0xff]  ;;  %v35861_v22 = vld [vmem:[#allocation123_spill] sm:$0xff] }
 0x93a   :  { %v34589_v10 = vand.u32 4294901760, %v26289_v14  ;;  %v26288_v25 = vmax.f32 %v26284_v47, 0.0  ;;  %v26287_v62 = vadd.f32 %v35833_v54, %v26259_v52  ;;  %v26258_v21 = vadd.f32 %v26247_v33, %v25635_v8  ;;  %v35862_v48 = vld [vmem:[#allocation132_spill] sm:$0xff]  ;;  %v35864_v8 = vld [vmem:[#allocation75_spill] sm:$0xff]  ;;  %v35867_v59 = vld [vmem:[#allocation25_spill] sm:$0xff] }
 0x93b   :  { %v35863_v13 = vld [vmem:[#allocation88_spill] sm:$0xff]  ;;  %v35868_v47 = vld [vmem:[#allocation126_spill] sm:$0xff]  ;;  %v35869_v52 = vld [vmem:[#allocation77_spill] sm:$0xff] }
 0x93c   :  { %v34593_v41 = vsub.f32 %v26289_v14, %v34589_v10  ;;  %v34595_v1 = vand.u32 4294901760, %v26288_v25  ;;  %v26291_v20 = vmax.f32 %v26287_v62, 0.0  ;;  %v26286_v53 = vadd.f32 %v35834_v4, %v26258_v21  ;;  %v35865_v45 = vld [vmem:[#allocation80_spill] sm:$0xff]  ;;  %v35866_v14 = vld [vmem:[#allocation95_spill] sm:$0xff]  ;;  %v35870_v33 = vld [vmem:[#allocation114_spill] sm:$0xff] }
 0x93d   :  { %v35872_v54 = vld [vmem:[#allocation107_spill] sm:$0xff]  ;;  %v35873_v62 = vld [vmem:[#allocation116_spill] sm:$0xff]  ;;  %v35878_v4 = vld [vmem:[#allocation69_spill] sm:$0xff] }
 0x93e   :  { %v26401_v51 = vand.u32 4294901760, %v34593_v41  ;;  %v26390_v16 = vsub.f32 %v26288_v25, %v34595_v1  ;;  %v34600_v5 = vand.u32 4294901760, %v26291_v20  ;;  %v26290_v31 = vmax.f32 %v26286_v53, 0.0  ;;  %28668 = vmatprep.mubr.f32.mxu1 %v34595_v1  ;;  %v35871_v25 = vld [vmem:[#allocation131_spill] sm:$0xff]  ;;  %v35879_v53 = vld [vmem:[#allocation92_spill] sm:$0xff] }
 0x93f   :  { %28669 = vmatmul.mubr.f32.vlgmr.msra.gmra.mxu1 %v34589_v10  ;;  %v35874_v21 = vld [vmem:[#allocation119_spill] sm:$0xff] }
 0x940   :  { %v34605_v3 = vsub.f32 %v26291_v20, %v34600_v5  ;;  %v34607_v43 = vand.u32 4294901760, %v26290_v31  ;;  %28713 = vmatpush3.msra.mxu1 %v35835_v36  ;;  %v26391_v35 = vand.u32 4294901760, %v26390_v16  ;;  %v26402_v17 = vsub.f32 %v34593_v41, %v26401_v51  ;;  %v35877_v20 = vld [vmem:[#allocation68_spill] sm:$0xff] }
 0x941   :  { %28714 = vmatprep.subr.mxu1 %v35836_v56 }
 0x942   :  { %v34615_v32 = vsub.f32 %v26290_v31, %v34607_v43  ;;  %28715 = vmatpush3.msra.mxu1 %v35836_v56  ;;  %28671 = vmatprep.mubr.f32.mxu1 %v34607_v43  ;;  %v26392_v18 = vsub.f32 %v26390_v16, %v26391_v35  ;;  %v26421_v11 = vand.u32 4294901760, %v34605_v3  ;;  %v26403_v49 = vand.u32 4294901760, %v26402_v17  ;;  %v35882_v31 = vld [vmem:[#allocation109_spill] sm:$0xff] }
 0x943   :  { %28716 = vmatprep.subr.mxu1 %v35837_v12  ;;  %28672 = vmatmul.mubr.f32.gmra.mxu1 %v34600_v5 }
 0x944   :  { %28717 = vmatpush3.msra.mxu1 %v35837_v12  ;;  %28744 = vmatprep.mubr.f32.mxu1 %v26391_v35  ;;  %v26393_v55 = vand.u32 4294901760, %v26392_v18  ;;  %v26411_v0 = vand.u32 4294901760, %v34615_v32  ;;  %v26422_v58 = vsub.f32 %v34605_v3, %v26421_v11 }
 0x945   :  { %28718 = vmatprep.subr.mxu1 %v35838_v26 }
 0x946   :  { %28719 = vmatpush3.msra.mxu1 %v35838_v26  ;;  %28630 = vmatprep.mubr.f32.mxu0 %v26393_v55  ;;  %v26412_v6 = vsub.f32 %v34615_v32, %v26411_v0  ;;  %v26423_v42 = vand.u32 4294901760, %v26422_v58 }
 0x947   :  { %28720 = vmatprep.subr.mxu1 %v35839_v2  ;;  %28631 = vmatmul.mubr.f32.vlgmr.msra.gmra.mxu0 %v26403_v49 }
 0x948   :  { %28675 = vmatpush3.msra.mxu0 %v35840_v39  ;;  %28721 = vmatpush3.msra.mxu1 %v35839_v2  ;;  %v26413_v44 = vand.u32 4294901760, %v26412_v6 }
 0x949   :  { %28676 = vmatprep.subr.mxu0 %v35841_v24  ;;  %28722 = vmatprep.subr.mxu1 %v35842_v29 }
 0x94a   :  { %28677 = vmatpush3.msra.mxu0 %v35841_v24  ;;  %28723 = vmatpush3.msra.mxu1 %v35842_v29 }
 0x94b   :  { %28633 = vmatprep.mubr.f32.mxu0 %v26413_v44  ;;  %28678 = vmatprep.subr.mxu0 %v35843_v63 }
 0x94c   :  { %28724 = vmatprep.subr.mxu1 %v35844_v61  ;;  %28634 = vmatmul.mubr.f32.gmra.mxu0 %v26423_v42 }
 0x94d   :  { %28679 = vmatpush3.msra.mxu0 %v35843_v63  ;;  %28725 = vmatpush3.msra.mxu1 %v35844_v61 }
 0x94e   :  { %28680 = vmatprep.subr.mxu0 %v35845_v30  ;;  %28706 = vmatprep.mubr.f32.mxu0 %v26390_v16  ;;  %v35881_v16 = vld [vmem:[#allocation82_spill] sm:$0xff] }
 0x94f   :  { %28726 = vmatprep.subr.mxu1 %v35846_v60  ;;  %28681 = vmatpush3.msra.mxu0 %v35845_v30 }
 0x950   :  { %28727 = vmatpush3.msra.mxu1 %v35846_v60  ;;  %28682 = vmatprep.subr.mxu0 %v35847_v15 }
 0x951   :  { %28728 = vmatprep.subr.mxu1 %v35848_v34  ;;  %28683 = vmatpush3.msra.mxu0 %v35847_v15 }
 0x952   :  { %28729 = vmatpush3.msra.mxu1 %v35848_v34  ;;  %28684 = vmatprep.subr.mxu0 %v35849_v28 }
 0x953   :  { %28730 = vmatprep.subr.mxu1 %v35850_v57  ;;  %28685 = vmatpush3.msra.mxu0 %v35849_v28 }
 0x954   :  { %28731 = vmatpush3.msra.mxu1 %v35850_v57  ;;  %28686 = vmatprep.subr.mxu0 %v35851_v7 }
 0x955   :  { %28732 = vmatprep.subr.mxu1 %v35852_v50  ;;  %28687 = vmatpush3.msra.mxu0 %v35851_v7 }
 0x956   :  { %28733 = vmatpush3.msra.mxu1 %v35852_v50  ;;  %28688 = vmatprep.subr.mxu0 %v35853_v46 }
 0x957   :  { %28734 = vmatprep.subr.mxu1 %v35854_v37  ;;  %28689 = vmatpush3.msra.mxu0 %v35853_v46 }
 0x958   :  { %28735 = vmatpush3.msra.mxu1 %v35854_v37  ;;  %28690 = vmatprep.subr.mxu0 %v35855_v23 }
 0x959   :  { %28736 = vmatprep.subr.mxu1 %v35856_v40  ;;  %28691 = vmatpush3.msra.mxu0 %v35855_v23 }
 0x95a   :  { %28737 = vmatpush3.msra.mxu1 %v35856_v40  ;;  %28692 = vmatprep.subr.mxu0 %v35857_v19 }
 0x95b   :  { %28738 = vmatprep.subr.mxu1 %v35858_v27  ;;  %28693 = vmatpush3.msra.mxu0 %v35857_v19 }
 0x95c   :  { %28739 = vmatpush3.msra.mxu1 %v35858_v27  ;;  %28694 = vmatprep.subr.mxu0 %v35859_v38 }
 0x95d   :  { %28740 = vmatprep.subr.mxu1 %v35860_v9  ;;  %28695 = vmatpush3.msra.mxu0 %v35859_v38 }
 0x95e   :  { %28741 = vmatpush3.msra.mxu1 %v35860_v9  ;;  %28696 = vmatprep.subr.mxu0 %v35861_v22 }
 0x95f   :  { %28742 = vmatprep.subr.mxu1 %v35862_v48  ;;  %28697 = vmatpush3.msra.mxu0 %v35861_v22 }
 0x960   :  { %28743 = vmatpush3.msra.mxu1 %v35862_v48  ;;  %28698 = vmatprep.subr.mxu0 %v35863_v13 }
 0x961   :  { %28745 = vmatmul.mubr.f32.vlgmr.msra.gmra.mxu1 %v26401_v51  ;;  %28788 = vmatprep.subr.mxu1 %v35835_v36  ;;  %v35880_v51 = vld [vmem:[#allocation93_spill] sm:$0xff] }
 0x962   :  { %28699 = vmatpush3.msra.mxu0 %v35863_v13  ;;  %28747 = vmatprep.mubr.f32.mxu1 %v26411_v0 }
 0x963   :  { %28789 = vmatpush3.msra.mxu1 %v35835_v36  ;;  %28700 = vmatprep.subr.mxu0 %v35864_v8 }
 0x964   :  { %28790 = vmatprep.subr.mxu1 %v35836_v56  ;;  %28701 = vmatpush3.msra.mxu0 %v35864_v8 }
 0x965   :  { %28791 = vmatpush3.msra.mxu1 %v35836_v56  ;;  %28702 = vmatprep.subr.mxu0 %v35865_v45 }
 0x966   :  { %28748 = vmatmul.mubr.f32.gmra.mxu1 %v26421_v11  ;;  %28792 = vmatprep.subr.mxu1 %v35837_v12 }
 0x967   :  { %28703 = vmatpush3.msra.mxu0 %v35865_v45  ;;  %28793 = vmatpush3.msra.mxu1 %v35837_v12 }
 0x968   :  { %28820 = vmatprep.mubr.f32.mxu1 %v34595_v1  ;;  %28704 = vmatprep.subr.mxu0 %v35866_v14 }
 0x969   :  { %28794 = vmatprep.subr.mxu1 %v35838_v26  ;;  %28705 = vmatpush3.msra.mxu0 %v35866_v14 }
 0x96a   :  { %28795 = vmatpush3.msra.mxu1 %v35838_v26  ;;  %28707 = vmatmul.mubr.f32.vlgmr.msra.gmra.mxu0 %v34593_v41  ;;  %v35875_v41 = vld [vmem:[#allocation91_spill] sm:$0xff] }
 0x96b   :  { %28750 = vmatprep.subr.mxu0 %v35867_v59  ;;  %28796 = vmatprep.subr.mxu1 %v35839_v2 }
 0x96c   :  { %28709 = vmatprep.mubr.f32.mxu0 %v34615_v32  ;;  %28751 = vmatpush3.msra.mxu0 %v35867_v59 }
 0x96d   :  { %28797 = vmatpush3.msra.mxu1 %v35839_v2  ;;  %28752 = vmatprep.subr.mxu0 %v35868_v47 }
 0x96e   :  { %28798 = vmatprep.subr.mxu1 %v35842_v29  ;;  %28753 = vmatpush3.msra.mxu0 %v35868_v47 }
 0x96f   :  { %28799 = vmatpush3.msra.mxu1 %v35842_v29  ;;  %28710 = vmatmul.mubr.f32.gmra.mxu0 %v34605_v3 }
 0x970   :  { %28754 = vmatprep.subr.mxu0 %v35869_v52  ;;  %28800 = vmatprep.subr.mxu1 %v35844_v61 }
 0x971   :  { %28755 = vmatpush3.msra.mxu0 %v35869_v52  ;;  %28782 = vmatprep.mubr.f32.mxu0 %v34595_v1  ;;  %v35876_v1 = vld [vmem:[#allocation83_spill] sm:$0xff] }
 0x972   :  { %28801 = vmatpush3.msra.mxu1 %v35844_v61  ;;  %28756 = vmatprep.subr.mxu0 %v35870_v33 }
 0x973   :  { %28802 = vmatprep.subr.mxu1 %v35846_v60  ;;  %28757 = vmatpush3.msra.mxu0 %v35870_v33 }
 0x974   :  { %28803 = vmatpush3.msra.mxu1 %v35846_v60  ;;  %28758 = vmatprep.subr.mxu0 %v35871_v25 }
 0x975   :  { %28804 = vmatprep.subr.mxu1 %v35848_v34  ;;  %28759 = vmatpush3.msra.mxu0 %v35871_v25 }
 0x976   :  { %28805 = vmatpush3.msra.mxu1 %v35848_v34  ;;  %28760 = vmatprep.subr.mxu0 %v35872_v54 }
 0x977   :  { %28806 = vmatprep.subr.mxu1 %v35850_v57  ;;  %28761 = vmatpush3.msra.mxu0 %v35872_v54 }
 0x978   :  { %28807 = vmatpush3.msra.mxu1 %v35850_v57  ;;  %28762 = vmatprep.subr.mxu0 %v35873_v62 }
 0x979   :  { %28808 = vmatprep.subr.mxu1 %v35852_v50  ;;  %28763 = vmatpush3.msra.mxu0 %v35873_v62 }
 0x97a   :  { %28809 = vmatpush3.msra.mxu1 %v35852_v50  ;;  %28764 = vmatprep.subr.mxu0 %v35874_v21 }
 0x97b   :  { %28810 = vmatprep.subr.mxu1 %v35854_v37  ;;  %28765 = vmatpush3.msra.mxu0 %v35874_v21 }
 0x97c   :  { %28811 = vmatpush3.msra.mxu1 %v35854_v37  ;;  %28766 = vmatprep.subr.mxu0 %v35875_v41 }
 0x97d   :  { %28812 = vmatprep.subr.mxu1 %v35856_v40  ;;  %28767 = vmatpush3.msra.mxu0 %v35875_v41 }
 0x97e   :  { %28813 = vmatpush3.msra.mxu1 %v35856_v40  ;;  %28768 = vmatprep.subr.mxu0 %v35876_v1 }
 0x97f   :  { %28814 = vmatprep.subr.mxu1 %v35858_v27  ;;  %28769 = vmatpush3.msra.mxu0 %v35876_v1 }
 0x980   :  { %28815 = vmatpush3.msra.mxu1 %v35858_v27  ;;  %28770 = vmatprep.subr.mxu0 %v35877_v20 }
 0x981   :  { %28816 = vmatprep.subr.mxu1 %v35860_v9  ;;  %28771 = vmatpush3.msra.mxu0 %v35877_v20 }
 0x982   :  { %28817 = vmatpush3.msra.mxu1 %v35860_v9  ;;  %28772 = vmatprep.subr.mxu0 %v35878_v4 }
 0x983   :  { %28818 = vmatprep.subr.mxu1 %v35862_v48  ;;  %28773 = vmatpush3.msra.mxu0 %v35878_v4 }
 0x984   :  { %28819 = vmatpush3.msra.mxu1 %v35862_v48  ;;  %28774 = vmatprep.subr.mxu0 %v35879_v53 }
 0x985   :  { %28821 = vmatmul.mubr.f32.vlgmr.msra.gmra.mxu1 %v34589_v10  ;;  %28775 = vmatpush3.msra.mxu0 %v35879_v53 }
 0x986   :  { %28823 = vmatprep.mubr.f32.mxu1 %v34607_v43  ;;  %28776 = vmatprep.subr.mxu0 %v35880_v51 }
 0x987   :  { %28777 = vmatpush3.msra.mxu0 %v35880_v51 }
 0x988   :  { %28778 = vmatprep.subr.mxu0 %v35881_v16 }
 0x989   :  { %28824 = vmatmul.mubr.f32.gmra.mxu1 %v34600_v5  ;;  %28779 = vmatpush3.msra.mxu0 %v35881_v16 }
 0x98a   :  { %28780 = vmatprep.subr.mxu0 %v35882_v31 }
 0x98b   :  { %28781 = vmatpush3.msra.mxu0 %v35882_v31 }
 0x98c   :  { %28783 = vmatmul.mubr.f32.vlgmr.msra.gmra.mxu0 %v34589_v10 }
 0x98d   :  { %28785 = vmatprep.mubr.f32.mxu0 %v34607_v43 }
 0x990   :  { %28786 = vmatmul.mubr.f32.gmra.mxu0 %v34600_v5 }
 0x9ff   :  { %v28670_v3 = vpop.f32.mrf.mxu1 }
 0xa01   :  { %v26576_v36 = vpop.f32.mrf.mxu1 }
 0xa03   :  { %v28673_v17 = vpop.f32.mrf.mxu1 }
 0xa05   :  { %v26588_v32 = vpop.f32.mrf.mxu1 }
 0xa07   :  { %v28632_v35 = vpop.f32.mrf.mxu0 }
 0xa08   :  { %v26583_v6 = vadd.f32 %v28670_v3, %v28632_v35 }
 0xa09   :  { %v26395_v56 = vpop.f32.mrf.mxu0 }
 0xa0a   :  { %v26577_v2 = vadd.f32 %v26576_v36, %v26395_v56 }
 0xa0c   :  { %v28635_v18 = vpop.f32.mrf.mxu0 }
 0xa0d   :  { %v26595_v5 = vadd.f32 %v28673_v17, %v28635_v18 }
 0xa0e   :  { %v26415_v12 = vpop.f32.mrf.mxu0 }
 0xa0f   :  { %v26589_v29 = vadd.f32 %v26588_v32, %v26415_v12 }
 0xa21   :  { %v28746_v11 = vpop.f32.mrf.mxu1 }
 0xa23   :  { %v26808_v55 = vpop.f32.mrf.mxu1 }
 0xa26   :  { %v28749_v49 = vpop.f32.mrf.mxu1 }
 0xa28   :  { %v26824_v58 = vpop.f32.mrf.mxu1 }
 0xa2a   :  { %v28708_v0 = vpop.f32.mrf.mxu0 }
 0xa2b   :  { %v26706_v43 = vadd.f32 %v28708_v0, %v26583_v6 }
 0xa2c   :  { %v26698_v26 = vpop.f32.mrf.mxu0 }
 0xa2d   :  { %v26699_v44 = vadd.f32 %v26698_v26, %v26577_v2  ;;  %v26817_v63 = vadd.f32 %v28746_v11, %v26706_v43 }
 0xa2f   :  { %v28711_v10 = vpop.f32.mrf.mxu0  ;;  %v26809_v34 = vadd.f32 %v26808_v55, %v26699_v44 }
 0xa30   :  { %v26720_v42 = vadd.f32 %v28711_v10, %v26595_v5 }
 0xa31   :  { %v26712_v24 = vpop.f32.mrf.mxu0 }
 0xa32   :  { %v26713_v60 = vadd.f32 %v26712_v24, %v26589_v29  ;;  %v26833_v50 = vadd.f32 %v28749_v49, %v26720_v42 }
 0xa34   :  { %v26825_v19 = vadd.f32 %v26824_v58, %v26713_v60 }
 0xa45   :  { %v28822_v39 = vpop.f32.mrf.mxu1 }
 0xa47   :  { %v27056_v61 = vpop.f32.mrf.mxu1 }
 0xa49   :  { %v28825_v46 = vpop.f32.mrf.mxu1 }
 0xa4b   :  { %v27068_v22 = vpop.f32.mrf.mxu1 }
 0xa4c   :  { %v28784_v30 = vpop.f32.mrf.mxu0 }
 0xa4d   :  { %v26958_v15 = vadd.f32 %v28784_v30, %v26817_v63 }
 0xa4e   :  { %v26951_v28 = vpop.f32.mrf.mxu0 }
 0xa4f   :  { %v27063_v57 = vadd.f32 %v28822_v39, %v26958_v15  ;;  %v26952_v7 = vadd.f32 %v26951_v28, %v26809_v34 }
 0xa50   :  { %v28787_v37 = vpop.f32.mrf.mxu0 }
 0xa51   :  { %27079 = vst.msk [vmem:[%s34818_s14 + $0x8] sm:$0xff] %vm20712_vm11, %v27063_v57  ;;  %v27057_v23 = vadd.f32 %v27056_v61, %v26952_v7  ;;  %v26970_v40 = vadd.f32 %v28787_v37, %v26833_v50  ;;  %27088 = vrot.lane.b32.xlu1 %v27063_v57, %s29023_s25 }
 0xa52   :  { %v26963_v27 = vpop.f32.mrf.mxu0 }
 0xa53   :  { %27078 = vst.msk [vmem:[%s34818_s14] sm:$0xff] %vm20712_vm11, %v27057_v23  ;;  %v27075_v38 = vadd.f32 %v28825_v46, %v26970_v40  ;;  %v26964_v9 = vadd.f32 %v26963_v27, %v26825_v19  ;;  %27086 = vrot.lane.b32.xlu0 %v27057_v23, %s29023_s25 }
 0xa55   :  { %27081 = vst.msk [vmem:[%s34818_s14 + $0x18] sm:$0xff] %vm20712_vm11, %v27075_v38  ;;  %v27069_v48 = vadd.f32 %v27068_v22, %v26964_v9  ;;  %27092 = vrot.lane.b32.xlu1 %v27075_v38, %s29023_s25 }
 0xa57   :  { %27080 = vst.msk [vmem:[%s34818_s14 + $0x10] sm:$0xff] %vm20712_vm11, %v27069_v48  ;;  %27090 = vrot.lane.b32.xlu0 %v27069_v48, %s29023_s25 }
 0xac3   :  { %v27089_v13 = vpop.permute.xlu1 %27088 }
 0xac4   :  { %27155 = vst.msk [vmem:[%s34818_s14 + $0x28] sm:$0xff] %vm20712_vm11, %v27089_v13 }
 0xac5   :  { %v27087_v8 = vpop.permute.xlu0 %27086 }
 0xac6   :  { %27154 = vst.msk [vmem:[%s34818_s14 + $0x20] sm:$0xff] %vm20712_vm11, %v27087_v8 }
 0xac7   :  { %v27093_v45 = vpop.permute.xlu1 %27092 }
 0xac8   :  { %27157 = vst.msk [vmem:[%s34818_s14 + $0x38] sm:$0xff] %vm20712_vm11, %v27093_v45 }
 0xac9   :  { %v27091_v14 = vpop.permute.xlu0 %27090 }
 0xaca   :  { %27156 = vst.msk [vmem:[%s34818_s14 + $0x30] sm:$0xff] %vm20712_vm11, %v27091_v14 }
 0xacb   :  { %27115 = vsyncpa [#allocation3], 1 }
 0xacc   :  { %27116 = vsyncpa [#allocation5], 1 }
 0xacd   :  { %27117 = vsyncpa [#allocation8], 1 }
 0xace   :  { %27118 = vsyncpa [#allocation11], 1 }

</bundles_post_ra>
